<compile_context>
chip_gen: v7x
topology: tpu7x:2x2x1
jax: 0.10.0
libtpu: 0.0.40
codegen_flags: <defaults>
</compile_context>

<pallas_src>
import functools

import jax
import jax.numpy as jnp
from jax.experimental import pallas as pl
from jax.experimental.pallas import tpu as pltpu


LANE = 128  # lane-dense width for the padded im2col K dimension


# ----------------------------------------------------------------------------
# Pallas kernel: fused  (x @ w) + b  [+ ReLU]   (conv-as-matmul)
# ----------------------------------------------------------------------------
def _matmul_bias_kernel(x_ref, w_ref, b_ref, o_ref, *, apply_relu):
    acc = jnp.dot(x_ref[...], w_ref[...], preferred_element_type=jnp.float32)
    acc = acc + b_ref[...]                       # (tm, N) + (1, N) broadcast
    if apply_relu:
        acc = jnp.maximum(acc, 0.0)
    o_ref[...] = acc.astype(o_ref.dtype)


def conv_matmul(x, w, b, *, apply_relu, num_tiles=2):
    """y = relu?(x @ w + b).  x: (M, K=128), w: (K, N), b: (N,).

    M is split into `num_tiles` large tiles: big tiles amortize the ~0.35us
    per-grid-step overhead, and >=2 parallel steps keep both v7x TensorCores
    busy.  On v5e/v6e the 2 steps simply run back-to-back.
    """
    M, K = x.shape
    K2, N = w.shape
    assert K == K2, (K, K2)

    tm = -(-M // num_tiles)             # ceil
    tm = ((tm + 7) // 8) * 8            # f32 sublane multiple
    M_pad = tm * num_tiles
    if M_pad != M:
        x = jnp.pad(x, ((0, M_pad - M), (0, 0)))

    b2 = b.reshape(1, N)
    kernel = functools.partial(_matmul_bias_kernel, apply_relu=apply_relu)

    out = pl.pallas_call(
        kernel,
        out_shape=jax.ShapeDtypeStruct((M_pad, N), jnp.float32),
        grid_spec=pltpu.PrefetchScalarGridSpec(
            num_scalar_prefetch=0,
            grid=(num_tiles,),
            in_specs=[
                pl.BlockSpec((tm, K), lambda i: (i, 0)),   # big activation tile
                pl.BlockSpec((K, N), lambda i: (0, 0)),    # weights (resident)
                pl.BlockSpec((1, N), lambda i: (0, 0)),    # bias
            ],
            out_specs=pl.BlockSpec((tm, N), lambda i: (i, 0)),
        ),
        compiler_params=pltpu.CompilerParams(
            dimension_semantics=("parallel",),
        ),
    )(x, w, b2)
    return out[:M]


# ----------------------------------------------------------------------------
# Pallas kernel: fused FC head   v = relu(x @ W1 + b1) @ W2 + b2
# ----------------------------------------------------------------------------
def _fc_head_kernel(x_ref, w1_ref, b1_ref, w2_ref, b2_ref, o_ref):
    x = x_ref[...].astype(jnp.bfloat16)                    # bf16 MXU path
    h = jnp.dot(x, w1_ref[...], preferred_element_type=jnp.float32)
    h = jnp.maximum(h + b1_ref[...], 0.0)                  # (B_pad, 256) f32
    v = jnp.dot(h, w2_ref[...], preferred_element_type=jnp.float32)
    o_ref[...] = (v + b2_ref[...]).astype(o_ref.dtype)


def fc_head(x, w1, b1, w2, b2):
    """x: (B, 7744) f32, w1: (7744, 256) bf16, w2: (256, 5) f32 -> (B, 5) f32."""
    B, K = x.shape
    N1 = w1.shape[1]
    K2, N2 = w2.shape
    assert K2 == N1

    B_pad = ((B + 15) // 16) * 16      # bf16-friendly sublane multiple
    if B_pad != B:
        x = jnp.pad(x, ((0, B_pad - B), (0, 0)))

    out = pl.pallas_call(
        _fc_head_kernel,
        out_shape=jax.ShapeDtypeStruct((B_pad, N2), jnp.float32),
        grid_spec=pltpu.PrefetchScalarGridSpec(
            num_scalar_prefetch=0,
            grid=(1,),
            in_specs=[
                pl.BlockSpec((B_pad, K), lambda i: (0, 0)),   # activations
                pl.BlockSpec((K, N1), lambda i: (0, 0)),      # fc1 weights (bf16)
                pl.BlockSpec((1, N1), lambda i: (0, 0)),      # fc1 bias
                pl.BlockSpec((N1, N2), lambda i: (0, 0)),     # fc2 weights
                pl.BlockSpec((1, N2), lambda i: (0, 0)),      # fc2 bias
            ],
            out_specs=pl.BlockSpec((B_pad, N2), lambda i: (0, 0)),
        ),
        compiler_params=pltpu.CompilerParams(
            dimension_semantics=("arbitrary",),
        ),
    )(x, w1, b1.reshape(1, N1), w2, b2.reshape(1, N2))
    return out[:B]


# ----------------------------------------------------------------------------
# im2col (pure indexing glue, stays in plain JAX), K padded to 128
# ----------------------------------------------------------------------------
def im2col(x_nhwc, k, stride, k_pad=LANE):
    B, H, W, C = x_nhwc.shape
    Ho = (H - k) // stride + 1
    Wo = (W - k) // stride + 1
    patches = []
    for ky in range(k):
        for kx in range(k):
            patches.append(
                x_nhwc[:, ky:ky + stride * Ho:stride, kx:kx + stride * Wo:stride, :]
            )
    p = jnp.stack(patches, axis=3)                 # (B, Ho, Wo, k*k, C)
    p = p.reshape(B * Ho * Wo, k * k * C)          # (M, k*k*C), order (ky, kx, C)
    if k_pad > k * k * C:                          # lane-dense activation stream
        p = jnp.pad(p, ((0, 0), (0, k_pad - k * k * C)))
    return p, (B, Ho, Wo)


# ----------------------------------------------------------------------------
# One-time parameter preparation (done ONCE, outside the per-step forward):
#   - conv weights reshaped to matmul (K, N) layout, K zero-padded to 128
#   - fc weights pre-transposed to (K, N); fc_v1 weight stored in bfloat16
# ----------------------------------------------------------------------------
def prepare_params(raw):
    w1 = jnp.transpose(raw["conv1_w"], (2, 3, 1, 0)).reshape(5 * 5 * 3, 8)
    w1 = jnp.pad(w1, ((0, LANE - 5 * 5 * 3), (0, 0)))       # (128, 8)
    w2 = jnp.transpose(raw["conv2_w"], (2, 3, 1, 0)).reshape(3 * 3 * 8, 16)
    w2 = jnp.pad(w2, ((0, LANE - 3 * 3 * 8), (0, 0)))       # (128, 16)
    return {
        "conv1_w": w1,
        "conv1_b": raw["conv1_b"],
        "conv2_w": w2,
        "conv2_b": raw["conv2_b"],
        "fc_v1_w": raw["fc_v1_w"].T.astype(jnp.bfloat16),   # (7744, 256) bf16
        "fc_v1_b": raw["fc_v1_b"],
        "fc_v2_w": raw["fc_v2_w"].T,                        # (256, 5) f32
        "fc_v2_b": raw["fc_v2_b"],
    }


# ----------------------------------------------------------------------------
# Critic forward
# ----------------------------------------------------------------------------
def critic_forward(params, x_nchw):
    B = x_nchw.shape[0]
    x = jnp.transpose(x_nchw, (0, 2, 3, 1))                 # NCHW -> NHWC

    # conv1: 3 -> 8, k=5, stride=2, + ReLU
    p1, (_, H1, W1) = im2col(x, 5, 2)                       # (B*46*46, 128)
    y1 = conv_matmul(p1, params["conv1_w"], params["conv1_b"], apply_relu=True)
    y1 = y1.reshape(B, H1, W1, 8)

    # conv2: 8 -> 16, k=3, stride=2, + ReLU
    p2, (_, H2, W2) = im2col(y1, 3, 2)                      # (B*22*22, 128)
    y2 = conv_matmul(p2, params["conv2_w"], params["conv2_b"], apply_relu=True)
    y2 = y2.reshape(B, H2, W2, 16)

    # flatten exactly like PyTorch's x.view((B, -1)) on an NCHW tensor
    flat = jnp.transpose(y2, (0, 3, 1, 2)).reshape(B, -1)   # (B, 7744)

    # fused fc_v1 (+ReLU) and fc_v2 in a single Pallas call
    return fc_head(flat, params["fc_v1_w"], params["fc_v1_b"],
                   params["fc_v2_w"], params["fc_v2_b"])    # (B, 5)


# ----------------------------------------------------------------------------
# Deterministic parameter init (PyTorch default: U(-1/sqrt(fan_in), +1/sqrt(fan_in)))
# ----------------------------------------------------------------------------
def init_params(key):
    ks = jax.random.split(key, 8)

    def u(k, shape, fan_in):
        bound = 1.0 / float(fan_in) ** 0.5
        return jax.random.uniform(k, shape, jnp.float32, -bound, bound)

    return {
        "conv1_w": u(ks[0], (8, 3, 5, 5), 3 * 5 * 5),
        "conv1_b": u(ks[1], (8,), 3 * 5 * 5),
        "conv2_w": u(ks[2], (16, 8, 3, 3), 8 * 3 * 3),
        "conv2_b": u(ks[3], (16,), 8 * 3 * 3),
        "fc_v1_w": u(ks[4], (256, 7744), 7744),
        "fc_v1_b": u(ks[5], (256,), 7744),
        "fc_v2_w": u(ks[6], (5, 256), 256),
        "fc_v2_b": u(ks[7], (5,), 256),
    }


if __name__ == "__main__":
    key = jax.random.PRNGKey(0)
    pkey, xkey = jax.random.split(key)
    params = prepare_params(init_params(pkey))   # one-time weight prep

    # Batch=2; spatial size 96x96 is pinned by Linear(7744) = 16*22*22.
    x = jax.random.normal(xkey, (2, 3, 96, 96), jnp.float32)

    v = jax.jit(critic_forward)(params, x)
    v = jax.block_until_ready(v)
    assert v.shape == (2, 5), v.shape
    assert bool(jnp.all(jnp.isfinite(v)))
    print("KERNEL_OK")
</pallas_src>

<mosaic_0001>
module attributes {stable_mosaic.version = 11 : i64} {
  func.func @_matmul_bias_kernel(%arg0: i32, %arg1: memref<2120x128xf32, #tpu.memory_space<vmem>>, %arg2: memref<128x8xf32, #tpu.memory_space<vmem>>, %arg3: memref<1x8xf32, #tpu.memory_space<vmem>>, %arg4: memref<2120x8xf32, #tpu.memory_space<vmem>>) attributes {dimension_semantics = [#tpu.dimension_semantics<parallel>], iteration_bounds = array<i64: 2>, scalar_prefetch = 0 : i64, scratch_operands = 0 : i64, tpu.core_type = #tpu.core_type<tc>, window_params = [{transform_indices = @transform_0, window_bounds = array<i64: 2120, 128>}, {pipeline_mode = #tpu.pipeline_mode<synchronous>, transform_indices = @transform_1, window_bounds = array<i64: 128, 8>}, {pipeline_mode = #tpu.pipeline_mode<synchronous>, transform_indices = @transform_2, window_bounds = array<i64: 1, 8>}, {transform_indices = @transform_3, window_bounds = array<i64: 2120, 8>}]} {
    %c0 = arith.constant 0 : index
    %c0_0 = arith.constant 0 : index
    %0 = vector.load %arg1[%c0, %c0_0] : memref<2120x128xf32, #tpu.memory_space<vmem>>, vector<2120x128xf32>
    %c0_1 = arith.constant 0 : index
    %c0_2 = arith.constant 0 : index
    %1 = vector.load %arg2[%c0_1, %c0_2] : memref<128x8xf32, #tpu.memory_space<vmem>>, vector<128x8xf32>
    %cst = arith.constant dense<0.000000e+00> : vector<2120x8xf32>
    %2 = tpu.matmul %0, %1, %cst {dimension_numbers = #tpu.dot_dimension_numbers<[1], [0], [0], [1], [0, 0, 1, 1], [], []>} : vector<2120x128xf32>, vector<128x8xf32>, vector<2120x8xf32> -> vector<2120x8xf32>
    %c0_3 = arith.constant 0 : index
    %c0_4 = arith.constant 0 : index
    %3 = vector.load %arg3[%c0_3, %c0_4] : memref<1x8xf32, #tpu.memory_space<vmem>>, vector<1x8xf32>
    %4 = vector.broadcast %3 : vector<1x8xf32> to vector<2120x8xf32>
    %5 = arith.addf %2, %4 : vector<2120x8xf32>
    %cst_5 = arith.constant 0.000000e+00 : f32
    %6 = vector.broadcast %cst_5 : f32 to vector<2120x8xf32>
    %7 = arith.maximumf %5, %6 : vector<2120x8xf32>
    %c0_6 = arith.constant 0 : index
    %c0_7 = arith.constant 0 : index
    %8 = vector.load %arg4[%c0_6, %c0_7] : memref<2120x8xf32, #tpu.memory_space<vmem>>, vector<2120x8xf32>
    tpu.vector_store %arg4[%c0_6, %c0_7], %7 {strides = array<i32>} : memref<2120x8xf32, #tpu.memory_space<vmem>>, vector<2120x8xf32>,
    return
  }
  func.func @transform_0(%arg0: i32) -> (i32, i32) {
    %c0_i32 = arith.constant 0 : i32
    %c0_i32_0 = arith.constant 0 : i32
    return %arg0, %c0_i32 : i32, i32
  }
  func.func @transform_1(%arg0: i32) -> (i32, i32) {
    %c0_i32 = arith.constant 0 : i32
    %c0_i32_0 = arith.constant 0 : i32
    %c0_i32_1 = arith.constant 0 : i32
    return %c0_i32, %c0_i32_0 : i32, i32
  }
  func.func @transform_2(%arg0: i32) -> (i32, i32) {
    %c0_i32 = arith.constant 0 : i32
    %c0_i32_0 = arith.constant 0 : i32
    %c0_i32_1 = arith.constant 0 : i32
    return %c0_i32, %c0_i32_0 : i32, i32
  }
  func.func @transform_3(%arg0: i32) -> (i32, i32) {
    %c0_i32 = arith.constant 0 : i32
    %c0_i32_0 = arith.constant 0 : i32
    return %arg0, %c0_i32 : i32, i32
  }
}

module attributes {stable_mosaic.version = 11 : i64} {
  func.func @_matmul_bias_kernel(%arg0: i32, %arg1: memref<488x128xf32, #tpu.memory_space<vmem>>, %arg2: memref<128x16xf32, #tpu.memory_space<vmem>>, %arg3: memref<1x16xf32, #tpu.memory_space<vmem>>, %arg4: memref<488x16xf32, #tpu.memory_space<vmem>>) attributes {dimension_semantics = [#tpu.dimension_semantics<parallel>], iteration_bounds = array<i64: 2>, scalar_prefetch = 0 : i64, scratch_operands = 0 : i64, tpu.core_type = #tpu.core_type<tc>, window_params = [{transform_indices = @transform_0, window_bounds = array<i64: 488, 128>}, {pipeline_mode = #tpu.pipeline_mode<synchronous>, transform_indices = @transform_1, window_bounds = array<i64: 128, 16>}, {pipeline_mode = #tpu.pipeline_mode<synchronous>, transform_indices = @transform_2, window_bounds = array<i64: 1, 16>}, {transform_indices = @transform_3, window_bounds = array<i64: 488, 16>}]} {
    %c0 = arith.constant 0 : index
    %c0_0 = arith.constant 0 : index
    %0 = vector.load %arg1[%c0, %c0_0] : memref<488x128xf32, #tpu.memory_space<vmem>>, vector<488x128xf32>
    %c0_1 = arith.constant 0 : index
    %c0_2 = arith.constant 0 : index
    %1 = vector.load %arg2[%c0_1, %c0_2] : memref<128x16xf32, #tpu.memory_space<vmem>>, vector<128x16xf32>
    %cst = arith.constant dense<0.000000e+00> : vector<488x16xf32>
    %2 = tpu.matmul %0, %1, %cst {dimension_numbers = #tpu.dot_dimension_numbers<[1], [0], [0], [1], [0, 0, 1, 1], [], []>} : vector<488x128xf32>, vector<128x16xf32>, vector<488x16xf32> -> vector<488x16xf32>
    %c0_3 = arith.constant 0 : index
    %c0_4 = arith.constant 0 : index
    %3 = vector.load %arg3[%c0_3, %c0_4] : memref<1x16xf32, #tpu.memory_space<vmem>>, vector<1x16xf32>
    %4 = vector.broadcast %3 : vector<1x16xf32> to vector<488x16xf32>
    %5 = arith.addf %2, %4 : vector<488x16xf32>
    %cst_5 = arith.constant 0.000000e+00 : f32
    %6 = vector.broadcast %cst_5 : f32 to vector<488x16xf32>
    %7 = arith.maximumf %5, %6 : vector<488x16xf32>
    %c0_6 = arith.constant 0 : index
    %c0_7 = arith.constant 0 : index
    %8 = vector.load %arg4[%c0_6, %c0_7] : memref<488x16xf32, #tpu.memory_space<vmem>>, vector<488x16xf32>
    tpu.vector_store %arg4[%c0_6, %c0_7], %7 {strides = array<i32>} : memref<488x16xf32, #tpu.memory_space<vmem>>, vector<488x16xf32>,
    return
  }
  func.func @transform_0(%arg0: i32) -> (i32, i32) {
    %c0_i32 = arith.constant 0 : i32
    %c0_i32_0 = arith.constant 0 : i32
    return %arg0, %c0_i32 : i32, i32
  }
  func.func @transform_1(%arg0: i32) -> (i32, i32) {
    %c0_i32 = arith.constant 0 : i32
    %c0_i32_0 = arith.constant 0 : i32
    %c0_i32_1 = arith.constant 0 : i32
    return %c0_i32, %c0_i32_0 : i32, i32
  }
  func.func @transform_2(%arg0: i32) -> (i32, i32) {
    %c0_i32 = arith.constant 0 : i32
    %c0_i32_0 = arith.constant 0 : i32
    %c0_i32_1 = arith.constant 0 : i32
    return %c0_i32, %c0_i32_0 : i32, i32
  }
  func.func @transform_3(%arg0: i32) -> (i32, i32) {
    %c0_i32 = arith.constant 0 : i32
    %c0_i32_0 = arith.constant 0 : i32
    return %arg0, %c0_i32 : i32, i32
  }
}

module attributes {stable_mosaic.version = 11 : i64} {
  func.func @_fc_head_kernel(%arg0: i32, %arg1: memref<16x7744xf32, #tpu.memory_space<vmem>>, %arg2: memref<7744x256xbf16, #tpu.memory_space<vmem>>, %arg3: memref<1x256xf32, #tpu.memory_space<vmem>>, %arg4: memref<256x5xf32, #tpu.memory_space<vmem>>, %arg5: memref<1x5xf32, #tpu.memory_space<vmem>>, %arg6: memref<16x5xf32, #tpu.memory_space<vmem>>) attributes {dimension_semantics = [#tpu.dimension_semantics<arbitrary>], iteration_bounds = array<i64: 1>, scalar_prefetch = 0 : i64, scratch_operands = 0 : i64, tpu.core_type = #tpu.core_type<tc>, window_params = [{pipeline_mode = #tpu.pipeline_mode<synchronous>, transform_indices = @transform_0, window_bounds = array<i64: 16, 7744>}, {pipeline_mode = #tpu.pipeline_mode<synchronous>, transform_indices = @transform_1, window_bounds = array<i64: 7744, 256>}, {pipeline_mode = #tpu.pipeline_mode<synchronous>, transform_indices = @transform_2, window_bounds = array<i64: 1, 256>}, {pipeline_mode = #tpu.pipeline_mode<synchronous>, transform_indices = @transform_3, window_bounds = array<i64: 256, 5>}, {pipeline_mode = #tpu.pipeline_mode<synchronous>, transform_indices = @transform_4, window_bounds = array<i64: 1, 5>}, {pipeline_mode = #tpu.pipeline_mode<synchronous>, transform_indices = @transform_5, window_bounds = array<i64: 16, 5>}]} {
    %c0 = arith.constant 0 : index
    %c0_0 = arith.constant 0 : index
    %0 = vector.load %arg1[%c0, %c0_0] : memref<16x7744xf32, #tpu.memory_space<vmem>>, vector<16x7744xf32>
    %1 = arith.truncf %0 : vector<16x7744xf32> to vector<16x7744xbf16>
    %c0_1 = arith.constant 0 : index
    %c0_2 = arith.constant 0 : index
    %2 = vector.load %arg2[%c0_1, %c0_2] : memref<7744x256xbf16, #tpu.memory_space<vmem>>, vector<7744x256xbf16>
    %cst = arith.constant dense<0.000000e+00> : vector<16x256xf32>
    %3 = tpu.matmul %1, %2, %cst {dimension_numbers = #tpu.dot_dimension_numbers<[1], [0], [0], [1], [0, 0, 1, 1], [], []>} : vector<16x7744xbf16>, vector<7744x256xbf16>, vector<16x256xf32> -> vector<16x256xf32>
    %c0_3 = arith.constant 0 : index
    %c0_4 = arith.constant 0 : index
    %4 = vector.load %arg3[%c0_3, %c0_4] : memref<1x256xf32, #tpu.memory_space<vmem>>, vector<1x256xf32>
    %5 = vector.broadcast %4 : vector<1x256xf32> to vector<16x256xf32>
    %6 = arith.addf %3, %5 : vector<16x256xf32>
    %cst_5 = arith.constant 0.000000e+00 : f32
    %7 = vector.broadcast %cst_5 : f32 to vector<16x256xf32>
    %8 = arith.maximumf %6, %7 : vector<16x256xf32>
    %c0_6 = arith.constant 0 : index
    %c0_7 = arith.constant 0 : index
    %9 = vector.load %arg4[%c0_6, %c0_7] : memref<256x5xf32, #tpu.memory_space<vmem>>, vector<256x5xf32>
    %cst_8 = arith.constant dense<0.000000e+00> : vector<16x5xf32>
    %10 = tpu.matmul %8, %9, %cst_8 {dimension_numbers = #tpu.dot_dimension_numbers<[1], [0], [0], [1], [0, 0, 1, 1], [], []>} : vector<16x256xf32>, vector<256x5xf32>, vector<16x5xf32> -> vector<16x5xf32>
    %c0_9 = arith.constant 0 : index
    %c0_10 = arith.constant 0 : index
    %11 = vector.load %arg5[%c0_9, %c0_10] : memref<1x5xf32, #tpu.memory_space<vmem>>, vector<1x5xf32>
    %12 = vector.broadcast %11 : vector<1x5xf32> to vector<16x5xf32>
    %13 = arith.addf %10, %12 : vector<16x5xf32>
    %c0_11 = arith.constant 0 : index
    %c0_12 = arith.constant 0 : index
    %14 = vector.load %arg6[%c0_11, %c0_12] : memref<16x5xf32, #tpu.memory_space<vmem>>, vector<16x5xf32>
    tpu.vector_store %arg6[%c0_11, %c0_12], %13 {strides = array<i32>} : memref<16x5xf32, #tpu.memory_space<vmem>>, vector<16x5xf32>,
    return
  }
  func.func @transform_0(%arg0: i32) -> (i32, i32) {
    %c0_i32 = arith.constant 0 : i32
    %c0_i32_0 = arith.constant 0 : i32
    %c0_i32_1 = arith.constant 0 : i32
    return %c0_i32, %c0_i32_0 : i32, i32
  }
  func.func @transform_1(%arg0: i32) -> (i32, i32) {
    %c0_i32 = arith.constant 0 : i32
    %c0_i32_0 = arith.constant 0 : i32
    %c0_i32_1 = arith.constant 0 : i32
    return %c0_i32, %c0_i32_0 : i32, i32
  }
  func.func @transform_2(%arg0: i32) -> (i32, i32) {
    %c0_i32 = arith.constant 0 : i32
    %c0_i32_0 = arith.constant 0 : i32
    %c0_i32_1 = arith.constant 0 : i32
    return %c0_i32, %c0_i32_0 : i32, i32
  }
  func.func @transform_3(%arg0: i32) -> (i32, i32) {
    %c0_i32 = arith.constant 0 : i32
    %c0_i32_0 = arith.constant 0 : i32
    %c0_i32_1 = arith.constant 0 : i32
    return %c0_i32, %c0_i32_0 : i32, i32
  }
  func.func @transform_4(%arg0: i32) -> (i32, i32) {
    %c0_i32 = arith.constant 0 : i32
    %c0_i32_0 = arith.constant 0 : i32
    %c0_i32_1 = arith.constant 0 : i32
    return %c0_i32, %c0_i32_0 : i32, i32
  }
  func.func @transform_5(%arg0: i32) -> (i32, i32) {
    %c0_i32 = arith.constant 0 : i32
    %c0_i32_0 = arith.constant 0 : i32
    %c0_i32_1 = arith.constant 0 : i32
    return %c0_i32, %c0_i32_0 : i32, i32
  }
}

</mosaic_0001>

<bundles_post_ra>
// kernel: critic_forward.3
= control target key start
LH: loop header
LB: loop body
LE: loop exit
PB: predicated region body
PF: predicated region fallthrough
CT: control target
= control target key end

     0   :  { %s3642_s12 = smov 0   ;;  %s5330_s0 = inlined_call_operand.vmem [shape: f32[4240,128], index: 0, kind: input, shape index: {}]   ;;  %s5331_s1 = inlined_call_operand.vmem [shape: f32[128,8], index: 1, kind: input, shape index: {}]   ;;  %s5332_s2 = inlined_call_operand.vmem [shape: f32[1,8], index: 2, kind: input, shape index: {}]   ;;  %s5333_s3 = inlined_call_operand.vmem [shape: f32[4240,8], index: 3, kind: output, shape index: {}]  }
   0x1 LB: > { %s2439_s13 = sadd.s32 4294967295, %s3617_s12   ;;  %p2443_p0 = scmp.ge.s32.totalorder %s3617_s12, 1  ;;  %s3617_s12 = sphi %s3642_s12, %s13_s12  }
   0x2   : > { %p138_p1 = scmp.lt.s32.totalorder %s3617_s12, 3 }
   0x4   : > { %p139_p2 = pnand %p2443_p0, %p138_p1 }
   0x5   : > { %v439_v0 = vld [vmem:[%s5331_s1] sm:$0xff] (!%p139_p2)  ;;  %v440_v1 = vld [vmem:[%s5331_s1 + $0x8] sm:$0xff] (!%p139_p2)  ;;  %v441_v2 = vld [vmem:[%s5331_s1 + $0x10] sm:$0xff] (!%p139_p2)  ;;  %v3619_v3 = vmov (!%p139_p2), 0.0|0.0   ;;  %vm3620_vm0 = vmmov (!%p139_p2), 0   ;;  %v3621_v6 = vmov (!%p139_p2), 0.0  }
   0x6   : > { %142 = sbr.rel (%p139_p2) target bundleno = 784 (0x310), region = 32  ;;  %3557 = vmatprep.subr.bf16.mxu0 (!%p139_p2), %v3619_v3  ;;  %v3558_v4 = vpack.c.bf16 (!%p139_p2), %v440_v1, %v439_v0  ;;  %3581 = vmatprep.subr.bf16.mxu1 (!%p139_p2), %v3619_v3  ;;  %v442_v5 = vld [vmem:[%s5331_s1 + $0x18] sm:$0xff] (!%p139_p2)  ;;  %v443_v8 = vld [vmem:[%s5331_s1 + $0x20] sm:$0xff] (!%p139_p2)  ;;  %v444_v9 = vld [vmem:[%s5331_s1 + $0x28] sm:$0xff] (!%p139_p2)  ;;  %vm2117_vm1 = vcmask (!%p139_p2), 64512  }
   0x7   : > { %2762 = vmatprep.mubr.msk.f32.mxu0 (!%p139_p2), %vm3620_vm0, %v3621_v6  ;;  %3161 = vmatprep.mubr.msk.f32.mxu1 (!%p139_p2), %vm3620_vm0, %v3621_v6  ;;  %v3561_v7 = vpack.c.bf16 (!%p139_p2), %v442_v5, %v441_v2  ;;  %v3564_v10 = vpack.c.bf16 (!%p139_p2), %v444_v9, %v443_v8  ;;  %v445_v11 = vld [vmem:[%s5331_s1 + $0x30] sm:$0xff] (!%p139_p2)  ;;  %v446_v12 = vld [vmem:[%s5331_s1 + $0x38] sm:$0xff] (!%p139_p2)  ;;  %v447_v14 = vld [vmem:[%s5331_s1 + $0x40] sm:$0xff] (!%p139_p2)  ;;  %s162_s7 = smul.u32 (!%p139_p2), 265, %s2439_s13 }
   0x8   : > { %3559 = vmatpush3.bf16.msra.mxu0 (!%p139_p2), %v3558_v4  ;;  %3589 = vmatpush3.bf16.msra.mxu1 (!%p139_p2), %v3558_v4  ;;  %v3567_v13 = vpack.c.bf16 (!%p139_p2), %v446_v12, %v445_v11  ;;  %v448_v15 = vld [vmem:[%s5331_s1 + $0x48] sm:$0xff] (!%p139_p2)  ;;  %v449_v17 = vld [vmem:[%s5331_s1 + $0x50] sm:$0xff] (!%p139_p2)  ;;  %v450_v18 = vld [vmem:[%s5331_s1 + $0x58] sm:$0xff] (!%p139_p2) }
   0x9   : > { %3560 = vmatprep.subr.bf16.mxu0 (!%p139_p2), %v3619_v3  ;;  %3582 = vmatprep.subr.bf16.mxu1 (!%p139_p2), %v3619_v3  ;;  %v3570_v16 = vpack.c.bf16 (!%p139_p2), %v448_v15, %v447_v14  ;;  %p163_p3 = scmp.lt.s32.totalorder (!%p139_p2), %s162_s7, 529  ;;  %v3573_v19 = vpack.c.bf16 (!%p139_p2), %v450_v18, %v449_v17  ;;  %v451_v20 = vld [vmem:[%s5331_s1 + $0x60] sm:$0xff] (!%p139_p2)  ;;  %v452_v21 = vld [vmem:[%s5331_s1 + $0x68] sm:$0xff] (!%p139_p2)  ;;  %v453_v23 = vld [vmem:[%s5331_s1 + $0x70] sm:$0xff] (!%p139_p2) }
   0xa   : > { %v3576_v22 = vpack.c.bf16 (!%p139_p2), %v452_v21, %v451_v20  ;;  %v454_v24 = vld [vmem:[%s5331_s1 + $0x78] sm:$0xff] (!%p139_p2) }
   0xb   : > { %v3579_v25 = vpack.c.bf16 (!%p139_p2), %v454_v24, %v453_v23 }
   0xc   : > { %3562 = vmatpush3.bf16.msra.mxu0 (!%p139_p2), %v3561_v7  ;;  %3590 = vmatpush3.bf16.msra.mxu1 (!%p139_p2), %v3561_v7 }
   0xd   : > { %3563 = vmatprep.subr.bf16.mxu0 %v3619_v3  ;;  %3583 = vmatprep.subr.bf16.mxu1 %v3619_v3  ;;  %s5335_s7 = smov (!%p163_p3, %s162_s7), 529 }
   0xe   : > { %s2444_s21 = sshll.u32 %s5335_s7, 3 }
   0xf   : > { %s3712_s24 = scalar_lea.vmem %s5330_s0, %s2444_s21  ;;  %s4046_s29 = scalar_lea.vmem %s5333_s3, %s2444_s21 }
  0x10   : > { %3565 = vmatpush3.bf16.msra.mxu0 %v3564_v10  ;;  %3591 = vmatpush3.bf16.msra.mxu1 %v3564_v10  ;;  %v174_v26 = vld [vmem:[%s3712_s24] sm:$0xff]  ;;  %v307_v27 = vld [vmem:[%s3712_s24 + $0x428] sm:$0xff]  ;;  %v308_v29 = vld [vmem:[%s3712_s24 + $0x430] sm:$0xff] }
  0x11   : > { %3566 = vmatprep.subr.bf16.mxu0 %v3619_v3  ;;  %3584 = vmatprep.subr.bf16.mxu1 %v3619_v3  ;;  %v175_v28 = vld [vmem:[%s3712_s24 + $0x8] sm:$0xff]  ;;  %v176_v30 = vld [vmem:[%s3712_s24 + $0x10] sm:$0xff]  ;;  %v309_v31 = vld [vmem:[%s3712_s24 + $0x438] sm:$0xff] }
  0x12   : > { %v177_v32 = vld [vmem:[%s3712_s24 + $0x18] sm:$0xff]  ;;  %v310_v33 = vld [vmem:[%s3712_s24 + $0x440] sm:$0xff]  ;;  %v311_v35 = vld [vmem:[%s3712_s24 + $0x448] sm:$0xff] }
  0x13   : > { %v178_v34 = vld [vmem:[%s3712_s24 + $0x20] sm:$0xff]  ;;  %v179_v36 = vld [vmem:[%s3712_s24 + $0x28] sm:$0xff]  ;;  %v312_v37 = vld [vmem:[%s3712_s24 + $0x450] sm:$0xff] }
  0x14   : > { %3568 = vmatpush3.bf16.msra.mxu0 %v3567_v13  ;;  %3592 = vmatpush3.bf16.msra.mxu1 %v3567_v13  ;;  %v180_v38 = vld [vmem:[%s3712_s24 + $0x30] sm:$0xff]  ;;  %v313_v39 = vld [vmem:[%s3712_s24 + $0x458] sm:$0xff]  ;;  %v314_v41 = vld [vmem:[%s3712_s24 + $0x460] sm:$0xff] }
  0x15   : > { %3569 = vmatprep.subr.bf16.mxu0 %v3619_v3  ;;  %3585 = vmatprep.subr.bf16.mxu1 %v3619_v3  ;;  %v181_v40 = vld [vmem:[%s3712_s24 + $0x38] sm:$0xff]  ;;  %v182_v42 = vld [vmem:[%s3712_s24 + $0x40] sm:$0xff]  ;;  %v315_v43 = vld [vmem:[%s3712_s24 + $0x468] sm:$0xff] }
  0x16   : > { %v183_v44 = vld [vmem:[%s3712_s24 + $0x48] sm:$0xff]  ;;  %v316_v45 = vld [vmem:[%s3712_s24 + $0x470] sm:$0xff]  ;;  %v317_v47 = vld [vmem:[%s3712_s24 + $0x478] sm:$0xff] }
  0x17   : > { %v184_v46 = vld [vmem:[%s3712_s24 + $0x50] sm:$0xff]  ;;  %v185_v48 = vld [vmem:[%s3712_s24 + $0x58] sm:$0xff]  ;;  %v318_v49 = vld [vmem:[%s3712_s24 + $0x480] sm:$0xff] }
  0x18   : > { %3571 = vmatpush3.bf16.msra.mxu0 %v3570_v16  ;;  %3593 = vmatpush3.bf16.msra.mxu1 %v3570_v16  ;;  %v186_v50 = vld [vmem:[%s3712_s24 + $0x60] sm:$0xff]  ;;  %v319_v51 = vld [vmem:[%s3712_s24 + $0x488] sm:$0xff]  ;;  %v320_v53 = vld [vmem:[%s3712_s24 + $0x490] sm:$0xff] }
  0x19   : > { %3572 = vmatprep.subr.bf16.mxu0 %v3619_v3  ;;  %3586 = vmatprep.subr.bf16.mxu1 %v3619_v3  ;;  %v187_v52 = vld [vmem:[%s3712_s24 + $0x68] sm:$0xff]  ;;  %v188_v54 = vld [vmem:[%s3712_s24 + $0x70] sm:$0xff]  ;;  %v321_v55 = vld [vmem:[%s3712_s24 + $0x498] sm:$0xff] }
  0x1a   : > { %v189_v56 = vld [vmem:[%s3712_s24 + $0x78] sm:$0xff]  ;;  %v322_v57 = vld [vmem:[%s3712_s24 + $0x4a0] sm:$0xff]  ;;  %v323_v59 = vld [vmem:[%s3712_s24 + $0x4a8] sm:$0xff] }
  0x1b   : > { %v190_v58 = vld [vmem:[%s3712_s24 + $0x80] sm:$0xff]  ;;  %v191_v60 = vld [vmem:[%s3712_s24 + $0x88] sm:$0xff]  ;;  %v324_v61 = vld [vmem:[%s3712_s24 + $0x4b0] sm:$0xff] }
  0x1c   : > { %3574 = vmatpush3.bf16.msra.mxu0 %v3573_v19  ;;  %3594 = vmatpush3.bf16.msra.mxu1 %v3573_v19  ;;  %v192_v62 = vld [vmem:[%s3712_s24 + $0x90] sm:$0xff]  ;;  %v325_v63 = vld [vmem:[%s3712_s24 + $0x4b8] sm:$0xff]  ;;  %v326_v1 = vld [vmem:[%s3712_s24 + $0x4c0] sm:$0xff] }
  0x1d   : > { %3575 = vmatprep.subr.bf16.mxu0 %v3619_v3  ;;  %3587 = vmatprep.subr.bf16.mxu1 %v3619_v3  ;;  %v193_v0 = vld [vmem:[%s3712_s24 + $0x98] sm:$0xff]  ;;  %v194_v2 = vld [vmem:[%s3712_s24 + $0xa0] sm:$0xff]  ;;  %v195_v4 = vld [vmem:[%s3712_s24 + $0xa8] sm:$0xff] }
  0x1e   : > { %v328_v5 = vld [vmem:[%s3712_s24 + $0x4d0] sm:$0xff]  ;;  %v329_v8 = vld [vmem:[%s3712_s24 + $0x4d8] sm:$0xff]  ;;  %v330_v10 = vld [vmem:[%s3712_s24 + $0x4e0] sm:$0xff] }
  0x1f   : > { %v196_v7 = vld [vmem:[%s3712_s24 + $0xb0] sm:$0xff]  ;;  %v197_v9 = vld [vmem:[%s3712_s24 + $0xb8] sm:$0xff]  ;;  %v198_v11 = vld [vmem:[%s3712_s24 + $0xc0] sm:$0xff] }
  0x20   : > { %3577 = vmatpush3.bf16.msra.mxu0 %v3576_v22  ;;  %3595 = vmatpush3.bf16.msra.mxu1 %v3576_v22  ;;  %v331_v12 = vld [vmem:[%s3712_s24 + $0x4e8] sm:$0xff]  ;;  %v332_v14 = vld [vmem:[%s3712_s24 + $0x4f0] sm:$0xff]  ;;  %v333_v16 = vld [vmem:[%s3712_s24 + $0x4f8] sm:$0xff] }
  0x21   : > { %3578 = vmatprep.subr.bf16.mxu0 %v3619_v3  ;;  %3588 = vmatprep.subr.bf16.mxu1 %v3619_v3  ;;  %v327_v3 = vld [vmem:[%s3712_s24 + $0x4c8] sm:$0xff]  ;;  %v200_v15 = vld [vmem:[%s3712_s24 + $0xd0] sm:$0xff]  ;;  %v201_v17 = vld [vmem:[%s3712_s24 + $0xd8] sm:$0xff] }
  0x22   : > { %v199_v13 = vld [vmem:[%s3712_s24 + $0xc8] sm:$0xff]  ;;  %v334_v18 = vld [vmem:[%s3712_s24 + $0x500] sm:$0xff]  ;;  %v336_v22 = vld [vmem:[%s3712_s24 + $0x510] sm:$0xff] }
  0x23   : > { %v202_v19 = vld [vmem:[%s3712_s24 + $0xe0] sm:$0xff]  ;;  %v335_v20 = vld [vmem:[%s3712_s24 + $0x508] sm:$0xff]  ;;  %v204_v23 = vld [vmem:[%s3712_s24 + $0xf0] sm:$0xff] }
  0x24   : > { %3580 = vmatpush3.bf16.msra.mxu0 %v3579_v25  ;;  %3596 = vmatpush3.bf16.msra.mxu1 %v3579_v25  ;;  %v203_v21 = vld [vmem:[%s3712_s24 + $0xe8] sm:$0xff]  ;;  %v337_v24 = vld [vmem:[%s3712_s24 + $0x518] sm:$0xff] }
  0x25   : > { %v205_v25 = vld [vmem:[%s3712_s24 + $0xf8] sm:$0xff] }
  0x27   : > { %2763 = vmatmul.mubr.f32.vlgmr.msra.gmra.mrb[0].mxu0 %v174_v26  ;;  %3162 = vmatmul.mubr.f32.vlgmr.msra.gmra.mrb[0].mxu1 %v307_v27  ;;  %v338_v26 = vld [vmem:[%s3712_s24 + $0x520] sm:$0xff] }
  0x28   : > { %2765 = vmatprep.mubr.msk.f32.mxu0 %vm3620_vm0, %v3621_v6  ;;  %3164 = vmatprep.mubr.msk.f32.mxu1 %vm3620_vm0, %v3621_v6  ;;  %v206_v27 = vld [vmem:[%s3712_s24 + $0x100] sm:$0xff] }
  0x2b   : > { %2766 = vmatmul.mubr.f32.gmra.mrb[2].mxu0 %v175_v28  ;;  %3165 = vmatmul.mubr.f32.gmra.mrb[2].mxu1 %v308_v29  ;;  %v339_v28 = vld [vmem:[%s3712_s24 + $0x528] sm:$0xff] }
  0x2c   : > { %2768 = vmatprep.mubr.msk.f32.mxu0 %vm3620_vm0, %v3621_v6  ;;  %3167 = vmatprep.mubr.msk.f32.mxu1 %vm3620_vm0, %v3621_v6  ;;  %v207_v29 = vld [vmem:[%s3712_s24 + $0x108] sm:$0xff] }
  0x2f   : > { %2769 = vmatmul.mubr.f32.gmra.mrb[4].mxu0 %v176_v30  ;;  %3168 = vmatmul.mubr.f32.gmra.mrb[4].mxu1 %v309_v31  ;;  %v340_v30 = vld [vmem:[%s3712_s24 + $0x530] sm:$0xff] }
  0x30   : > { %2771 = vmatprep.mubr.msk.f32.mxu0 %vm3620_vm0, %v3621_v6  ;;  %3170 = vmatprep.mubr.msk.f32.mxu1 %vm3620_vm0, %v3621_v6  ;;  %v208_v31 = vld [vmem:[%s3712_s24 + $0x110] sm:$0xff] }
  0x33   : > { %2772 = vmatmul.mubr.f32.gmra.mrb[6].mxu0 %v177_v32  ;;  %3171 = vmatmul.mubr.f32.gmra.mrb[6].mxu1 %v310_v33  ;;  %v341_v32 = vld [vmem:[%s3712_s24 + $0x538] sm:$0xff] }
  0x34   : > { %2774 = vmatprep.mubr.msk.f32.mxu0 %vm3620_vm0, %v3621_v6  ;;  %3173 = vmatprep.mubr.msk.f32.mxu1 %vm3620_vm0, %v3621_v6  ;;  %v209_v33 = vld [vmem:[%s3712_s24 + $0x118] sm:$0xff] }
  0x37   : > { %2775 = vmatmul.mubr.f32.gmra.mrb[8].mxu0 %v178_v34  ;;  %3174 = vmatmul.mubr.f32.gmra.mrb[8].mxu1 %v311_v35  ;;  %v342_v34 = vld [vmem:[%s3712_s24 + $0x540] sm:$0xff] }
  0x38   : > { %2777 = vmatprep.mubr.msk.f32.mxu0 %vm3620_vm0, %v3621_v6  ;;  %3176 = vmatprep.mubr.msk.f32.mxu1 %vm3620_vm0, %v3621_v6  ;;  %v210_v35 = vld [vmem:[%s3712_s24 + $0x120] sm:$0xff] }
  0x3b   : > { %2778 = vmatmul.mubr.f32.gmra.mrb[10].mxu0 %v179_v36  ;;  %3177 = vmatmul.mubr.f32.gmra.mrb[10].mxu1 %v312_v37  ;;  %v343_v36 = vld [vmem:[%s3712_s24 + $0x548] sm:$0xff] }
  0x3c   : > { %2780 = vmatprep.mubr.msk.f32.mxu0 %vm3620_vm0, %v3621_v6  ;;  %3179 = vmatprep.mubr.msk.f32.mxu1 %vm3620_vm0, %v3621_v6  ;;  %v211_v37 = vld [vmem:[%s3712_s24 + $0x128] sm:$0xff] }
  0x3f   : > { %2781 = vmatmul.mubr.f32.gmra.mrb[12].mxu0 %v180_v38  ;;  %3180 = vmatmul.mubr.f32.gmra.mrb[12].mxu1 %v313_v39  ;;  %v344_v38 = vld [vmem:[%s3712_s24 + $0x550] sm:$0xff] }
  0x40   : > { %2783 = vmatprep.mubr.msk.f32.mxu0 %vm3620_vm0, %v3621_v6  ;;  %3182 = vmatprep.mubr.msk.f32.mxu1 %vm3620_vm0, %v3621_v6  ;;  %v212_v39 = vld [vmem:[%s3712_s24 + $0x130] sm:$0xff] }
  0x43   : > { %2784 = vmatmul.mubr.f32.gmra.mrb[14].mxu0 %v181_v40  ;;  %3183 = vmatmul.mubr.f32.gmra.mrb[14].mxu1 %v314_v41  ;;  %v345_v40 = vld [vmem:[%s3712_s24 + $0x558] sm:$0xff] }
  0x44   : > { %2786 = vmatprep.mubr.msk.f32.mxu0 %vm3620_vm0, %v3621_v6  ;;  %3185 = vmatprep.mubr.msk.f32.mxu1 %vm3620_vm0, %v3621_v6  ;;  %v213_v41 = vld [vmem:[%s3712_s24 + $0x138] sm:$0xff] }
  0x47   : > { %2787 = vmatmul.mubr.f32.gmra.mrb[16].mxu0 %v182_v42  ;;  %3186 = vmatmul.mubr.f32.gmra.mrb[16].mxu1 %v315_v43  ;;  %v346_v42 = vld [vmem:[%s3712_s24 + $0x560] sm:$0xff] }
  0x48   : > { %2789 = vmatprep.mubr.msk.f32.mxu0 %vm3620_vm0, %v3621_v6  ;;  %3188 = vmatprep.mubr.msk.f32.mxu1 %vm3620_vm0, %v3621_v6  ;;  %v214_v43 = vld [vmem:[%s3712_s24 + $0x140] sm:$0xff] }
  0x4b   : > { %2790 = vmatmul.mubr.f32.gmra.mrb[18].mxu0 %v183_v44  ;;  %3189 = vmatmul.mubr.f32.gmra.mrb[18].mxu1 %v316_v45  ;;  %v347_v44 = vld [vmem:[%s3712_s24 + $0x568] sm:$0xff] }
  0x4c   : > { %2792 = vmatprep.mubr.msk.f32.mxu0 %vm3620_vm0, %v3621_v6  ;;  %3191 = vmatprep.mubr.msk.f32.mxu1 %vm3620_vm0, %v3621_v6  ;;  %v215_v45 = vld [vmem:[%s3712_s24 + $0x148] sm:$0xff] }
  0x4f   : > { %2793 = vmatmul.mubr.f32.gmra.mrb[20].mxu0 %v184_v46  ;;  %3192 = vmatmul.mubr.f32.gmra.mrb[20].mxu1 %v317_v47  ;;  %v348_v46 = vld [vmem:[%s3712_s24 + $0x570] sm:$0xff] }
  0x50   : > { %2795 = vmatprep.mubr.msk.f32.mxu0 %vm3620_vm0, %v3621_v6  ;;  %3194 = vmatprep.mubr.msk.f32.mxu1 %vm3620_vm0, %v3621_v6  ;;  %v216_v47 = vld [vmem:[%s3712_s24 + $0x150] sm:$0xff] }
  0x53   : > { %2796 = vmatmul.mubr.f32.gmra.mrb[22].mxu0 %v185_v48  ;;  %3195 = vmatmul.mubr.f32.gmra.mrb[22].mxu1 %v318_v49  ;;  %v349_v48 = vld [vmem:[%s3712_s24 + $0x578] sm:$0xff] }
  0x54   : > { %2798 = vmatprep.mubr.msk.f32.mxu0 %vm3620_vm0, %v3621_v6  ;;  %3197 = vmatprep.mubr.msk.f32.mxu1 %vm3620_vm0, %v3621_v6  ;;  %v217_v49 = vld [vmem:[%s3712_s24 + $0x158] sm:$0xff] }
  0x57   : > { %2799 = vmatmul.mubr.f32.gmra.mrb[24].mxu0 %v186_v50  ;;  %3198 = vmatmul.mubr.f32.gmra.mrb[24].mxu1 %v319_v51  ;;  %v350_v50 = vld [vmem:[%s3712_s24 + $0x580] sm:$0xff] }
  0x58   : > { %2801 = vmatprep.mubr.msk.f32.mxu0 %vm3620_vm0, %v3621_v6  ;;  %3200 = vmatprep.mubr.msk.f32.mxu1 %vm3620_vm0, %v3621_v6  ;;  %v218_v51 = vld [vmem:[%s3712_s24 + $0x160] sm:$0xff] }
  0x5b   : > { %2802 = vmatmul.mubr.f32.gmra.mrb[26].mxu0 %v187_v52  ;;  %3201 = vmatmul.mubr.f32.gmra.mrb[26].mxu1 %v320_v53  ;;  %v351_v52 = vld [vmem:[%s3712_s24 + $0x588] sm:$0xff] }
  0x5c   : > { %2804 = vmatprep.mubr.msk.f32.mxu0 %vm3620_vm0, %v3621_v6  ;;  %3203 = vmatprep.mubr.msk.f32.mxu1 %vm3620_vm0, %v3621_v6  ;;  %v219_v53 = vld [vmem:[%s3712_s24 + $0x168] sm:$0xff] }
  0x5f   : > { %2805 = vmatmul.mubr.f32.gmra.mrb[28].mxu0 %v188_v54  ;;  %3204 = vmatmul.mubr.f32.gmra.mrb[28].mxu1 %v321_v55  ;;  %v352_v54 = vld [vmem:[%s3712_s24 + $0x590] sm:$0xff] }
  0x60   : > { %2807 = vmatprep.mubr.msk.f32.mxu0 %vm3620_vm0, %v3621_v6  ;;  %3206 = vmatprep.mubr.msk.f32.mxu1 %vm3620_vm0, %v3621_v6  ;;  %v220_v55 = vld [vmem:[%s3712_s24 + $0x170] sm:$0xff] }
  0x63   : > { %2808 = vmatmul.mubr.f32.gmra.mrb[30].mxu0 %v189_v56  ;;  %3207 = vmatmul.mubr.f32.gmra.mrb[30].mxu1 %v322_v57  ;;  %v353_v56 = vld [vmem:[%s3712_s24 + $0x598] sm:$0xff] }
  0x64   : > { %2810 = vmatprep.mubr.msk.f32.mxu0 %vm3620_vm0, %v3621_v6  ;;  %3209 = vmatprep.mubr.msk.f32.mxu1 %vm3620_vm0, %v3621_v6  ;;  %v221_v57 = vld [vmem:[%s3712_s24 + $0x178] sm:$0xff] }
  0x67   : > { %2811 = vmatmul.mubr.f32.gmra.mrb[32].mxu0 %v190_v58  ;;  %3210 = vmatmul.mubr.f32.gmra.mrb[32].mxu1 %v323_v59  ;;  %v354_v58 = vld [vmem:[%s3712_s24 + $0x5a0] sm:$0xff] }
  0x68   : > { %2813 = vmatprep.mubr.msk.f32.mxu0 %vm3620_vm0, %v3621_v6  ;;  %3212 = vmatprep.mubr.msk.f32.mxu1 %vm3620_vm0, %v3621_v6  ;;  %v222_v59 = vld [vmem:[%s3712_s24 + $0x180] sm:$0xff] }
  0x6b   : > { %2814 = vmatmul.mubr.f32.gmra.mrb[34].mxu0 %v191_v60  ;;  %3213 = vmatmul.mubr.f32.gmra.mrb[34].mxu1 %v324_v61  ;;  %v355_v60 = vld [vmem:[%s3712_s24 + $0x5a8] sm:$0xff] }
  0x6c   : > { %2816 = vmatprep.mubr.msk.f32.mxu0 %vm3620_vm0, %v3621_v6  ;;  %3215 = vmatprep.mubr.msk.f32.mxu1 %vm3620_vm0, %v3621_v6  ;;  %v223_v61 = vld [vmem:[%s3712_s24 + $0x188] sm:$0xff] }
  0x6f   : > { %2817 = vmatmul.mubr.f32.gmra.mrb[36].mxu0 %v192_v62  ;;  %3216 = vmatmul.mubr.f32.gmra.mrb[36].mxu1 %v325_v63  ;;  %v356_v62 = vld [vmem:[%s3712_s24 + $0x5b0] sm:$0xff] }
  0x70   : > { %2819 = vmatprep.mubr.msk.f32.mxu0 %vm3620_vm0, %v3621_v6  ;;  %3218 = vmatprep.mubr.msk.f32.mxu1 %vm3620_vm0, %v3621_v6  ;;  %v224_v63 = vld [vmem:[%s3712_s24 + $0x190] sm:$0xff] }
  0x73   : > { %2820 = vmatmul.mubr.f32.gmra.mrb[38].mxu0 %v193_v0  ;;  %3219 = vmatmul.mubr.f32.gmra.mrb[38].mxu1 %v326_v1  ;;  %v357_v0 = vld [vmem:[%s3712_s24 + $0x5b8] sm:$0xff] }
  0x74   : > { %2822 = vmatprep.mubr.msk.f32.mxu0 %vm3620_vm0, %v3621_v6  ;;  %3221 = vmatprep.mubr.msk.f32.mxu1 %vm3620_vm0, %v3621_v6  ;;  %v225_v1 = vld [vmem:[%s3712_s24 + $0x198] sm:$0xff] }
  0x77   : > { %2823 = vmatmul.mubr.f32.gmra.mrb[40].mxu0 %v194_v2  ;;  %3222 = vmatmul.mubr.f32.gmra.mrb[40].mxu1 %v327_v3  ;;  %v358_v2 = vld [vmem:[%s3712_s24 + $0x5c0] sm:$0xff] }
  0x78   : > { %2825 = vmatprep.mubr.msk.f32.mxu0 %vm3620_vm0, %v3621_v6  ;;  %3224 = vmatprep.mubr.msk.f32.mxu1 %vm3620_vm0, %v3621_v6  ;;  %v226_v3 = vld [vmem:[%s3712_s24 + $0x1a0] sm:$0xff] }
  0x7b   : > { %2826 = vmatmul.mubr.f32.gmra.mrb[42].mxu0 %v195_v4  ;;  %3225 = vmatmul.mubr.f32.gmra.mrb[42].mxu1 %v328_v5  ;;  %v359_v4 = vld [vmem:[%s3712_s24 + $0x5c8] sm:$0xff]  ;;  %v4031_v5 = vld [vmem:[%s5332_s2] ss:$0 sm:$0xff] }
  0x7c   : > { %2828 = vmatprep.mubr.msk.f32.mxu0 %vm3620_vm0, %v3621_v6  ;;  %3227 = vmatprep.mubr.msk.f32.mxu1 %vm3620_vm0, %v3621_v6 }
  0x7f   : > { %2829 = vmatmul.mubr.f32.gmra.mrb[44].mxu0 %v196_v7  ;;  %3228 = vmatmul.mubr.f32.gmra.mrb[44].mxu1 %v329_v8  ;;  %v227_v7 = vld [vmem:[%s3712_s24 + $0x1a8] sm:$0xff]  ;;  %v360_v8 = vld [vmem:[%s3712_s24 + $0x5d0] sm:$0xff] }
  0x80   : > { %2831 = vmatprep.mubr.msk.f32.mxu0 %vm3620_vm0, %v3621_v6  ;;  %3230 = vmatprep.mubr.msk.f32.mxu1 %vm3620_vm0, %v3621_v6 }
  0x83   : > { %2832 = vmatmul.mubr.f32.gmra.mrb[46].mxu0 %v197_v9  ;;  %3231 = vmatmul.mubr.f32.gmra.mrb[46].mxu1 %v330_v10 }
  0x84   : > { %2834 = vmatprep.mubr.msk.f32.mxu0 %vm3620_vm0, %v3621_v6  ;;  %3233 = vmatprep.mubr.msk.f32.mxu1 %vm3620_vm0, %v3621_v6 }
  0x87   : > { %2835 = vmatmul.mubr.f32.gmra.mrb[48].mxu0 %v198_v11  ;;  %3234 = vmatmul.mubr.f32.gmra.mrb[48].mxu1 %v331_v12 }
  0x88   : > { %2837 = vmatprep.mubr.msk.f32.mxu0 %vm3620_vm0, %v3621_v6  ;;  %3236 = vmatprep.mubr.msk.f32.mxu1 %vm3620_vm0, %v3621_v6 }
  0x8b   : > { %2838 = vmatmul.mubr.f32.gmra.mrb[50].mxu0 %v199_v13  ;;  %3237 = vmatmul.mubr.f32.gmra.mrb[50].mxu1 %v332_v14 }
  0x8c   : > { %2840 = vmatprep.mubr.msk.f32.mxu0 %vm3620_vm0, %v3621_v6  ;;  %3239 = vmatprep.mubr.msk.f32.mxu1 %vm3620_vm0, %v3621_v6 }
  0x8f   : > { %2841 = vmatmul.mubr.f32.gmra.mrb[52].mxu0 %v200_v15  ;;  %3240 = vmatmul.mubr.f32.gmra.mrb[52].mxu1 %v333_v16  ;;  %v228_v15 = vld [vmem:[%s3712_s24 + $0x1b0] sm:$0xff]  ;;  %v361_v16 = vld [vmem:[%s3712_s24 + $0x5d8] sm:$0xff] }
  0x90   : > { %2843 = vmatprep.mubr.msk.f32.mxu0 %vm3620_vm0, %v3621_v6  ;;  %3242 = vmatprep.mubr.msk.f32.mxu1 %vm3620_vm0, %v3621_v6 }
  0x93   : > { %2844 = vmatmul.mubr.f32.gmra.mrb[54].mxu0 %v201_v17  ;;  %3243 = vmatmul.mubr.f32.gmra.mrb[54].mxu1 %v334_v18 }
  0x94   : > { %2846 = vmatprep.mubr.msk.f32.mxu0 %vm3620_vm0, %v3621_v6  ;;  %3245 = vmatprep.mubr.msk.f32.mxu1 %vm3620_vm0, %v3621_v6 }
  0x97   : > { %2847 = vmatmul.mubr.f32.gmra.mrb[56].mxu0 %v202_v19  ;;  %3246 = vmatmul.mubr.f32.gmra.mrb[56].mxu1 %v335_v20 }
  0x98   : > { %2849 = vmatprep.mubr.msk.f32.mxu0 %vm3620_vm0, %v3621_v6  ;;  %3248 = vmatprep.mubr.msk.f32.mxu1 %vm3620_vm0, %v3621_v6 }
  0x9b   : > { %2850 = vmatmul.mubr.f32.gmra.mrb[58].mxu0 %v203_v21  ;;  %3249 = vmatmul.mubr.f32.gmra.mrb[58].mxu1 %v336_v22 }
  0x9c   : > { %2852 = vmatprep.mubr.msk.f32.mxu0 %vm3620_vm0, %v3621_v6  ;;  %3251 = vmatprep.mubr.msk.f32.mxu1 %vm3620_vm0, %v3621_v6 }
  0x9f   : > { %2853 = vmatmul.mubr.f32.gmra.mrb[60].mxu0 %v204_v23  ;;  %3252 = vmatmul.mubr.f32.gmra.mrb[60].mxu1 %v337_v24 }
  0xa0   : > { %2855 = vmatprep.mubr.msk.f32.mxu0 %vm3620_vm0, %v3621_v6  ;;  %3254 = vmatprep.mubr.msk.f32.mxu1 %vm3620_vm0, %v3621_v6 }
  0xa3   : > { %2856 = vmatmul.mubr.f32.gmra.mrb[62].mxu0 %v205_v25  ;;  %3255 = vmatmul.mubr.f32.gmra.mrb[62].mxu1 %v338_v26  ;;  %v229_v25 = vld [vmem:[%s3712_s24 + $0x1b8] sm:$0xff]  ;;  %v362_v26 = vld [vmem:[%s3712_s24 + $0x5e0] sm:$0xff] }
  0xa4   : > { %2858 = vmatprep.mubr.msk.f32.mxu0 %vm3620_vm0, %v3621_v6  ;;  %3257 = vmatprep.mubr.msk.f32.mxu1 %vm3620_vm0, %v3621_v6 }
  0xa7   : > { %2859 = vmatmul.mubr.f32.gmra.mrb[64].mxu0 %v206_v27  ;;  %3258 = vmatmul.mubr.f32.gmra.mrb[64].mxu1 %v339_v28 }
  0xa8   : > { %2861 = vmatprep.mubr.msk.f32.mxu0 %vm3620_vm0, %v3621_v6  ;;  %3260 = vmatprep.mubr.msk.f32.mxu1 %vm3620_vm0, %v3621_v6 }
  0xab   : > { %2862 = vmatmul.mubr.f32.gmra.mrb[66].mxu0 %v207_v29  ;;  %3261 = vmatmul.mubr.f32.gmra.mrb[66].mxu1 %v340_v30 }
  0xac   : > { %2864 = vmatprep.mubr.msk.f32.mxu0 %vm3620_vm0, %v3621_v6  ;;  %3263 = vmatprep.mubr.msk.f32.mxu1 %vm3620_vm0, %v3621_v6 }
  0xaf   : > { %2865 = vmatmul.mubr.f32.gmra.mrb[68].mxu0 %v208_v31  ;;  %3264 = vmatmul.mubr.f32.gmra.mrb[68].mxu1 %v341_v32 }
  0xb0   : > { %2867 = vmatprep.mubr.msk.f32.mxu0 %vm3620_vm0, %v3621_v6  ;;  %3266 = vmatprep.mubr.msk.f32.mxu1 %vm3620_vm0, %v3621_v6 }
  0xb3   : > { %2868 = vmatmul.mubr.f32.gmra.mrb[70].mxu0 %v209_v33  ;;  %3267 = vmatmul.mubr.f32.gmra.mrb[70].mxu1 %v342_v34 }
  0xb4   : > { %2870 = vmatprep.mubr.msk.f32.mxu0 %vm3620_vm0, %v3621_v6  ;;  %3269 = vmatprep.mubr.msk.f32.mxu1 %vm3620_vm0, %v3621_v6 }
  0xb7   : > { %2871 = vmatmul.mubr.f32.gmra.mrb[72].mxu0 %v210_v35  ;;  %3270 = vmatmul.mubr.f32.gmra.mrb[72].mxu1 %v343_v36  ;;  %v230_v35 = vld [vmem:[%s3712_s24 + $0x1c0] sm:$0xff]  ;;  %v363_v36 = vld [vmem:[%s3712_s24 + $0x5e8] sm:$0xff] }
  0xb8   : > { %2873 = vmatprep.mubr.msk.f32.mxu0 %vm3620_vm0, %v3621_v6  ;;  %3272 = vmatprep.mubr.msk.f32.mxu1 %vm3620_vm0, %v3621_v6 }
  0xbb   : > { %2874 = vmatmul.mubr.f32.gmra.mrb[74].mxu0 %v211_v37  ;;  %3273 = vmatmul.mubr.f32.gmra.mrb[74].mxu1 %v344_v38 }
  0xbc   : > { %2876 = vmatprep.mubr.msk.f32.mxu0 %vm3620_vm0, %v3621_v6  ;;  %3275 = vmatprep.mubr.msk.f32.mxu1 %vm3620_vm0, %v3621_v6 }
  0xbf   : > { %2877 = vmatmul.mubr.f32.gmra.mrb[76].mxu0 %v212_v39  ;;  %3276 = vmatmul.mubr.f32.gmra.mrb[76].mxu1 %v345_v40 }
  0xc0   : > { %2879 = vmatprep.mubr.msk.f32.mxu0 %vm3620_vm0, %v3621_v6  ;;  %3278 = vmatprep.mubr.msk.f32.mxu1 %vm3620_vm0, %v3621_v6 }
  0xc3   : > { %2880 = vmatmul.mubr.f32.gmra.mrb[78].mxu0 %v213_v41  ;;  %3279 = vmatmul.mubr.f32.gmra.mrb[78].mxu1 %v346_v42 }
  0xc4   : > { %2882 = vmatprep.mubr.msk.f32.mxu0 %vm3620_vm0, %v3621_v6  ;;  %3281 = vmatprep.mubr.msk.f32.mxu1 %vm3620_vm0, %v3621_v6 }
  0xc7   : > { %2883 = vmatmul.mubr.f32.gmra.mrb[80].mxu0 %v214_v43  ;;  %3282 = vmatmul.mubr.f32.gmra.mrb[80].mxu1 %v347_v44 }
  0xc8   : > { %2885 = vmatprep.mubr.msk.f32.mxu0 %vm3620_vm0, %v3621_v6  ;;  %3284 = vmatprep.mubr.msk.f32.mxu1 %vm3620_vm0, %v3621_v6 }
  0xcb   : > { %2886 = vmatmul.mubr.f32.gmra.mrb[82].mxu0 %v215_v45  ;;  %3285 = vmatmul.mubr.f32.gmra.mrb[82].mxu1 %v348_v46  ;;  %v231_v45 = vld [vmem:[%s3712_s24 + $0x1c8] sm:$0xff]  ;;  %v364_v46 = vld [vmem:[%s3712_s24 + $0x5f0] sm:$0xff] }
  0xcc   : > { %2888 = vmatprep.mubr.msk.f32.mxu0 %vm3620_vm0, %v3621_v6  ;;  %3287 = vmatprep.mubr.msk.f32.mxu1 %vm3620_vm0, %v3621_v6 }
  0xcf   : > { %2889 = vmatmul.mubr.f32.gmra.mrb[84].mxu0 %v216_v47  ;;  %3288 = vmatmul.mubr.f32.gmra.mrb[84].mxu1 %v349_v48 }
  0xd0   : > { %2891 = vmatprep.mubr.msk.f32.mxu0 %vm3620_vm0, %v3621_v6  ;;  %3290 = vmatprep.mubr.msk.f32.mxu1 %vm3620_vm0, %v3621_v6 }
  0xd3   : > { %2892 = vmatmul.mubr.f32.gmra.mrb[86].mxu0 %v217_v49  ;;  %3291 = vmatmul.mubr.f32.gmra.mrb[86].mxu1 %v350_v50 }
  0xd4   : > { %2894 = vmatprep.mubr.msk.f32.mxu0 %vm3620_vm0, %v3621_v6  ;;  %3293 = vmatprep.mubr.msk.f32.mxu1 %vm3620_vm0, %v3621_v6 }
  0xd7   : > { %2895 = vmatmul.mubr.f32.gmra.mrb[88].mxu0 %v218_v51  ;;  %3294 = vmatmul.mubr.f32.gmra.mrb[88].mxu1 %v351_v52 }
  0xd8   : > { %2897 = vmatprep.mubr.msk.f32.mxu0 %vm3620_vm0, %v3621_v6  ;;  %3296 = vmatprep.mubr.msk.f32.mxu1 %vm3620_vm0, %v3621_v6 }
  0xdb   : > { %2898 = vmatmul.mubr.f32.gmra.mrb[90].mxu0 %v219_v53  ;;  %3297 = vmatmul.mubr.f32.gmra.mrb[90].mxu1 %v352_v54 }
  0xdc   : > { %2900 = vmatprep.mubr.msk.f32.mxu0 %vm3620_vm0, %v3621_v6  ;;  %3299 = vmatprep.mubr.msk.f32.mxu1 %vm3620_vm0, %v3621_v6 }
  0xdf   : > { %2901 = vmatmul.mubr.f32.gmra.mrb[92].mxu0 %v220_v55  ;;  %3300 = vmatmul.mubr.f32.gmra.mrb[92].mxu1 %v353_v56  ;;  %v232_v55 = vld [vmem:[%s3712_s24 + $0x1d0] sm:$0xff]  ;;  %v365_v56 = vld [vmem:[%s3712_s24 + $0x5f8] sm:$0xff] }
  0xe0   : > { %2903 = vmatprep.mubr.msk.f32.mxu0 %vm3620_vm0, %v3621_v6  ;;  %3302 = vmatprep.mubr.msk.f32.mxu1 %vm3620_vm0, %v3621_v6 }
  0xe3   : > { %2904 = vmatmul.mubr.f32.gmra.mrb[94].mxu0 %v221_v57  ;;  %3303 = vmatmul.mubr.f32.gmra.mrb[94].mxu1 %v354_v58 }
  0xe4   : > { %2906 = vmatprep.mubr.msk.f32.mxu0 %vm3620_vm0, %v3621_v6  ;;  %3305 = vmatprep.mubr.msk.f32.mxu1 %vm3620_vm0, %v3621_v6 }
  0xe7   : > { %2907 = vmatmul.mubr.f32.gmra.mrb[96].mxu0 %v222_v59  ;;  %3306 = vmatmul.mubr.f32.gmra.mrb[96].mxu1 %v355_v60 }
  0xe8   : > { %2909 = vmatprep.mubr.msk.f32.mxu0 %vm3620_vm0, %v3621_v6  ;;  %3308 = vmatprep.mubr.msk.f32.mxu1 %vm3620_vm0, %v3621_v6 }
  0xeb   : > { %2910 = vmatmul.mubr.f32.gmra.mrb[98].mxu0 %v223_v61  ;;  %3309 = vmatmul.mubr.f32.gmra.mrb[98].mxu1 %v356_v62 }
  0xec   : > { %2912 = vmatprep.mubr.msk.f32.mxu0 %vm3620_vm0, %v3621_v6  ;;  %3311 = vmatprep.mubr.msk.f32.mxu1 %vm3620_vm0, %v3621_v6 }
  0xef   : > { %2913 = vmatmul.mubr.f32.gmra.mrb[100].mxu0 %v224_v63  ;;  %3312 = vmatmul.mubr.f32.gmra.mrb[100].mxu1 %v357_v0 }
  0xf0   : > { %2915 = vmatprep.mubr.msk.f32.mxu0 %vm3620_vm0, %v3621_v6  ;;  %3314 = vmatprep.mubr.msk.f32.mxu1 %vm3620_vm0, %v3621_v6 }
  0xf3   : > { %2916 = vmatmul.mubr.f32.gmra.mrb[102].mxu0 %v225_v1  ;;  %3315 = vmatmul.mubr.f32.gmra.mrb[102].mxu1 %v358_v2  ;;  %v233_v1 = vld [vmem:[%s3712_s24 + $0x1d8] sm:$0xff]  ;;  %v366_v2 = vld [vmem:[%s3712_s24 + $0x600] sm:$0xff] }
  0xf4   : > { %2918 = vmatprep.mubr.msk.f32.mxu0 %vm3620_vm0, %v3621_v6  ;;  %3317 = vmatprep.mubr.msk.f32.mxu1 %vm3620_vm0, %v3621_v6 }
  0xf7   : > { %2919 = vmatmul.mubr.f32.gmra.mrb[104].mxu0 %v226_v3  ;;  %3318 = vmatmul.mubr.f32.gmra.mrb[104].mxu1 %v359_v4 }
  0xf8   : > { %2921 = vmatprep.mubr.msk.f32.mxu0 %vm3620_vm0, %v3621_v6  ;;  %3320 = vmatprep.mubr.msk.f32.mxu1 %vm3620_vm0, %v3621_v6 }
  0xfa   : > { %v528_v9 = vpop.f32.mrb[0].mxu0  ;;  %v1193_v10 = vpop.f32.mrb[0].mxu1 }
  0xfb   : > { %v529_v11 = vadd.f32 %v4031_v5, %v528_v9  ;;  %v2764_v12 = vpop.f32.mrb[1].mxu0  ;;  %2922 = vmatmul.mubr.f32.gmra.mrb[106].mxu0 %v227_v7  ;;  %v1194_v13 = vadd.f32 %v4031_v5, %v1193_v10  ;;  %v3163_v14 = vpop.f32.mrb[1].mxu1  ;;  %3321 = vmatmul.mubr.f32.gmra.mrb[106].mxu1 %v360_v8 }
  0xfc   : > { %2924 = vmatprep.mubr.msk.f32.mxu0 %vm3620_vm0, %v3621_v6  ;;  %3323 = vmatprep.mubr.msk.f32.mxu1 %vm3620_vm0, %v3621_v6  ;;  %v367_v14 = vld [vmem:[%s3712_s24 + $0x608] sm:$0xff] }
  0xfd   : > { %v1852_v17 = vmax.f32 %v529_v11, 0.0  ;;  %v1985_v18 = vmax.f32 %v1194_v13, 0.0  ;;  %v234_v13 = vld [vmem:[%s3712_s24 + $0x1e0] sm:$0xff] }
  0xfe   : > { %v533_v19 = vpop.f32.mrb[2].mxu0  ;;  %v1198_v20 = vpop.f32.mrb[2].mxu1 }
  0xff   : > { %2118 = vst.msk [vmem:[%s4046_s29] sm:$0xff] %vm2117_vm1, %v1852_v17  ;;  %2251 = vst.msk [vmem:[%s4046_s29 + $0x428] sm:$0xff] %vm2117_vm1, %v1985_v18  ;;  %v534_v21 = vadd.f32 %v4031_v5, %v533_v19  ;;  %v2767_v22 = vpop.f32.mrb[3].mxu0  ;;  %2925 = vmatmul.mubr.f32.gmra.mrb[108].mxu0 %v228_v15  ;;  %v1199_v23 = vadd.f32 %v4031_v5, %v1198_v20  ;;  %v3166_v24 = vpop.f32.mrb[3].mxu1  ;;  %3324 = vmatmul.mubr.f32.gmra.mrb[108].mxu1 %v361_v16 }
 0x100   : > { %2927 = vmatprep.mubr.msk.f32.mxu0 %vm3620_vm0, %v3621_v6  ;;  %3326 = vmatprep.mubr.msk.f32.mxu1 %vm3620_vm0, %v3621_v6  ;;  %v368_v24 = vld [vmem:[%s3712_s24 + $0x610] sm:$0xff] }
 0x101   : > { %v1853_v27 = vmax.f32 %v534_v21, 0.0  ;;  %v1986_v28 = vmax.f32 %v1199_v23, 0.0  ;;  %v235_v23 = vld [vmem:[%s3712_s24 + $0x1e8] sm:$0xff] }
 0x102   : > { %v538_v29 = vpop.f32.mrb[4].mxu0  ;;  %v1203_v30 = vpop.f32.mrb[4].mxu1 }
 0x103   : > { %2119 = vst.msk [vmem:[%s4046_s29 + $0x8] sm:$0xff] %vm2117_vm1, %v1853_v27  ;;  %2252 = vst.msk [vmem:[%s4046_s29 + $0x430] sm:$0xff] %vm2117_vm1, %v1986_v28  ;;  %v539_v31 = vadd.f32 %v4031_v5, %v538_v29  ;;  %v2770_v32 = vpop.f32.mrb[5].mxu0  ;;  %2928 = vmatmul.mubr.f32.gmra.mrb[110].mxu0 %v229_v25  ;;  %v1204_v33 = vadd.f32 %v4031_v5, %v1203_v30  ;;  %v3169_v34 = vpop.f32.mrb[5].mxu1  ;;  %3327 = vmatmul.mubr.f32.gmra.mrb[110].mxu1 %v362_v26 }
 0x104   : > { %2930 = vmatprep.mubr.msk.f32.mxu0 %vm3620_vm0, %v3621_v6  ;;  %3329 = vmatprep.mubr.msk.f32.mxu1 %vm3620_vm0, %v3621_v6  ;;  %v369_v34 = vld [vmem:[%s3712_s24 + $0x618] sm:$0xff] }
 0x105   : > { %v1854_v37 = vmax.f32 %v539_v31, 0.0  ;;  %v1987_v38 = vmax.f32 %v1204_v33, 0.0  ;;  %v236_v33 = vld [vmem:[%s3712_s24 + $0x1f0] sm:$0xff] }
 0x106   : > { %v543_v39 = vpop.f32.mrb[6].mxu0  ;;  %v1208_v40 = vpop.f32.mrb[6].mxu1 }
 0x107   : > { %2120 = vst.msk [vmem:[%s4046_s29 + $0x10] sm:$0xff] %vm2117_vm1, %v1854_v37  ;;  %2253 = vst.msk [vmem:[%s4046_s29 + $0x438] sm:$0xff] %vm2117_vm1, %v1987_v38  ;;  %v544_v41 = vadd.f32 %v4031_v5, %v543_v39  ;;  %v2773_v42 = vpop.f32.mrb[7].mxu0  ;;  %2931 = vmatmul.mubr.f32.gmra.mrb[112].mxu0 %v230_v35  ;;  %v1209_v43 = vadd.f32 %v4031_v5, %v1208_v40  ;;  %v3172_v44 = vpop.f32.mrb[7].mxu1  ;;  %3330 = vmatmul.mubr.f32.gmra.mrb[112].mxu1 %v363_v36 }
 0x108   : > { %2933 = vmatprep.mubr.msk.f32.mxu0 %vm3620_vm0, %v3621_v6  ;;  %3332 = vmatprep.mubr.msk.f32.mxu1 %vm3620_vm0, %v3621_v6  ;;  %v370_v44 = vld [vmem:[%s3712_s24 + $0x620] sm:$0xff] }
 0x109   : > { %v1855_v47 = vmax.f32 %v544_v41, 0.0  ;;  %v1988_v48 = vmax.f32 %v1209_v43, 0.0  ;;  %v237_v43 = vld [vmem:[%s3712_s24 + $0x1f8] sm:$0xff] }
 0x10a   : > { %v548_v49 = vpop.f32.mrb[8].mxu0  ;;  %v1213_v50 = vpop.f32.mrb[8].mxu1 }
 0x10b   : > { %2121 = vst.msk [vmem:[%s4046_s29 + $0x18] sm:$0xff] %vm2117_vm1, %v1855_v47  ;;  %2254 = vst.msk [vmem:[%s4046_s29 + $0x440] sm:$0xff] %vm2117_vm1, %v1988_v48  ;;  %v549_v51 = vadd.f32 %v4031_v5, %v548_v49  ;;  %v2776_v52 = vpop.f32.mrb[9].mxu0  ;;  %2934 = vmatmul.mubr.f32.gmra.mrb[114].mxu0 %v231_v45  ;;  %v1214_v53 = vadd.f32 %v4031_v5, %v1213_v50  ;;  %v3175_v54 = vpop.f32.mrb[9].mxu1  ;;  %3333 = vmatmul.mubr.f32.gmra.mrb[114].mxu1 %v364_v46 }
 0x10c   : > { %2936 = vmatprep.mubr.msk.f32.mxu0 %vm3620_vm0, %v3621_v6  ;;  %3335 = vmatprep.mubr.msk.f32.mxu1 %vm3620_vm0, %v3621_v6  ;;  %v371_v54 = vld [vmem:[%s3712_s24 + $0x628] sm:$0xff] }
 0x10d   : > { %v1856_v57 = vmax.f32 %v549_v51, 0.0  ;;  %v1989_v58 = vmax.f32 %v1214_v53, 0.0  ;;  %v238_v53 = vld [vmem:[%s3712_s24 + $0x200] sm:$0xff] }
 0x10e   : > { %v553_v59 = vpop.f32.mrb[10].mxu0  ;;  %v1218_v60 = vpop.f32.mrb[10].mxu1 }
 0x10f   : > { %2122 = vst.msk [vmem:[%s4046_s29 + $0x20] sm:$0xff] %vm2117_vm1, %v1856_v57  ;;  %2255 = vst.msk [vmem:[%s4046_s29 + $0x448] sm:$0xff] %vm2117_vm1, %v1989_v58  ;;  %v554_v61 = vadd.f32 %v4031_v5, %v553_v59  ;;  %v2779_v62 = vpop.f32.mrb[11].mxu0  ;;  %2937 = vmatmul.mubr.f32.gmra.mrb[116].mxu0 %v232_v55  ;;  %v1219_v63 = vadd.f32 %v4031_v5, %v1218_v60  ;;  %v3178_v0 = vpop.f32.mrb[11].mxu1  ;;  %3336 = vmatmul.mubr.f32.gmra.mrb[116].mxu1 %v365_v56 }
 0x110   : > { %2939 = vmatprep.mubr.msk.f32.mxu0 %vm3620_vm0, %v3621_v6  ;;  %3338 = vmatprep.mubr.msk.f32.mxu1 %vm3620_vm0, %v3621_v6  ;;  %v372_v0 = vld [vmem:[%s3712_s24 + $0x630] sm:$0xff] }
 0x111   : > { %v1857_v3 = vmax.f32 %v554_v61, 0.0  ;;  %v1990_v4 = vmax.f32 %v1219_v63, 0.0  ;;  %v239_v63 = vld [vmem:[%s3712_s24 + $0x208] sm:$0xff] }
 0x112   : > { %v558_v7 = vpop.f32.mrb[12].mxu0  ;;  %v1223_v8 = vpop.f32.mrb[12].mxu1 }
 0x113   : > { %2123 = vst.msk [vmem:[%s4046_s29 + $0x28] sm:$0xff] %vm2117_vm1, %v1857_v3  ;;  %2256 = vst.msk [vmem:[%s4046_s29 + $0x450] sm:$0xff] %vm2117_vm1, %v1990_v4  ;;  %v559_v9 = vadd.f32 %v4031_v5, %v558_v7  ;;  %v2782_v10 = vpop.f32.mrb[13].mxu0  ;;  %2940 = vmatmul.mubr.f32.gmra.mrb[118].mxu0 %v233_v1  ;;  %v1224_v11 = vadd.f32 %v4031_v5, %v1223_v8  ;;  %v3181_v12 = vpop.f32.mrb[13].mxu1  ;;  %3339 = vmatmul.mubr.f32.gmra.mrb[118].mxu1 %v366_v2 }
 0x114   : > { %2942 = vmatprep.mubr.msk.f32.mxu0 %vm3620_vm0, %v3621_v6  ;;  %3341 = vmatprep.mubr.msk.f32.mxu1 %vm3620_vm0, %v3621_v6  ;;  %v373_v12 = vld [vmem:[%s3712_s24 + $0x638] sm:$0xff] }
 0x115   : > { %v1858_v15 = vmax.f32 %v559_v9, 0.0  ;;  %v1991_v16 = vmax.f32 %v1224_v11, 0.0  ;;  %v240_v11 = vld [vmem:[%s3712_s24 + $0x210] sm:$0xff] }
 0x116   : > { %v563_v17 = vpop.f32.mrb[14].mxu0  ;;  %v1228_v18 = vpop.f32.mrb[14].mxu1 }
 0x117   : > { %2124 = vst.msk [vmem:[%s4046_s29 + $0x30] sm:$0xff] %vm2117_vm1, %v1858_v15  ;;  %2257 = vst.msk [vmem:[%s4046_s29 + $0x458] sm:$0xff] %vm2117_vm1, %v1991_v16  ;;  %v564_v19 = vadd.f32 %v4031_v5, %v563_v17  ;;  %v2785_v20 = vpop.f32.mrb[15].mxu0  ;;  %2943 = vmatmul.mubr.f32.gmra.mrb[120].mxu0 %v234_v13  ;;  %v1229_v21 = vadd.f32 %v4031_v5, %v1228_v18  ;;  %v3184_v22 = vpop.f32.mrb[15].mxu1  ;;  %3342 = vmatmul.mubr.f32.gmra.mrb[120].mxu1 %v367_v14 }
 0x118   : > { %2945 = vmatprep.mubr.msk.f32.mxu0 %vm3620_vm0, %v3621_v6  ;;  %3344 = vmatprep.mubr.msk.f32.mxu1 %vm3620_vm0, %v3621_v6  ;;  %v374_v22 = vld [vmem:[%s3712_s24 + $0x640] sm:$0xff] }
 0x119   : > { %v1859_v25 = vmax.f32 %v564_v19, 0.0  ;;  %v1992_v26 = vmax.f32 %v1229_v21, 0.0  ;;  %v241_v21 = vld [vmem:[%s3712_s24 + $0x218] sm:$0xff] }
 0x11a   : > { %v568_v27 = vpop.f32.mrb[16].mxu0  ;;  %v1233_v28 = vpop.f32.mrb[16].mxu1 }
 0x11b   : > { %2125 = vst.msk [vmem:[%s4046_s29 + $0x38] sm:$0xff] %vm2117_vm1, %v1859_v25  ;;  %2258 = vst.msk [vmem:[%s4046_s29 + $0x460] sm:$0xff] %vm2117_vm1, %v1992_v26  ;;  %v569_v29 = vadd.f32 %v4031_v5, %v568_v27  ;;  %v2788_v30 = vpop.f32.mrb[17].mxu0  ;;  %2946 = vmatmul.mubr.f32.gmra.mrb[122].mxu0 %v235_v23  ;;  %v1234_v31 = vadd.f32 %v4031_v5, %v1233_v28  ;;  %v3187_v32 = vpop.f32.mrb[17].mxu1  ;;  %3345 = vmatmul.mubr.f32.gmra.mrb[122].mxu1 %v368_v24 }
 0x11c   : > { %2948 = vmatprep.mubr.msk.f32.mxu0 %vm3620_vm0, %v3621_v6  ;;  %3347 = vmatprep.mubr.msk.f32.mxu1 %vm3620_vm0, %v3621_v6  ;;  %v375_v32 = vld [vmem:[%s3712_s24 + $0x648] sm:$0xff] }
 0x11d   : > { %v1860_v35 = vmax.f32 %v569_v29, 0.0  ;;  %v1993_v36 = vmax.f32 %v1234_v31, 0.0  ;;  %v242_v31 = vld [vmem:[%s3712_s24 + $0x220] sm:$0xff] }
 0x11e   : > { %v573_v37 = vpop.f32.mrb[18].mxu0  ;;  %v1238_v38 = vpop.f32.mrb[18].mxu1 }
 0x11f   : > { %2126 = vst.msk [vmem:[%s4046_s29 + $0x40] sm:$0xff] %vm2117_vm1, %v1860_v35  ;;  %2259 = vst.msk [vmem:[%s4046_s29 + $0x468] sm:$0xff] %vm2117_vm1, %v1993_v36  ;;  %v574_v39 = vadd.f32 %v4031_v5, %v573_v37  ;;  %v2791_v40 = vpop.f32.mrb[19].mxu0  ;;  %2949 = vmatmul.mubr.f32.gmra.mrb[124].mxu0 %v236_v33  ;;  %v1239_v41 = vadd.f32 %v4031_v5, %v1238_v38  ;;  %v3190_v42 = vpop.f32.mrb[19].mxu1  ;;  %3348 = vmatmul.mubr.f32.gmra.mrb[124].mxu1 %v369_v34 }
 0x120   : > { %2951 = vmatprep.mubr.msk.f32.mxu0 %vm3620_vm0, %v3621_v6  ;;  %3350 = vmatprep.mubr.msk.f32.mxu1 %vm3620_vm0, %v3621_v6  ;;  %v376_v42 = vld [vmem:[%s3712_s24 + $0x650] sm:$0xff] }
 0x121   : > { %v1861_v45 = vmax.f32 %v574_v39, 0.0  ;;  %v1994_v46 = vmax.f32 %v1239_v41, 0.0  ;;  %v243_v41 = vld [vmem:[%s3712_s24 + $0x228] sm:$0xff] }
 0x122   : > { %v578_v47 = vpop.f32.mrb[20].mxu0  ;;  %v1243_v48 = vpop.f32.mrb[20].mxu1 }
 0x123   : > { %2127 = vst.msk [vmem:[%s4046_s29 + $0x48] sm:$0xff] %vm2117_vm1, %v1861_v45  ;;  %2260 = vst.msk [vmem:[%s4046_s29 + $0x470] sm:$0xff] %vm2117_vm1, %v1994_v46  ;;  %v579_v49 = vadd.f32 %v4031_v5, %v578_v47  ;;  %v2794_v50 = vpop.f32.mrb[21].mxu0  ;;  %2952 = vmatmul.mubr.f32.gmra.mrb[126].mxu0 %v237_v43  ;;  %v1244_v51 = vadd.f32 %v4031_v5, %v1243_v48  ;;  %v3193_v52 = vpop.f32.mrb[21].mxu1  ;;  %3351 = vmatmul.mubr.f32.gmra.mrb[126].mxu1 %v370_v44 }
 0x124   : > { %2954 = vmatprep.mubr.msk.f32.mxu0 %vm3620_vm0, %v3621_v6  ;;  %3353 = vmatprep.mubr.msk.f32.mxu1 %vm3620_vm0, %v3621_v6  ;;  %v377_v52 = vld [vmem:[%s3712_s24 + $0x658] sm:$0xff] }
 0x125   : > { %v1862_v55 = vmax.f32 %v579_v49, 0.0  ;;  %v1995_v56 = vmax.f32 %v1244_v51, 0.0  ;;  %v244_v51 = vld [vmem:[%s3712_s24 + $0x230] sm:$0xff] }
 0x126   : > { %v583_v57 = vpop.f32.mrb[22].mxu0  ;;  %v1248_v58 = vpop.f32.mrb[22].mxu1 }
 0x127   : > { %2128 = vst.msk [vmem:[%s4046_s29 + $0x50] sm:$0xff] %vm2117_vm1, %v1862_v55  ;;  %2261 = vst.msk [vmem:[%s4046_s29 + $0x478] sm:$0xff] %vm2117_vm1, %v1995_v56  ;;  %v584_v59 = vadd.f32 %v4031_v5, %v583_v57  ;;  %v2797_v60 = vpop.f32.mrb[23].mxu0  ;;  %2955 = vmatmul.mubr.f32.gmra.mrb[128].mxu0 %v238_v53  ;;  %v1249_v61 = vadd.f32 %v4031_v5, %v1248_v58  ;;  %v3196_v62 = vpop.f32.mrb[23].mxu1  ;;  %3354 = vmatmul.mubr.f32.gmra.mrb[128].mxu1 %v371_v54 }
 0x128   : > { %2957 = vmatprep.mubr.msk.f32.mxu0 %vm3620_vm0, %v3621_v6  ;;  %3356 = vmatprep.mubr.msk.f32.mxu1 %vm3620_vm0, %v3621_v6  ;;  %v378_v62 = vld [vmem:[%s3712_s24 + $0x660] sm:$0xff] }
 0x129   : > { %v1863_v1 = vmax.f32 %v584_v59, 0.0  ;;  %v1996_v2 = vmax.f32 %v1249_v61, 0.0  ;;  %v245_v61 = vld [vmem:[%s3712_s24 + $0x238] sm:$0xff] }
 0x12a   : > { %v588_v3 = vpop.f32.mrb[24].mxu0  ;;  %v1253_v4 = vpop.f32.mrb[24].mxu1 }
 0x12b   : > { %2129 = vst.msk [vmem:[%s4046_s29 + $0x58] sm:$0xff] %vm2117_vm1, %v1863_v1  ;;  %2262 = vst.msk [vmem:[%s4046_s29 + $0x480] sm:$0xff] %vm2117_vm1, %v1996_v2  ;;  %v589_v7 = vadd.f32 %v4031_v5, %v588_v3  ;;  %v2800_v8 = vpop.f32.mrb[25].mxu0  ;;  %2958 = vmatmul.mubr.f32.gmra.mrb[130].mxu0 %v239_v63  ;;  %v1254_v9 = vadd.f32 %v4031_v5, %v1253_v4  ;;  %v3199_v10 = vpop.f32.mrb[25].mxu1  ;;  %3357 = vmatmul.mubr.f32.gmra.mrb[130].mxu1 %v372_v0 }
 0x12c   : > { %2960 = vmatprep.mubr.msk.f32.mxu0 %vm3620_vm0, %v3621_v6  ;;  %3359 = vmatprep.mubr.msk.f32.mxu1 %vm3620_vm0, %v3621_v6  ;;  %v379_v10 = vld [vmem:[%s3712_s24 + $0x668] sm:$0xff] }
 0x12d   : > { %v1864_v13 = vmax.f32 %v589_v7, 0.0  ;;  %v1997_v14 = vmax.f32 %v1254_v9, 0.0  ;;  %v246_v9 = vld [vmem:[%s3712_s24 + $0x240] sm:$0xff] }
 0x12e   : > { %v593_v15 = vpop.f32.mrb[26].mxu0  ;;  %v1258_v16 = vpop.f32.mrb[26].mxu1 }
 0x12f   : > { %2130 = vst.msk [vmem:[%s4046_s29 + $0x60] sm:$0xff] %vm2117_vm1, %v1864_v13  ;;  %2263 = vst.msk [vmem:[%s4046_s29 + $0x488] sm:$0xff] %vm2117_vm1, %v1997_v14  ;;  %v594_v17 = vadd.f32 %v4031_v5, %v593_v15  ;;  %v2803_v18 = vpop.f32.mrb[27].mxu0  ;;  %2961 = vmatmul.mubr.f32.gmra.mrb[132].mxu0 %v240_v11  ;;  %v1259_v19 = vadd.f32 %v4031_v5, %v1258_v16  ;;  %v3202_v20 = vpop.f32.mrb[27].mxu1  ;;  %3360 = vmatmul.mubr.f32.gmra.mrb[132].mxu1 %v373_v12 }
 0x130   : > { %2963 = vmatprep.mubr.msk.f32.mxu0 %vm3620_vm0, %v3621_v6  ;;  %3362 = vmatprep.mubr.msk.f32.mxu1 %vm3620_vm0, %v3621_v6  ;;  %v380_v20 = vld [vmem:[%s3712_s24 + $0x670] sm:$0xff] }
 0x131   : > { %v1865_v23 = vmax.f32 %v594_v17, 0.0  ;;  %v1998_v24 = vmax.f32 %v1259_v19, 0.0  ;;  %v247_v19 = vld [vmem:[%s3712_s24 + $0x248] sm:$0xff] }
 0x132   : > { %v598_v25 = vpop.f32.mrb[28].mxu0  ;;  %v1263_v26 = vpop.f32.mrb[28].mxu1 }
 0x133   : > { %2131 = vst.msk [vmem:[%s4046_s29 + $0x68] sm:$0xff] %vm2117_vm1, %v1865_v23  ;;  %2264 = vst.msk [vmem:[%s4046_s29 + $0x490] sm:$0xff] %vm2117_vm1, %v1998_v24  ;;  %v599_v27 = vadd.f32 %v4031_v5, %v598_v25  ;;  %v2806_v28 = vpop.f32.mrb[29].mxu0  ;;  %2964 = vmatmul.mubr.f32.gmra.mrb[134].mxu0 %v241_v21  ;;  %v1264_v29 = vadd.f32 %v4031_v5, %v1263_v26  ;;  %v3205_v30 = vpop.f32.mrb[29].mxu1  ;;  %3363 = vmatmul.mubr.f32.gmra.mrb[134].mxu1 %v374_v22 }
 0x134   : > { %2966 = vmatprep.mubr.msk.f32.mxu0 %vm3620_vm0, %v3621_v6  ;;  %3365 = vmatprep.mubr.msk.f32.mxu1 %vm3620_vm0, %v3621_v6  ;;  %v381_v30 = vld [vmem:[%s3712_s24 + $0x678] sm:$0xff] }
 0x135   : > { %v1866_v33 = vmax.f32 %v599_v27, 0.0  ;;  %v1999_v34 = vmax.f32 %v1264_v29, 0.0  ;;  %v248_v29 = vld [vmem:[%s3712_s24 + $0x250] sm:$0xff] }
 0x136   : > { %v603_v35 = vpop.f32.mrb[30].mxu0  ;;  %v1268_v36 = vpop.f32.mrb[30].mxu1 }
 0x137   : > { %2132 = vst.msk [vmem:[%s4046_s29 + $0x70] sm:$0xff] %vm2117_vm1, %v1866_v33  ;;  %2265 = vst.msk [vmem:[%s4046_s29 + $0x498] sm:$0xff] %vm2117_vm1, %v1999_v34  ;;  %v604_v37 = vadd.f32 %v4031_v5, %v603_v35  ;;  %v2809_v38 = vpop.f32.mrb[31].mxu0  ;;  %2967 = vmatmul.mubr.f32.gmra.mrb[136].mxu0 %v242_v31  ;;  %v1269_v39 = vadd.f32 %v4031_v5, %v1268_v36  ;;  %v3208_v40 = vpop.f32.mrb[31].mxu1  ;;  %3366 = vmatmul.mubr.f32.gmra.mrb[136].mxu1 %v375_v32 }
 0x138   : > { %2969 = vmatprep.mubr.msk.f32.mxu0 %vm3620_vm0, %v3621_v6  ;;  %3368 = vmatprep.mubr.msk.f32.mxu1 %vm3620_vm0, %v3621_v6  ;;  %v382_v40 = vld [vmem:[%s3712_s24 + $0x680] sm:$0xff] }
 0x139   : > { %v1867_v43 = vmax.f32 %v604_v37, 0.0  ;;  %v2000_v44 = vmax.f32 %v1269_v39, 0.0  ;;  %v249_v39 = vld [vmem:[%s3712_s24 + $0x258] sm:$0xff] }
 0x13a   : > { %v608_v45 = vpop.f32.mrb[32].mxu0  ;;  %v1273_v46 = vpop.f32.mrb[32].mxu1 }
 0x13b   : > { %2133 = vst.msk [vmem:[%s4046_s29 + $0x78] sm:$0xff] %vm2117_vm1, %v1867_v43  ;;  %2266 = vst.msk [vmem:[%s4046_s29 + $0x4a0] sm:$0xff] %vm2117_vm1, %v2000_v44  ;;  %v609_v47 = vadd.f32 %v4031_v5, %v608_v45  ;;  %v2812_v48 = vpop.f32.mrb[33].mxu0  ;;  %2970 = vmatmul.mubr.f32.gmra.mrb[138].mxu0 %v243_v41  ;;  %v1274_v49 = vadd.f32 %v4031_v5, %v1273_v46  ;;  %v3211_v50 = vpop.f32.mrb[33].mxu1  ;;  %3369 = vmatmul.mubr.f32.gmra.mrb[138].mxu1 %v376_v42 }
 0x13c   : > { %2972 = vmatprep.mubr.msk.f32.mxu0 %vm3620_vm0, %v3621_v6  ;;  %3371 = vmatprep.mubr.msk.f32.mxu1 %vm3620_vm0, %v3621_v6  ;;  %v383_v50 = vld [vmem:[%s3712_s24 + $0x688] sm:$0xff] }
 0x13d   : > { %v1868_v53 = vmax.f32 %v609_v47, 0.0  ;;  %v2001_v54 = vmax.f32 %v1274_v49, 0.0  ;;  %v250_v49 = vld [vmem:[%s3712_s24 + $0x260] sm:$0xff] }
 0x13e   : > { %v613_v55 = vpop.f32.mrb[34].mxu0  ;;  %v1278_v56 = vpop.f32.mrb[34].mxu1 }
 0x13f   : > { %2134 = vst.msk [vmem:[%s4046_s29 + $0x80] sm:$0xff] %vm2117_vm1, %v1868_v53  ;;  %2267 = vst.msk [vmem:[%s4046_s29 + $0x4a8] sm:$0xff] %vm2117_vm1, %v2001_v54  ;;  %v614_v57 = vadd.f32 %v4031_v5, %v613_v55  ;;  %v2815_v58 = vpop.f32.mrb[35].mxu0  ;;  %2973 = vmatmul.mubr.f32.gmra.mrb[140].mxu0 %v244_v51  ;;  %v1279_v59 = vadd.f32 %v4031_v5, %v1278_v56  ;;  %v3214_v60 = vpop.f32.mrb[35].mxu1  ;;  %3372 = vmatmul.mubr.f32.gmra.mrb[140].mxu1 %v377_v52 }
 0x140   : > { %2975 = vmatprep.mubr.msk.f32.mxu0 %vm3620_vm0, %v3621_v6  ;;  %3374 = vmatprep.mubr.msk.f32.mxu1 %vm3620_vm0, %v3621_v6  ;;  %v384_v60 = vld [vmem:[%s3712_s24 + $0x690] sm:$0xff] }
 0x141   : > { %v1869_v63 = vmax.f32 %v614_v57, 0.0  ;;  %v2002_v0 = vmax.f32 %v1279_v59, 0.0  ;;  %v251_v59 = vld [vmem:[%s3712_s24 + $0x268] sm:$0xff] }
 0x142   : > { %v618_v1 = vpop.f32.mrb[36].mxu0  ;;  %v1283_v2 = vpop.f32.mrb[36].mxu1 }
 0x143   : > { %2135 = vst.msk [vmem:[%s4046_s29 + $0x88] sm:$0xff] %vm2117_vm1, %v1869_v63  ;;  %2268 = vst.msk [vmem:[%s4046_s29 + $0x4b0] sm:$0xff] %vm2117_vm1, %v2002_v0  ;;  %v619_v3 = vadd.f32 %v4031_v5, %v618_v1  ;;  %v2818_v4 = vpop.f32.mrb[37].mxu0  ;;  %2976 = vmatmul.mubr.f32.gmra.mrb[142].mxu0 %v245_v61  ;;  %v1284_v7 = vadd.f32 %v4031_v5, %v1283_v2  ;;  %v3217_v8 = vpop.f32.mrb[37].mxu1  ;;  %3375 = vmatmul.mubr.f32.gmra.mrb[142].mxu1 %v378_v62 }
 0x144   : > { %2978 = vmatprep.mubr.msk.f32.mxu0 %vm3620_vm0, %v3621_v6  ;;  %3377 = vmatprep.mubr.msk.f32.mxu1 %vm3620_vm0, %v3621_v6  ;;  %v385_v8 = vld [vmem:[%s3712_s24 + $0x698] sm:$0xff] }
 0x145   : > { %v1870_v11 = vmax.f32 %v619_v3, 0.0  ;;  %v2003_v12 = vmax.f32 %v1284_v7, 0.0  ;;  %v252_v7 = vld [vmem:[%s3712_s24 + $0x270] sm:$0xff] }
 0x146   : > { %v623_v13 = vpop.f32.mrb[38].mxu0  ;;  %v1288_v14 = vpop.f32.mrb[38].mxu1 }
 0x147   : > { %2136 = vst.msk [vmem:[%s4046_s29 + $0x90] sm:$0xff] %vm2117_vm1, %v1870_v11  ;;  %2269 = vst.msk [vmem:[%s4046_s29 + $0x4b8] sm:$0xff] %vm2117_vm1, %v2003_v12  ;;  %v624_v15 = vadd.f32 %v4031_v5, %v623_v13  ;;  %v2821_v16 = vpop.f32.mrb[39].mxu0  ;;  %2979 = vmatmul.mubr.f32.gmra.mrb[144].mxu0 %v246_v9  ;;  %v1289_v17 = vadd.f32 %v4031_v5, %v1288_v14  ;;  %v3220_v18 = vpop.f32.mrb[39].mxu1  ;;  %3378 = vmatmul.mubr.f32.gmra.mrb[144].mxu1 %v379_v10 }
 0x148   : > { %2981 = vmatprep.mubr.msk.f32.mxu0 %vm3620_vm0, %v3621_v6  ;;  %3380 = vmatprep.mubr.msk.f32.mxu1 %vm3620_vm0, %v3621_v6  ;;  %v386_v18 = vld [vmem:[%s3712_s24 + $0x6a0] sm:$0xff] }
 0x149   : > { %v1871_v21 = vmax.f32 %v624_v15, 0.0  ;;  %v2004_v22 = vmax.f32 %v1289_v17, 0.0  ;;  %v253_v17 = vld [vmem:[%s3712_s24 + $0x278] sm:$0xff] }
 0x14a   : > { %v628_v23 = vpop.f32.mrb[40].mxu0  ;;  %v1293_v24 = vpop.f32.mrb[40].mxu1 }
 0x14b   : > { %2137 = vst.msk [vmem:[%s4046_s29 + $0x98] sm:$0xff] %vm2117_vm1, %v1871_v21  ;;  %2270 = vst.msk [vmem:[%s4046_s29 + $0x4c0] sm:$0xff] %vm2117_vm1, %v2004_v22  ;;  %v629_v25 = vadd.f32 %v4031_v5, %v628_v23  ;;  %v2824_v26 = vpop.f32.mrb[41].mxu0  ;;  %2982 = vmatmul.mubr.f32.gmra.mrb[146].mxu0 %v247_v19  ;;  %v1294_v27 = vadd.f32 %v4031_v5, %v1293_v24  ;;  %v3223_v28 = vpop.f32.mrb[41].mxu1  ;;  %3381 = vmatmul.mubr.f32.gmra.mrb[146].mxu1 %v380_v20 }
 0x14c   : > { %2984 = vmatprep.mubr.msk.f32.mxu0 %vm3620_vm0, %v3621_v6  ;;  %3383 = vmatprep.mubr.msk.f32.mxu1 %vm3620_vm0, %v3621_v6  ;;  %v387_v28 = vld [vmem:[%s3712_s24 + $0x6a8] sm:$0xff] }
 0x14d   : > { %v1872_v31 = vmax.f32 %v629_v25, 0.0  ;;  %v2005_v32 = vmax.f32 %v1294_v27, 0.0  ;;  %v254_v27 = vld [vmem:[%s3712_s24 + $0x280] sm:$0xff] }
 0x14e   : > { %v633_v33 = vpop.f32.mrb[42].mxu0  ;;  %v1298_v34 = vpop.f32.mrb[42].mxu1 }
 0x14f   : > { %2138 = vst.msk [vmem:[%s4046_s29 + $0xa0] sm:$0xff] %vm2117_vm1, %v1872_v31  ;;  %2271 = vst.msk [vmem:[%s4046_s29 + $0x4c8] sm:$0xff] %vm2117_vm1, %v2005_v32  ;;  %v634_v35 = vadd.f32 %v4031_v5, %v633_v33  ;;  %v2827_v36 = vpop.f32.mrb[43].mxu0  ;;  %2985 = vmatmul.mubr.f32.gmra.mrb[148].mxu0 %v248_v29  ;;  %v1299_v37 = vadd.f32 %v4031_v5, %v1298_v34  ;;  %v3226_v38 = vpop.f32.mrb[43].mxu1  ;;  %3384 = vmatmul.mubr.f32.gmra.mrb[148].mxu1 %v381_v30 }
 0x150   : > { %2987 = vmatprep.mubr.msk.f32.mxu0 %vm3620_vm0, %v3621_v6  ;;  %3386 = vmatprep.mubr.msk.f32.mxu1 %vm3620_vm0, %v3621_v6  ;;  %v388_v38 = vld [vmem:[%s3712_s24 + $0x6b0] sm:$0xff] }
 0x151   : > { %v1873_v41 = vmax.f32 %v634_v35, 0.0  ;;  %v2006_v42 = vmax.f32 %v1299_v37, 0.0  ;;  %v255_v37 = vld [vmem:[%s3712_s24 + $0x288] sm:$0xff] }
 0x152   : > { %v638_v43 = vpop.f32.mrb[44].mxu0  ;;  %v1303_v44 = vpop.f32.mrb[44].mxu1 }
 0x153   : > { %2139 = vst.msk [vmem:[%s4046_s29 + $0xa8] sm:$0xff] %vm2117_vm1, %v1873_v41  ;;  %2272 = vst.msk [vmem:[%s4046_s29 + $0x4d0] sm:$0xff] %vm2117_vm1, %v2006_v42  ;;  %v639_v45 = vadd.f32 %v4031_v5, %v638_v43  ;;  %v2830_v46 = vpop.f32.mrb[45].mxu0  ;;  %2988 = vmatmul.mubr.f32.gmra.mrb[150].mxu0 %v249_v39  ;;  %v1304_v47 = vadd.f32 %v4031_v5, %v1303_v44  ;;  %v3229_v48 = vpop.f32.mrb[45].mxu1  ;;  %3387 = vmatmul.mubr.f32.gmra.mrb[150].mxu1 %v382_v40 }
 0x154   : > { %2990 = vmatprep.mubr.msk.f32.mxu0 %vm3620_vm0, %v3621_v6  ;;  %3389 = vmatprep.mubr.msk.f32.mxu1 %vm3620_vm0, %v3621_v6  ;;  %v389_v48 = vld [vmem:[%s3712_s24 + $0x6b8] sm:$0xff] }
 0x155   : > { %v1874_v51 = vmax.f32 %v639_v45, 0.0  ;;  %v2007_v52 = vmax.f32 %v1304_v47, 0.0  ;;  %v256_v47 = vld [vmem:[%s3712_s24 + $0x290] sm:$0xff] }
 0x156   : > { %v643_v53 = vpop.f32.mrb[46].mxu0  ;;  %v1308_v54 = vpop.f32.mrb[46].mxu1 }
 0x157   : > { %2140 = vst.msk [vmem:[%s4046_s29 + $0xb0] sm:$0xff] %vm2117_vm1, %v1874_v51  ;;  %2273 = vst.msk [vmem:[%s4046_s29 + $0x4d8] sm:$0xff] %vm2117_vm1, %v2007_v52  ;;  %v644_v55 = vadd.f32 %v4031_v5, %v643_v53  ;;  %v2833_v56 = vpop.f32.mrb[47].mxu0  ;;  %2991 = vmatmul.mubr.f32.gmra.mrb[152].mxu0 %v250_v49  ;;  %v1309_v57 = vadd.f32 %v4031_v5, %v1308_v54  ;;  %v3232_v58 = vpop.f32.mrb[47].mxu1  ;;  %3390 = vmatmul.mubr.f32.gmra.mrb[152].mxu1 %v383_v50 }
 0x158   : > { %2993 = vmatprep.mubr.msk.f32.mxu0 %vm3620_vm0, %v3621_v6  ;;  %3392 = vmatprep.mubr.msk.f32.mxu1 %vm3620_vm0, %v3621_v6  ;;  %v390_v58 = vld [vmem:[%s3712_s24 + $0x6c0] sm:$0xff] }
 0x159   : > { %v1875_v61 = vmax.f32 %v644_v55, 0.0  ;;  %v2008_v62 = vmax.f32 %v1309_v57, 0.0  ;;  %v257_v57 = vld [vmem:[%s3712_s24 + $0x298] sm:$0xff] }
 0x15a   : > { %v648_v63 = vpop.f32.mrb[48].mxu0  ;;  %v1313_v0 = vpop.f32.mrb[48].mxu1 }
 0x15b   : > { %2141 = vst.msk [vmem:[%s4046_s29 + $0xb8] sm:$0xff] %vm2117_vm1, %v1875_v61  ;;  %2274 = vst.msk [vmem:[%s4046_s29 + $0x4e0] sm:$0xff] %vm2117_vm1, %v2008_v62  ;;  %v649_v1 = vadd.f32 %v4031_v5, %v648_v63  ;;  %v2836_v2 = vpop.f32.mrb[49].mxu0  ;;  %2994 = vmatmul.mubr.f32.gmra.mrb[154].mxu0 %v251_v59  ;;  %v1314_v3 = vadd.f32 %v4031_v5, %v1313_v0  ;;  %v3235_v4 = vpop.f32.mrb[49].mxu1  ;;  %3393 = vmatmul.mubr.f32.gmra.mrb[154].mxu1 %v384_v60 }
 0x15c   : > { %2996 = vmatprep.mubr.msk.f32.mxu0 %vm3620_vm0, %v3621_v6  ;;  %3395 = vmatprep.mubr.msk.f32.mxu1 %vm3620_vm0, %v3621_v6  ;;  %v391_v4 = vld [vmem:[%s3712_s24 + $0x6c8] sm:$0xff] }
 0x15d   : > { %v1876_v9 = vmax.f32 %v649_v1, 0.0  ;;  %v2009_v10 = vmax.f32 %v1314_v3, 0.0  ;;  %v258_v3 = vld [vmem:[%s3712_s24 + $0x2a0] sm:$0xff] }
 0x15e   : > { %v653_v11 = vpop.f32.mrb[50].mxu0  ;;  %v1318_v12 = vpop.f32.mrb[50].mxu1 }
 0x15f   : > { %2142 = vst.msk [vmem:[%s4046_s29 + $0xc0] sm:$0xff] %vm2117_vm1, %v1876_v9  ;;  %2275 = vst.msk [vmem:[%s4046_s29 + $0x4e8] sm:$0xff] %vm2117_vm1, %v2009_v10  ;;  %v654_v13 = vadd.f32 %v4031_v5, %v653_v11  ;;  %v2839_v14 = vpop.f32.mrb[51].mxu0  ;;  %2997 = vmatmul.mubr.f32.gmra.mrb[156].mxu0 %v252_v7  ;;  %v1319_v15 = vadd.f32 %v4031_v5, %v1318_v12  ;;  %v3238_v16 = vpop.f32.mrb[51].mxu1  ;;  %3396 = vmatmul.mubr.f32.gmra.mrb[156].mxu1 %v385_v8 }
 0x160   : > { %2999 = vmatprep.mubr.msk.f32.mxu0 %vm3620_vm0, %v3621_v6  ;;  %3398 = vmatprep.mubr.msk.f32.mxu1 %vm3620_vm0, %v3621_v6  ;;  %v392_v16 = vld [vmem:[%s3712_s24 + $0x6d0] sm:$0xff] }
 0x161   : > { %v1877_v19 = vmax.f32 %v654_v13, 0.0  ;;  %v2010_v20 = vmax.f32 %v1319_v15, 0.0  ;;  %v259_v15 = vld [vmem:[%s3712_s24 + $0x2a8] sm:$0xff] }
 0x162   : > { %v658_v21 = vpop.f32.mrb[52].mxu0  ;;  %v1323_v22 = vpop.f32.mrb[52].mxu1 }
 0x163   : > { %2143 = vst.msk [vmem:[%s4046_s29 + $0xc8] sm:$0xff] %vm2117_vm1, %v1877_v19  ;;  %2276 = vst.msk [vmem:[%s4046_s29 + $0x4f0] sm:$0xff] %vm2117_vm1, %v2010_v20  ;;  %v659_v23 = vadd.f32 %v4031_v5, %v658_v21  ;;  %v2842_v24 = vpop.f32.mrb[53].mxu0  ;;  %3000 = vmatmul.mubr.f32.gmra.mrb[158].mxu0 %v253_v17  ;;  %v1324_v25 = vadd.f32 %v4031_v5, %v1323_v22  ;;  %v3241_v26 = vpop.f32.mrb[53].mxu1  ;;  %3399 = vmatmul.mubr.f32.gmra.mrb[158].mxu1 %v386_v18 }
 0x164   : > { %3002 = vmatprep.mubr.msk.f32.mxu0 %vm3620_vm0, %v3621_v6  ;;  %3401 = vmatprep.mubr.msk.f32.mxu1 %vm3620_vm0, %v3621_v6  ;;  %v393_v26 = vld [vmem:[%s3712_s24 + $0x6d8] sm:$0xff] }
 0x165   : > { %v1878_v29 = vmax.f32 %v659_v23, 0.0  ;;  %v2011_v30 = vmax.f32 %v1324_v25, 0.0  ;;  %v260_v25 = vld [vmem:[%s3712_s24 + $0x2b0] sm:$0xff] }
 0x166   : > { %v663_v31 = vpop.f32.mrb[54].mxu0  ;;  %v1328_v32 = vpop.f32.mrb[54].mxu1 }
 0x167   : > { %2144 = vst.msk [vmem:[%s4046_s29 + $0xd0] sm:$0xff] %vm2117_vm1, %v1878_v29  ;;  %2277 = vst.msk [vmem:[%s4046_s29 + $0x4f8] sm:$0xff] %vm2117_vm1, %v2011_v30  ;;  %v664_v33 = vadd.f32 %v4031_v5, %v663_v31  ;;  %v2845_v34 = vpop.f32.mrb[55].mxu0  ;;  %3003 = vmatmul.mubr.f32.gmra.mrb[160].mxu0 %v254_v27  ;;  %v1329_v35 = vadd.f32 %v4031_v5, %v1328_v32  ;;  %v3244_v36 = vpop.f32.mrb[55].mxu1  ;;  %3402 = vmatmul.mubr.f32.gmra.mrb[160].mxu1 %v387_v28 }
 0x168   : > { %3005 = vmatprep.mubr.msk.f32.mxu0 %vm3620_vm0, %v3621_v6  ;;  %3404 = vmatprep.mubr.msk.f32.mxu1 %vm3620_vm0, %v3621_v6  ;;  %v394_v36 = vld [vmem:[%s3712_s24 + $0x6e0] sm:$0xff] }
 0x169   : > { %v1879_v39 = vmax.f32 %v664_v33, 0.0  ;;  %v2012_v40 = vmax.f32 %v1329_v35, 0.0  ;;  %v261_v35 = vld [vmem:[%s3712_s24 + $0x2b8] sm:$0xff] }
 0x16a   : > { %v668_v41 = vpop.f32.mrb[56].mxu0  ;;  %v1333_v42 = vpop.f32.mrb[56].mxu1 }
 0x16b   : > { %2145 = vst.msk [vmem:[%s4046_s29 + $0xd8] sm:$0xff] %vm2117_vm1, %v1879_v39  ;;  %2278 = vst.msk [vmem:[%s4046_s29 + $0x500] sm:$0xff] %vm2117_vm1, %v2012_v40  ;;  %v669_v43 = vadd.f32 %v4031_v5, %v668_v41  ;;  %v2848_v44 = vpop.f32.mrb[57].mxu0  ;;  %3006 = vmatmul.mubr.f32.gmra.mrb[162].mxu0 %v255_v37  ;;  %v1334_v45 = vadd.f32 %v4031_v5, %v1333_v42  ;;  %v3247_v46 = vpop.f32.mrb[57].mxu1  ;;  %3405 = vmatmul.mubr.f32.gmra.mrb[162].mxu1 %v388_v38 }
 0x16c   : > { %3008 = vmatprep.mubr.msk.f32.mxu0 %vm3620_vm0, %v3621_v6  ;;  %3407 = vmatprep.mubr.msk.f32.mxu1 %vm3620_vm0, %v3621_v6  ;;  %v395_v46 = vld [vmem:[%s3712_s24 + $0x6e8] sm:$0xff] }
 0x16d   : > { %v1880_v49 = vmax.f32 %v669_v43, 0.0  ;;  %v2013_v50 = vmax.f32 %v1334_v45, 0.0  ;;  %v262_v45 = vld [vmem:[%s3712_s24 + $0x2c0] sm:$0xff] }
 0x16e   : > { %v673_v51 = vpop.f32.mrb[58].mxu0  ;;  %v1338_v52 = vpop.f32.mrb[58].mxu1 }
 0x16f   : > { %2146 = vst.msk [vmem:[%s4046_s29 + $0xe0] sm:$0xff] %vm2117_vm1, %v1880_v49  ;;  %2279 = vst.msk [vmem:[%s4046_s29 + $0x508] sm:$0xff] %vm2117_vm1, %v2013_v50  ;;  %v674_v53 = vadd.f32 %v4031_v5, %v673_v51  ;;  %v2851_v54 = vpop.f32.mrb[59].mxu0  ;;  %3009 = vmatmul.mubr.f32.gmra.mrb[164].mxu0 %v256_v47  ;;  %v1339_v55 = vadd.f32 %v4031_v5, %v1338_v52  ;;  %v3250_v56 = vpop.f32.mrb[59].mxu1  ;;  %3408 = vmatmul.mubr.f32.gmra.mrb[164].mxu1 %v389_v48 }
 0x170   : > { %3011 = vmatprep.mubr.msk.f32.mxu0 %vm3620_vm0, %v3621_v6  ;;  %3410 = vmatprep.mubr.msk.f32.mxu1 %vm3620_vm0, %v3621_v6  ;;  %v396_v56 = vld [vmem:[%s3712_s24 + $0x6f0] sm:$0xff] }
 0x171   : > { %v1881_v59 = vmax.f32 %v674_v53, 0.0  ;;  %v2014_v60 = vmax.f32 %v1339_v55, 0.0  ;;  %v263_v55 = vld [vmem:[%s3712_s24 + $0x2c8] sm:$0xff] }
 0x172   : > { %v678_v61 = vpop.f32.mrb[60].mxu0  ;;  %v1343_v62 = vpop.f32.mrb[60].mxu1 }
 0x173   : > { %2147 = vst.msk [vmem:[%s4046_s29 + $0xe8] sm:$0xff] %vm2117_vm1, %v1881_v59  ;;  %2280 = vst.msk [vmem:[%s4046_s29 + $0x510] sm:$0xff] %vm2117_vm1, %v2014_v60  ;;  %v679_v63 = vadd.f32 %v4031_v5, %v678_v61  ;;  %v2854_v0 = vpop.f32.mrb[61].mxu0  ;;  %3012 = vmatmul.mubr.f32.gmra.mrb[166].mxu0 %v257_v57  ;;  %v1344_v1 = vadd.f32 %v4031_v5, %v1343_v62  ;;  %v3253_v2 = vpop.f32.mrb[61].mxu1  ;;  %3411 = vmatmul.mubr.f32.gmra.mrb[166].mxu1 %v390_v58 }
 0x174   : > { %3014 = vmatprep.mubr.msk.f32.mxu0 %vm3620_vm0, %v3621_v6  ;;  %3413 = vmatprep.mubr.msk.f32.mxu1 %vm3620_vm0, %v3621_v6  ;;  %v397_v2 = vld [vmem:[%s3712_s24 + $0x6f8] sm:$0xff] }
 0x175   : > { %v1882_v7 = vmax.f32 %v679_v63, 0.0  ;;  %v2015_v8 = vmax.f32 %v1344_v1, 0.0  ;;  %v264_v1 = vld [vmem:[%s3712_s24 + $0x2d0] sm:$0xff] }
 0x176   : > { %v683_v9 = vpop.f32.mrb[62].mxu0  ;;  %v1348_v10 = vpop.f32.mrb[62].mxu1 }
 0x177   : > { %2148 = vst.msk [vmem:[%s4046_s29 + $0xf0] sm:$0xff] %vm2117_vm1, %v1882_v7  ;;  %2281 = vst.msk [vmem:[%s4046_s29 + $0x518] sm:$0xff] %vm2117_vm1, %v2015_v8  ;;  %v684_v11 = vadd.f32 %v4031_v5, %v683_v9  ;;  %v2857_v12 = vpop.f32.mrb[63].mxu0  ;;  %3015 = vmatmul.mubr.f32.gmra.mrb[168].mxu0 %v258_v3  ;;  %v1349_v13 = vadd.f32 %v4031_v5, %v1348_v10  ;;  %v3256_v14 = vpop.f32.mrb[63].mxu1  ;;  %3414 = vmatmul.mubr.f32.gmra.mrb[168].mxu1 %v391_v4  ;;  %v4433_v5 = vld [vmem:[%s5332_s2] ss:$0 sm:$0xff] }
 0x178   : > { %3017 = vmatprep.mubr.msk.f32.mxu0 %vm3620_vm0, %v3621_v6  ;;  %3416 = vmatprep.mubr.msk.f32.mxu1 %vm3620_vm0, %v3621_v6  ;;  %v398_v14 = vld [vmem:[%s3712_s24 + $0x700] sm:$0xff] }
 0x179   : > { %v1883_v17 = vmax.f32 %v684_v11, 0.0  ;;  %v2016_v18 = vmax.f32 %v1349_v13, 0.0  ;;  %v265_v13 = vld [vmem:[%s3712_s24 + $0x2d8] sm:$0xff] }
 0x17a   : > { %v688_v19 = vpop.f32.mrb[64].mxu0  ;;  %v1353_v20 = vpop.f32.mrb[64].mxu1 }
 0x17b   : > { %2149 = vst.msk [vmem:[%s4046_s29 + $0xf8] sm:$0xff] %vm2117_vm1, %v1883_v17  ;;  %2282 = vst.msk [vmem:[%s4046_s29 + $0x520] sm:$0xff] %vm2117_vm1, %v2016_v18  ;;  %v689_v21 = vadd.f32 %v4433_v5, %v688_v19  ;;  %v2860_v22 = vpop.f32.mrb[65].mxu0  ;;  %3018 = vmatmul.mubr.f32.gmra.mrb[170].mxu0 %v259_v15  ;;  %v1354_v23 = vadd.f32 %v4433_v5, %v1353_v20  ;;  %v3259_v24 = vpop.f32.mrb[65].mxu1  ;;  %3417 = vmatmul.mubr.f32.gmra.mrb[170].mxu1 %v392_v16 }
 0x17c   : > { %3020 = vmatprep.mubr.msk.f32.mxu0 %vm3620_vm0, %v3621_v6  ;;  %3419 = vmatprep.mubr.msk.f32.mxu1 %vm3620_vm0, %v3621_v6  ;;  %v399_v24 = vld [vmem:[%s3712_s24 + $0x708] sm:$0xff] }
 0x17d   : > { %v1884_v27 = vmax.f32 %v689_v21, 0.0  ;;  %v2017_v28 = vmax.f32 %v1354_v23, 0.0  ;;  %v266_v23 = vld [vmem:[%s3712_s24 + $0x2e0] sm:$0xff] }
 0x17e   : > { %v693_v29 = vpop.f32.mrb[66].mxu0  ;;  %v1358_v30 = vpop.f32.mrb[66].mxu1 }
 0x17f   : > { %2150 = vst.msk [vmem:[%s4046_s29 + $0x100] sm:$0xff] %vm2117_vm1, %v1884_v27  ;;  %2283 = vst.msk [vmem:[%s4046_s29 + $0x528] sm:$0xff] %vm2117_vm1, %v2017_v28  ;;  %v694_v31 = vadd.f32 %v4433_v5, %v693_v29  ;;  %v2863_v32 = vpop.f32.mrb[67].mxu0  ;;  %3021 = vmatmul.mubr.f32.gmra.mrb[172].mxu0 %v260_v25  ;;  %v1359_v33 = vadd.f32 %v4433_v5, %v1358_v30  ;;  %v3262_v34 = vpop.f32.mrb[67].mxu1  ;;  %3420 = vmatmul.mubr.f32.gmra.mrb[172].mxu1 %v393_v26 }
 0x180   : > { %3023 = vmatprep.mubr.msk.f32.mxu0 %vm3620_vm0, %v3621_v6  ;;  %3422 = vmatprep.mubr.msk.f32.mxu1 %vm3620_vm0, %v3621_v6  ;;  %v400_v34 = vld [vmem:[%s3712_s24 + $0x710] sm:$0xff] }
 0x181   : > { %v1885_v37 = vmax.f32 %v694_v31, 0.0  ;;  %v2018_v38 = vmax.f32 %v1359_v33, 0.0  ;;  %v267_v33 = vld [vmem:[%s3712_s24 + $0x2e8] sm:$0xff] }
 0x182   : > { %v698_v39 = vpop.f32.mrb[68].mxu0  ;;  %v1363_v40 = vpop.f32.mrb[68].mxu1 }
 0x183   : > { %2151 = vst.msk [vmem:[%s4046_s29 + $0x108] sm:$0xff] %vm2117_vm1, %v1885_v37  ;;  %2284 = vst.msk [vmem:[%s4046_s29 + $0x530] sm:$0xff] %vm2117_vm1, %v2018_v38  ;;  %v699_v41 = vadd.f32 %v4433_v5, %v698_v39  ;;  %v2866_v42 = vpop.f32.mrb[69].mxu0  ;;  %3024 = vmatmul.mubr.f32.gmra.mrb[174].mxu0 %v261_v35  ;;  %v1364_v43 = vadd.f32 %v4433_v5, %v1363_v40  ;;  %v3265_v44 = vpop.f32.mrb[69].mxu1  ;;  %3423 = vmatmul.mubr.f32.gmra.mrb[174].mxu1 %v394_v36 }
 0x184   : > { %3026 = vmatprep.mubr.msk.f32.mxu0 %vm3620_vm0, %v3621_v6  ;;  %3425 = vmatprep.mubr.msk.f32.mxu1 %vm3620_vm0, %v3621_v6  ;;  %v401_v44 = vld [vmem:[%s3712_s24 + $0x718] sm:$0xff] }
 0x185   : > { %v1886_v47 = vmax.f32 %v699_v41, 0.0  ;;  %v2019_v48 = vmax.f32 %v1364_v43, 0.0  ;;  %v268_v43 = vld [vmem:[%s3712_s24 + $0x2f0] sm:$0xff] }
 0x186   : > { %v703_v49 = vpop.f32.mrb[70].mxu0  ;;  %v1368_v50 = vpop.f32.mrb[70].mxu1 }
 0x187   : > { %2152 = vst.msk [vmem:[%s4046_s29 + $0x110] sm:$0xff] %vm2117_vm1, %v1886_v47  ;;  %2285 = vst.msk [vmem:[%s4046_s29 + $0x538] sm:$0xff] %vm2117_vm1, %v2019_v48  ;;  %v704_v51 = vadd.f32 %v4433_v5, %v703_v49  ;;  %v2869_v52 = vpop.f32.mrb[71].mxu0  ;;  %3027 = vmatmul.mubr.f32.gmra.mrb[176].mxu0 %v262_v45  ;;  %v1369_v53 = vadd.f32 %v4433_v5, %v1368_v50  ;;  %v3268_v54 = vpop.f32.mrb[71].mxu1  ;;  %3426 = vmatmul.mubr.f32.gmra.mrb[176].mxu1 %v395_v46 }
 0x188   : > { %3029 = vmatprep.mubr.msk.f32.mxu0 %vm3620_vm0, %v3621_v6  ;;  %3428 = vmatprep.mubr.msk.f32.mxu1 %vm3620_vm0, %v3621_v6  ;;  %v402_v54 = vld [vmem:[%s3712_s24 + $0x720] sm:$0xff] }
 0x189   : > { %v1887_v57 = vmax.f32 %v704_v51, 0.0  ;;  %v2020_v58 = vmax.f32 %v1369_v53, 0.0  ;;  %v269_v53 = vld [vmem:[%s3712_s24 + $0x2f8] sm:$0xff] }
 0x18a   : > { %v708_v59 = vpop.f32.mrb[72].mxu0  ;;  %v1373_v60 = vpop.f32.mrb[72].mxu1 }
 0x18b   : > { %2153 = vst.msk [vmem:[%s4046_s29 + $0x118] sm:$0xff] %vm2117_vm1, %v1887_v57  ;;  %2286 = vst.msk [vmem:[%s4046_s29 + $0x540] sm:$0xff] %vm2117_vm1, %v2020_v58  ;;  %v709_v61 = vadd.f32 %v4433_v5, %v708_v59  ;;  %v2872_v62 = vpop.f32.mrb[73].mxu0  ;;  %3030 = vmatmul.mubr.f32.gmra.mrb[178].mxu0 %v263_v55  ;;  %v1374_v63 = vadd.f32 %v4433_v5, %v1373_v60  ;;  %v3271_v0 = vpop.f32.mrb[73].mxu1  ;;  %3429 = vmatmul.mubr.f32.gmra.mrb[178].mxu1 %v396_v56 }
 0x18c   : > { %3032 = vmatprep.mubr.msk.f32.mxu0 %vm3620_vm0, %v3621_v6  ;;  %3431 = vmatprep.mubr.msk.f32.mxu1 %vm3620_vm0, %v3621_v6  ;;  %v403_v0 = vld [vmem:[%s3712_s24 + $0x728] sm:$0xff] }
 0x18d   : > { %v1888_v3 = vmax.f32 %v709_v61, 0.0  ;;  %v2021_v4 = vmax.f32 %v1374_v63, 0.0  ;;  %v270_v63 = vld [vmem:[%s3712_s24 + $0x300] sm:$0xff] }
 0x18e   : > { %v713_v7 = vpop.f32.mrb[74].mxu0  ;;  %v1378_v8 = vpop.f32.mrb[74].mxu1 }
 0x18f   : > { %2154 = vst.msk [vmem:[%s4046_s29 + $0x120] sm:$0xff] %vm2117_vm1, %v1888_v3  ;;  %2287 = vst.msk [vmem:[%s4046_s29 + $0x548] sm:$0xff] %vm2117_vm1, %v2021_v4  ;;  %v714_v9 = vadd.f32 %v4433_v5, %v713_v7  ;;  %v2875_v10 = vpop.f32.mrb[75].mxu0  ;;  %3033 = vmatmul.mubr.f32.gmra.mrb[180].mxu0 %v264_v1  ;;  %v1379_v11 = vadd.f32 %v4433_v5, %v1378_v8  ;;  %v3274_v12 = vpop.f32.mrb[75].mxu1  ;;  %3432 = vmatmul.mubr.f32.gmra.mrb[180].mxu1 %v397_v2 }
 0x190   : > { %3035 = vmatprep.mubr.msk.f32.mxu0 %vm3620_vm0, %v3621_v6  ;;  %3434 = vmatprep.mubr.msk.f32.mxu1 %vm3620_vm0, %v3621_v6  ;;  %v404_v12 = vld [vmem:[%s3712_s24 + $0x730] sm:$0xff] }
 0x191   : > { %v1889_v15 = vmax.f32 %v714_v9, 0.0  ;;  %v2022_v16 = vmax.f32 %v1379_v11, 0.0  ;;  %v271_v11 = vld [vmem:[%s3712_s24 + $0x308] sm:$0xff] }
 0x192   : > { %v718_v17 = vpop.f32.mrb[76].mxu0  ;;  %v1383_v18 = vpop.f32.mrb[76].mxu1 }
 0x193   : > { %2155 = vst.msk [vmem:[%s4046_s29 + $0x128] sm:$0xff] %vm2117_vm1, %v1889_v15  ;;  %2288 = vst.msk [vmem:[%s4046_s29 + $0x550] sm:$0xff] %vm2117_vm1, %v2022_v16  ;;  %v719_v19 = vadd.f32 %v4433_v5, %v718_v17  ;;  %v2878_v20 = vpop.f32.mrb[77].mxu0  ;;  %3036 = vmatmul.mubr.f32.gmra.mrb[182].mxu0 %v265_v13  ;;  %v1384_v21 = vadd.f32 %v4433_v5, %v1383_v18  ;;  %v3277_v22 = vpop.f32.mrb[77].mxu1  ;;  %3435 = vmatmul.mubr.f32.gmra.mrb[182].mxu1 %v398_v14 }
 0x194   : > { %3038 = vmatprep.mubr.msk.f32.mxu0 %vm3620_vm0, %v3621_v6  ;;  %3437 = vmatprep.mubr.msk.f32.mxu1 %vm3620_vm0, %v3621_v6  ;;  %v405_v22 = vld [vmem:[%s3712_s24 + $0x738] sm:$0xff] }
 0x195   : > { %v1890_v25 = vmax.f32 %v719_v19, 0.0  ;;  %v2023_v26 = vmax.f32 %v1384_v21, 0.0  ;;  %v272_v21 = vld [vmem:[%s3712_s24 + $0x310] sm:$0xff] }
 0x196   : > { %v723_v27 = vpop.f32.mrb[78].mxu0  ;;  %v1388_v28 = vpop.f32.mrb[78].mxu1 }
 0x197   : > { %2156 = vst.msk [vmem:[%s4046_s29 + $0x130] sm:$0xff] %vm2117_vm1, %v1890_v25  ;;  %2289 = vst.msk [vmem:[%s4046_s29 + $0x558] sm:$0xff] %vm2117_vm1, %v2023_v26  ;;  %v724_v29 = vadd.f32 %v4433_v5, %v723_v27  ;;  %v2881_v30 = vpop.f32.mrb[79].mxu0  ;;  %3039 = vmatmul.mubr.f32.gmra.mrb[184].mxu0 %v266_v23  ;;  %v1389_v31 = vadd.f32 %v4433_v5, %v1388_v28  ;;  %v3280_v32 = vpop.f32.mrb[79].mxu1  ;;  %3438 = vmatmul.mubr.f32.gmra.mrb[184].mxu1 %v399_v24 }
 0x198   : > { %3041 = vmatprep.mubr.msk.f32.mxu0 %vm3620_vm0, %v3621_v6  ;;  %3440 = vmatprep.mubr.msk.f32.mxu1 %vm3620_vm0, %v3621_v6  ;;  %v406_v32 = vld [vmem:[%s3712_s24 + $0x740] sm:$0xff] }
 0x199   : > { %v1891_v35 = vmax.f32 %v724_v29, 0.0  ;;  %v2024_v36 = vmax.f32 %v1389_v31, 0.0  ;;  %v273_v31 = vld [vmem:[%s3712_s24 + $0x318] sm:$0xff] }
 0x19a   : > { %v728_v37 = vpop.f32.mrb[80].mxu0  ;;  %v1393_v38 = vpop.f32.mrb[80].mxu1 }
 0x19b   : > { %2157 = vst.msk [vmem:[%s4046_s29 + $0x138] sm:$0xff] %vm2117_vm1, %v1891_v35  ;;  %2290 = vst.msk [vmem:[%s4046_s29 + $0x560] sm:$0xff] %vm2117_vm1, %v2024_v36  ;;  %v729_v39 = vadd.f32 %v4433_v5, %v728_v37  ;;  %v2884_v40 = vpop.f32.mrb[81].mxu0  ;;  %3042 = vmatmul.mubr.f32.gmra.mrb[186].mxu0 %v267_v33  ;;  %v1394_v41 = vadd.f32 %v4433_v5, %v1393_v38  ;;  %v3283_v42 = vpop.f32.mrb[81].mxu1  ;;  %3441 = vmatmul.mubr.f32.gmra.mrb[186].mxu1 %v400_v34 }
 0x19c   : > { %3044 = vmatprep.mubr.msk.f32.mxu0 %vm3620_vm0, %v3621_v6  ;;  %3443 = vmatprep.mubr.msk.f32.mxu1 %vm3620_vm0, %v3621_v6  ;;  %v407_v42 = vld [vmem:[%s3712_s24 + $0x748] sm:$0xff] }
 0x19d   : > { %v1892_v45 = vmax.f32 %v729_v39, 0.0  ;;  %v2025_v46 = vmax.f32 %v1394_v41, 0.0  ;;  %v274_v41 = vld [vmem:[%s3712_s24 + $0x320] sm:$0xff] }
 0x19e   : > { %v733_v47 = vpop.f32.mrb[82].mxu0  ;;  %v1398_v48 = vpop.f32.mrb[82].mxu1 }
 0x19f   : > { %2158 = vst.msk [vmem:[%s4046_s29 + $0x140] sm:$0xff] %vm2117_vm1, %v1892_v45  ;;  %2291 = vst.msk [vmem:[%s4046_s29 + $0x568] sm:$0xff] %vm2117_vm1, %v2025_v46  ;;  %v734_v49 = vadd.f32 %v4433_v5, %v733_v47  ;;  %v2887_v50 = vpop.f32.mrb[83].mxu0  ;;  %3045 = vmatmul.mubr.f32.gmra.mrb[188].mxu0 %v268_v43  ;;  %v1399_v51 = vadd.f32 %v4433_v5, %v1398_v48  ;;  %v3286_v52 = vpop.f32.mrb[83].mxu1  ;;  %3444 = vmatmul.mubr.f32.gmra.mrb[188].mxu1 %v401_v44 }
 0x1a0   : > { %3047 = vmatprep.mubr.msk.f32.mxu0 %vm3620_vm0, %v3621_v6  ;;  %3446 = vmatprep.mubr.msk.f32.mxu1 %vm3620_vm0, %v3621_v6  ;;  %v408_v52 = vld [vmem:[%s3712_s24 + $0x750] sm:$0xff] }
 0x1a1   : > { %v1893_v55 = vmax.f32 %v734_v49, 0.0  ;;  %v2026_v56 = vmax.f32 %v1399_v51, 0.0  ;;  %v275_v51 = vld [vmem:[%s3712_s24 + $0x328] sm:$0xff] }
 0x1a2   : > { %v738_v57 = vpop.f32.mrb[84].mxu0  ;;  %v1403_v58 = vpop.f32.mrb[84].mxu1 }
 0x1a3   : > { %2159 = vst.msk [vmem:[%s4046_s29 + $0x148] sm:$0xff] %vm2117_vm1, %v1893_v55  ;;  %2292 = vst.msk [vmem:[%s4046_s29 + $0x570] sm:$0xff] %vm2117_vm1, %v2026_v56  ;;  %v739_v59 = vadd.f32 %v4433_v5, %v738_v57  ;;  %v2890_v60 = vpop.f32.mrb[85].mxu0  ;;  %3048 = vmatmul.mubr.f32.gmra.mrb[190].mxu0 %v269_v53  ;;  %v1404_v61 = vadd.f32 %v4433_v5, %v1403_v58  ;;  %v3289_v62 = vpop.f32.mrb[85].mxu1  ;;  %3447 = vmatmul.mubr.f32.gmra.mrb[190].mxu1 %v402_v54 }
 0x1a4   : > { %3050 = vmatprep.mubr.msk.f32.mxu0 %vm3620_vm0, %v3621_v6  ;;  %3449 = vmatprep.mubr.msk.f32.mxu1 %vm3620_vm0, %v3621_v6  ;;  %v409_v62 = vld [vmem:[%s3712_s24 + $0x758] sm:$0xff] }
 0x1a5   : > { %v1894_v1 = vmax.f32 %v739_v59, 0.0  ;;  %v2027_v2 = vmax.f32 %v1404_v61, 0.0  ;;  %v276_v61 = vld [vmem:[%s3712_s24 + $0x330] sm:$0xff] }
 0x1a6   : > { %v743_v3 = vpop.f32.mrb[86].mxu0  ;;  %v1408_v4 = vpop.f32.mrb[86].mxu1 }
 0x1a7   : > { %2160 = vst.msk [vmem:[%s4046_s29 + $0x150] sm:$0xff] %vm2117_vm1, %v1894_v1  ;;  %2293 = vst.msk [vmem:[%s4046_s29 + $0x578] sm:$0xff] %vm2117_vm1, %v2027_v2  ;;  %v744_v7 = vadd.f32 %v4433_v5, %v743_v3  ;;  %v2893_v8 = vpop.f32.mrb[87].mxu0  ;;  %3051 = vmatmul.mubr.f32.gmra.mrb[192].mxu0 %v270_v63  ;;  %v1409_v9 = vadd.f32 %v4433_v5, %v1408_v4  ;;  %v3292_v10 = vpop.f32.mrb[87].mxu1  ;;  %3450 = vmatmul.mubr.f32.gmra.mrb[192].mxu1 %v403_v0 }
 0x1a8   : > { %3053 = vmatprep.mubr.msk.f32.mxu0 %vm3620_vm0, %v3621_v6  ;;  %3452 = vmatprep.mubr.msk.f32.mxu1 %vm3620_vm0, %v3621_v6  ;;  %v410_v10 = vld [vmem:[%s3712_s24 + $0x760] sm:$0xff] }
 0x1a9   : > { %v1895_v13 = vmax.f32 %v744_v7, 0.0  ;;  %v2028_v14 = vmax.f32 %v1409_v9, 0.0  ;;  %v277_v9 = vld [vmem:[%s3712_s24 + $0x338] sm:$0xff] }
 0x1aa   : > { %v748_v15 = vpop.f32.mrb[88].mxu0  ;;  %v1413_v16 = vpop.f32.mrb[88].mxu1 }
 0x1ab   : > { %2161 = vst.msk [vmem:[%s4046_s29 + $0x158] sm:$0xff] %vm2117_vm1, %v1895_v13  ;;  %2294 = vst.msk [vmem:[%s4046_s29 + $0x580] sm:$0xff] %vm2117_vm1, %v2028_v14  ;;  %v749_v17 = vadd.f32 %v4433_v5, %v748_v15  ;;  %v2896_v18 = vpop.f32.mrb[89].mxu0  ;;  %3054 = vmatmul.mubr.f32.gmra.mrb[194].mxu0 %v271_v11  ;;  %v1414_v19 = vadd.f32 %v4433_v5, %v1413_v16  ;;  %v3295_v20 = vpop.f32.mrb[89].mxu1  ;;  %3453 = vmatmul.mubr.f32.gmra.mrb[194].mxu1 %v404_v12 }
 0x1ac   : > { %3056 = vmatprep.mubr.msk.f32.mxu0 %vm3620_vm0, %v3621_v6  ;;  %3455 = vmatprep.mubr.msk.f32.mxu1 %vm3620_vm0, %v3621_v6  ;;  %v411_v20 = vld [vmem:[%s3712_s24 + $0x768] sm:$0xff] }
 0x1ad   : > { %v1896_v23 = vmax.f32 %v749_v17, 0.0  ;;  %v2029_v24 = vmax.f32 %v1414_v19, 0.0  ;;  %v278_v19 = vld [vmem:[%s3712_s24 + $0x340] sm:$0xff] }
 0x1ae   : > { %v753_v25 = vpop.f32.mrb[90].mxu0  ;;  %v1418_v26 = vpop.f32.mrb[90].mxu1 }
 0x1af   : > { %2162 = vst.msk [vmem:[%s4046_s29 + $0x160] sm:$0xff] %vm2117_vm1, %v1896_v23  ;;  %2295 = vst.msk [vmem:[%s4046_s29 + $0x588] sm:$0xff] %vm2117_vm1, %v2029_v24  ;;  %v754_v27 = vadd.f32 %v4433_v5, %v753_v25  ;;  %v2899_v28 = vpop.f32.mrb[91].mxu0  ;;  %3057 = vmatmul.mubr.f32.gmra.mrb[196].mxu0 %v272_v21  ;;  %v1419_v29 = vadd.f32 %v4433_v5, %v1418_v26  ;;  %v3298_v30 = vpop.f32.mrb[91].mxu1  ;;  %3456 = vmatmul.mubr.f32.gmra.mrb[196].mxu1 %v405_v22 }
 0x1b0   : > { %3059 = vmatprep.mubr.msk.f32.mxu0 %vm3620_vm0, %v3621_v6  ;;  %3458 = vmatprep.mubr.msk.f32.mxu1 %vm3620_vm0, %v3621_v6  ;;  %v412_v30 = vld [vmem:[%s3712_s24 + $0x770] sm:$0xff] }
 0x1b1   : > { %v1897_v33 = vmax.f32 %v754_v27, 0.0  ;;  %v2030_v34 = vmax.f32 %v1419_v29, 0.0  ;;  %v279_v29 = vld [vmem:[%s3712_s24 + $0x348] sm:$0xff] }
 0x1b2   : > { %v758_v35 = vpop.f32.mrb[92].mxu0  ;;  %v1423_v36 = vpop.f32.mrb[92].mxu1 }
 0x1b3   : > { %2163 = vst.msk [vmem:[%s4046_s29 + $0x168] sm:$0xff] %vm2117_vm1, %v1897_v33  ;;  %2296 = vst.msk [vmem:[%s4046_s29 + $0x590] sm:$0xff] %vm2117_vm1, %v2030_v34  ;;  %v759_v37 = vadd.f32 %v4433_v5, %v758_v35  ;;  %v2902_v38 = vpop.f32.mrb[93].mxu0  ;;  %3060 = vmatmul.mubr.f32.gmra.mrb[198].mxu0 %v273_v31  ;;  %v1424_v39 = vadd.f32 %v4433_v5, %v1423_v36  ;;  %v3301_v40 = vpop.f32.mrb[93].mxu1  ;;  %3459 = vmatmul.mubr.f32.gmra.mrb[198].mxu1 %v406_v32 }
 0x1b4   : > { %3062 = vmatprep.mubr.msk.f32.mxu0 %vm3620_vm0, %v3621_v6  ;;  %3461 = vmatprep.mubr.msk.f32.mxu1 %vm3620_vm0, %v3621_v6  ;;  %v413_v40 = vld [vmem:[%s3712_s24 + $0x778] sm:$0xff] }
 0x1b5   : > { %v1898_v43 = vmax.f32 %v759_v37, 0.0  ;;  %v2031_v44 = vmax.f32 %v1424_v39, 0.0  ;;  %v280_v39 = vld [vmem:[%s3712_s24 + $0x350] sm:$0xff] }
 0x1b6   : > { %v763_v45 = vpop.f32.mrb[94].mxu0  ;;  %v1428_v46 = vpop.f32.mrb[94].mxu1 }
 0x1b7   : > { %2164 = vst.msk [vmem:[%s4046_s29 + $0x170] sm:$0xff] %vm2117_vm1, %v1898_v43  ;;  %2297 = vst.msk [vmem:[%s4046_s29 + $0x598] sm:$0xff] %vm2117_vm1, %v2031_v44  ;;  %v764_v47 = vadd.f32 %v4433_v5, %v763_v45  ;;  %v2905_v48 = vpop.f32.mrb[95].mxu0  ;;  %3063 = vmatmul.mubr.f32.gmra.mrb[200].mxu0 %v274_v41  ;;  %v1429_v49 = vadd.f32 %v4433_v5, %v1428_v46  ;;  %v3304_v50 = vpop.f32.mrb[95].mxu1  ;;  %3462 = vmatmul.mubr.f32.gmra.mrb[200].mxu1 %v407_v42 }
 0x1b8   : > { %3065 = vmatprep.mubr.msk.f32.mxu0 %vm3620_vm0, %v3621_v6  ;;  %3464 = vmatprep.mubr.msk.f32.mxu1 %vm3620_vm0, %v3621_v6  ;;  %v414_v50 = vld [vmem:[%s3712_s24 + $0x780] sm:$0xff] }
 0x1b9   : > { %v1899_v53 = vmax.f32 %v764_v47, 0.0  ;;  %v2032_v54 = vmax.f32 %v1429_v49, 0.0  ;;  %v281_v49 = vld [vmem:[%s3712_s24 + $0x358] sm:$0xff] }
 0x1ba   : > { %v768_v55 = vpop.f32.mrb[96].mxu0  ;;  %v1433_v56 = vpop.f32.mrb[96].mxu1 }
 0x1bb   : > { %2165 = vst.msk [vmem:[%s4046_s29 + $0x178] sm:$0xff] %vm2117_vm1, %v1899_v53  ;;  %2298 = vst.msk [vmem:[%s4046_s29 + $0x5a0] sm:$0xff] %vm2117_vm1, %v2032_v54  ;;  %v769_v57 = vadd.f32 %v4433_v5, %v768_v55  ;;  %v2908_v58 = vpop.f32.mrb[97].mxu0  ;;  %3066 = vmatmul.mubr.f32.gmra.mrb[202].mxu0 %v275_v51  ;;  %v1434_v59 = vadd.f32 %v4433_v5, %v1433_v56  ;;  %v3307_v60 = vpop.f32.mrb[97].mxu1  ;;  %3465 = vmatmul.mubr.f32.gmra.mrb[202].mxu1 %v408_v52 }
 0x1bc   : > { %3068 = vmatprep.mubr.msk.f32.mxu0 %vm3620_vm0, %v3621_v6  ;;  %3467 = vmatprep.mubr.msk.f32.mxu1 %vm3620_vm0, %v3621_v6  ;;  %v415_v60 = vld [vmem:[%s3712_s24 + $0x788] sm:$0xff] }
 0x1bd   : > { %v1900_v63 = vmax.f32 %v769_v57, 0.0  ;;  %v2033_v0 = vmax.f32 %v1434_v59, 0.0  ;;  %v282_v59 = vld [vmem:[%s3712_s24 + $0x360] sm:$0xff] }
 0x1be   : > { %v773_v1 = vpop.f32.mrb[98].mxu0  ;;  %v1438_v2 = vpop.f32.mrb[98].mxu1 }
 0x1bf   : > { %2166 = vst.msk [vmem:[%s4046_s29 + $0x180] sm:$0xff] %vm2117_vm1, %v1900_v63  ;;  %2299 = vst.msk [vmem:[%s4046_s29 + $0x5a8] sm:$0xff] %vm2117_vm1, %v2033_v0  ;;  %v774_v3 = vadd.f32 %v4433_v5, %v773_v1  ;;  %v2911_v4 = vpop.f32.mrb[99].mxu0  ;;  %3069 = vmatmul.mubr.f32.gmra.mrb[204].mxu0 %v276_v61  ;;  %v1439_v7 = vadd.f32 %v4433_v5, %v1438_v2  ;;  %v3310_v8 = vpop.f32.mrb[99].mxu1  ;;  %3468 = vmatmul.mubr.f32.gmra.mrb[204].mxu1 %v409_v62 }
 0x1c0   : > { %3071 = vmatprep.mubr.msk.f32.mxu0 %vm3620_vm0, %v3621_v6  ;;  %3470 = vmatprep.mubr.msk.f32.mxu1 %vm3620_vm0, %v3621_v6  ;;  %v416_v8 = vld [vmem:[%s3712_s24 + $0x790] sm:$0xff] }
 0x1c1   : > { %v1901_v11 = vmax.f32 %v774_v3, 0.0  ;;  %v2034_v12 = vmax.f32 %v1439_v7, 0.0  ;;  %v283_v7 = vld [vmem:[%s3712_s24 + $0x368] sm:$0xff] }
 0x1c2   : > { %v778_v13 = vpop.f32.mrb[100].mxu0  ;;  %v1443_v14 = vpop.f32.mrb[100].mxu1 }
 0x1c3   : > { %2167 = vst.msk [vmem:[%s4046_s29 + $0x188] sm:$0xff] %vm2117_vm1, %v1901_v11  ;;  %2300 = vst.msk [vmem:[%s4046_s29 + $0x5b0] sm:$0xff] %vm2117_vm1, %v2034_v12  ;;  %v779_v15 = vadd.f32 %v4433_v5, %v778_v13  ;;  %v2914_v16 = vpop.f32.mrb[101].mxu0  ;;  %3072 = vmatmul.mubr.f32.gmra.mrb[206].mxu0 %v277_v9  ;;  %v1444_v17 = vadd.f32 %v4433_v5, %v1443_v14  ;;  %v3313_v18 = vpop.f32.mrb[101].mxu1  ;;  %3471 = vmatmul.mubr.f32.gmra.mrb[206].mxu1 %v410_v10 }
 0x1c4   : > { %3074 = vmatprep.mubr.msk.f32.mxu0 %vm3620_vm0, %v3621_v6  ;;  %3473 = vmatprep.mubr.msk.f32.mxu1 %vm3620_vm0, %v3621_v6  ;;  %v417_v18 = vld [vmem:[%s3712_s24 + $0x798] sm:$0xff] }
 0x1c5   : > { %v1902_v21 = vmax.f32 %v779_v15, 0.0  ;;  %v2035_v22 = vmax.f32 %v1444_v17, 0.0  ;;  %v284_v17 = vld [vmem:[%s3712_s24 + $0x370] sm:$0xff] }
 0x1c6   : > { %v783_v23 = vpop.f32.mrb[102].mxu0  ;;  %v1448_v24 = vpop.f32.mrb[102].mxu1 }
 0x1c7   : > { %2168 = vst.msk [vmem:[%s4046_s29 + $0x190] sm:$0xff] %vm2117_vm1, %v1902_v21  ;;  %2301 = vst.msk [vmem:[%s4046_s29 + $0x5b8] sm:$0xff] %vm2117_vm1, %v2035_v22  ;;  %v784_v25 = vadd.f32 %v4433_v5, %v783_v23  ;;  %v2917_v26 = vpop.f32.mrb[103].mxu0  ;;  %3075 = vmatmul.mubr.f32.gmra.mrb[208].mxu0 %v278_v19  ;;  %v1449_v27 = vadd.f32 %v4433_v5, %v1448_v24  ;;  %v3316_v28 = vpop.f32.mrb[103].mxu1  ;;  %3474 = vmatmul.mubr.f32.gmra.mrb[208].mxu1 %v411_v20 }
 0x1c8   : > { %3077 = vmatprep.mubr.msk.f32.mxu0 %vm3620_vm0, %v3621_v6  ;;  %3476 = vmatprep.mubr.msk.f32.mxu1 %vm3620_vm0, %v3621_v6  ;;  %v418_v28 = vld [vmem:[%s3712_s24 + $0x7a0] sm:$0xff] }
 0x1c9   : > { %v1903_v31 = vmax.f32 %v784_v25, 0.0  ;;  %v2036_v32 = vmax.f32 %v1449_v27, 0.0  ;;  %v285_v27 = vld [vmem:[%s3712_s24 + $0x378] sm:$0xff] }
 0x1ca   : > { %v788_v33 = vpop.f32.mrb[104].mxu0  ;;  %v1453_v34 = vpop.f32.mrb[104].mxu1 }
 0x1cb   : > { %2169 = vst.msk [vmem:[%s4046_s29 + $0x198] sm:$0xff] %vm2117_vm1, %v1903_v31  ;;  %2302 = vst.msk [vmem:[%s4046_s29 + $0x5c0] sm:$0xff] %vm2117_vm1, %v2036_v32  ;;  %v789_v35 = vadd.f32 %v4433_v5, %v788_v33  ;;  %v2920_v36 = vpop.f32.mrb[105].mxu0  ;;  %3078 = vmatmul.mubr.f32.gmra.mrb[210].mxu0 %v279_v29  ;;  %v1454_v37 = vadd.f32 %v4433_v5, %v1453_v34  ;;  %v3319_v38 = vpop.f32.mrb[105].mxu1  ;;  %3477 = vmatmul.mubr.f32.gmra.mrb[210].mxu1 %v412_v30 }
 0x1cc   : > { %3080 = vmatprep.mubr.msk.f32.mxu0 %vm3620_vm0, %v3621_v6  ;;  %3479 = vmatprep.mubr.msk.f32.mxu1 %vm3620_vm0, %v3621_v6  ;;  %v419_v38 = vld [vmem:[%s3712_s24 + $0x7a8] sm:$0xff] }
 0x1cd   : > { %v1904_v41 = vmax.f32 %v789_v35, 0.0  ;;  %v2037_v42 = vmax.f32 %v1454_v37, 0.0  ;;  %v286_v37 = vld [vmem:[%s3712_s24 + $0x380] sm:$0xff] }
 0x1ce   : > { %v793_v43 = vpop.f32.mrb[106].mxu0  ;;  %v1458_v44 = vpop.f32.mrb[106].mxu1 }
 0x1cf   : > { %2170 = vst.msk [vmem:[%s4046_s29 + $0x1a0] sm:$0xff] %vm2117_vm1, %v1904_v41  ;;  %2303 = vst.msk [vmem:[%s4046_s29 + $0x5c8] sm:$0xff] %vm2117_vm1, %v2037_v42  ;;  %v794_v45 = vadd.f32 %v4433_v5, %v793_v43  ;;  %v2923_v46 = vpop.f32.mrb[107].mxu0  ;;  %3081 = vmatmul.mubr.f32.gmra.mrb[212].mxu0 %v280_v39  ;;  %v1459_v47 = vadd.f32 %v4433_v5, %v1458_v44  ;;  %v3322_v48 = vpop.f32.mrb[107].mxu1  ;;  %3480 = vmatmul.mubr.f32.gmra.mrb[212].mxu1 %v413_v40 }
 0x1d0   : > { %3083 = vmatprep.mubr.msk.f32.mxu0 %vm3620_vm0, %v3621_v6  ;;  %3482 = vmatprep.mubr.msk.f32.mxu1 %vm3620_vm0, %v3621_v6  ;;  %v420_v48 = vld [vmem:[%s3712_s24 + $0x7b0] sm:$0xff] }
 0x1d1   : > { %v1905_v51 = vmax.f32 %v794_v45, 0.0  ;;  %v2038_v52 = vmax.f32 %v1459_v47, 0.0  ;;  %v287_v47 = vld [vmem:[%s3712_s24 + $0x388] sm:$0xff] }
 0x1d2   : > { %v798_v53 = vpop.f32.mrb[108].mxu0  ;;  %v1463_v54 = vpop.f32.mrb[108].mxu1 }
 0x1d3   : > { %2171 = vst.msk [vmem:[%s4046_s29 + $0x1a8] sm:$0xff] %vm2117_vm1, %v1905_v51  ;;  %2304 = vst.msk [vmem:[%s4046_s29 + $0x5d0] sm:$0xff] %vm2117_vm1, %v2038_v52  ;;  %v799_v55 = vadd.f32 %v4433_v5, %v798_v53  ;;  %v2926_v56 = vpop.f32.mrb[109].mxu0  ;;  %3084 = vmatmul.mubr.f32.gmra.mrb[214].mxu0 %v281_v49  ;;  %v1464_v57 = vadd.f32 %v4433_v5, %v1463_v54  ;;  %v3325_v58 = vpop.f32.mrb[109].mxu1  ;;  %3483 = vmatmul.mubr.f32.gmra.mrb[214].mxu1 %v414_v50 }
 0x1d4   : > { %3086 = vmatprep.mubr.msk.f32.mxu0 %vm3620_vm0, %v3621_v6  ;;  %3485 = vmatprep.mubr.msk.f32.mxu1 %vm3620_vm0, %v3621_v6  ;;  %v421_v58 = vld [vmem:[%s3712_s24 + $0x7b8] sm:$0xff] }
 0x1d5   : > { %v1906_v61 = vmax.f32 %v799_v55, 0.0  ;;  %v2039_v62 = vmax.f32 %v1464_v57, 0.0  ;;  %v288_v57 = vld [vmem:[%s3712_s24 + $0x390] sm:$0xff] }
 0x1d6   : > { %v803_v63 = vpop.f32.mrb[110].mxu0  ;;  %v1468_v0 = vpop.f32.mrb[110].mxu1 }
 0x1d7   : > { %2172 = vst.msk [vmem:[%s4046_s29 + $0x1b0] sm:$0xff] %vm2117_vm1, %v1906_v61  ;;  %2305 = vst.msk [vmem:[%s4046_s29 + $0x5d8] sm:$0xff] %vm2117_vm1, %v2039_v62  ;;  %v804_v1 = vadd.f32 %v4433_v5, %v803_v63  ;;  %v2929_v2 = vpop.f32.mrb[111].mxu0  ;;  %3087 = vmatmul.mubr.f32.gmra.mrb[216].mxu0 %v282_v59  ;;  %v1469_v3 = vadd.f32 %v4433_v5, %v1468_v0  ;;  %v3328_v4 = vpop.f32.mrb[111].mxu1  ;;  %3486 = vmatmul.mubr.f32.gmra.mrb[216].mxu1 %v415_v60 }
 0x1d8   : > { %3089 = vmatprep.mubr.msk.f32.mxu0 %vm3620_vm0, %v3621_v6  ;;  %3488 = vmatprep.mubr.msk.f32.mxu1 %vm3620_vm0, %v3621_v6  ;;  %v422_v4 = vld [vmem:[%s3712_s24 + $0x7c0] sm:$0xff] }
 0x1d9   : > { %v1907_v9 = vmax.f32 %v804_v1, 0.0  ;;  %v2040_v10 = vmax.f32 %v1469_v3, 0.0  ;;  %v289_v3 = vld [vmem:[%s3712_s24 + $0x398] sm:$0xff] }
 0x1da   : > { %v808_v11 = vpop.f32.mrb[112].mxu0  ;;  %v1473_v12 = vpop.f32.mrb[112].mxu1 }
 0x1db   : > { %2173 = vst.msk [vmem:[%s4046_s29 + $0x1b8] sm:$0xff] %vm2117_vm1, %v1907_v9  ;;  %2306 = vst.msk [vmem:[%s4046_s29 + $0x5e0] sm:$0xff] %vm2117_vm1, %v2040_v10  ;;  %v809_v13 = vadd.f32 %v4433_v5, %v808_v11  ;;  %v2932_v14 = vpop.f32.mrb[113].mxu0  ;;  %3090 = vmatmul.mubr.f32.gmra.mrb[218].mxu0 %v283_v7  ;;  %v1474_v15 = vadd.f32 %v4433_v5, %v1473_v12  ;;  %v3331_v16 = vpop.f32.mrb[113].mxu1  ;;  %3489 = vmatmul.mubr.f32.gmra.mrb[218].mxu1 %v416_v8 }
 0x1dc   : > { %3092 = vmatprep.mubr.msk.f32.mxu0 %vm3620_vm0, %v3621_v6  ;;  %3491 = vmatprep.mubr.msk.f32.mxu1 %vm3620_vm0, %v3621_v6  ;;  %v423_v16 = vld [vmem:[%s3712_s24 + $0x7c8] sm:$0xff] }
 0x1dd   : > { %v1908_v19 = vmax.f32 %v809_v13, 0.0  ;;  %v2041_v20 = vmax.f32 %v1474_v15, 0.0  ;;  %v290_v15 = vld [vmem:[%s3712_s24 + $0x3a0] sm:$0xff] }
 0x1de   : > { %v813_v21 = vpop.f32.mrb[114].mxu0  ;;  %v1478_v22 = vpop.f32.mrb[114].mxu1 }
 0x1df   : > { %2174 = vst.msk [vmem:[%s4046_s29 + $0x1c0] sm:$0xff] %vm2117_vm1, %v1908_v19  ;;  %2307 = vst.msk [vmem:[%s4046_s29 + $0x5e8] sm:$0xff] %vm2117_vm1, %v2041_v20  ;;  %v814_v23 = vadd.f32 %v4433_v5, %v813_v21  ;;  %v2935_v24 = vpop.f32.mrb[115].mxu0  ;;  %3093 = vmatmul.mubr.f32.gmra.mrb[220].mxu0 %v284_v17  ;;  %v1479_v25 = vadd.f32 %v4433_v5, %v1478_v22  ;;  %v3334_v26 = vpop.f32.mrb[115].mxu1  ;;  %3492 = vmatmul.mubr.f32.gmra.mrb[220].mxu1 %v417_v18 }
 0x1e0   : > { %3095 = vmatprep.mubr.msk.f32.mxu0 %vm3620_vm0, %v3621_v6  ;;  %3494 = vmatprep.mubr.msk.f32.mxu1 %vm3620_vm0, %v3621_v6  ;;  %v424_v26 = vld [vmem:[%s3712_s24 + $0x7d0] sm:$0xff] }
 0x1e1   : > { %v1909_v29 = vmax.f32 %v814_v23, 0.0  ;;  %v2042_v30 = vmax.f32 %v1479_v25, 0.0  ;;  %v291_v25 = vld [vmem:[%s3712_s24 + $0x3a8] sm:$0xff] }
 0x1e2   : > { %v818_v31 = vpop.f32.mrb[116].mxu0  ;;  %v1483_v32 = vpop.f32.mrb[116].mxu1 }
 0x1e3   : > { %2175 = vst.msk [vmem:[%s4046_s29 + $0x1c8] sm:$0xff] %vm2117_vm1, %v1909_v29  ;;  %2308 = vst.msk [vmem:[%s4046_s29 + $0x5f0] sm:$0xff] %vm2117_vm1, %v2042_v30  ;;  %v819_v33 = vadd.f32 %v4433_v5, %v818_v31  ;;  %v2938_v34 = vpop.f32.mrb[117].mxu0  ;;  %3096 = vmatmul.mubr.f32.gmra.mrb[222].mxu0 %v285_v27  ;;  %v1484_v35 = vadd.f32 %v4433_v5, %v1483_v32  ;;  %v3337_v36 = vpop.f32.mrb[117].mxu1  ;;  %3495 = vmatmul.mubr.f32.gmra.mrb[222].mxu1 %v418_v28 }
 0x1e4   : > { %3098 = vmatprep.mubr.msk.f32.mxu0 %vm3620_vm0, %v3621_v6  ;;  %3497 = vmatprep.mubr.msk.f32.mxu1 %vm3620_vm0, %v3621_v6  ;;  %v425_v36 = vld [vmem:[%s3712_s24 + $0x7d8] sm:$0xff] }
 0x1e5   : > { %v1910_v39 = vmax.f32 %v819_v33, 0.0  ;;  %v2043_v40 = vmax.f32 %v1484_v35, 0.0  ;;  %v292_v35 = vld [vmem:[%s3712_s24 + $0x3b0] sm:$0xff] }
 0x1e6   : > { %v823_v41 = vpop.f32.mrb[118].mxu0  ;;  %v1488_v42 = vpop.f32.mrb[118].mxu1 }
 0x1e7   : > { %2176 = vst.msk [vmem:[%s4046_s29 + $0x1d0] sm:$0xff] %vm2117_vm1, %v1910_v39  ;;  %2309 = vst.msk [vmem:[%s4046_s29 + $0x5f8] sm:$0xff] %vm2117_vm1, %v2043_v40  ;;  %v824_v43 = vadd.f32 %v4433_v5, %v823_v41  ;;  %v2941_v44 = vpop.f32.mrb[119].mxu0  ;;  %3099 = vmatmul.mubr.f32.gmra.mrb[224].mxu0 %v286_v37  ;;  %v1489_v45 = vadd.f32 %v4433_v5, %v1488_v42  ;;  %v3340_v46 = vpop.f32.mrb[119].mxu1  ;;  %3498 = vmatmul.mubr.f32.gmra.mrb[224].mxu1 %v419_v38 }
 0x1e8   : > { %3101 = vmatprep.mubr.msk.f32.mxu0 %vm3620_vm0, %v3621_v6  ;;  %3500 = vmatprep.mubr.msk.f32.mxu1 %vm3620_vm0, %v3621_v6  ;;  %v426_v46 = vld [vmem:[%s3712_s24 + $0x7e0] sm:$0xff] }
 0x1e9   : > { %v1911_v49 = vmax.f32 %v824_v43, 0.0  ;;  %v2044_v50 = vmax.f32 %v1489_v45, 0.0  ;;  %v293_v45 = vld [vmem:[%s3712_s24 + $0x3b8] sm:$0xff] }
 0x1ea   : > { %v828_v51 = vpop.f32.mrb[120].mxu0  ;;  %v1493_v52 = vpop.f32.mrb[120].mxu1 }
 0x1eb   : > { %2177 = vst.msk [vmem:[%s4046_s29 + $0x1d8] sm:$0xff] %vm2117_vm1, %v1911_v49  ;;  %2310 = vst.msk [vmem:[%s4046_s29 + $0x600] sm:$0xff] %vm2117_vm1, %v2044_v50  ;;  %v829_v53 = vadd.f32 %v4433_v5, %v828_v51  ;;  %v2944_v54 = vpop.f32.mrb[121].mxu0  ;;  %3102 = vmatmul.mubr.f32.gmra.mrb[226].mxu0 %v287_v47  ;;  %v1494_v55 = vadd.f32 %v4433_v5, %v1493_v52  ;;  %v3343_v56 = vpop.f32.mrb[121].mxu1  ;;  %3501 = vmatmul.mubr.f32.gmra.mrb[226].mxu1 %v420_v48 }
 0x1ec   : > { %3104 = vmatprep.mubr.msk.f32.mxu0 %vm3620_vm0, %v3621_v6  ;;  %3503 = vmatprep.mubr.msk.f32.mxu1 %vm3620_vm0, %v3621_v6  ;;  %v427_v56 = vld [vmem:[%s3712_s24 + $0x7e8] sm:$0xff] }
 0x1ed   : > { %v1912_v59 = vmax.f32 %v829_v53, 0.0  ;;  %v2045_v60 = vmax.f32 %v1494_v55, 0.0  ;;  %v294_v55 = vld [vmem:[%s3712_s24 + $0x3c0] sm:$0xff] }
 0x1ee   : > { %v833_v61 = vpop.f32.mrb[122].mxu0  ;;  %v1498_v62 = vpop.f32.mrb[122].mxu1 }
 0x1ef   : > { %2178 = vst.msk [vmem:[%s4046_s29 + $0x1e0] sm:$0xff] %vm2117_vm1, %v1912_v59  ;;  %2311 = vst.msk [vmem:[%s4046_s29 + $0x608] sm:$0xff] %vm2117_vm1, %v2045_v60  ;;  %v834_v63 = vadd.f32 %v4433_v5, %v833_v61  ;;  %v2947_v0 = vpop.f32.mrb[123].mxu0  ;;  %3105 = vmatmul.mubr.f32.gmra.mrb[228].mxu0 %v288_v57  ;;  %v1499_v1 = vadd.f32 %v4433_v5, %v1498_v62  ;;  %v3346_v2 = vpop.f32.mrb[123].mxu1  ;;  %3504 = vmatmul.mubr.f32.gmra.mrb[228].mxu1 %v421_v58 }
 0x1f0   : > { %3107 = vmatprep.mubr.msk.f32.mxu0 %vm3620_vm0, %v3621_v6  ;;  %3506 = vmatprep.mubr.msk.f32.mxu1 %vm3620_vm0, %v3621_v6  ;;  %v428_v2 = vld [vmem:[%s3712_s24 + $0x7f0] sm:$0xff] }
 0x1f1   : > { %v1913_v7 = vmax.f32 %v834_v63, 0.0  ;;  %v2046_v8 = vmax.f32 %v1499_v1, 0.0  ;;  %v295_v1 = vld [vmem:[%s3712_s24 + $0x3c8] sm:$0xff] }
 0x1f2   : > { %v838_v9 = vpop.f32.mrb[124].mxu0  ;;  %v1503_v10 = vpop.f32.mrb[124].mxu1 }
 0x1f3   : > { %2179 = vst.msk [vmem:[%s4046_s29 + $0x1e8] sm:$0xff] %vm2117_vm1, %v1913_v7  ;;  %2312 = vst.msk [vmem:[%s4046_s29 + $0x610] sm:$0xff] %vm2117_vm1, %v2046_v8  ;;  %v839_v11 = vadd.f32 %v4433_v5, %v838_v9  ;;  %v2950_v12 = vpop.f32.mrb[125].mxu0  ;;  %3108 = vmatmul.mubr.f32.gmra.mrb[230].mxu0 %v289_v3  ;;  %v1504_v13 = vadd.f32 %v4433_v5, %v1503_v10  ;;  %v3349_v14 = vpop.f32.mrb[125].mxu1  ;;  %3507 = vmatmul.mubr.f32.gmra.mrb[230].mxu1 %v422_v4 }
 0x1f4   : > { %3110 = vmatprep.mubr.msk.f32.mxu0 %vm3620_vm0, %v3621_v6  ;;  %3509 = vmatprep.mubr.msk.f32.mxu1 %vm3620_vm0, %v3621_v6  ;;  %v429_v14 = vld [vmem:[%s3712_s24 + $0x7f8] sm:$0xff] }
 0x1f5   : > { %v1914_v17 = vmax.f32 %v839_v11, 0.0  ;;  %v2047_v18 = vmax.f32 %v1504_v13, 0.0  ;;  %v296_v13 = vld [vmem:[%s3712_s24 + $0x3d0] sm:$0xff] }
 0x1f6   : > { %v843_v19 = vpop.f32.mrb[126].mxu0  ;;  %v1508_v20 = vpop.f32.mrb[126].mxu1 }
 0x1f7   : > { %2180 = vst.msk [vmem:[%s4046_s29 + $0x1f0] sm:$0xff] %vm2117_vm1, %v1914_v17  ;;  %2313 = vst.msk [vmem:[%s4046_s29 + $0x618] sm:$0xff] %vm2117_vm1, %v2047_v18  ;;  %v844_v21 = vadd.f32 %v4433_v5, %v843_v19  ;;  %v2953_v22 = vpop.f32.mrb[127].mxu0  ;;  %3111 = vmatmul.mubr.f32.gmra.mrb[232].mxu0 %v290_v15  ;;  %v1509_v23 = vadd.f32 %v4433_v5, %v1508_v20  ;;  %v3352_v24 = vpop.f32.mrb[127].mxu1  ;;  %3510 = vmatmul.mubr.f32.gmra.mrb[232].mxu1 %v423_v16  ;;  %v4822_v5 = vld [vmem:[%s5332_s2] ss:$0 sm:$0xff] }
 0x1f8   : > { %3113 = vmatprep.mubr.msk.f32.mxu0 %vm3620_vm0, %v3621_v6  ;;  %3512 = vmatprep.mubr.msk.f32.mxu1 %vm3620_vm0, %v3621_v6  ;;  %v430_v24 = vld [vmem:[%s3712_s24 + $0x800] sm:$0xff] }
 0x1f9   : > { %v1915_v27 = vmax.f32 %v844_v21, 0.0  ;;  %v2048_v28 = vmax.f32 %v1509_v23, 0.0  ;;  %v297_v23 = vld [vmem:[%s3712_s24 + $0x3d8] sm:$0xff] }
 0x1fa   : > { %v848_v29 = vpop.f32.mrb[128].mxu0  ;;  %v1513_v30 = vpop.f32.mrb[128].mxu1 }
 0x1fb   : > { %2181 = vst.msk [vmem:[%s4046_s29 + $0x1f8] sm:$0xff] %vm2117_vm1, %v1915_v27  ;;  %2314 = vst.msk [vmem:[%s4046_s29 + $0x620] sm:$0xff] %vm2117_vm1, %v2048_v28  ;;  %v849_v31 = vadd.f32 %v4822_v5, %v848_v29  ;;  %v2956_v32 = vpop.f32.mrb[129].mxu0  ;;  %3114 = vmatmul.mubr.f32.gmra.mrb[234].mxu0 %v291_v25  ;;  %v1514_v33 = vadd.f32 %v4822_v5, %v1513_v30  ;;  %v3355_v34 = vpop.f32.mrb[129].mxu1  ;;  %3513 = vmatmul.mubr.f32.gmra.mrb[234].mxu1 %v424_v26 }
 0x1fc   : > { %3116 = vmatprep.mubr.msk.f32.mxu0 %vm3620_vm0, %v3621_v6  ;;  %3515 = vmatprep.mubr.msk.f32.mxu1 %vm3620_vm0, %v3621_v6  ;;  %v431_v34 = vld [vmem:[%s3712_s24 + $0x808] sm:$0xff] }
 0x1fd   : > { %v1916_v37 = vmax.f32 %v849_v31, 0.0  ;;  %v2049_v38 = vmax.f32 %v1514_v33, 0.0  ;;  %v298_v33 = vld [vmem:[%s3712_s24 + $0x3e0] sm:$0xff] }
 0x1fe   : > { %v853_v39 = vpop.f32.mrb[130].mxu0  ;;  %v1518_v40 = vpop.f32.mrb[130].mxu1 }
 0x1ff   : > { %2182 = vst.msk [vmem:[%s4046_s29 + $0x200] sm:$0xff] %vm2117_vm1, %v1916_v37  ;;  %2315 = vst.msk [vmem:[%s4046_s29 + $0x628] sm:$0xff] %vm2117_vm1, %v2049_v38  ;;  %v854_v41 = vadd.f32 %v4822_v5, %v853_v39  ;;  %v2959_v42 = vpop.f32.mrb[131].mxu0  ;;  %3117 = vmatmul.mubr.f32.gmra.mrb[236].mxu0 %v292_v35  ;;  %v1519_v43 = vadd.f32 %v4822_v5, %v1518_v40  ;;  %v3358_v44 = vpop.f32.mrb[131].mxu1  ;;  %3516 = vmatmul.mubr.f32.gmra.mrb[236].mxu1 %v425_v36 }
 0x200   : > { %3119 = vmatprep.mubr.msk.f32.mxu0 %vm3620_vm0, %v3621_v6  ;;  %3518 = vmatprep.mubr.msk.f32.mxu1 %vm3620_vm0, %v3621_v6  ;;  %v432_v44 = vld [vmem:[%s3712_s24 + $0x810] sm:$0xff] }
 0x201   : > { %v1917_v47 = vmax.f32 %v854_v41, 0.0  ;;  %v2050_v48 = vmax.f32 %v1519_v43, 0.0  ;;  %v299_v43 = vld [vmem:[%s3712_s24 + $0x3e8] sm:$0xff] }
 0x202   : > { %v858_v49 = vpop.f32.mrb[132].mxu0  ;;  %v1523_v50 = vpop.f32.mrb[132].mxu1 }
 0x203   : > { %2183 = vst.msk [vmem:[%s4046_s29 + $0x208] sm:$0xff] %vm2117_vm1, %v1917_v47  ;;  %2316 = vst.msk [vmem:[%s4046_s29 + $0x630] sm:$0xff] %vm2117_vm1, %v2050_v48  ;;  %v859_v51 = vadd.f32 %v4822_v5, %v858_v49  ;;  %v2962_v52 = vpop.f32.mrb[133].mxu0  ;;  %3120 = vmatmul.mubr.f32.gmra.mrb[238].mxu0 %v293_v45  ;;  %v1524_v53 = vadd.f32 %v4822_v5, %v1523_v50  ;;  %v3361_v54 = vpop.f32.mrb[133].mxu1  ;;  %3519 = vmatmul.mubr.f32.gmra.mrb[238].mxu1 %v426_v46 }
 0x204   : > { %3122 = vmatprep.mubr.msk.f32.mxu0 %vm3620_vm0, %v3621_v6  ;;  %3521 = vmatprep.mubr.msk.f32.mxu1 %vm3620_vm0, %v3621_v6  ;;  %v433_v54 = vld [vmem:[%s3712_s24 + $0x818] sm:$0xff] }
 0x205   : > { %v1918_v57 = vmax.f32 %v859_v51, 0.0  ;;  %v2051_v58 = vmax.f32 %v1524_v53, 0.0  ;;  %v300_v53 = vld [vmem:[%s3712_s24 + $0x3f0] sm:$0xff] }
 0x206   : > { %v863_v59 = vpop.f32.mrb[134].mxu0  ;;  %v1528_v60 = vpop.f32.mrb[134].mxu1 }
 0x207   : > { %2184 = vst.msk [vmem:[%s4046_s29 + $0x210] sm:$0xff] %vm2117_vm1, %v1918_v57  ;;  %2317 = vst.msk [vmem:[%s4046_s29 + $0x638] sm:$0xff] %vm2117_vm1, %v2051_v58  ;;  %v864_v61 = vadd.f32 %v4822_v5, %v863_v59  ;;  %v2965_v62 = vpop.f32.mrb[135].mxu0  ;;  %3123 = vmatmul.mubr.f32.gmra.mrb[240].mxu0 %v294_v55  ;;  %v1529_v63 = vadd.f32 %v4822_v5, %v1528_v60  ;;  %v3364_v0 = vpop.f32.mrb[135].mxu1  ;;  %3522 = vmatmul.mubr.f32.gmra.mrb[240].mxu1 %v427_v56 }
 0x208   : > { %3125 = vmatprep.mubr.msk.f32.mxu0 %vm3620_vm0, %v3621_v6  ;;  %3524 = vmatprep.mubr.msk.f32.mxu1 %vm3620_vm0, %v3621_v6  ;;  %v434_v0 = vld [vmem:[%s3712_s24 + $0x820] sm:$0xff] }
 0x209   : > { %v1919_v3 = vmax.f32 %v864_v61, 0.0  ;;  %v2052_v4 = vmax.f32 %v1529_v63, 0.0  ;;  %v301_v63 = vld [vmem:[%s3712_s24 + $0x3f8] sm:$0xff] }
 0x20a   : > { %v868_v7 = vpop.f32.mrb[136].mxu0  ;;  %v1533_v8 = vpop.f32.mrb[136].mxu1 }
 0x20b   : > { %2185 = vst.msk [vmem:[%s4046_s29 + $0x218] sm:$0xff] %vm2117_vm1, %v1919_v3  ;;  %2318 = vst.msk [vmem:[%s4046_s29 + $0x640] sm:$0xff] %vm2117_vm1, %v2052_v4  ;;  %v869_v9 = vadd.f32 %v4822_v5, %v868_v7  ;;  %v2968_v10 = vpop.f32.mrb[137].mxu0  ;;  %3126 = vmatmul.mubr.f32.gmra.mrb[242].mxu0 %v295_v1  ;;  %v1534_v11 = vadd.f32 %v4822_v5, %v1533_v8  ;;  %v3367_v12 = vpop.f32.mrb[137].mxu1  ;;  %3525 = vmatmul.mubr.f32.gmra.mrb[242].mxu1 %v428_v2 }
 0x20c   : > { %3128 = vmatprep.mubr.msk.f32.mxu0 %vm3620_vm0, %v3621_v6  ;;  %3527 = vmatprep.mubr.msk.f32.mxu1 %vm3620_vm0, %v3621_v6  ;;  %v435_v12 = vld [vmem:[%s3712_s24 + $0x828] sm:$0xff] }
 0x20d   : > { %v1920_v15 = vmax.f32 %v869_v9, 0.0  ;;  %v2053_v16 = vmax.f32 %v1534_v11, 0.0  ;;  %v302_v11 = vld [vmem:[%s3712_s24 + $0x400] sm:$0xff] }
 0x20e   : > { %v873_v17 = vpop.f32.mrb[138].mxu0  ;;  %v1538_v18 = vpop.f32.mrb[138].mxu1 }
 0x20f   : > { %2186 = vst.msk [vmem:[%s4046_s29 + $0x220] sm:$0xff] %vm2117_vm1, %v1920_v15  ;;  %2319 = vst.msk [vmem:[%s4046_s29 + $0x648] sm:$0xff] %vm2117_vm1, %v2053_v16  ;;  %v874_v19 = vadd.f32 %v4822_v5, %v873_v17  ;;  %v2971_v20 = vpop.f32.mrb[139].mxu0  ;;  %3129 = vmatmul.mubr.f32.gmra.mrb[244].mxu0 %v296_v13  ;;  %v1539_v21 = vadd.f32 %v4822_v5, %v1538_v18  ;;  %v3370_v22 = vpop.f32.mrb[139].mxu1  ;;  %3528 = vmatmul.mubr.f32.gmra.mrb[244].mxu1 %v429_v14 }
 0x210   : > { %3131 = vmatprep.mubr.msk.f32.mxu0 %vm3620_vm0, %v3621_v6  ;;  %3530 = vmatprep.mubr.msk.f32.mxu1 %vm3620_vm0, %v3621_v6  ;;  %v436_v22 = vld [vmem:[%s3712_s24 + $0x830] sm:$0xff] }
 0x211   : > { %v1921_v25 = vmax.f32 %v874_v19, 0.0  ;;  %v2054_v26 = vmax.f32 %v1539_v21, 0.0  ;;  %v303_v21 = vld [vmem:[%s3712_s24 + $0x408] sm:$0xff] }
 0x212   : > { %v878_v27 = vpop.f32.mrb[140].mxu0  ;;  %v1543_v28 = vpop.f32.mrb[140].mxu1 }
 0x213   : > { %2187 = vst.msk [vmem:[%s4046_s29 + $0x228] sm:$0xff] %vm2117_vm1, %v1921_v25  ;;  %2320 = vst.msk [vmem:[%s4046_s29 + $0x650] sm:$0xff] %vm2117_vm1, %v2054_v26  ;;  %v879_v29 = vadd.f32 %v4822_v5, %v878_v27  ;;  %v2974_v30 = vpop.f32.mrb[141].mxu0  ;;  %3132 = vmatmul.mubr.f32.gmra.mrb[246].mxu0 %v297_v23  ;;  %v1544_v31 = vadd.f32 %v4822_v5, %v1543_v28  ;;  %v3373_v32 = vpop.f32.mrb[141].mxu1  ;;  %3531 = vmatmul.mubr.f32.gmra.mrb[246].mxu1 %v430_v24 }
 0x214   : > { %3134 = vmatprep.mubr.msk.f32.mxu0 %vm3620_vm0, %v3621_v6  ;;  %3533 = vmatprep.mubr.msk.f32.mxu1 %vm3620_vm0, %v3621_v6  ;;  %v437_v32 = vld [vmem:[%s3712_s24 + $0x838] sm:$0xff] }
 0x215   : > { %v1922_v35 = vmax.f32 %v879_v29, 0.0  ;;  %v2055_v36 = vmax.f32 %v1544_v31, 0.0  ;;  %v304_v31 = vld [vmem:[%s3712_s24 + $0x410] sm:$0xff] }
 0x216   : > { %v883_v37 = vpop.f32.mrb[142].mxu0  ;;  %v1548_v38 = vpop.f32.mrb[142].mxu1 }
 0x217   : > { %2188 = vst.msk [vmem:[%s4046_s29 + $0x230] sm:$0xff] %vm2117_vm1, %v1922_v35  ;;  %2321 = vst.msk [vmem:[%s4046_s29 + $0x658] sm:$0xff] %vm2117_vm1, %v2055_v36  ;;  %v884_v39 = vadd.f32 %v4822_v5, %v883_v37  ;;  %v2977_v40 = vpop.f32.mrb[143].mxu0  ;;  %3135 = vmatmul.mubr.f32.gmra.mrb[248].mxu0 %v298_v33  ;;  %v1549_v41 = vadd.f32 %v4822_v5, %v1548_v38  ;;  %v3376_v42 = vpop.f32.mrb[143].mxu1  ;;  %3534 = vmatmul.mubr.f32.gmra.mrb[248].mxu1 %v431_v34 }
 0x218   : > { %3137 = vmatprep.mubr.msk.f32.mxu0 %vm3620_vm0, %v3621_v6  ;;  %3536 = vmatprep.mubr.msk.f32.mxu1 %vm3620_vm0, %v3621_v6  ;;  %v438_v42 = vld [vmem:[%s3712_s24 + $0x840] sm:$0xff] }
 0x219   : > { %v1923_v45 = vmax.f32 %v884_v39, 0.0  ;;  %v2056_v46 = vmax.f32 %v1549_v41, 0.0  ;;  %v305_v41 = vld [vmem:[%s3712_s24 + $0x418] sm:$0xff] }
 0x21a   : > { %v888_v47 = vpop.f32.mrb[144].mxu0  ;;  %v1553_v48 = vpop.f32.mrb[144].mxu1 }
 0x21b   : > { %2189 = vst.msk [vmem:[%s4046_s29 + $0x238] sm:$0xff] %vm2117_vm1, %v1923_v45  ;;  %2322 = vst.msk [vmem:[%s4046_s29 + $0x660] sm:$0xff] %vm2117_vm1, %v2056_v46  ;;  %v889_v49 = vadd.f32 %v4822_v5, %v888_v47  ;;  %v2980_v50 = vpop.f32.mrb[145].mxu0  ;;  %3138 = vmatmul.mubr.f32.gmra.mrb[250].mxu0 %v299_v43  ;;  %v1554_v51 = vadd.f32 %v4822_v5, %v1553_v48  ;;  %v3379_v52 = vpop.f32.mrb[145].mxu1  ;;  %3537 = vmatmul.mubr.f32.gmra.mrb[250].mxu1 %v432_v44 }
 0x21c   : > { %3140 = vmatprep.mubr.msk.f32.mxu0 %vm3620_vm0, %v3621_v6  ;;  %3539 = vmatprep.mubr.msk.f32.mxu1 %vm3620_vm0, %v3621_v6 }
 0x21d   : > { %v1924_v55 = vmax.f32 %v889_v49, 0.0  ;;  %v2057_v56 = vmax.f32 %v1554_v51, 0.0  ;;  %v306_v51 = vld [vmem:[%s3712_s24 + $0x420] sm:$0xff] }
 0x21e   : > { %v893_v57 = vpop.f32.mrb[146].mxu0  ;;  %v1558_v58 = vpop.f32.mrb[146].mxu1 }
 0x21f   : > { %2190 = vst.msk [vmem:[%s4046_s29 + $0x240] sm:$0xff] %vm2117_vm1, %v1924_v55  ;;  %2323 = vst.msk [vmem:[%s4046_s29 + $0x668] sm:$0xff] %vm2117_vm1, %v2057_v56  ;;  %v894_v59 = vadd.f32 %v4822_v5, %v893_v57  ;;  %v2983_v60 = vpop.f32.mrb[147].mxu0  ;;  %3141 = vmatmul.mubr.f32.gmra.mrb[252].mxu0 %v300_v53  ;;  %v1559_v61 = vadd.f32 %v4822_v5, %v1558_v58  ;;  %v3382_v62 = vpop.f32.mrb[147].mxu1  ;;  %3540 = vmatmul.mubr.f32.gmra.mrb[252].mxu1 %v433_v54 }
 0x220   : > { %3143 = vmatprep.mubr.msk.f32.mxu0 %vm3620_vm0, %v3621_v6  ;;  %3542 = vmatprep.mubr.msk.f32.mxu1 %vm3620_vm0, %v3621_v6 }
 0x221   : > { %v1925_v1 = vmax.f32 %v894_v59, 0.0  ;;  %v2058_v2 = vmax.f32 %v1559_v61, 0.0 }
 0x222   : > { %v898_v3 = vpop.f32.mrb[148].mxu0  ;;  %v1563_v4 = vpop.f32.mrb[148].mxu1 }
 0x223   : > { %2191 = vst.msk [vmem:[%s4046_s29 + $0x248] sm:$0xff] %vm2117_vm1, %v1925_v1  ;;  %2324 = vst.msk [vmem:[%s4046_s29 + $0x670] sm:$0xff] %vm2117_vm1, %v2058_v2  ;;  %v899_v7 = vadd.f32 %v4822_v5, %v898_v3  ;;  %v2986_v8 = vpop.f32.mrb[149].mxu0  ;;  %3144 = vmatmul.mubr.f32.gmra.mrb[254].mxu0 %v301_v63  ;;  %v1564_v9 = vadd.f32 %v4822_v5, %v1563_v4  ;;  %v3385_v10 = vpop.f32.mrb[149].mxu1  ;;  %3543 = vmatmul.mubr.f32.gmra.mrb[254].mxu1 %v434_v0 }
 0x224   : > { %3146 = vmatprep.mubr.msk.f32.mxu0 %vm3620_vm0, %v3621_v6  ;;  %3545 = vmatprep.mubr.msk.f32.mxu1 %vm3620_vm0, %v3621_v6 }
 0x225   : > { %v1926_v13 = vmax.f32 %v899_v7, 0.0  ;;  %v2059_v14 = vmax.f32 %v1564_v9, 0.0 }
 0x226   : > { %v903_v15 = vpop.f32.mrb[150].mxu0  ;;  %v1568_v16 = vpop.f32.mrb[150].mxu1 }
 0x227   : > { %2192 = vst.msk [vmem:[%s4046_s29 + $0x250] sm:$0xff] %vm2117_vm1, %v1926_v13  ;;  %2325 = vst.msk [vmem:[%s4046_s29 + $0x678] sm:$0xff] %vm2117_vm1, %v2059_v14  ;;  %v904_v17 = vadd.f32 %v4822_v5, %v903_v15  ;;  %v2989_v18 = vpop.f32.mrb[151].mxu0  ;;  %3147 = vmatmul.mubr.f32.gmra.mrb[0].mxu0 %v302_v11  ;;  %v1569_v19 = vadd.f32 %v4822_v5, %v1568_v16  ;;  %v3388_v20 = vpop.f32.mrb[151].mxu1  ;;  %3546 = vmatmul.mubr.f32.gmra.mrb[0].mxu1 %v435_v12 }
 0x228   : > { %3149 = vmatprep.mubr.msk.f32.mxu0 %vm3620_vm0, %v3621_v6  ;;  %3548 = vmatprep.mubr.msk.f32.mxu1 %vm3620_vm0, %v3621_v6 }
 0x229   : > { %v1927_v23 = vmax.f32 %v904_v17, 0.0  ;;  %v2060_v24 = vmax.f32 %v1569_v19, 0.0 }
 0x22a   : > { %v908_v25 = vpop.f32.mrb[152].mxu0  ;;  %v1573_v26 = vpop.f32.mrb[152].mxu1 }
 0x22b   : > { %2193 = vst.msk [vmem:[%s4046_s29 + $0x258] sm:$0xff] %vm2117_vm1, %v1927_v23  ;;  %2326 = vst.msk [vmem:[%s4046_s29 + $0x680] sm:$0xff] %vm2117_vm1, %v2060_v24  ;;  %v909_v27 = vadd.f32 %v4822_v5, %v908_v25  ;;  %v2992_v28 = vpop.f32.mrb[153].mxu0  ;;  %3150 = vmatmul.mubr.f32.gmra.mrb[2].mxu0 %v303_v21  ;;  %v1574_v29 = vadd.f32 %v4822_v5, %v1573_v26  ;;  %v3391_v30 = vpop.f32.mrb[153].mxu1  ;;  %3549 = vmatmul.mubr.f32.gmra.mrb[2].mxu1 %v436_v22 }
 0x22c   : > { %3152 = vmatprep.mubr.msk.f32.mxu0 %vm3620_vm0, %v3621_v6  ;;  %3551 = vmatprep.mubr.msk.f32.mxu1 %vm3620_vm0, %v3621_v6 }
 0x22d   : > { %v1928_v33 = vmax.f32 %v909_v27, 0.0  ;;  %v2061_v34 = vmax.f32 %v1574_v29, 0.0 }
 0x22e   : > { %v913_v35 = vpop.f32.mrb[154].mxu0  ;;  %v1578_v36 = vpop.f32.mrb[154].mxu1 }
 0x22f   : > { %2194 = vst.msk [vmem:[%s4046_s29 + $0x260] sm:$0xff] %vm2117_vm1, %v1928_v33  ;;  %2327 = vst.msk [vmem:[%s4046_s29 + $0x688] sm:$0xff] %vm2117_vm1, %v2061_v34  ;;  %v914_v37 = vadd.f32 %v4822_v5, %v913_v35  ;;  %v2995_v38 = vpop.f32.mrb[155].mxu0  ;;  %3153 = vmatmul.mubr.f32.gmra.mrb[4].mxu0 %v304_v31  ;;  %v1579_v39 = vadd.f32 %v4822_v5, %v1578_v36  ;;  %v3394_v40 = vpop.f32.mrb[155].mxu1  ;;  %3552 = vmatmul.mubr.f32.gmra.mrb[4].mxu1 %v437_v32 }
 0x230   : > { %3155 = vmatprep.mubr.msk.f32.mxu0 %vm3620_vm0, %v3621_v6  ;;  %3554 = vmatprep.mubr.msk.f32.mxu1 %vm3620_vm0, %v3621_v6 }
 0x231   : > { %v1929_v43 = vmax.f32 %v914_v37, 0.0  ;;  %v2062_v44 = vmax.f32 %v1579_v39, 0.0 }
 0x232   : > { %v918_v45 = vpop.f32.mrb[156].mxu0  ;;  %v1583_v46 = vpop.f32.mrb[156].mxu1 }
 0x233   : > { %2195 = vst.msk [vmem:[%s4046_s29 + $0x268] sm:$0xff] %vm2117_vm1, %v1929_v43  ;;  %2328 = vst.msk [vmem:[%s4046_s29 + $0x690] sm:$0xff] %vm2117_vm1, %v2062_v44  ;;  %v919_v47 = vadd.f32 %v4822_v5, %v918_v45  ;;  %v2998_v48 = vpop.f32.mrb[157].mxu0  ;;  %3156 = vmatmul.mubr.f32.gmra.mrb[6].mxu0 %v305_v41  ;;  %v1584_v49 = vadd.f32 %v4822_v5, %v1583_v46  ;;  %v3397_v50 = vpop.f32.mrb[157].mxu1  ;;  %3555 = vmatmul.mubr.f32.gmra.mrb[6].mxu1 %v438_v42 }
 0x234   : > { %3158 = vmatprep.mubr.msk.f32.mxu0 %vm3620_vm0, %v3621_v6 }
 0x235   : > { %v1930_v52 = vmax.f32 %v919_v47, 0.0  ;;  %v2063_v53 = vmax.f32 %v1584_v49, 0.0 }
 0x236   : > { %v923_v54 = vpop.f32.mrb[158].mxu0  ;;  %v1588_v55 = vpop.f32.mrb[158].mxu1 }
 0x237   : > { %2196 = vst.msk [vmem:[%s4046_s29 + $0x270] sm:$0xff] %vm2117_vm1, %v1930_v52  ;;  %2329 = vst.msk [vmem:[%s4046_s29 + $0x698] sm:$0xff] %vm2117_vm1, %v2063_v53  ;;  %v924_v56 = vadd.f32 %v4822_v5, %v923_v54  ;;  %v3001_v57 = vpop.f32.mrb[159].mxu0  ;;  %3159 = vmatmul.mubr.f32.gmra.mrb[8].mxu0 %v306_v51  ;;  %v1589_v58 = vadd.f32 %v4822_v5, %v1588_v55  ;;  %v3400_v59 = vpop.f32.mrb[159].mxu1 }
 0x239   : > { %v1931_v6 = vmax.f32 %v924_v56, 0.0  ;;  %v2064_v60 = vmax.f32 %v1589_v58, 0.0 }
 0x23a   : > { %v928_v61 = vpop.f32.mrb[160].mxu0  ;;  %v1593_v62 = vpop.f32.mrb[160].mxu1 }
 0x23b   : > { %2197 = vst.msk [vmem:[%s4046_s29 + $0x278] sm:$0xff] %vm2117_vm1, %v1931_v6  ;;  %2330 = vst.msk [vmem:[%s4046_s29 + $0x6a0] sm:$0xff] %vm2117_vm1, %v2064_v60  ;;  %v929_v63 = vadd.f32 %v4822_v5, %v928_v61  ;;  %v3004_v0 = vpop.f32.mrb[161].mxu0  ;;  %v1594_v1 = vadd.f32 %v4822_v5, %v1593_v62  ;;  %v3403_v2 = vpop.f32.mrb[161].mxu1 }
 0x23d   : > { %v1932_v3 = vmax.f32 %v929_v63, 0.0  ;;  %v2065_v4 = vmax.f32 %v1594_v1, 0.0 }
 0x23e   : > { %v933_v7 = vpop.f32.mrb[162].mxu0  ;;  %v1598_v8 = vpop.f32.mrb[162].mxu1 }
 0x23f   : > { %2198 = vst.msk [vmem:[%s4046_s29 + $0x280] sm:$0xff] %vm2117_vm1, %v1932_v3  ;;  %2331 = vst.msk [vmem:[%s4046_s29 + $0x6a8] sm:$0xff] %vm2117_vm1, %v2065_v4  ;;  %v934_v9 = vadd.f32 %v4822_v5, %v933_v7  ;;  %v3007_v10 = vpop.f32.mrb[163].mxu0  ;;  %v1599_v11 = vadd.f32 %v4822_v5, %v1598_v8  ;;  %v3406_v12 = vpop.f32.mrb[163].mxu1 }
 0x241   : > { %v1933_v13 = vmax.f32 %v934_v9, 0.0  ;;  %v2066_v14 = vmax.f32 %v1599_v11, 0.0 }
 0x242   : > { %v938_v15 = vpop.f32.mrb[164].mxu0  ;;  %v1603_v16 = vpop.f32.mrb[164].mxu1 }
 0x243   : > { %2199 = vst.msk [vmem:[%s4046_s29 + $0x288] sm:$0xff] %vm2117_vm1, %v1933_v13  ;;  %2332 = vst.msk [vmem:[%s4046_s29 + $0x6b0] sm:$0xff] %vm2117_vm1, %v2066_v14  ;;  %v939_v17 = vadd.f32 %v4822_v5, %v938_v15  ;;  %v3010_v18 = vpop.f32.mrb[165].mxu0  ;;  %v1604_v19 = vadd.f32 %v4822_v5, %v1603_v16  ;;  %v3409_v20 = vpop.f32.mrb[165].mxu1 }
 0x245   : > { %v1934_v21 = vmax.f32 %v939_v17, 0.0  ;;  %v2067_v22 = vmax.f32 %v1604_v19, 0.0 }
 0x246   : > { %v943_v23 = vpop.f32.mrb[166].mxu0  ;;  %v1608_v24 = vpop.f32.mrb[166].mxu1 }
 0x247   : > { %2200 = vst.msk [vmem:[%s4046_s29 + $0x290] sm:$0xff] %vm2117_vm1, %v1934_v21  ;;  %2333 = vst.msk [vmem:[%s4046_s29 + $0x6b8] sm:$0xff] %vm2117_vm1, %v2067_v22  ;;  %v944_v25 = vadd.f32 %v4822_v5, %v943_v23  ;;  %v3013_v26 = vpop.f32.mrb[167].mxu0  ;;  %v1609_v27 = vadd.f32 %v4822_v5, %v1608_v24  ;;  %v3412_v28 = vpop.f32.mrb[167].mxu1 }
 0x249   : > { %v1935_v29 = vmax.f32 %v944_v25, 0.0  ;;  %v2068_v30 = vmax.f32 %v1609_v27, 0.0 }
 0x24a   : > { %v948_v31 = vpop.f32.mrb[168].mxu0  ;;  %v1613_v32 = vpop.f32.mrb[168].mxu1 }
 0x24b   : > { %2201 = vst.msk [vmem:[%s4046_s29 + $0x298] sm:$0xff] %vm2117_vm1, %v1935_v29  ;;  %2334 = vst.msk [vmem:[%s4046_s29 + $0x6c0] sm:$0xff] %vm2117_vm1, %v2068_v30  ;;  %v949_v33 = vadd.f32 %v4822_v5, %v948_v31  ;;  %v3016_v34 = vpop.f32.mrb[169].mxu0  ;;  %v1614_v35 = vadd.f32 %v4822_v5, %v1613_v32  ;;  %v3415_v36 = vpop.f32.mrb[169].mxu1 }
 0x24d   : > { %v1936_v37 = vmax.f32 %v949_v33, 0.0  ;;  %v2069_v38 = vmax.f32 %v1614_v35, 0.0 }
 0x24e   : > { %v953_v39 = vpop.f32.mrb[170].mxu0  ;;  %v1618_v40 = vpop.f32.mrb[170].mxu1 }
 0x24f   : > { %2202 = vst.msk [vmem:[%s4046_s29 + $0x2a0] sm:$0xff] %vm2117_vm1, %v1936_v37  ;;  %2335 = vst.msk [vmem:[%s4046_s29 + $0x6c8] sm:$0xff] %vm2117_vm1, %v2069_v38  ;;  %v954_v41 = vadd.f32 %v4822_v5, %v953_v39  ;;  %v3019_v42 = vpop.f32.mrb[171].mxu0  ;;  %v1619_v43 = vadd.f32 %v4822_v5, %v1618_v40  ;;  %v3418_v44 = vpop.f32.mrb[171].mxu1 }
 0x251   : > { %v1937_v45 = vmax.f32 %v954_v41, 0.0  ;;  %v2070_v46 = vmax.f32 %v1619_v43, 0.0 }
 0x252   : > { %v958_v47 = vpop.f32.mrb[172].mxu0  ;;  %v1623_v48 = vpop.f32.mrb[172].mxu1 }
 0x253   : > { %2203 = vst.msk [vmem:[%s4046_s29 + $0x2a8] sm:$0xff] %vm2117_vm1, %v1937_v45  ;;  %2336 = vst.msk [vmem:[%s4046_s29 + $0x6d0] sm:$0xff] %vm2117_vm1, %v2070_v46  ;;  %v959_v49 = vadd.f32 %v4822_v5, %v958_v47  ;;  %v3022_v50 = vpop.f32.mrb[173].mxu0  ;;  %v1624_v51 = vadd.f32 %v4822_v5, %v1623_v48  ;;  %v3421_v52 = vpop.f32.mrb[173].mxu1 }
 0x255   : > { %v1938_v53 = vmax.f32 %v959_v49, 0.0  ;;  %v2071_v54 = vmax.f32 %v1624_v51, 0.0 }
 0x256   : > { %v963_v55 = vpop.f32.mrb[174].mxu0  ;;  %v1628_v56 = vpop.f32.mrb[174].mxu1 }
 0x257   : > { %2204 = vst.msk [vmem:[%s4046_s29 + $0x2b0] sm:$0xff] %vm2117_vm1, %v1938_v53  ;;  %2337 = vst.msk [vmem:[%s4046_s29 + $0x6d8] sm:$0xff] %vm2117_vm1, %v2071_v54  ;;  %v964_v57 = vadd.f32 %v4822_v5, %v963_v55  ;;  %v3025_v58 = vpop.f32.mrb[175].mxu0  ;;  %v1629_v59 = vadd.f32 %v4822_v5, %v1628_v56  ;;  %v3424_v6 = vpop.f32.mrb[175].mxu1 }
 0x259   : > { %v1939_v60 = vmax.f32 %v964_v57, 0.0  ;;  %v2072_v61 = vmax.f32 %v1629_v59, 0.0 }
 0x25a   : > { %v968_v62 = vpop.f32.mrb[176].mxu0  ;;  %v1633_v63 = vpop.f32.mrb[176].mxu1 }
 0x25b   : > { %2205 = vst.msk [vmem:[%s4046_s29 + $0x2b8] sm:$0xff] %vm2117_vm1, %v1939_v60  ;;  %2338 = vst.msk [vmem:[%s4046_s29 + $0x6e0] sm:$0xff] %vm2117_vm1, %v2072_v61  ;;  %v969_v0 = vadd.f32 %v4822_v5, %v968_v62  ;;  %v3028_v1 = vpop.f32.mrb[177].mxu0  ;;  %v1634_v2 = vadd.f32 %v4822_v5, %v1633_v63  ;;  %v3427_v3 = vpop.f32.mrb[177].mxu1 }
 0x25d   : > { %v1940_v4 = vmax.f32 %v969_v0, 0.0  ;;  %v2073_v7 = vmax.f32 %v1634_v2, 0.0 }
 0x25e   : > { %v973_v8 = vpop.f32.mrb[178].mxu0  ;;  %v1638_v9 = vpop.f32.mrb[178].mxu1 }
 0x25f   : > { %2206 = vst.msk [vmem:[%s4046_s29 + $0x2c0] sm:$0xff] %vm2117_vm1, %v1940_v4  ;;  %2339 = vst.msk [vmem:[%s4046_s29 + $0x6e8] sm:$0xff] %vm2117_vm1, %v2073_v7  ;;  %v974_v10 = vadd.f32 %v4822_v5, %v973_v8  ;;  %v3031_v11 = vpop.f32.mrb[179].mxu0  ;;  %v1639_v12 = vadd.f32 %v4822_v5, %v1638_v9  ;;  %v3430_v13 = vpop.f32.mrb[179].mxu1 }
 0x261   : > { %v1941_v14 = vmax.f32 %v974_v10, 0.0  ;;  %v2074_v15 = vmax.f32 %v1639_v12, 0.0 }
 0x262   : > { %v978_v16 = vpop.f32.mrb[180].mxu0  ;;  %v1643_v17 = vpop.f32.mrb[180].mxu1 }
 0x263   : > { %2207 = vst.msk [vmem:[%s4046_s29 + $0x2c8] sm:$0xff] %vm2117_vm1, %v1941_v14  ;;  %2340 = vst.msk [vmem:[%s4046_s29 + $0x6f0] sm:$0xff] %vm2117_vm1, %v2074_v15  ;;  %v979_v18 = vadd.f32 %v4822_v5, %v978_v16  ;;  %v3034_v19 = vpop.f32.mrb[181].mxu0  ;;  %v1644_v20 = vadd.f32 %v4822_v5, %v1643_v17  ;;  %v3433_v21 = vpop.f32.mrb[181].mxu1 }
 0x265   : > { %v1942_v22 = vmax.f32 %v979_v18, 0.0  ;;  %v2075_v23 = vmax.f32 %v1644_v20, 0.0 }
 0x266   : > { %v983_v24 = vpop.f32.mrb[182].mxu0  ;;  %v1648_v25 = vpop.f32.mrb[182].mxu1 }
 0x267   : > { %2208 = vst.msk [vmem:[%s4046_s29 + $0x2d0] sm:$0xff] %vm2117_vm1, %v1942_v22  ;;  %2341 = vst.msk [vmem:[%s4046_s29 + $0x6f8] sm:$0xff] %vm2117_vm1, %v2075_v23  ;;  %v984_v26 = vadd.f32 %v4822_v5, %v983_v24  ;;  %v3037_v27 = vpop.f32.mrb[183].mxu0  ;;  %v1649_v28 = vadd.f32 %v4822_v5, %v1648_v25  ;;  %v3436_v29 = vpop.f32.mrb[183].mxu1 }
 0x269   : > { %v1943_v30 = vmax.f32 %v984_v26, 0.0  ;;  %v2076_v31 = vmax.f32 %v1649_v28, 0.0 }
 0x26a   : > { %v988_v32 = vpop.f32.mrb[184].mxu0  ;;  %v1653_v33 = vpop.f32.mrb[184].mxu1 }
 0x26b   : > { %2209 = vst.msk [vmem:[%s4046_s29 + $0x2d8] sm:$0xff] %vm2117_vm1, %v1943_v30  ;;  %2342 = vst.msk [vmem:[%s4046_s29 + $0x700] sm:$0xff] %vm2117_vm1, %v2076_v31  ;;  %v989_v34 = vadd.f32 %v4822_v5, %v988_v32  ;;  %v3040_v35 = vpop.f32.mrb[185].mxu0  ;;  %v1654_v36 = vadd.f32 %v4822_v5, %v1653_v33  ;;  %v3439_v37 = vpop.f32.mrb[185].mxu1 }
 0x26d   : > { %v1944_v38 = vmax.f32 %v989_v34, 0.0  ;;  %v2077_v39 = vmax.f32 %v1654_v36, 0.0 }
 0x26e   : > { %v993_v40 = vpop.f32.mrb[186].mxu0  ;;  %v1658_v41 = vpop.f32.mrb[186].mxu1 }
 0x26f   : > { %2210 = vst.msk [vmem:[%s4046_s29 + $0x2e0] sm:$0xff] %vm2117_vm1, %v1944_v38  ;;  %2343 = vst.msk [vmem:[%s4046_s29 + $0x708] sm:$0xff] %vm2117_vm1, %v2077_v39  ;;  %v994_v42 = vadd.f32 %v4822_v5, %v993_v40  ;;  %v3043_v43 = vpop.f32.mrb[187].mxu0  ;;  %v1659_v44 = vadd.f32 %v4822_v5, %v1658_v41  ;;  %v3442_v45 = vpop.f32.mrb[187].mxu1 }
 0x271   : > { %v1945_v46 = vmax.f32 %v994_v42, 0.0  ;;  %v2078_v47 = vmax.f32 %v1659_v44, 0.0 }
 0x272   : > { %v998_v48 = vpop.f32.mrb[188].mxu0  ;;  %v1663_v49 = vpop.f32.mrb[188].mxu1 }
 0x273   : > { %2211 = vst.msk [vmem:[%s4046_s29 + $0x2e8] sm:$0xff] %vm2117_vm1, %v1945_v46  ;;  %2344 = vst.msk [vmem:[%s4046_s29 + $0x710] sm:$0xff] %vm2117_vm1, %v2078_v47  ;;  %v999_v50 = vadd.f32 %v4822_v5, %v998_v48  ;;  %v3046_v51 = vpop.f32.mrb[189].mxu0  ;;  %v1664_v52 = vadd.f32 %v4822_v5, %v1663_v49  ;;  %v3445_v53 = vpop.f32.mrb[189].mxu1 }
 0x275   : > { %v1946_v54 = vmax.f32 %v999_v50, 0.0  ;;  %v2079_v55 = vmax.f32 %v1664_v52, 0.0 }
 0x276   : > { %v1003_v56 = vpop.f32.mrb[190].mxu0  ;;  %v1668_v57 = vpop.f32.mrb[190].mxu1 }
 0x277   : > { %2212 = vst.msk [vmem:[%s4046_s29 + $0x2f0] sm:$0xff] %vm2117_vm1, %v1946_v54  ;;  %2345 = vst.msk [vmem:[%s4046_s29 + $0x718] sm:$0xff] %vm2117_vm1, %v2079_v55  ;;  %v1004_v58 = vadd.f32 %v4822_v5, %v1003_v56  ;;  %v3049_v59 = vpop.f32.mrb[191].mxu0  ;;  %v1669_v6 = vadd.f32 %v4822_v5, %v1668_v57  ;;  %v3448_v60 = vpop.f32.mrb[191].mxu1 }
 0x279   : > { %v1947_v61 = vmax.f32 %v1004_v58, 0.0  ;;  %v2080_v62 = vmax.f32 %v1669_v6, 0.0 }
 0x27a   : > { %v1008_v63 = vpop.f32.mrb[192].mxu0  ;;  %v1673_v0 = vpop.f32.mrb[192].mxu1 }
 0x27b   : > { %2213 = vst.msk [vmem:[%s4046_s29 + $0x2f8] sm:$0xff] %vm2117_vm1, %v1947_v61  ;;  %2346 = vst.msk [vmem:[%s4046_s29 + $0x720] sm:$0xff] %vm2117_vm1, %v2080_v62  ;;  %v1009_v1 = vadd.f32 %v4822_v5, %v1008_v63  ;;  %v3052_v2 = vpop.f32.mrb[193].mxu0  ;;  %v1674_v3 = vadd.f32 %v4822_v5, %v1673_v0  ;;  %v3451_v4 = vpop.f32.mrb[193].mxu1 }
 0x27d   : > { %v1948_v7 = vmax.f32 %v1009_v1, 0.0  ;;  %v2081_v8 = vmax.f32 %v1674_v3, 0.0 }
 0x27e   : > { %v1013_v9 = vpop.f32.mrb[194].mxu0  ;;  %v1678_v10 = vpop.f32.mrb[194].mxu1 }
 0x27f   : > { %2214 = vst.msk [vmem:[%s4046_s29 + $0x300] sm:$0xff] %vm2117_vm1, %v1948_v7  ;;  %2347 = vst.msk [vmem:[%s4046_s29 + $0x728] sm:$0xff] %vm2117_vm1, %v2081_v8  ;;  %v1014_v11 = vadd.f32 %v4822_v5, %v1013_v9  ;;  %v3055_v12 = vpop.f32.mrb[195].mxu0  ;;  %v1679_v13 = vadd.f32 %v4822_v5, %v1678_v10  ;;  %v3454_v14 = vpop.f32.mrb[195].mxu1 }
 0x281   : > { %v1949_v15 = vmax.f32 %v1014_v11, 0.0  ;;  %v2082_v16 = vmax.f32 %v1679_v13, 0.0 }
 0x282   : > { %v1018_v17 = vpop.f32.mrb[196].mxu0  ;;  %v1683_v18 = vpop.f32.mrb[196].mxu1 }
 0x283   : > { %2215 = vst.msk [vmem:[%s4046_s29 + $0x308] sm:$0xff] %vm2117_vm1, %v1949_v15  ;;  %2348 = vst.msk [vmem:[%s4046_s29 + $0x730] sm:$0xff] %vm2117_vm1, %v2082_v16  ;;  %v1019_v19 = vadd.f32 %v4822_v5, %v1018_v17  ;;  %v3058_v20 = vpop.f32.mrb[197].mxu0  ;;  %v1684_v21 = vadd.f32 %v4822_v5, %v1683_v18  ;;  %v3457_v22 = vpop.f32.mrb[197].mxu1 }
 0x285   : > { %v1950_v23 = vmax.f32 %v1019_v19, 0.0  ;;  %v2083_v24 = vmax.f32 %v1684_v21, 0.0 }
 0x286   : > { %v1023_v25 = vpop.f32.mrb[198].mxu0  ;;  %v1688_v26 = vpop.f32.mrb[198].mxu1 }
 0x287   : > { %2216 = vst.msk [vmem:[%s4046_s29 + $0x310] sm:$0xff] %vm2117_vm1, %v1950_v23  ;;  %2349 = vst.msk [vmem:[%s4046_s29 + $0x738] sm:$0xff] %vm2117_vm1, %v2083_v24  ;;  %v1024_v27 = vadd.f32 %v4822_v5, %v1023_v25  ;;  %v3061_v28 = vpop.f32.mrb[199].mxu0  ;;  %v1689_v29 = vadd.f32 %v4822_v5, %v1688_v26  ;;  %v3460_v30 = vpop.f32.mrb[199].mxu1 }
 0x288   : > { %v5172_v28 = vld [vmem:[%s5332_s2] ss:$0 sm:$0xff] }
 0x289   : > { %v1951_v31 = vmax.f32 %v1024_v27, 0.0  ;;  %v2084_v32 = vmax.f32 %v1689_v29, 0.0 }
 0x28a   : > { %v1028_v33 = vpop.f32.mrb[200].mxu0  ;;  %v1693_v34 = vpop.f32.mrb[200].mxu1 }
 0x28b   : > { %2217 = vst.msk [vmem:[%s4046_s29 + $0x318] sm:$0xff] %vm2117_vm1, %v1951_v31  ;;  %2350 = vst.msk [vmem:[%s4046_s29 + $0x740] sm:$0xff] %vm2117_vm1, %v2084_v32  ;;  %v1029_v35 = vadd.f32 %v4822_v5, %v1028_v33  ;;  %v3064_v36 = vpop.f32.mrb[201].mxu0  ;;  %v1694_v37 = vadd.f32 %v4822_v5, %v1693_v34  ;;  %v3463_v38 = vpop.f32.mrb[201].mxu1 }
 0x28d   : > { %v1952_v39 = vmax.f32 %v1029_v35, 0.0  ;;  %v2085_v40 = vmax.f32 %v1694_v37, 0.0 }
 0x28e   : > { %v1033_v41 = vpop.f32.mrb[202].mxu0  ;;  %v1698_v42 = vpop.f32.mrb[202].mxu1 }
 0x28f   : > { %2218 = vst.msk [vmem:[%s4046_s29 + $0x320] sm:$0xff] %vm2117_vm1, %v1952_v39  ;;  %2351 = vst.msk [vmem:[%s4046_s29 + $0x748] sm:$0xff] %vm2117_vm1, %v2085_v40  ;;  %v1034_v43 = vadd.f32 %v4822_v5, %v1033_v41  ;;  %v3067_v44 = vpop.f32.mrb[203].mxu0  ;;  %v1699_v45 = vadd.f32 %v4822_v5, %v1698_v42  ;;  %v3466_v46 = vpop.f32.mrb[203].mxu1 }
 0x291   : > { %v1953_v47 = vmax.f32 %v1034_v43, 0.0  ;;  %v2086_v48 = vmax.f32 %v1699_v45, 0.0 }
 0x292   : > { %v1038_v49 = vpop.f32.mrb[204].mxu0  ;;  %v1703_v50 = vpop.f32.mrb[204].mxu1 }
 0x293   : > { %2219 = vst.msk [vmem:[%s4046_s29 + $0x328] sm:$0xff] %vm2117_vm1, %v1953_v47  ;;  %2352 = vst.msk [vmem:[%s4046_s29 + $0x750] sm:$0xff] %vm2117_vm1, %v2086_v48  ;;  %v1039_v51 = vadd.f32 %v4822_v5, %v1038_v49  ;;  %v3070_v52 = vpop.f32.mrb[205].mxu0  ;;  %v1704_v53 = vadd.f32 %v4822_v5, %v1703_v50  ;;  %v3469_v54 = vpop.f32.mrb[205].mxu1 }
 0x295   : > { %v1954_v55 = vmax.f32 %v1039_v51, 0.0  ;;  %v2087_v56 = vmax.f32 %v1704_v53, 0.0 }
 0x296   : > { %v1043_v57 = vpop.f32.mrb[206].mxu0  ;;  %v1708_v58 = vpop.f32.mrb[206].mxu1 }
 0x297   : > { %2220 = vst.msk [vmem:[%s4046_s29 + $0x330] sm:$0xff] %vm2117_vm1, %v1954_v55  ;;  %2353 = vst.msk [vmem:[%s4046_s29 + $0x758] sm:$0xff] %vm2117_vm1, %v2087_v56  ;;  %v1044_v59 = vadd.f32 %v4822_v5, %v1043_v57  ;;  %v3073_v6 = vpop.f32.mrb[207].mxu0  ;;  %v1709_v60 = vadd.f32 %v4822_v5, %v1708_v58  ;;  %v3472_v61 = vpop.f32.mrb[207].mxu1 }
 0x299   : > { %v1955_v62 = vmax.f32 %v1044_v59, 0.0  ;;  %v2088_v63 = vmax.f32 %v1709_v60, 0.0 }
 0x29a   : > { %v1048_v0 = vpop.f32.mrb[208].mxu0  ;;  %v1713_v1 = vpop.f32.mrb[208].mxu1 }
 0x29b   : > { %2221 = vst.msk [vmem:[%s4046_s29 + $0x338] sm:$0xff] %vm2117_vm1, %v1955_v62  ;;  %2354 = vst.msk [vmem:[%s4046_s29 + $0x760] sm:$0xff] %vm2117_vm1, %v2088_v63  ;;  %v1049_v2 = vadd.f32 %v4822_v5, %v1048_v0  ;;  %v3076_v3 = vpop.f32.mrb[209].mxu0  ;;  %v1714_v4 = vadd.f32 %v4822_v5, %v1713_v1  ;;  %v3475_v7 = vpop.f32.mrb[209].mxu1 }
 0x29d   : > { %v1956_v8 = vmax.f32 %v1049_v2, 0.0  ;;  %v2089_v9 = vmax.f32 %v1714_v4, 0.0 }
 0x29e   : > { %v1053_v10 = vpop.f32.mrb[210].mxu0  ;;  %v1718_v11 = vpop.f32.mrb[210].mxu1 }
 0x29f   : > { %2222 = vst.msk [vmem:[%s4046_s29 + $0x340] sm:$0xff] %vm2117_vm1, %v1956_v8  ;;  %2355 = vst.msk [vmem:[%s4046_s29 + $0x768] sm:$0xff] %vm2117_vm1, %v2089_v9  ;;  %v1054_v12 = vadd.f32 %v4822_v5, %v1053_v10  ;;  %v3079_v13 = vpop.f32.mrb[211].mxu0  ;;  %v1719_v14 = vadd.f32 %v4822_v5, %v1718_v11  ;;  %v3478_v15 = vpop.f32.mrb[211].mxu1 }
 0x2a1   : > { %v1957_v16 = vmax.f32 %v1054_v12, 0.0  ;;  %v2090_v17 = vmax.f32 %v1719_v14, 0.0 }
 0x2a2   : > { %v1058_v18 = vpop.f32.mrb[212].mxu0  ;;  %v1723_v19 = vpop.f32.mrb[212].mxu1 }
 0x2a3   : > { %2223 = vst.msk [vmem:[%s4046_s29 + $0x348] sm:$0xff] %vm2117_vm1, %v1957_v16  ;;  %2356 = vst.msk [vmem:[%s4046_s29 + $0x770] sm:$0xff] %vm2117_vm1, %v2090_v17  ;;  %v1059_v20 = vadd.f32 %v4822_v5, %v1058_v18  ;;  %v3082_v21 = vpop.f32.mrb[213].mxu0  ;;  %v1724_v22 = vadd.f32 %v4822_v5, %v1723_v19  ;;  %v3481_v23 = vpop.f32.mrb[213].mxu1 }
 0x2a5   : > { %v1958_v24 = vmax.f32 %v1059_v20, 0.0  ;;  %v2091_v25 = vmax.f32 %v1724_v22, 0.0 }
 0x2a6   : > { %v1063_v26 = vpop.f32.mrb[214].mxu0  ;;  %v1728_v27 = vpop.f32.mrb[214].mxu1 }
 0x2a7   : > { %2224 = vst.msk [vmem:[%s4046_s29 + $0x350] sm:$0xff] %vm2117_vm1, %v1958_v24  ;;  %2357 = vst.msk [vmem:[%s4046_s29 + $0x778] sm:$0xff] %vm2117_vm1, %v2091_v25  ;;  %v1064_v29 = vadd.f32 %v5172_v28, %v1063_v26  ;;  %v3085_v30 = vpop.f32.mrb[215].mxu0  ;;  %v1729_v5 = vadd.f32 %v5172_v28, %v1728_v27  ;;  %v3484_v31 = vpop.f32.mrb[215].mxu1 }
 0x2a9   : > { %v1959_v32 = vmax.f32 %v1064_v29, 0.0  ;;  %v2092_v33 = vmax.f32 %v1729_v5, 0.0 }
 0x2aa   : > { %v1068_v34 = vpop.f32.mrb[216].mxu0  ;;  %v1733_v35 = vpop.f32.mrb[216].mxu1 }
 0x2ab   : > { %2225 = vst.msk [vmem:[%s4046_s29 + $0x358] sm:$0xff] %vm2117_vm1, %v1959_v32  ;;  %2358 = vst.msk [vmem:[%s4046_s29 + $0x780] sm:$0xff] %vm2117_vm1, %v2092_v33  ;;  %v1069_v36 = vadd.f32 %v5172_v28, %v1068_v34  ;;  %v3088_v37 = vpop.f32.mrb[217].mxu0  ;;  %v1734_v38 = vadd.f32 %v5172_v28, %v1733_v35  ;;  %v3487_v39 = vpop.f32.mrb[217].mxu1 }
 0x2ad   : > { %v1960_v40 = vmax.f32 %v1069_v36, 0.0  ;;  %v2093_v41 = vmax.f32 %v1734_v38, 0.0 }
 0x2ae   : > { %v1073_v42 = vpop.f32.mrb[218].mxu0  ;;  %v1738_v43 = vpop.f32.mrb[218].mxu1 }
 0x2af   : > { %2226 = vst.msk [vmem:[%s4046_s29 + $0x360] sm:$0xff] %vm2117_vm1, %v1960_v40  ;;  %2359 = vst.msk [vmem:[%s4046_s29 + $0x788] sm:$0xff] %vm2117_vm1, %v2093_v41  ;;  %v1074_v44 = vadd.f32 %v5172_v28, %v1073_v42  ;;  %v3091_v45 = vpop.f32.mrb[219].mxu0  ;;  %v1739_v46 = vadd.f32 %v5172_v28, %v1738_v43  ;;  %v3490_v47 = vpop.f32.mrb[219].mxu1 }
 0x2b1   : > { %v1961_v48 = vmax.f32 %v1074_v44, 0.0  ;;  %v2094_v49 = vmax.f32 %v1739_v46, 0.0 }
 0x2b2   : > { %v1078_v50 = vpop.f32.mrb[220].mxu0  ;;  %v1743_v51 = vpop.f32.mrb[220].mxu1 }
 0x2b3   : > { %2227 = vst.msk [vmem:[%s4046_s29 + $0x368] sm:$0xff] %vm2117_vm1, %v1961_v48  ;;  %2360 = vst.msk [vmem:[%s4046_s29 + $0x790] sm:$0xff] %vm2117_vm1, %v2094_v49  ;;  %v1079_v52 = vadd.f32 %v5172_v28, %v1078_v50  ;;  %v3094_v53 = vpop.f32.mrb[221].mxu0  ;;  %v1744_v54 = vadd.f32 %v5172_v28, %v1743_v51  ;;  %v3493_v55 = vpop.f32.mrb[221].mxu1 }
 0x2b5   : > { %v1962_v56 = vmax.f32 %v1079_v52, 0.0  ;;  %v2095_v57 = vmax.f32 %v1744_v54, 0.0 }
 0x2b6   : > { %v1083_v58 = vpop.f32.mrb[222].mxu0  ;;  %v1748_v59 = vpop.f32.mrb[222].mxu1 }
 0x2b7   : > { %2228 = vst.msk [vmem:[%s4046_s29 + $0x370] sm:$0xff] %vm2117_vm1, %v1962_v56  ;;  %2361 = vst.msk [vmem:[%s4046_s29 + $0x798] sm:$0xff] %vm2117_vm1, %v2095_v57  ;;  %v1084_v6 = vadd.f32 %v5172_v28, %v1083_v58  ;;  %v3097_v60 = vpop.f32.mrb[223].mxu0  ;;  %v1749_v61 = vadd.f32 %v5172_v28, %v1748_v59  ;;  %v3496_v62 = vpop.f32.mrb[223].mxu1 }
 0x2b9   : > { %v1963_v63 = vmax.f32 %v1084_v6, 0.0  ;;  %v2096_v0 = vmax.f32 %v1749_v61, 0.0 }
 0x2ba   : > { %v1088_v1 = vpop.f32.mrb[224].mxu0  ;;  %v1753_v2 = vpop.f32.mrb[224].mxu1 }
 0x2bb   : > { %2229 = vst.msk [vmem:[%s4046_s29 + $0x378] sm:$0xff] %vm2117_vm1, %v1963_v63  ;;  %2362 = vst.msk [vmem:[%s4046_s29 + $0x7a0] sm:$0xff] %vm2117_vm1, %v2096_v0  ;;  %v1089_v3 = vadd.f32 %v5172_v28, %v1088_v1  ;;  %v3100_v4 = vpop.f32.mrb[225].mxu0  ;;  %v1754_v7 = vadd.f32 %v5172_v28, %v1753_v2  ;;  %v3499_v8 = vpop.f32.mrb[225].mxu1 }
 0x2bd   : > { %v1964_v9 = vmax.f32 %v1089_v3, 0.0  ;;  %v2097_v10 = vmax.f32 %v1754_v7, 0.0 }
 0x2be   : > { %v1093_v11 = vpop.f32.mrb[226].mxu0  ;;  %v1758_v12 = vpop.f32.mrb[226].mxu1 }
 0x2bf   : > { %2230 = vst.msk [vmem:[%s4046_s29 + $0x380] sm:$0xff] %vm2117_vm1, %v1964_v9  ;;  %2363 = vst.msk [vmem:[%s4046_s29 + $0x7a8] sm:$0xff] %vm2117_vm1, %v2097_v10  ;;  %v1094_v13 = vadd.f32 %v5172_v28, %v1093_v11  ;;  %v3103_v14 = vpop.f32.mrb[227].mxu0  ;;  %v1759_v15 = vadd.f32 %v5172_v28, %v1758_v12  ;;  %v3502_v16 = vpop.f32.mrb[227].mxu1 }
 0x2c1   : > { %v1965_v17 = vmax.f32 %v1094_v13, 0.0  ;;  %v2098_v18 = vmax.f32 %v1759_v15, 0.0 }
 0x2c2   : > { %v1098_v19 = vpop.f32.mrb[228].mxu0  ;;  %v1763_v20 = vpop.f32.mrb[228].mxu1 }
 0x2c3   : > { %2231 = vst.msk [vmem:[%s4046_s29 + $0x388] sm:$0xff] %vm2117_vm1, %v1965_v17  ;;  %2364 = vst.msk [vmem:[%s4046_s29 + $0x7b0] sm:$0xff] %vm2117_vm1, %v2098_v18  ;;  %v1099_v21 = vadd.f32 %v5172_v28, %v1098_v19  ;;  %v3106_v22 = vpop.f32.mrb[229].mxu0  ;;  %v1764_v23 = vadd.f32 %v5172_v28, %v1763_v20  ;;  %v3505_v24 = vpop.f32.mrb[229].mxu1 }
 0x2c5   : > { %v1966_v25 = vmax.f32 %v1099_v21, 0.0  ;;  %v2099_v26 = vmax.f32 %v1764_v23, 0.0 }
 0x2c6   : > { %v1103_v27 = vpop.f32.mrb[230].mxu0  ;;  %v1768_v29 = vpop.f32.mrb[230].mxu1 }
 0x2c7   : > { %2232 = vst.msk [vmem:[%s4046_s29 + $0x390] sm:$0xff] %vm2117_vm1, %v1966_v25  ;;  %2365 = vst.msk [vmem:[%s4046_s29 + $0x7b8] sm:$0xff] %vm2117_vm1, %v2099_v26  ;;  %v1104_v30 = vadd.f32 %v5172_v28, %v1103_v27  ;;  %v3109_v5 = vpop.f32.mrb[231].mxu0  ;;  %v1769_v31 = vadd.f32 %v5172_v28, %v1768_v29  ;;  %v3508_v32 = vpop.f32.mrb[231].mxu1 }
 0x2c9   : > { %v1967_v33 = vmax.f32 %v1104_v30, 0.0  ;;  %v2100_v34 = vmax.f32 %v1769_v31, 0.0 }
 0x2ca   : > { %v1108_v35 = vpop.f32.mrb[232].mxu0  ;;  %v1773_v36 = vpop.f32.mrb[232].mxu1 }
 0x2cb   : > { %2233 = vst.msk [vmem:[%s4046_s29 + $0x398] sm:$0xff] %vm2117_vm1, %v1967_v33  ;;  %2366 = vst.msk [vmem:[%s4046_s29 + $0x7c0] sm:$0xff] %vm2117_vm1, %v2100_v34  ;;  %v1109_v37 = vadd.f32 %v5172_v28, %v1108_v35  ;;  %v3112_v38 = vpop.f32.mrb[233].mxu0  ;;  %v1774_v39 = vadd.f32 %v5172_v28, %v1773_v36  ;;  %v3511_v40 = vpop.f32.mrb[233].mxu1 }
 0x2cd   : > { %v1968_v41 = vmax.f32 %v1109_v37, 0.0  ;;  %v2101_v42 = vmax.f32 %v1774_v39, 0.0 }
 0x2ce   : > { %v1113_v43 = vpop.f32.mrb[234].mxu0  ;;  %v1778_v44 = vpop.f32.mrb[234].mxu1 }
 0x2cf   : > { %2234 = vst.msk [vmem:[%s4046_s29 + $0x3a0] sm:$0xff] %vm2117_vm1, %v1968_v41  ;;  %2367 = vst.msk [vmem:[%s4046_s29 + $0x7c8] sm:$0xff] %vm2117_vm1, %v2101_v42  ;;  %v1114_v45 = vadd.f32 %v5172_v28, %v1113_v43  ;;  %v3115_v46 = vpop.f32.mrb[235].mxu0  ;;  %v1779_v47 = vadd.f32 %v5172_v28, %v1778_v44  ;;  %v3514_v48 = vpop.f32.mrb[235].mxu1 }
 0x2d1   : > { %v1969_v49 = vmax.f32 %v1114_v45, 0.0  ;;  %v2102_v50 = vmax.f32 %v1779_v47, 0.0 }
 0x2d2   : > { %v1118_v51 = vpop.f32.mrb[236].mxu0  ;;  %v1783_v52 = vpop.f32.mrb[236].mxu1 }
 0x2d3   : > { %2235 = vst.msk [vmem:[%s4046_s29 + $0x3a8] sm:$0xff] %vm2117_vm1, %v1969_v49  ;;  %2368 = vst.msk [vmem:[%s4046_s29 + $0x7d0] sm:$0xff] %vm2117_vm1, %v2102_v50  ;;  %v1119_v53 = vadd.f32 %v5172_v28, %v1118_v51  ;;  %v3118_v54 = vpop.f32.mrb[237].mxu0  ;;  %v1784_v55 = vadd.f32 %v5172_v28, %v1783_v52  ;;  %v3517_v56 = vpop.f32.mrb[237].mxu1 }
 0x2d5   : > { %v1970_v57 = vmax.f32 %v1119_v53, 0.0  ;;  %v2103_v58 = vmax.f32 %v1784_v55, 0.0 }
 0x2d6   : > { %v1123_v59 = vpop.f32.mrb[238].mxu0  ;;  %v1788_v6 = vpop.f32.mrb[238].mxu1 }
 0x2d7   : > { %2236 = vst.msk [vmem:[%s4046_s29 + $0x3b0] sm:$0xff] %vm2117_vm1, %v1970_v57  ;;  %2369 = vst.msk [vmem:[%s4046_s29 + $0x7d8] sm:$0xff] %vm2117_vm1, %v2103_v58  ;;  %v1124_v60 = vadd.f32 %v5172_v28, %v1123_v59  ;;  %v3121_v61 = vpop.f32.mrb[239].mxu0  ;;  %v1789_v62 = vadd.f32 %v5172_v28, %v1788_v6  ;;  %v3520_v63 = vpop.f32.mrb[239].mxu1 }
 0x2d9   : > { %v1971_v0 = vmax.f32 %v1124_v60, 0.0  ;;  %v2104_v1 = vmax.f32 %v1789_v62, 0.0 }
 0x2da   : > { %v1128_v2 = vpop.f32.mrb[240].mxu0  ;;  %v1793_v3 = vpop.f32.mrb[240].mxu1 }
 0x2db   : > { %2237 = vst.msk [vmem:[%s4046_s29 + $0x3b8] sm:$0xff] %vm2117_vm1, %v1971_v0  ;;  %2370 = vst.msk [vmem:[%s4046_s29 + $0x7e0] sm:$0xff] %vm2117_vm1, %v2104_v1  ;;  %v1129_v4 = vadd.f32 %v5172_v28, %v1128_v2  ;;  %v3124_v7 = vpop.f32.mrb[241].mxu0  ;;  %v1794_v8 = vadd.f32 %v5172_v28, %v1793_v3  ;;  %v3523_v9 = vpop.f32.mrb[241].mxu1 }
 0x2dd   : > { %v1972_v10 = vmax.f32 %v1129_v4, 0.0  ;;  %v2105_v11 = vmax.f32 %v1794_v8, 0.0 }
 0x2de   : > { %v1133_v12 = vpop.f32.mrb[242].mxu0  ;;  %v1798_v13 = vpop.f32.mrb[242].mxu1 }
 0x2df   : > { %2238 = vst.msk [vmem:[%s4046_s29 + $0x3c0] sm:$0xff] %vm2117_vm1, %v1972_v10  ;;  %2371 = vst.msk [vmem:[%s4046_s29 + $0x7e8] sm:$0xff] %vm2117_vm1, %v2105_v11  ;;  %v1134_v14 = vadd.f32 %v5172_v28, %v1133_v12  ;;  %v3127_v15 = vpop.f32.mrb[243].mxu0  ;;  %v1799_v16 = vadd.f32 %v5172_v28, %v1798_v13  ;;  %v3526_v17 = vpop.f32.mrb[243].mxu1 }
 0x2e1   : > { %v1973_v18 = vmax.f32 %v1134_v14, 0.0  ;;  %v2106_v19 = vmax.f32 %v1799_v16, 0.0 }
 0x2e2   : > { %v1138_v20 = vpop.f32.mrb[244].mxu0  ;;  %v1803_v21 = vpop.f32.mrb[244].mxu1 }
 0x2e3   : > { %2239 = vst.msk [vmem:[%s4046_s29 + $0x3c8] sm:$0xff] %vm2117_vm1, %v1973_v18  ;;  %2372 = vst.msk [vmem:[%s4046_s29 + $0x7f0] sm:$0xff] %vm2117_vm1, %v2106_v19  ;;  %v1139_v22 = vadd.f32 %v5172_v28, %v1138_v20  ;;  %v3130_v23 = vpop.f32.mrb[245].mxu0  ;;  %v1804_v24 = vadd.f32 %v5172_v28, %v1803_v21  ;;  %v3529_v25 = vpop.f32.mrb[245].mxu1 }
 0x2e5   : > { %v1974_v26 = vmax.f32 %v1139_v22, 0.0  ;;  %v2107_v27 = vmax.f32 %v1804_v24, 0.0 }
 0x2e6   : > { %v1143_v29 = vpop.f32.mrb[246].mxu0  ;;  %v1808_v30 = vpop.f32.mrb[246].mxu1 }
 0x2e7   : > { %2240 = vst.msk [vmem:[%s4046_s29 + $0x3d0] sm:$0xff] %vm2117_vm1, %v1974_v26  ;;  %2373 = vst.msk [vmem:[%s4046_s29 + $0x7f8] sm:$0xff] %vm2117_vm1, %v2107_v27  ;;  %v1144_v5 = vadd.f32 %v5172_v28, %v1143_v29  ;;  %v3133_v31 = vpop.f32.mrb[247].mxu0  ;;  %v1809_v32 = vadd.f32 %v5172_v28, %v1808_v30  ;;  %v3532_v33 = vpop.f32.mrb[247].mxu1 }
 0x2e9   : > { %v1975_v34 = vmax.f32 %v1144_v5, 0.0  ;;  %v2108_v35 = vmax.f32 %v1809_v32, 0.0 }
 0x2ea   : > { %v1148_v36 = vpop.f32.mrb[248].mxu0  ;;  %v1813_v37 = vpop.f32.mrb[248].mxu1 }
 0x2eb   : > { %2241 = vst.msk [vmem:[%s4046_s29 + $0x3d8] sm:$0xff] %vm2117_vm1, %v1975_v34  ;;  %2374 = vst.msk [vmem:[%s4046_s29 + $0x800] sm:$0xff] %vm2117_vm1, %v2108_v35  ;;  %v1149_v38 = vadd.f32 %v5172_v28, %v1148_v36  ;;  %v3136_v39 = vpop.f32.mrb[249].mxu0  ;;  %v1814_v40 = vadd.f32 %v5172_v28, %v1813_v37  ;;  %v3535_v41 = vpop.f32.mrb[249].mxu1 }
 0x2ed   : > { %v1976_v42 = vmax.f32 %v1149_v38, 0.0  ;;  %v2109_v43 = vmax.f32 %v1814_v40, 0.0 }
 0x2ee   : > { %v1153_v44 = vpop.f32.mrb[250].mxu0  ;;  %v1818_v45 = vpop.f32.mrb[250].mxu1 }
 0x2ef   : > { %2242 = vst.msk [vmem:[%s4046_s29 + $0x3e0] sm:$0xff] %vm2117_vm1, %v1976_v42  ;;  %2375 = vst.msk [vmem:[%s4046_s29 + $0x808] sm:$0xff] %vm2117_vm1, %v2109_v43  ;;  %v1154_v46 = vadd.f32 %v5172_v28, %v1153_v44  ;;  %v3139_v47 = vpop.f32.mrb[251].mxu0  ;;  %v1819_v48 = vadd.f32 %v5172_v28, %v1818_v45  ;;  %v3538_v49 = vpop.f32.mrb[251].mxu1 }
 0x2f1   : > { %v1977_v50 = vmax.f32 %v1154_v46, 0.0  ;;  %v2110_v51 = vmax.f32 %v1819_v48, 0.0 }
 0x2f2   : > { %v1158_v52 = vpop.f32.mrb[252].mxu0  ;;  %v1823_v53 = vpop.f32.mrb[252].mxu1 }
 0x2f3   : > { %2243 = vst.msk [vmem:[%s4046_s29 + $0x3e8] sm:$0xff] %vm2117_vm1, %v1977_v50  ;;  %2376 = vst.msk [vmem:[%s4046_s29 + $0x810] sm:$0xff] %vm2117_vm1, %v2110_v51  ;;  %v1159_v54 = vadd.f32 %v5172_v28, %v1158_v52  ;;  %v3142_v55 = vpop.f32.mrb[253].mxu0  ;;  %v1824_v56 = vadd.f32 %v5172_v28, %v1823_v53  ;;  %v3541_v57 = vpop.f32.mrb[253].mxu1 }
 0x2f5   : > { %v1978_v58 = vmax.f32 %v1159_v54, 0.0  ;;  %v2111_v59 = vmax.f32 %v1824_v56, 0.0 }
 0x2f6   : > { %v1163_v6 = vpop.f32.mrb[254].mxu0  ;;  %v1828_v60 = vpop.f32.mrb[254].mxu1 }
 0x2f7   : > { %2244 = vst.msk [vmem:[%s4046_s29 + $0x3f0] sm:$0xff] %vm2117_vm1, %v1978_v58  ;;  %2377 = vst.msk [vmem:[%s4046_s29 + $0x818] sm:$0xff] %vm2117_vm1, %v2111_v59  ;;  %v1164_v61 = vadd.f32 %v5172_v28, %v1163_v6  ;;  %v3145_v62 = vpop.f32.mrb[255].mxu0  ;;  %v1829_v63 = vadd.f32 %v5172_v28, %v1828_v60  ;;  %v3544_v0 = vpop.f32.mrb[255].mxu1 }
 0x2f9   : > { %v1979_v1 = vmax.f32 %v1164_v61, 0.0  ;;  %v2112_v2 = vmax.f32 %v1829_v63, 0.0 }
 0x2fa   : > { %v1168_v3 = vpop.f32.mrb[0].mxu0  ;;  %v1833_v4 = vpop.f32.mrb[0].mxu1 }
 0x2fb   : > { %2245 = vst.msk [vmem:[%s4046_s29 + $0x3f8] sm:$0xff] %vm2117_vm1, %v1979_v1  ;;  %2378 = vst.msk [vmem:[%s4046_s29 + $0x820] sm:$0xff] %vm2117_vm1, %v2112_v2  ;;  %v1169_v7 = vadd.f32 %v5172_v28, %v1168_v3  ;;  %v3148_v8 = vpop.f32.mrb[1].mxu0  ;;  %v1834_v9 = vadd.f32 %v5172_v28, %v1833_v4  ;;  %v3547_v10 = vpop.f32.mrb[1].mxu1 }
 0x2fd   : > { %v1980_v11 = vmax.f32 %v1169_v7, 0.0  ;;  %v2113_v12 = vmax.f32 %v1834_v9, 0.0 }
 0x2fe   : > { %v1173_v13 = vpop.f32.mrb[2].mxu0  ;;  %v1838_v14 = vpop.f32.mrb[2].mxu1 }
 0x2ff   : > { %2246 = vst.msk [vmem:[%s4046_s29 + $0x400] sm:$0xff] %vm2117_vm1, %v1980_v11  ;;  %2379 = vst.msk [vmem:[%s4046_s29 + $0x828] sm:$0xff] %vm2117_vm1, %v2113_v12  ;;  %v1174_v15 = vadd.f32 %v5172_v28, %v1173_v13  ;;  %v3151_v16 = vpop.f32.mrb[3].mxu0  ;;  %v1839_v17 = vadd.f32 %v5172_v28, %v1838_v14  ;;  %v3550_v18 = vpop.f32.mrb[3].mxu1 }
 0x301   : > { %v1981_v19 = vmax.f32 %v1174_v15, 0.0  ;;  %v2114_v20 = vmax.f32 %v1839_v17, 0.0 }
 0x302   : > { %v1178_v21 = vpop.f32.mrb[4].mxu0  ;;  %v1843_v22 = vpop.f32.mrb[4].mxu1 }
 0x303   : > { %2247 = vst.msk [vmem:[%s4046_s29 + $0x408] sm:$0xff] %vm2117_vm1, %v1981_v19  ;;  %2380 = vst.msk [vmem:[%s4046_s29 + $0x830] sm:$0xff] %vm2117_vm1, %v2114_v20  ;;  %v1179_v23 = vadd.f32 %v5172_v28, %v1178_v21  ;;  %v3154_v24 = vpop.f32.mrb[5].mxu0  ;;  %v1844_v25 = vadd.f32 %v5172_v28, %v1843_v22  ;;  %v3553_v26 = vpop.f32.mrb[5].mxu1 }
 0x305   : > { %v1982_v27 = vmax.f32 %v1179_v23, 0.0  ;;  %v2115_v29 = vmax.f32 %v1844_v25, 0.0 }
 0x306   : > { %v1183_v30 = vpop.f32.mrb[6].mxu0  ;;  %v1848_v5 = vpop.f32.mrb[6].mxu1 }
 0x307   : > { %2248 = vst.msk [vmem:[%s4046_s29 + $0x410] sm:$0xff] %vm2117_vm1, %v1982_v27  ;;  %2381 = vst.msk [vmem:[%s4046_s29 + $0x838] sm:$0xff] %vm2117_vm1, %v2115_v29  ;;  %v1184_v31 = vadd.f32 %v5172_v28, %v1183_v30  ;;  %v3157_v32 = vpop.f32.mrb[7].mxu0  ;;  %v1849_v33 = vadd.f32 %v5172_v28, %v1848_v5  ;;  %v3556_v34 = vpop.f32.mrb[7].mxu1 }
 0x309   : > { %v1983_v35 = vmax.f32 %v1184_v31, 0.0  ;;  %v2116_v36 = vmax.f32 %v1849_v33, 0.0 }
 0x30a   : > { %v1188_v37 = vpop.f32.mrb[8].mxu0 }
 0x30b   : > { %2249 = vst.msk [vmem:[%s4046_s29 + $0x418] sm:$0xff] %vm2117_vm1, %v1983_v35  ;;  %2382 = vst.msk [vmem:[%s4046_s29 + $0x840] sm:$0xff] %vm2117_vm1, %v2116_v36  ;;  %v1189_v38 = vadd.f32 %v5172_v28, %v1188_v37  ;;  %v3160_v39 = vpop.f32.mrb[9].mxu0 }
 0x30d   : > { %v1984_v40 = vmax.f32 %v1189_v38, 0.0 }
 0x30f   : > { %2250 = vst.msk [vmem:[%s4046_s29 + $0x420] sm:$0xff] %vm2117_vm1, %v1984_v40 }
 0x310 PF: > { %s13_s12 = sadd.s32 1, %s3617_s12  }
 0x311   : > { %p10_p4 = scmp.ge.s32.totalorder %s13_s12, 4  }
 0x313   :  { %12 = sbr.rel (!%p10_p4) target bundleno = 1 (0x1), region = 62 }

// kernel: critic_forward.4
= control target key start
LH: loop header
LB: loop body
LE: loop exit
PB: predicated region body
PF: predicated region fallthrough
CT: control target
= control target key end

     0   :  { %s1191_s12 = smov 0   ;;  %s1640_s0 = inlined_call_operand.vmem [shape: f32[976,128], index: 0, kind: input, shape index: {}]   ;;  %s1641_s1 = inlined_call_operand.vmem [shape: f32[128,16], index: 1, kind: input, shape index: {}]   ;;  %s1642_s2 = inlined_call_operand.vmem [shape: f32[1,16], index: 2, kind: input, shape index: {}]   ;;  %s1643_s3 = inlined_call_operand.vmem [shape: f32[976,16], index: 3, kind: output, shape index: {}]  }
   0x1 LB: > { %s807_s13 = sadd.s32 4294967295, %s1166_s12   ;;  %p811_p0 = scmp.ge.s32.totalorder %s1166_s12, 1  ;;  %s1166_s12 = sphi %s1191_s12, %s13_s12  }
   0x2   : > { %p138_p1 = scmp.lt.s32.totalorder %s1166_s12, 3 }
   0x4   : > { %p139_p2 = pnand %p811_p0, %p138_p1 }
   0x5   : > { %v235_v0 = vld [vmem:[%s1641_s1] sm:$0xff] (!%p139_p2)  ;;  %v236_v1 = vld [vmem:[%s1641_s1 + $0x8] sm:$0xff] (!%p139_p2)  ;;  %v237_v2 = vld [vmem:[%s1641_s1 + $0x10] sm:$0xff] (!%p139_p2)  ;;  %v1168_v3 = vmov (!%p139_p2), 0.0|0.0   ;;  %vm1169_vm0 = vmmov (!%p139_p2), 0   ;;  %v1170_v6 = vmov (!%p139_p2), 0.0  }
   0x6   : > { %142 = sbr.rel (%p139_p2) target bundleno = 376 (0x178), region = 32  ;;  %1109 = vmatprep.subr.bf16.mxu0 (!%p139_p2), %v1168_v3  ;;  %v1110_v4 = vpack.c.bf16 (!%p139_p2), %v236_v1, %v235_v0  ;;  %1133 = vmatprep.subr.bf16.mxu1 (!%p139_p2), %v1168_v3  ;;  %v238_v5 = vld [vmem:[%s1641_s1 + $0x18] sm:$0xff] (!%p139_p2)  ;;  %v239_v8 = vld [vmem:[%s1641_s1 + $0x20] sm:$0xff] (!%p139_p2)  ;;  %v240_v9 = vld [vmem:[%s1641_s1 + $0x28] sm:$0xff] (!%p139_p2)  ;;  %vm689_vm1 = vcmask (!%p139_p2), 130048  }
   0x7   : > { %926 = vmatprep.mubr.msk.f32.mxu0 (!%p139_p2), %vm1169_vm0, %v1170_v6  ;;  %1019 = vmatprep.mubr.msk.f32.mxu1 (!%p139_p2), %vm1169_vm0, %v1170_v6  ;;  %v1113_v7 = vpack.c.bf16 (!%p139_p2), %v238_v5, %v237_v2  ;;  %v1116_v10 = vpack.c.bf16 (!%p139_p2), %v240_v9, %v239_v8  ;;  %v241_v11 = vld [vmem:[%s1641_s1 + $0x30] sm:$0xff] (!%p139_p2)  ;;  %v242_v12 = vld [vmem:[%s1641_s1 + $0x38] sm:$0xff] (!%p139_p2)  ;;  %v243_v14 = vld [vmem:[%s1641_s1 + $0x40] sm:$0xff] (!%p139_p2)  ;;  %s162_s7 = smul.u32 (!%p139_p2), 61, %s807_s13 }
   0x8   : > { %1111 = vmatpush3.bf16.msra.mxu0 (!%p139_p2), %v1110_v4  ;;  %1141 = vmatpush3.bf16.msra.mxu1 (!%p139_p2), %v1110_v4  ;;  %v1119_v13 = vpack.c.bf16 (!%p139_p2), %v242_v12, %v241_v11  ;;  %v244_v15 = vld [vmem:[%s1641_s1 + $0x48] sm:$0xff] (!%p139_p2)  ;;  %v245_v17 = vld [vmem:[%s1641_s1 + $0x50] sm:$0xff] (!%p139_p2)  ;;  %v246_v18 = vld [vmem:[%s1641_s1 + $0x58] sm:$0xff] (!%p139_p2) }
   0x9   : > { %1112 = vmatprep.subr.bf16.mxu0 (!%p139_p2), %v1168_v3  ;;  %1134 = vmatprep.subr.bf16.mxu1 (!%p139_p2), %v1168_v3  ;;  %v1122_v16 = vpack.c.bf16 (!%p139_p2), %v244_v15, %v243_v14  ;;  %p163_p3 = scmp.lt.s32.totalorder (!%p139_p2), %s162_s7, 121  ;;  %v1125_v19 = vpack.c.bf16 (!%p139_p2), %v246_v18, %v245_v17  ;;  %v247_v20 = vld [vmem:[%s1641_s1 + $0x60] sm:$0xff] (!%p139_p2)  ;;  %v248_v21 = vld [vmem:[%s1641_s1 + $0x68] sm:$0xff] (!%p139_p2)  ;;  %v249_v23 = vld [vmem:[%s1641_s1 + $0x70] sm:$0xff] (!%p139_p2) }
   0xa   : > { %v1128_v22 = vpack.c.bf16 (!%p139_p2), %v248_v21, %v247_v20  ;;  %v250_v24 = vld [vmem:[%s1641_s1 + $0x78] sm:$0xff] (!%p139_p2) }
   0xb   : > { %v1131_v25 = vpack.c.bf16 (!%p139_p2), %v250_v24, %v249_v23  ;;  %v1445_v24 = vld [vmem:[%s1642_s2] ss:$0 sm:$0xff] (!%p139_p2) }
   0xc   : > { %1114 = vmatpush3.bf16.msra.mxu0 (!%p139_p2), %v1113_v7  ;;  %1142 = vmatpush3.bf16.msra.mxu1 (!%p139_p2), %v1113_v7 }
   0xd   : > { %1115 = vmatprep.subr.bf16.mxu0 %v1168_v3  ;;  %1135 = vmatprep.subr.bf16.mxu1 %v1168_v3  ;;  %s1645_s7 = smov (!%p163_p3, %s162_s7), 121 }
   0xe   : > { %s812_s21 = sshll.u32 %s1645_s7, 3 }
   0xf   : > { %s1261_s24 = scalar_lea.vmem %s1640_s0, %s812_s21  ;;  %s1454_s29 = scalar_lea.vmem %s1643_s3, %s812_s21 }
  0x10   : > { %1117 = vmatpush3.bf16.msra.mxu0 %v1116_v10  ;;  %1143 = vmatpush3.bf16.msra.mxu1 %v1116_v10  ;;  %v174_v26 = vld [vmem:[%s1261_s24] sm:$0xff]  ;;  %v205_v27 = vld [vmem:[%s1261_s24 + $0xf8] sm:$0xff]  ;;  %v175_v28 = vld [vmem:[%s1261_s24 + $0x8] sm:$0xff] }
  0x11   : > { %1118 = vmatprep.subr.bf16.mxu0 %v1168_v3  ;;  %1136 = vmatprep.subr.bf16.mxu1 %v1168_v3  ;;  %v206_v29 = vld [vmem:[%s1261_s24 + $0x100] sm:$0xff]  ;;  %v176_v30 = vld [vmem:[%s1261_s24 + $0x10] sm:$0xff]  ;;  %v207_v31 = vld [vmem:[%s1261_s24 + $0x108] sm:$0xff] }
  0x12   : > { %v177_v32 = vld [vmem:[%s1261_s24 + $0x18] sm:$0xff]  ;;  %v208_v33 = vld [vmem:[%s1261_s24 + $0x110] sm:$0xff]  ;;  %v178_v34 = vld [vmem:[%s1261_s24 + $0x20] sm:$0xff] }
  0x13   : > { %v209_v35 = vld [vmem:[%s1261_s24 + $0x118] sm:$0xff]  ;;  %v179_v36 = vld [vmem:[%s1261_s24 + $0x28] sm:$0xff]  ;;  %v210_v37 = vld [vmem:[%s1261_s24 + $0x120] sm:$0xff] }
  0x14   : > { %1120 = vmatpush3.bf16.msra.mxu0 %v1119_v13  ;;  %1144 = vmatpush3.bf16.msra.mxu1 %v1119_v13  ;;  %v180_v38 = vld [vmem:[%s1261_s24 + $0x30] sm:$0xff]  ;;  %v211_v39 = vld [vmem:[%s1261_s24 + $0x128] sm:$0xff]  ;;  %v181_v40 = vld [vmem:[%s1261_s24 + $0x38] sm:$0xff] }
  0x15   : > { %1121 = vmatprep.subr.bf16.mxu0 %v1168_v3  ;;  %1137 = vmatprep.subr.bf16.mxu1 %v1168_v3  ;;  %v212_v41 = vld [vmem:[%s1261_s24 + $0x130] sm:$0xff]  ;;  %v182_v42 = vld [vmem:[%s1261_s24 + $0x40] sm:$0xff]  ;;  %v213_v43 = vld [vmem:[%s1261_s24 + $0x138] sm:$0xff] }
  0x16   : > { %v183_v44 = vld [vmem:[%s1261_s24 + $0x48] sm:$0xff]  ;;  %v214_v45 = vld [vmem:[%s1261_s24 + $0x140] sm:$0xff]  ;;  %v184_v46 = vld [vmem:[%s1261_s24 + $0x50] sm:$0xff] }
  0x17   : > { %v215_v47 = vld [vmem:[%s1261_s24 + $0x148] sm:$0xff]  ;;  %v185_v48 = vld [vmem:[%s1261_s24 + $0x58] sm:$0xff]  ;;  %v216_v49 = vld [vmem:[%s1261_s24 + $0x150] sm:$0xff] }
  0x18   : > { %1123 = vmatpush3.bf16.msra.mxu0 %v1122_v16  ;;  %1145 = vmatpush3.bf16.msra.mxu1 %v1122_v16  ;;  %v186_v50 = vld [vmem:[%s1261_s24 + $0x60] sm:$0xff]  ;;  %v217_v51 = vld [vmem:[%s1261_s24 + $0x158] sm:$0xff]  ;;  %v187_v52 = vld [vmem:[%s1261_s24 + $0x68] sm:$0xff] }
  0x19   : > { %1124 = vmatprep.subr.bf16.mxu0 %v1168_v3  ;;  %1138 = vmatprep.subr.bf16.mxu1 %v1168_v3  ;;  %v218_v53 = vld [vmem:[%s1261_s24 + $0x160] sm:$0xff]  ;;  %v188_v54 = vld [vmem:[%s1261_s24 + $0x70] sm:$0xff]  ;;  %v219_v55 = vld [vmem:[%s1261_s24 + $0x168] sm:$0xff] }
  0x1a   : > { %v189_v56 = vld [vmem:[%s1261_s24 + $0x78] sm:$0xff]  ;;  %v220_v57 = vld [vmem:[%s1261_s24 + $0x170] sm:$0xff]  ;;  %v190_v58 = vld [vmem:[%s1261_s24 + $0x80] sm:$0xff] }
  0x1b   : > { %v221_v59 = vld [vmem:[%s1261_s24 + $0x178] sm:$0xff]  ;;  %v191_v60 = vld [vmem:[%s1261_s24 + $0x88] sm:$0xff]  ;;  %v222_v61 = vld [vmem:[%s1261_s24 + $0x180] sm:$0xff] }
  0x1c   : > { %1126 = vmatpush3.bf16.msra.mxu0 %v1125_v19  ;;  %1146 = vmatpush3.bf16.msra.mxu1 %v1125_v19  ;;  %v192_v62 = vld [vmem:[%s1261_s24 + $0x90] sm:$0xff]  ;;  %v223_v63 = vld [vmem:[%s1261_s24 + $0x188] sm:$0xff]  ;;  %v193_v0 = vld [vmem:[%s1261_s24 + $0x98] sm:$0xff] }
  0x1d   : > { %1127 = vmatprep.subr.bf16.mxu0 %v1168_v3  ;;  %1139 = vmatprep.subr.bf16.mxu1 %v1168_v3  ;;  %v224_v1 = vld [vmem:[%s1261_s24 + $0x190] sm:$0xff]  ;;  %v194_v2 = vld [vmem:[%s1261_s24 + $0xa0] sm:$0xff]  ;;  %v195_v4 = vld [vmem:[%s1261_s24 + $0xa8] sm:$0xff] }
  0x1e   : > { %v226_v5 = vld [vmem:[%s1261_s24 + $0x1a0] sm:$0xff]  ;;  %v196_v7 = vld [vmem:[%s1261_s24 + $0xb0] sm:$0xff]  ;;  %v227_v8 = vld [vmem:[%s1261_s24 + $0x1a8] sm:$0xff] }
  0x1f   : > { %v197_v9 = vld [vmem:[%s1261_s24 + $0xb8] sm:$0xff]  ;;  %v228_v10 = vld [vmem:[%s1261_s24 + $0x1b0] sm:$0xff]  ;;  %v198_v11 = vld [vmem:[%s1261_s24 + $0xc0] sm:$0xff] }
  0x20   : > { %1129 = vmatpush3.bf16.msra.mxu0 %v1128_v22  ;;  %1147 = vmatpush3.bf16.msra.mxu1 %v1128_v22  ;;  %v229_v12 = vld [vmem:[%s1261_s24 + $0x1b8] sm:$0xff]  ;;  %v199_v13 = vld [vmem:[%s1261_s24 + $0xc8] sm:$0xff]  ;;  %v230_v14 = vld [vmem:[%s1261_s24 + $0x1c0] sm:$0xff] }
  0x21   : > { %1130 = vmatprep.subr.bf16.mxu0 %v1168_v3  ;;  %1140 = vmatprep.subr.bf16.mxu1 %v1168_v3  ;;  %v225_v3 = vld [vmem:[%s1261_s24 + $0x198] sm:$0xff]  ;;  %v200_v15 = vld [vmem:[%s1261_s24 + $0xd0] sm:$0xff]  ;;  %v231_v16 = vld [vmem:[%s1261_s24 + $0x1c8] sm:$0xff] }
  0x22   : > { %v201_v17 = vld [vmem:[%s1261_s24 + $0xd8] sm:$0xff]  ;;  %v232_v18 = vld [vmem:[%s1261_s24 + $0x1d0] sm:$0xff]  ;;  %v202_v19 = vld [vmem:[%s1261_s24 + $0xe0] sm:$0xff] }
  0x23   : > { %v233_v20 = vld [vmem:[%s1261_s24 + $0x1d8] sm:$0xff]  ;;  %v203_v21 = vld [vmem:[%s1261_s24 + $0xe8] sm:$0xff]  ;;  %v234_v22 = vld [vmem:[%s1261_s24 + $0x1e0] sm:$0xff] }
  0x24   : > { %1132 = vmatpush3.bf16.msra.mxu0 %v1131_v25  ;;  %1148 = vmatpush3.bf16.msra.mxu1 %v1131_v25  ;;  %v204_v23 = vld [vmem:[%s1261_s24 + $0xf0] sm:$0xff] }
  0x27   : > { %927 = vmatmul.mubr.f32.vlgmr.msra.gmra.mrb[0].mxu0 %v174_v26  ;;  %1020 = vmatmul.mubr.f32.vlgmr.msra.gmra.mrb[0].mxu1 %v205_v27 }
  0x28   : > { %929 = vmatprep.mubr.msk.f32.mxu0 %vm1169_vm0, %v1170_v6  ;;  %1022 = vmatprep.mubr.msk.f32.mxu1 %vm1169_vm0, %v1170_v6 }
  0x2b   : > { %930 = vmatmul.mubr.f32.gmra.mrb[2].mxu0 %v175_v28  ;;  %1023 = vmatmul.mubr.f32.gmra.mrb[2].mxu1 %v206_v29 }
  0x2c   : > { %932 = vmatprep.mubr.msk.f32.mxu0 %vm1169_vm0, %v1170_v6  ;;  %1025 = vmatprep.mubr.msk.f32.mxu1 %vm1169_vm0, %v1170_v6 }
  0x2f   : > { %933 = vmatmul.mubr.f32.gmra.mrb[4].mxu0 %v176_v30  ;;  %1026 = vmatmul.mubr.f32.gmra.mrb[4].mxu1 %v207_v31 }
  0x30   : > { %935 = vmatprep.mubr.msk.f32.mxu0 %vm1169_vm0, %v1170_v6  ;;  %1028 = vmatprep.mubr.msk.f32.mxu1 %vm1169_vm0, %v1170_v6 }
  0x33   : > { %936 = vmatmul.mubr.f32.gmra.mrb[6].mxu0 %v177_v32  ;;  %1029 = vmatmul.mubr.f32.gmra.mrb[6].mxu1 %v208_v33 }
  0x34   : > { %938 = vmatprep.mubr.msk.f32.mxu0 %vm1169_vm0, %v1170_v6  ;;  %1031 = vmatprep.mubr.msk.f32.mxu1 %vm1169_vm0, %v1170_v6 }
  0x37   : > { %939 = vmatmul.mubr.f32.gmra.mrb[8].mxu0 %v178_v34  ;;  %1032 = vmatmul.mubr.f32.gmra.mrb[8].mxu1 %v209_v35 }
  0x38   : > { %941 = vmatprep.mubr.msk.f32.mxu0 %vm1169_vm0, %v1170_v6  ;;  %1034 = vmatprep.mubr.msk.f32.mxu1 %vm1169_vm0, %v1170_v6 }
  0x3b   : > { %942 = vmatmul.mubr.f32.gmra.mrb[10].mxu0 %v179_v36  ;;  %1035 = vmatmul.mubr.f32.gmra.mrb[10].mxu1 %v210_v37 }
  0x3c   : > { %944 = vmatprep.mubr.msk.f32.mxu0 %vm1169_vm0, %v1170_v6  ;;  %1037 = vmatprep.mubr.msk.f32.mxu1 %vm1169_vm0, %v1170_v6 }
  0x3f   : > { %945 = vmatmul.mubr.f32.gmra.mrb[12].mxu0 %v180_v38  ;;  %1038 = vmatmul.mubr.f32.gmra.mrb[12].mxu1 %v211_v39 }
  0x40   : > { %947 = vmatprep.mubr.msk.f32.mxu0 %vm1169_vm0, %v1170_v6  ;;  %1040 = vmatprep.mubr.msk.f32.mxu1 %vm1169_vm0, %v1170_v6 }
  0x43   : > { %948 = vmatmul.mubr.f32.gmra.mrb[14].mxu0 %v181_v40  ;;  %1041 = vmatmul.mubr.f32.gmra.mrb[14].mxu1 %v212_v41 }
  0x44   : > { %950 = vmatprep.mubr.msk.f32.mxu0 %vm1169_vm0, %v1170_v6  ;;  %1043 = vmatprep.mubr.msk.f32.mxu1 %vm1169_vm0, %v1170_v6 }
  0x47   : > { %951 = vmatmul.mubr.f32.gmra.mrb[16].mxu0 %v182_v42  ;;  %1044 = vmatmul.mubr.f32.gmra.mrb[16].mxu1 %v213_v43 }
  0x48   : > { %953 = vmatprep.mubr.msk.f32.mxu0 %vm1169_vm0, %v1170_v6  ;;  %1046 = vmatprep.mubr.msk.f32.mxu1 %vm1169_vm0, %v1170_v6 }
  0x4b   : > { %954 = vmatmul.mubr.f32.gmra.mrb[18].mxu0 %v183_v44  ;;  %1047 = vmatmul.mubr.f32.gmra.mrb[18].mxu1 %v214_v45 }
  0x4c   : > { %956 = vmatprep.mubr.msk.f32.mxu0 %vm1169_vm0, %v1170_v6  ;;  %1049 = vmatprep.mubr.msk.f32.mxu1 %vm1169_vm0, %v1170_v6 }
  0x4f   : > { %957 = vmatmul.mubr.f32.gmra.mrb[20].mxu0 %v184_v46  ;;  %1050 = vmatmul.mubr.f32.gmra.mrb[20].mxu1 %v215_v47 }
  0x50   : > { %959 = vmatprep.mubr.msk.f32.mxu0 %vm1169_vm0, %v1170_v6  ;;  %1052 = vmatprep.mubr.msk.f32.mxu1 %vm1169_vm0, %v1170_v6 }
  0x53   : > { %960 = vmatmul.mubr.f32.gmra.mrb[22].mxu0 %v185_v48  ;;  %1053 = vmatmul.mubr.f32.gmra.mrb[22].mxu1 %v216_v49 }
  0x54   : > { %962 = vmatprep.mubr.msk.f32.mxu0 %vm1169_vm0, %v1170_v6  ;;  %1055 = vmatprep.mubr.msk.f32.mxu1 %vm1169_vm0, %v1170_v6 }
  0x57   : > { %963 = vmatmul.mubr.f32.gmra.mrb[24].mxu0 %v186_v50  ;;  %1056 = vmatmul.mubr.f32.gmra.mrb[24].mxu1 %v217_v51 }
  0x58   : > { %965 = vmatprep.mubr.msk.f32.mxu0 %vm1169_vm0, %v1170_v6  ;;  %1058 = vmatprep.mubr.msk.f32.mxu1 %vm1169_vm0, %v1170_v6 }
  0x5b   : > { %966 = vmatmul.mubr.f32.gmra.mrb[26].mxu0 %v187_v52  ;;  %1059 = vmatmul.mubr.f32.gmra.mrb[26].mxu1 %v218_v53 }
  0x5c   : > { %968 = vmatprep.mubr.msk.f32.mxu0 %vm1169_vm0, %v1170_v6  ;;  %1061 = vmatprep.mubr.msk.f32.mxu1 %vm1169_vm0, %v1170_v6 }
  0x5f   : > { %969 = vmatmul.mubr.f32.gmra.mrb[28].mxu0 %v188_v54  ;;  %1062 = vmatmul.mubr.f32.gmra.mrb[28].mxu1 %v219_v55 }
  0x60   : > { %971 = vmatprep.mubr.msk.f32.mxu0 %vm1169_vm0, %v1170_v6  ;;  %1064 = vmatprep.mubr.msk.f32.mxu1 %vm1169_vm0, %v1170_v6 }
  0x63   : > { %972 = vmatmul.mubr.f32.gmra.mrb[30].mxu0 %v189_v56  ;;  %1065 = vmatmul.mubr.f32.gmra.mrb[30].mxu1 %v220_v57 }
  0x64   : > { %974 = vmatprep.mubr.msk.f32.mxu0 %vm1169_vm0, %v1170_v6  ;;  %1067 = vmatprep.mubr.msk.f32.mxu1 %vm1169_vm0, %v1170_v6 }
  0x67   : > { %975 = vmatmul.mubr.f32.gmra.mrb[32].mxu0 %v190_v58  ;;  %1068 = vmatmul.mubr.f32.gmra.mrb[32].mxu1 %v221_v59 }
  0x68   : > { %977 = vmatprep.mubr.msk.f32.mxu0 %vm1169_vm0, %v1170_v6  ;;  %1070 = vmatprep.mubr.msk.f32.mxu1 %vm1169_vm0, %v1170_v6 }
  0x6b   : > { %978 = vmatmul.mubr.f32.gmra.mrb[34].mxu0 %v191_v60  ;;  %1071 = vmatmul.mubr.f32.gmra.mrb[34].mxu1 %v222_v61 }
  0x6c   : > { %980 = vmatprep.mubr.msk.f32.mxu0 %vm1169_vm0, %v1170_v6  ;;  %1073 = vmatprep.mubr.msk.f32.mxu1 %vm1169_vm0, %v1170_v6 }
  0x6f   : > { %981 = vmatmul.mubr.f32.gmra.mrb[36].mxu0 %v192_v62  ;;  %1074 = vmatmul.mubr.f32.gmra.mrb[36].mxu1 %v223_v63 }
  0x70   : > { %983 = vmatprep.mubr.msk.f32.mxu0 %vm1169_vm0, %v1170_v6  ;;  %1076 = vmatprep.mubr.msk.f32.mxu1 %vm1169_vm0, %v1170_v6 }
  0x73   : > { %984 = vmatmul.mubr.f32.gmra.mrb[38].mxu0 %v193_v0  ;;  %1077 = vmatmul.mubr.f32.gmra.mrb[38].mxu1 %v224_v1 }
  0x74   : > { %986 = vmatprep.mubr.msk.f32.mxu0 %vm1169_vm0, %v1170_v6  ;;  %1079 = vmatprep.mubr.msk.f32.mxu1 %vm1169_vm0, %v1170_v6 }
  0x77   : > { %987 = vmatmul.mubr.f32.gmra.mrb[40].mxu0 %v194_v2  ;;  %1080 = vmatmul.mubr.f32.gmra.mrb[40].mxu1 %v225_v3 }
  0x78   : > { %989 = vmatprep.mubr.msk.f32.mxu0 %vm1169_vm0, %v1170_v6  ;;  %1082 = vmatprep.mubr.msk.f32.mxu1 %vm1169_vm0, %v1170_v6 }
  0x7b   : > { %990 = vmatmul.mubr.f32.gmra.mrb[42].mxu0 %v195_v4  ;;  %1083 = vmatmul.mubr.f32.gmra.mrb[42].mxu1 %v226_v5 }
  0x7c   : > { %992 = vmatprep.mubr.msk.f32.mxu0 %vm1169_vm0, %v1170_v6  ;;  %1085 = vmatprep.mubr.msk.f32.mxu1 %vm1169_vm0, %v1170_v6 }
  0x7f   : > { %993 = vmatmul.mubr.f32.gmra.mrb[44].mxu0 %v196_v7  ;;  %1086 = vmatmul.mubr.f32.gmra.mrb[44].mxu1 %v227_v8 }
  0x80   : > { %995 = vmatprep.mubr.msk.f32.mxu0 %vm1169_vm0, %v1170_v6  ;;  %1088 = vmatprep.mubr.msk.f32.mxu1 %vm1169_vm0, %v1170_v6 }
  0x83   : > { %996 = vmatmul.mubr.f32.gmra.mrb[46].mxu0 %v197_v9  ;;  %1089 = vmatmul.mubr.f32.gmra.mrb[46].mxu1 %v228_v10 }
  0x84   : > { %998 = vmatprep.mubr.msk.f32.mxu0 %vm1169_vm0, %v1170_v6  ;;  %1091 = vmatprep.mubr.msk.f32.mxu1 %vm1169_vm0, %v1170_v6 }
  0x87   : > { %999 = vmatmul.mubr.f32.gmra.mrb[48].mxu0 %v198_v11  ;;  %1092 = vmatmul.mubr.f32.gmra.mrb[48].mxu1 %v229_v12 }
  0x88   : > { %1001 = vmatprep.mubr.msk.f32.mxu0 %vm1169_vm0, %v1170_v6  ;;  %1094 = vmatprep.mubr.msk.f32.mxu1 %vm1169_vm0, %v1170_v6 }
  0x8b   : > { %1002 = vmatmul.mubr.f32.gmra.mrb[50].mxu0 %v199_v13  ;;  %1095 = vmatmul.mubr.f32.gmra.mrb[50].mxu1 %v230_v14 }
  0x8c   : > { %1004 = vmatprep.mubr.msk.f32.mxu0 %vm1169_vm0, %v1170_v6  ;;  %1097 = vmatprep.mubr.msk.f32.mxu1 %vm1169_vm0, %v1170_v6 }
  0x8f   : > { %1005 = vmatmul.mubr.f32.gmra.mrb[52].mxu0 %v200_v15  ;;  %1098 = vmatmul.mubr.f32.gmra.mrb[52].mxu1 %v231_v16 }
  0x90   : > { %1007 = vmatprep.mubr.msk.f32.mxu0 %vm1169_vm0, %v1170_v6  ;;  %1100 = vmatprep.mubr.msk.f32.mxu1 %vm1169_vm0, %v1170_v6 }
  0x93   : > { %1008 = vmatmul.mubr.f32.gmra.mrb[54].mxu0 %v201_v17  ;;  %1101 = vmatmul.mubr.f32.gmra.mrb[54].mxu1 %v232_v18 }
  0x94   : > { %1010 = vmatprep.mubr.msk.f32.mxu0 %vm1169_vm0, %v1170_v6  ;;  %1103 = vmatprep.mubr.msk.f32.mxu1 %vm1169_vm0, %v1170_v6 }
  0x97   : > { %1011 = vmatmul.mubr.f32.gmra.mrb[56].mxu0 %v202_v19  ;;  %1104 = vmatmul.mubr.f32.gmra.mrb[56].mxu1 %v233_v20 }
  0x98   : > { %1013 = vmatprep.mubr.msk.f32.mxu0 %vm1169_vm0, %v1170_v6  ;;  %1106 = vmatprep.mubr.msk.f32.mxu1 %vm1169_vm0, %v1170_v6 }
  0x9b   : > { %1014 = vmatmul.mubr.f32.gmra.mrb[58].mxu0 %v203_v21  ;;  %1107 = vmatmul.mubr.f32.gmra.mrb[58].mxu1 %v234_v22 }
  0x9c   : > { %1016 = vmatprep.mubr.msk.f32.mxu0 %vm1169_vm0, %v1170_v6 }
  0x9f   : > { %1017 = vmatmul.mubr.f32.gmra.mrb[60].mxu0 %v204_v23 }
  0xfa   : > { %v324_v25 = vpop.f32.mrb[0].mxu0  ;;  %v479_v26 = vpop.f32.mrb[0].mxu1 }
  0xfb   : > { %v325_v27 = vadd.f32 %v1445_v24, %v324_v25  ;;  %v928_v28 = vpop.f32.mrb[1].mxu0  ;;  %v480_v29 = vadd.f32 %v1445_v24, %v479_v26  ;;  %v1021_v30 = vpop.f32.mrb[1].mxu1 }
  0xfd   : > { %v628_v6 = vmax.f32 %v325_v27, 0.0  ;;  %v659_v31 = vmax.f32 %v480_v29, 0.0 }
  0xfe   : > { %v329_v32 = vpop.f32.mrb[2].mxu0  ;;  %v484_v33 = vpop.f32.mrb[2].mxu1 }
  0xff   : > { %690 = vst.msk [vmem:[%s1454_s29] sm:$0xff] %vm689_vm1, %v628_v6  ;;  %721 = vst.msk [vmem:[%s1454_s29 + $0xf8] sm:$0xff] %vm689_vm1, %v659_v31  ;;  %v330_v34 = vadd.f32 %v1445_v24, %v329_v32  ;;  %v931_v35 = vpop.f32.mrb[3].mxu0  ;;  %v485_v36 = vadd.f32 %v1445_v24, %v484_v33  ;;  %v1024_v37 = vpop.f32.mrb[3].mxu1 }
 0x101   : > { %v629_v38 = vmax.f32 %v330_v34, 0.0  ;;  %v660_v39 = vmax.f32 %v485_v36, 0.0 }
 0x102   : > { %v334_v40 = vpop.f32.mrb[4].mxu0  ;;  %v489_v41 = vpop.f32.mrb[4].mxu1 }
 0x103   : > { %691 = vst.msk [vmem:[%s1454_s29 + $0x8] sm:$0xff] %vm689_vm1, %v629_v38  ;;  %722 = vst.msk [vmem:[%s1454_s29 + $0x100] sm:$0xff] %vm689_vm1, %v660_v39  ;;  %v335_v42 = vadd.f32 %v1445_v24, %v334_v40  ;;  %v934_v43 = vpop.f32.mrb[5].mxu0  ;;  %v490_v44 = vadd.f32 %v1445_v24, %v489_v41  ;;  %v1027_v45 = vpop.f32.mrb[5].mxu1 }
 0x105   : > { %v630_v46 = vmax.f32 %v335_v42, 0.0  ;;  %v661_v47 = vmax.f32 %v490_v44, 0.0 }
 0x106   : > { %v339_v48 = vpop.f32.mrb[6].mxu0  ;;  %v494_v49 = vpop.f32.mrb[6].mxu1 }
 0x107   : > { %692 = vst.msk [vmem:[%s1454_s29 + $0x10] sm:$0xff] %vm689_vm1, %v630_v46  ;;  %723 = vst.msk [vmem:[%s1454_s29 + $0x108] sm:$0xff] %vm689_vm1, %v661_v47  ;;  %v340_v50 = vadd.f32 %v1445_v24, %v339_v48  ;;  %v937_v51 = vpop.f32.mrb[7].mxu0  ;;  %v495_v52 = vadd.f32 %v1445_v24, %v494_v49  ;;  %v1030_v53 = vpop.f32.mrb[7].mxu1 }
 0x109   : > { %v631_v54 = vmax.f32 %v340_v50, 0.0  ;;  %v662_v55 = vmax.f32 %v495_v52, 0.0 }
 0x10a   : > { %v344_v56 = vpop.f32.mrb[8].mxu0  ;;  %v499_v57 = vpop.f32.mrb[8].mxu1 }
 0x10b   : > { %693 = vst.msk [vmem:[%s1454_s29 + $0x18] sm:$0xff] %vm689_vm1, %v631_v54  ;;  %724 = vst.msk [vmem:[%s1454_s29 + $0x110] sm:$0xff] %vm689_vm1, %v662_v55  ;;  %v345_v58 = vadd.f32 %v1445_v24, %v344_v56  ;;  %v940_v59 = vpop.f32.mrb[9].mxu0  ;;  %v500_v60 = vadd.f32 %v1445_v24, %v499_v57  ;;  %v1033_v61 = vpop.f32.mrb[9].mxu1 }
 0x10d   : > { %v632_v62 = vmax.f32 %v345_v58, 0.0  ;;  %v663_v63 = vmax.f32 %v500_v60, 0.0 }
 0x10e   : > { %v349_v0 = vpop.f32.mrb[10].mxu0  ;;  %v504_v1 = vpop.f32.mrb[10].mxu1 }
 0x10f   : > { %694 = vst.msk [vmem:[%s1454_s29 + $0x20] sm:$0xff] %vm689_vm1, %v632_v62  ;;  %725 = vst.msk [vmem:[%s1454_s29 + $0x118] sm:$0xff] %vm689_vm1, %v663_v63  ;;  %v350_v2 = vadd.f32 %v1445_v24, %v349_v0  ;;  %v943_v3 = vpop.f32.mrb[11].mxu0  ;;  %v505_v4 = vadd.f32 %v1445_v24, %v504_v1  ;;  %v1036_v5 = vpop.f32.mrb[11].mxu1 }
 0x111   : > { %v633_v7 = vmax.f32 %v350_v2, 0.0  ;;  %v664_v8 = vmax.f32 %v505_v4, 0.0 }
 0x112   : > { %v354_v9 = vpop.f32.mrb[12].mxu0  ;;  %v509_v10 = vpop.f32.mrb[12].mxu1 }
 0x113   : > { %695 = vst.msk [vmem:[%s1454_s29 + $0x28] sm:$0xff] %vm689_vm1, %v633_v7  ;;  %726 = vst.msk [vmem:[%s1454_s29 + $0x120] sm:$0xff] %vm689_vm1, %v664_v8  ;;  %v355_v11 = vadd.f32 %v1445_v24, %v354_v9  ;;  %v946_v12 = vpop.f32.mrb[13].mxu0  ;;  %v510_v13 = vadd.f32 %v1445_v24, %v509_v10  ;;  %v1039_v14 = vpop.f32.mrb[13].mxu1 }
 0x115   : > { %v634_v15 = vmax.f32 %v355_v11, 0.0  ;;  %v665_v16 = vmax.f32 %v510_v13, 0.0 }
 0x116   : > { %v359_v17 = vpop.f32.mrb[14].mxu0  ;;  %v514_v18 = vpop.f32.mrb[14].mxu1 }
 0x117   : > { %696 = vst.msk [vmem:[%s1454_s29 + $0x30] sm:$0xff] %vm689_vm1, %v634_v15  ;;  %727 = vst.msk [vmem:[%s1454_s29 + $0x128] sm:$0xff] %vm689_vm1, %v665_v16  ;;  %v360_v19 = vadd.f32 %v1445_v24, %v359_v17  ;;  %v949_v20 = vpop.f32.mrb[15].mxu0  ;;  %v515_v21 = vadd.f32 %v1445_v24, %v514_v18  ;;  %v1042_v22 = vpop.f32.mrb[15].mxu1 }
 0x119   : > { %v635_v23 = vmax.f32 %v360_v19, 0.0  ;;  %v666_v25 = vmax.f32 %v515_v21, 0.0 }
 0x11a   : > { %v364_v26 = vpop.f32.mrb[16].mxu0  ;;  %v519_v27 = vpop.f32.mrb[16].mxu1 }
 0x11b   : > { %697 = vst.msk [vmem:[%s1454_s29 + $0x38] sm:$0xff] %vm689_vm1, %v635_v23  ;;  %728 = vst.msk [vmem:[%s1454_s29 + $0x130] sm:$0xff] %vm689_vm1, %v666_v25  ;;  %v365_v28 = vadd.f32 %v1445_v24, %v364_v26  ;;  %v952_v29 = vpop.f32.mrb[17].mxu0  ;;  %v520_v30 = vadd.f32 %v1445_v24, %v519_v27  ;;  %v1045_v6 = vpop.f32.mrb[17].mxu1 }
 0x11d   : > { %v636_v31 = vmax.f32 %v365_v28, 0.0  ;;  %v667_v32 = vmax.f32 %v520_v30, 0.0 }
 0x11e   : > { %v369_v33 = vpop.f32.mrb[18].mxu0  ;;  %v524_v34 = vpop.f32.mrb[18].mxu1 }
 0x11f   : > { %698 = vst.msk [vmem:[%s1454_s29 + $0x40] sm:$0xff] %vm689_vm1, %v636_v31  ;;  %729 = vst.msk [vmem:[%s1454_s29 + $0x138] sm:$0xff] %vm689_vm1, %v667_v32  ;;  %v370_v35 = vadd.f32 %v1445_v24, %v369_v33  ;;  %v955_v36 = vpop.f32.mrb[19].mxu0  ;;  %v525_v37 = vadd.f32 %v1445_v24, %v524_v34  ;;  %v1048_v38 = vpop.f32.mrb[19].mxu1 }
 0x121   : > { %v637_v39 = vmax.f32 %v370_v35, 0.0  ;;  %v668_v40 = vmax.f32 %v525_v37, 0.0 }
 0x122   : > { %v374_v41 = vpop.f32.mrb[20].mxu0  ;;  %v529_v42 = vpop.f32.mrb[20].mxu1 }
 0x123   : > { %699 = vst.msk [vmem:[%s1454_s29 + $0x48] sm:$0xff] %vm689_vm1, %v637_v39  ;;  %730 = vst.msk [vmem:[%s1454_s29 + $0x140] sm:$0xff] %vm689_vm1, %v668_v40  ;;  %v375_v43 = vadd.f32 %v1445_v24, %v374_v41  ;;  %v958_v44 = vpop.f32.mrb[21].mxu0  ;;  %v530_v45 = vadd.f32 %v1445_v24, %v529_v42  ;;  %v1051_v46 = vpop.f32.mrb[21].mxu1 }
 0x125   : > { %v638_v47 = vmax.f32 %v375_v43, 0.0  ;;  %v669_v48 = vmax.f32 %v530_v45, 0.0 }
 0x126   : > { %v379_v49 = vpop.f32.mrb[22].mxu0  ;;  %v534_v50 = vpop.f32.mrb[22].mxu1 }
 0x127   : > { %700 = vst.msk [vmem:[%s1454_s29 + $0x50] sm:$0xff] %vm689_vm1, %v638_v47  ;;  %731 = vst.msk [vmem:[%s1454_s29 + $0x148] sm:$0xff] %vm689_vm1, %v669_v48  ;;  %v380_v51 = vadd.f32 %v1445_v24, %v379_v49  ;;  %v961_v52 = vpop.f32.mrb[23].mxu0  ;;  %v535_v53 = vadd.f32 %v1445_v24, %v534_v50  ;;  %v1054_v54 = vpop.f32.mrb[23].mxu1 }
 0x129   : > { %v639_v55 = vmax.f32 %v380_v51, 0.0  ;;  %v670_v56 = vmax.f32 %v535_v53, 0.0 }
 0x12a   : > { %v384_v57 = vpop.f32.mrb[24].mxu0  ;;  %v539_v58 = vpop.f32.mrb[24].mxu1 }
 0x12b   : > { %701 = vst.msk [vmem:[%s1454_s29 + $0x58] sm:$0xff] %vm689_vm1, %v639_v55  ;;  %732 = vst.msk [vmem:[%s1454_s29 + $0x150] sm:$0xff] %vm689_vm1, %v670_v56  ;;  %v385_v59 = vadd.f32 %v1445_v24, %v384_v57  ;;  %v964_v60 = vpop.f32.mrb[25].mxu0  ;;  %v540_v61 = vadd.f32 %v1445_v24, %v539_v58  ;;  %v1057_v62 = vpop.f32.mrb[25].mxu1 }
 0x12d   : > { %v640_v63 = vmax.f32 %v385_v59, 0.0  ;;  %v671_v0 = vmax.f32 %v540_v61, 0.0 }
 0x12e   : > { %v389_v1 = vpop.f32.mrb[26].mxu0  ;;  %v544_v2 = vpop.f32.mrb[26].mxu1 }
 0x12f   : > { %702 = vst.msk [vmem:[%s1454_s29 + $0x60] sm:$0xff] %vm689_vm1, %v640_v63  ;;  %733 = vst.msk [vmem:[%s1454_s29 + $0x158] sm:$0xff] %vm689_vm1, %v671_v0  ;;  %v390_v3 = vadd.f32 %v1445_v24, %v389_v1  ;;  %v967_v4 = vpop.f32.mrb[27].mxu0  ;;  %v545_v5 = vadd.f32 %v1445_v24, %v544_v2  ;;  %v1060_v7 = vpop.f32.mrb[27].mxu1 }
 0x131   : > { %v641_v8 = vmax.f32 %v390_v3, 0.0  ;;  %v672_v9 = vmax.f32 %v545_v5, 0.0 }
 0x132   : > { %v394_v10 = vpop.f32.mrb[28].mxu0  ;;  %v549_v11 = vpop.f32.mrb[28].mxu1 }
 0x133   : > { %703 = vst.msk [vmem:[%s1454_s29 + $0x68] sm:$0xff] %vm689_vm1, %v641_v8  ;;  %734 = vst.msk [vmem:[%s1454_s29 + $0x160] sm:$0xff] %vm689_vm1, %v672_v9  ;;  %v395_v12 = vadd.f32 %v1445_v24, %v394_v10  ;;  %v970_v13 = vpop.f32.mrb[29].mxu0  ;;  %v550_v14 = vadd.f32 %v1445_v24, %v549_v11  ;;  %v1063_v15 = vpop.f32.mrb[29].mxu1 }
 0x135   : > { %v642_v16 = vmax.f32 %v395_v12, 0.0  ;;  %v673_v17 = vmax.f32 %v550_v14, 0.0 }
 0x136   : > { %v399_v18 = vpop.f32.mrb[30].mxu0  ;;  %v554_v19 = vpop.f32.mrb[30].mxu1 }
 0x137   : > { %704 = vst.msk [vmem:[%s1454_s29 + $0x70] sm:$0xff] %vm689_vm1, %v642_v16  ;;  %735 = vst.msk [vmem:[%s1454_s29 + $0x168] sm:$0xff] %vm689_vm1, %v673_v17  ;;  %v400_v20 = vadd.f32 %v1445_v24, %v399_v18  ;;  %v973_v21 = vpop.f32.mrb[31].mxu0  ;;  %v555_v22 = vadd.f32 %v1445_v24, %v554_v19  ;;  %v1066_v23 = vpop.f32.mrb[31].mxu1 }
 0x139   : > { %v643_v25 = vmax.f32 %v400_v20, 0.0  ;;  %v674_v26 = vmax.f32 %v555_v22, 0.0 }
 0x13a   : > { %v404_v27 = vpop.f32.mrb[32].mxu0  ;;  %v559_v28 = vpop.f32.mrb[32].mxu1 }
 0x13b   : > { %705 = vst.msk [vmem:[%s1454_s29 + $0x78] sm:$0xff] %vm689_vm1, %v643_v25  ;;  %736 = vst.msk [vmem:[%s1454_s29 + $0x170] sm:$0xff] %vm689_vm1, %v674_v26  ;;  %v405_v29 = vadd.f32 %v1445_v24, %v404_v27  ;;  %v976_v30 = vpop.f32.mrb[33].mxu0  ;;  %v560_v6 = vadd.f32 %v1445_v24, %v559_v28  ;;  %v1069_v31 = vpop.f32.mrb[33].mxu1 }
 0x13d   : > { %v644_v32 = vmax.f32 %v405_v29, 0.0  ;;  %v675_v33 = vmax.f32 %v560_v6, 0.0 }
 0x13e   : > { %v409_v34 = vpop.f32.mrb[34].mxu0  ;;  %v564_v35 = vpop.f32.mrb[34].mxu1 }
 0x13f   : > { %706 = vst.msk [vmem:[%s1454_s29 + $0x80] sm:$0xff] %vm689_vm1, %v644_v32  ;;  %737 = vst.msk [vmem:[%s1454_s29 + $0x178] sm:$0xff] %vm689_vm1, %v675_v33  ;;  %v410_v36 = vadd.f32 %v1445_v24, %v409_v34  ;;  %v979_v37 = vpop.f32.mrb[35].mxu0  ;;  %v565_v38 = vadd.f32 %v1445_v24, %v564_v35  ;;  %v1072_v39 = vpop.f32.mrb[35].mxu1 }
 0x141   : > { %v645_v40 = vmax.f32 %v410_v36, 0.0  ;;  %v676_v41 = vmax.f32 %v565_v38, 0.0 }
 0x142   : > { %v414_v42 = vpop.f32.mrb[36].mxu0  ;;  %v569_v43 = vpop.f32.mrb[36].mxu1 }
 0x143   : > { %707 = vst.msk [vmem:[%s1454_s29 + $0x88] sm:$0xff] %vm689_vm1, %v645_v40  ;;  %738 = vst.msk [vmem:[%s1454_s29 + $0x180] sm:$0xff] %vm689_vm1, %v676_v41  ;;  %v415_v44 = vadd.f32 %v1445_v24, %v414_v42  ;;  %v982_v45 = vpop.f32.mrb[37].mxu0  ;;  %v570_v46 = vadd.f32 %v1445_v24, %v569_v43  ;;  %v1075_v47 = vpop.f32.mrb[37].mxu1 }
 0x145   : > { %v646_v48 = vmax.f32 %v415_v44, 0.0  ;;  %v677_v49 = vmax.f32 %v570_v46, 0.0 }
 0x146   : > { %v419_v50 = vpop.f32.mrb[38].mxu0  ;;  %v574_v51 = vpop.f32.mrb[38].mxu1 }
 0x147   : > { %708 = vst.msk [vmem:[%s1454_s29 + $0x90] sm:$0xff] %vm689_vm1, %v646_v48  ;;  %739 = vst.msk [vmem:[%s1454_s29 + $0x188] sm:$0xff] %vm689_vm1, %v677_v49  ;;  %v420_v52 = vadd.f32 %v1445_v24, %v419_v50  ;;  %v985_v53 = vpop.f32.mrb[39].mxu0  ;;  %v575_v54 = vadd.f32 %v1445_v24, %v574_v51  ;;  %v1078_v55 = vpop.f32.mrb[39].mxu1 }
 0x149   : > { %v647_v56 = vmax.f32 %v420_v52, 0.0  ;;  %v678_v57 = vmax.f32 %v575_v54, 0.0 }
 0x14a   : > { %v424_v58 = vpop.f32.mrb[40].mxu0  ;;  %v579_v59 = vpop.f32.mrb[40].mxu1 }
 0x14b   : > { %709 = vst.msk [vmem:[%s1454_s29 + $0x98] sm:$0xff] %vm689_vm1, %v647_v56  ;;  %740 = vst.msk [vmem:[%s1454_s29 + $0x190] sm:$0xff] %vm689_vm1, %v678_v57  ;;  %v425_v60 = vadd.f32 %v1445_v24, %v424_v58  ;;  %v988_v61 = vpop.f32.mrb[41].mxu0  ;;  %v580_v62 = vadd.f32 %v1445_v24, %v579_v59  ;;  %v1081_v63 = vpop.f32.mrb[41].mxu1 }
 0x14d   : > { %v648_v0 = vmax.f32 %v425_v60, 0.0  ;;  %v679_v1 = vmax.f32 %v580_v62, 0.0 }
 0x14e   : > { %v429_v2 = vpop.f32.mrb[42].mxu0  ;;  %v584_v3 = vpop.f32.mrb[42].mxu1 }
 0x14f   : > { %710 = vst.msk [vmem:[%s1454_s29 + $0xa0] sm:$0xff] %vm689_vm1, %v648_v0  ;;  %741 = vst.msk [vmem:[%s1454_s29 + $0x198] sm:$0xff] %vm689_vm1, %v679_v1  ;;  %v430_v4 = vadd.f32 %v1445_v24, %v429_v2  ;;  %v991_v5 = vpop.f32.mrb[43].mxu0  ;;  %v585_v7 = vadd.f32 %v1445_v24, %v584_v3  ;;  %v1084_v8 = vpop.f32.mrb[43].mxu1 }
 0x151   : > { %v649_v9 = vmax.f32 %v430_v4, 0.0  ;;  %v680_v10 = vmax.f32 %v585_v7, 0.0 }
 0x152   : > { %v434_v11 = vpop.f32.mrb[44].mxu0  ;;  %v589_v12 = vpop.f32.mrb[44].mxu1 }
 0x153   : > { %711 = vst.msk [vmem:[%s1454_s29 + $0xa8] sm:$0xff] %vm689_vm1, %v649_v9  ;;  %742 = vst.msk [vmem:[%s1454_s29 + $0x1a0] sm:$0xff] %vm689_vm1, %v680_v10  ;;  %v435_v13 = vadd.f32 %v1445_v24, %v434_v11  ;;  %v994_v14 = vpop.f32.mrb[45].mxu0  ;;  %v590_v15 = vadd.f32 %v1445_v24, %v589_v12  ;;  %v1087_v16 = vpop.f32.mrb[45].mxu1 }
 0x155   : > { %v650_v17 = vmax.f32 %v435_v13, 0.0  ;;  %v681_v18 = vmax.f32 %v590_v15, 0.0 }
 0x156   : > { %v439_v19 = vpop.f32.mrb[46].mxu0  ;;  %v594_v20 = vpop.f32.mrb[46].mxu1 }
 0x157   : > { %712 = vst.msk [vmem:[%s1454_s29 + $0xb0] sm:$0xff] %vm689_vm1, %v650_v17  ;;  %743 = vst.msk [vmem:[%s1454_s29 + $0x1a8] sm:$0xff] %vm689_vm1, %v681_v18  ;;  %v440_v21 = vadd.f32 %v1445_v24, %v439_v19  ;;  %v997_v22 = vpop.f32.mrb[47].mxu0  ;;  %v595_v23 = vadd.f32 %v1445_v24, %v594_v20  ;;  %v1090_v25 = vpop.f32.mrb[47].mxu1 }
 0x159   : > { %v651_v26 = vmax.f32 %v440_v21, 0.0  ;;  %v682_v27 = vmax.f32 %v595_v23, 0.0 }
 0x15a   : > { %v444_v28 = vpop.f32.mrb[48].mxu0  ;;  %v599_v29 = vpop.f32.mrb[48].mxu1 }
 0x15b   : > { %713 = vst.msk [vmem:[%s1454_s29 + $0xb8] sm:$0xff] %vm689_vm1, %v651_v26  ;;  %744 = vst.msk [vmem:[%s1454_s29 + $0x1b0] sm:$0xff] %vm689_vm1, %v682_v27  ;;  %v445_v30 = vadd.f32 %v1445_v24, %v444_v28  ;;  %v1000_v6 = vpop.f32.mrb[49].mxu0  ;;  %v600_v31 = vadd.f32 %v1445_v24, %v599_v29  ;;  %v1093_v32 = vpop.f32.mrb[49].mxu1 }
 0x15d   : > { %v652_v33 = vmax.f32 %v445_v30, 0.0  ;;  %v683_v34 = vmax.f32 %v600_v31, 0.0 }
 0x15e   : > { %v449_v35 = vpop.f32.mrb[50].mxu0  ;;  %v604_v36 = vpop.f32.mrb[50].mxu1 }
 0x15f   : > { %714 = vst.msk [vmem:[%s1454_s29 + $0xc0] sm:$0xff] %vm689_vm1, %v652_v33  ;;  %745 = vst.msk [vmem:[%s1454_s29 + $0x1b8] sm:$0xff] %vm689_vm1, %v683_v34  ;;  %v450_v37 = vadd.f32 %v1445_v24, %v449_v35  ;;  %v1003_v38 = vpop.f32.mrb[51].mxu0  ;;  %v605_v39 = vadd.f32 %v1445_v24, %v604_v36  ;;  %v1096_v40 = vpop.f32.mrb[51].mxu1 }
 0x161   : > { %v653_v41 = vmax.f32 %v450_v37, 0.0  ;;  %v684_v42 = vmax.f32 %v605_v39, 0.0 }
 0x162   : > { %v454_v43 = vpop.f32.mrb[52].mxu0  ;;  %v609_v44 = vpop.f32.mrb[52].mxu1 }
 0x163   : > { %715 = vst.msk [vmem:[%s1454_s29 + $0xc8] sm:$0xff] %vm689_vm1, %v653_v41  ;;  %746 = vst.msk [vmem:[%s1454_s29 + $0x1c0] sm:$0xff] %vm689_vm1, %v684_v42  ;;  %v455_v45 = vadd.f32 %v1445_v24, %v454_v43  ;;  %v1006_v46 = vpop.f32.mrb[53].mxu0  ;;  %v610_v47 = vadd.f32 %v1445_v24, %v609_v44  ;;  %v1099_v48 = vpop.f32.mrb[53].mxu1 }
 0x165   : > { %v654_v49 = vmax.f32 %v455_v45, 0.0  ;;  %v685_v50 = vmax.f32 %v610_v47, 0.0 }
 0x166   : > { %v459_v51 = vpop.f32.mrb[54].mxu0  ;;  %v614_v52 = vpop.f32.mrb[54].mxu1 }
 0x167   : > { %716 = vst.msk [vmem:[%s1454_s29 + $0xd0] sm:$0xff] %vm689_vm1, %v654_v49  ;;  %747 = vst.msk [vmem:[%s1454_s29 + $0x1c8] sm:$0xff] %vm689_vm1, %v685_v50  ;;  %v460_v53 = vadd.f32 %v1445_v24, %v459_v51  ;;  %v1009_v54 = vpop.f32.mrb[55].mxu0  ;;  %v615_v55 = vadd.f32 %v1445_v24, %v614_v52  ;;  %v1102_v56 = vpop.f32.mrb[55].mxu1 }
 0x169   : > { %v655_v57 = vmax.f32 %v460_v53, 0.0  ;;  %v686_v58 = vmax.f32 %v615_v55, 0.0 }
 0x16a   : > { %v464_v59 = vpop.f32.mrb[56].mxu0  ;;  %v619_v60 = vpop.f32.mrb[56].mxu1 }
 0x16b   : > { %717 = vst.msk [vmem:[%s1454_s29 + $0xd8] sm:$0xff] %vm689_vm1, %v655_v57  ;;  %748 = vst.msk [vmem:[%s1454_s29 + $0x1d0] sm:$0xff] %vm689_vm1, %v686_v58  ;;  %v465_v61 = vadd.f32 %v1445_v24, %v464_v59  ;;  %v1012_v62 = vpop.f32.mrb[57].mxu0  ;;  %v620_v63 = vadd.f32 %v1445_v24, %v619_v60  ;;  %v1105_v0 = vpop.f32.mrb[57].mxu1 }
 0x16d   : > { %v656_v1 = vmax.f32 %v465_v61, 0.0  ;;  %v687_v2 = vmax.f32 %v620_v63, 0.0 }
 0x16e   : > { %v469_v3 = vpop.f32.mrb[58].mxu0  ;;  %v624_v4 = vpop.f32.mrb[58].mxu1 }
 0x16f   : > { %718 = vst.msk [vmem:[%s1454_s29 + $0xe0] sm:$0xff] %vm689_vm1, %v656_v1  ;;  %749 = vst.msk [vmem:[%s1454_s29 + $0x1d8] sm:$0xff] %vm689_vm1, %v687_v2  ;;  %v470_v5 = vadd.f32 %v1445_v24, %v469_v3  ;;  %v1015_v7 = vpop.f32.mrb[59].mxu0  ;;  %v625_v8 = vadd.f32 %v1445_v24, %v624_v4  ;;  %v1108_v9 = vpop.f32.mrb[59].mxu1 }
 0x171   : > { %v657_v10 = vmax.f32 %v470_v5, 0.0  ;;  %v688_v11 = vmax.f32 %v625_v8, 0.0 }
 0x172   : > { %v474_v12 = vpop.f32.mrb[60].mxu0 }
 0x173   : > { %719 = vst.msk [vmem:[%s1454_s29 + $0xe8] sm:$0xff] %vm689_vm1, %v657_v10  ;;  %750 = vst.msk [vmem:[%s1454_s29 + $0x1e0] sm:$0xff] %vm689_vm1, %v688_v11  ;;  %v475_v13 = vadd.f32 %v1445_v24, %v474_v12  ;;  %v1018_v14 = vpop.f32.mrb[61].mxu0 }
 0x175   : > { %v658_v15 = vmax.f32 %v475_v13, 0.0 }
 0x177   : > { %720 = vst.msk [vmem:[%s1454_s29 + $0xf0] sm:$0xff] %vm689_vm1, %v658_v15 }
 0x178 PF: > { %s13_s12 = sadd.s32 1, %s1166_s12  }
 0x179   : > { %p10_p4 = scmp.ge.s32.totalorder %s13_s12, 4  }
 0x17b   :  { %12 = sbr.rel (!%p10_p4) target bundleno = 1 (0x1), region = 62 }

// kernel: critic_forward.5
= control target key start
LH: loop header
LB: loop body
LE: loop exit
PB: predicated region body
PF: predicated region fallthrough
CT: control target
= control target key end

     0   :  { %vm6024_vm0 = vcmask 523264   ;;  %vm7479_vm1 = vcmask 39936   ;;  %s13512_s1 = inlined_call_operand.vmem [shape: bf16[7744,256], index: 1, kind: input, shape index: {}]   ;;  %s13513_s0 = inlined_call_operand.vmem [shape: f32[16,7744], index: 0, kind: input, shape index: {}]   ;;  %s13514_s3 = inlined_call_operand.vmem [shape: f32[256,5], index: 3, kind: input, shape index: {}]   ;;  %s13515_s2 = inlined_call_operand.vmem [shape: f32[1,256], index: 2, kind: input, shape index: {}]   ;;  %s13516_s4 = inlined_call_operand.vmem [shape: f32[1,5], index: 4, kind: input, shape index: {}]   ;;  %s13517_s5 = inlined_call_operand.vmem [shape: f32[16,5], index: 5, kind: output, shape index: {}]  }
   0x1   :  { %v8651_v0 = vld [vmem:[%s13512_s1 + $0x4] ss:$8 sps:$4 sm:$0xff]   ;;  %v8655_v2 = vld [vmem:[%s13512_s1] ss:$8 sps:$4 sm:$0xff]   ;;  %v8657_v4 = vld [vmem:[%s13512_s1 + $0x14] ss:$8 sps:$4 sm:$0xff]  }
   0x2   :  { %v8653_v1 = vld [vmem:[%s13512_s1 + $0xf04] ss:$8 sps:$4 sm:$0xff]   ;;  %6028 = vmatprep.subr.bf16.mxu1 %v8651_v0  ;;  %v8656_v3 = vld [vmem:[%s13512_s1 + $0xf00] ss:$8 sps:$4 sm:$0xff]   ;;  %v8659_v5 = vld [vmem:[%s13512_s1 + $0xf14] ss:$8 sps:$4 sm:$0xff]  }
   0x3   :  { %6673 = vmatprep.subr.bf16.mxu0 %v8653_v1  ;;  %6029 = vmatpush1.bf16.msra.mxu1 %v8655_v2  ;;  %v8661_v6 = vld [vmem:[%s13512_s1 + $0x10] ss:$8 sps:$4 sm:$0xff]   ;;  %v8663_v8 = vld [vmem:[%s13512_s1 + $0x24] ss:$8 sps:$4 sm:$0xff]   ;;  %v8667_v10 = vld [vmem:[%s13512_s1 + $0x20] ss:$8 sps:$4 sm:$0xff]  }
   0x4   :  { %6674 = vmatpush1.bf16.msra.mxu0 %v8656_v3  ;;  %6030 = vmatprep.subr.bf16.mxu1 %v8657_v4  ;;  %v8662_v7 = vld [vmem:[%s13512_s1 + $0xf10] ss:$8 sps:$4 sm:$0xff]   ;;  %v8665_v9 = vld [vmem:[%s13512_s1 + $0xf24] ss:$8 sps:$4 sm:$0xff]   ;;  %v8668_v11 = vld [vmem:[%s13512_s1 + $0xf20] ss:$8 sps:$4 sm:$0xff]  }
   0x5   :  { %6675 = vmatprep.subr.bf16.mxu0 %v8659_v5  ;;  %v8669_v12 = vld [vmem:[%s13512_s1 + $0x34] ss:$8 sps:$4 sm:$0xff]   ;;  %v8673_v14 = vld [vmem:[%s13512_s1 + $0x30] ss:$8 sps:$4 sm:$0xff]   ;;  %v8675_v16 = vld [vmem:[%s13512_s1 + $0x44] ss:$8 sps:$4 sm:$0xff]  }
   0x6   :  { %v8671_v13 = vld [vmem:[%s13512_s1 + $0xf34] ss:$8 sps:$4 sm:$0xff]   ;;  %v8674_v15 = vld [vmem:[%s13512_s1 + $0xf30] ss:$8 sps:$4 sm:$0xff]   ;;  %v8677_v17 = vld [vmem:[%s13512_s1 + $0xf44] ss:$8 sps:$4 sm:$0xff]  }
   0x7   :  { %6031 = vmatpush1.bf16.msra.mxu1 %v8661_v6  ;;  %v8679_v18 = vld [vmem:[%s13512_s1 + $0x40] ss:$8 sps:$4 sm:$0xff]   ;;  %v8681_v20 = vld [vmem:[%s13512_s1 + $0x54] ss:$8 sps:$4 sm:$0xff]   ;;  %v8685_v22 = vld [vmem:[%s13512_s1 + $0x50] ss:$8 sps:$4 sm:$0xff]  }
   0x8   :  { %6676 = vmatpush1.bf16.msra.mxu0 %v8662_v7  ;;  %6032 = vmatprep.subr.bf16.mxu1 %v8663_v8  ;;  %v8680_v19 = vld [vmem:[%s13512_s1 + $0xf40] ss:$8 sps:$4 sm:$0xff]   ;;  %v8683_v21 = vld [vmem:[%s13512_s1 + $0xf54] ss:$8 sps:$4 sm:$0xff]   ;;  %v8686_v23 = vld [vmem:[%s13512_s1 + $0xf50] ss:$8 sps:$4 sm:$0xff]  }
   0x9   :  { %6677 = vmatprep.subr.bf16.mxu0 %v8665_v9  ;;  %v8687_v24 = vld [vmem:[%s13512_s1 + $0x64] ss:$8 sps:$4 sm:$0xff]   ;;  %v8691_v26 = vld [vmem:[%s13512_s1 + $0x60] ss:$8 sps:$4 sm:$0xff]   ;;  %v8693_v28 = vld [vmem:[%s13512_s1 + $0x74] ss:$8 sps:$4 sm:$0xff]  }
   0xa   :  { %v8689_v25 = vld [vmem:[%s13512_s1 + $0xf64] ss:$8 sps:$4 sm:$0xff]   ;;  %v8692_v27 = vld [vmem:[%s13512_s1 + $0xf60] ss:$8 sps:$4 sm:$0xff]   ;;  %v8695_v29 = vld [vmem:[%s13512_s1 + $0xf74] ss:$8 sps:$4 sm:$0xff]  }
   0xb   :  { %6033 = vmatpush1.bf16.msra.mxu1 %v8667_v10  ;;  %v8697_v30 = vld [vmem:[%s13512_s1 + $0x70] ss:$8 sps:$4 sm:$0xff]   ;;  %v8699_v32 = vld [vmem:[%s13512_s1 + $0x84] ss:$8 sps:$4 sm:$0xff]   ;;  %v8703_v34 = vld [vmem:[%s13512_s1 + $0x80] ss:$8 sps:$4 sm:$0xff]  }
   0xc   :  { %6678 = vmatpush1.bf16.msra.mxu0 %v8668_v11  ;;  %6034 = vmatprep.subr.bf16.mxu1 %v8669_v12  ;;  %v8698_v31 = vld [vmem:[%s13512_s1 + $0xf70] ss:$8 sps:$4 sm:$0xff]   ;;  %v8701_v33 = vld [vmem:[%s13512_s1 + $0xf84] ss:$8 sps:$4 sm:$0xff]   ;;  %v8704_v35 = vld [vmem:[%s13512_s1 + $0xf80] ss:$8 sps:$4 sm:$0xff]  }
   0xd   :  { %6679 = vmatprep.subr.bf16.mxu0 %v8671_v13  ;;  %v8705_v36 = vld [vmem:[%s13512_s1 + $0x94] ss:$8 sps:$4 sm:$0xff]   ;;  %v8709_v38 = vld [vmem:[%s13512_s1 + $0x90] ss:$8 sps:$4 sm:$0xff]   ;;  %v8711_v40 = vld [vmem:[%s13512_s1 + $0xa4] ss:$8 sps:$4 sm:$0xff]  }
   0xe   :  { %v8707_v37 = vld [vmem:[%s13512_s1 + $0xf94] ss:$8 sps:$4 sm:$0xff]   ;;  %v8710_v39 = vld [vmem:[%s13512_s1 + $0xf90] ss:$8 sps:$4 sm:$0xff]   ;;  %v8713_v41 = vld [vmem:[%s13512_s1 + $0xfa4] ss:$8 sps:$4 sm:$0xff]  }
   0xf   :  { %6035 = vmatpush1.bf16.msra.mxu1 %v8673_v14  ;;  %v8715_v42 = vld [vmem:[%s13512_s1 + $0xa0] ss:$8 sps:$4 sm:$0xff]   ;;  %v8717_v44 = vld [vmem:[%s13512_s1 + $0xb4] ss:$8 sps:$4 sm:$0xff]   ;;  %v8721_v46 = vld [vmem:[%s13512_s1 + $0xb0] ss:$8 sps:$4 sm:$0xff]  }
  0x10   :  { %6680 = vmatpush1.bf16.msra.mxu0 %v8674_v15  ;;  %6036 = vmatprep.subr.bf16.mxu1 %v8675_v16  ;;  %v8716_v43 = vld [vmem:[%s13512_s1 + $0xfa0] ss:$8 sps:$4 sm:$0xff]   ;;  %v8719_v45 = vld [vmem:[%s13512_s1 + $0xfb4] ss:$8 sps:$4 sm:$0xff]   ;;  %v8722_v47 = vld [vmem:[%s13512_s1 + $0xfb0] ss:$8 sps:$4 sm:$0xff]  }
  0x11   :  { %6681 = vmatprep.subr.bf16.mxu0 %v8677_v17  ;;  %v22_v48 = vld [vmem:[%s13513_s0 + $0x8] sm:$0xff]  ;;  %v83_v49 = vld [vmem:[%s13513_s0 + $0x1f0] sm:$0xff]  ;;  %v52_v53 = vld [vmem:[%s13513_s0 + $0xf8] sm:$0xff] }
  0x12   :  { %v8723_v50 = vld [vmem:[%s13512_s1 + $0xc4] ss:$8 sps:$4 sm:$0xff]   ;;  %v144_v52 = vpack.c.bf16 %v83_v49, %v22_v48  ;;  %v8727_v56 = vld [vmem:[%s13512_s1 + $0xc0] ss:$8 sps:$4 sm:$0xff]   ;;  %v8729_v58 = vld [vmem:[%s13512_s1 + $0xd4] ss:$8 sps:$4 sm:$0xff]  }
  0x13   :  { %6037 = vmatpush1.bf16.msra.mxu1 %v8679_v18  ;;  %v8725_v51 = vld [vmem:[%s13512_s1 + $0xfc4] ss:$8 sps:$4 sm:$0xff]   ;;  %v8728_v57 = vld [vmem:[%s13512_s1 + $0xfc0] ss:$8 sps:$4 sm:$0xff]   ;;  %v8731_v59 = vld [vmem:[%s13512_s1 + $0xfd4] ss:$8 sps:$4 sm:$0xff]  }
  0x14   :  { %6682 = vmatpush1.bf16.msra.mxu0 %v8680_v19  ;;  %6038 = vmatprep.subr.bf16.mxu1 %v8681_v20  ;;  %v113_v54 = vld [vmem:[%s13513_s0 + $0x2e0] sm:$0xff]  ;;  %v8733_v60 = vld [vmem:[%s13512_s1 + $0xd0] ss:$8 sps:$4 sm:$0xff]   ;;  %v8741_v2 = vld [vmem:[%s13512_s1 + $0xf4] ss:$8 sps:$4 sm:$0xff]  }
  0x15   :  { %6683 = vmatprep.subr.bf16.mxu0 %v8683_v21  ;;  %6060 = vmatprep.mubr.bf16.mxu1 %v144_v52  ;;  %v174_v55 = vpack.c.bf16 %v113_v54, %v52_v53  ;;  %v8734_v61 = vld [vmem:[%s13512_s1 + $0xfd0] ss:$8 sps:$4 sm:$0xff]   ;;  %v8735_v62 = vld [vmem:[%s13512_s1 + $0xe4] ss:$8 sps:$4 sm:$0xff]   ;;  %v8739_v0 = vld [vmem:[%s13512_s1 + $0xe0] ss:$8 sps:$4 sm:$0xff]  }
  0x16   :  { %v8737_v63 = vld [vmem:[%s13512_s1 + $0xfe4] ss:$8 sps:$4 sm:$0xff]   ;;  %v8740_v1 = vld [vmem:[%s13512_s1 + $0xfe0] ss:$8 sps:$4 sm:$0xff]   ;;  %v8743_v3 = vld [vmem:[%s13512_s1 + $0xff4] ss:$8 sps:$4 sm:$0xff]  }
  0x17   :  { %6039 = vmatpush1.bf16.msra.mxu1 %v8685_v22  ;;  %6705 = vmatprep.mubr.bf16.mxu0 %v174_v55  ;;  %v8745_v4 = vld [vmem:[%s13512_s1 + $0xf0] ss:$8 sps:$4 sm:$0xff]   ;;  %v21_v6 = vld [vmem:[%s13513_s0] sm:$0xff]  ;;  %v82_v8 = vld [vmem:[%s13513_s0 + $0x1e8] sm:$0xff] }
  0x18   :  { %6684 = vmatpush1.bf16.msra.mxu0 %v8686_v23  ;;  %6040 = vmatprep.subr.bf16.mxu1 %v8687_v24  ;;  %v8746_v5 = vld [vmem:[%s13512_s1 + $0xff0] ss:$8 sps:$4 sm:$0xff]   ;;  %v8749_v7 = vld [vmem:[%s13512_s1 + $0x104] ss:$8 sps:$4 sm:$0xff]   ;;  %v8747_v12 = vld [vmem:[%s13512_s1 + $0x100] ss:$8 sps:$4 sm:$0xff]   ;;  %v143_v14 = vpack.c.bf16 %v82_v8, %v21_v6 }
  0x19   :  { %6685 = vmatprep.subr.bf16.mxu0 %v8689_v25  ;;  %v51_v9 = vld [vmem:[%s13513_s0 + $0xf0] sm:$0xff]  ;;  %v112_v10 = vld [vmem:[%s13513_s0 + $0x2d8] sm:$0xff]  ;;  %v8752_v11 = vld [vmem:[%s13512_s1 + $0x1004] ss:$8 sps:$4 sm:$0xff]  }
  0x1a   :  { %v8750_v13 = vld [vmem:[%s13512_s1 + $0x1000] ss:$8 sps:$4 sm:$0xff]   ;;  %v173_v15 = vpack.c.bf16 %v112_v10, %v51_v9  ;;  %v8755_v16 = vld [vmem:[%s13512_s1 + $0x114] ss:$8 sps:$4 sm:$0xff]   ;;  %v8753_v18 = vld [vmem:[%s13512_s1 + $0x110] ss:$8 sps:$4 sm:$0xff]  }
  0x1b   :  { %6041 = vmatpush1.bf16.msra.mxu1 %v8691_v26  ;;  %v8758_v17 = vld [vmem:[%s13512_s1 + $0x1014] ss:$8 sps:$4 sm:$0xff]   ;;  %v8756_v19 = vld [vmem:[%s13512_s1 + $0x1010] ss:$8 sps:$4 sm:$0xff]   ;;  %v8761_v20 = vld [vmem:[%s13512_s1 + $0x124] ss:$8 sps:$4 sm:$0xff]  }
  0x1c   :  { %6686 = vmatpush1.bf16.msra.mxu0 %v8692_v27  ;;  %6042 = vmatprep.subr.bf16.mxu1 %v8693_v28  ;;  %v8764_v21 = vld [vmem:[%s13512_s1 + $0x1024] ss:$8 sps:$4 sm:$0xff]   ;;  %v8759_v22 = vld [vmem:[%s13512_s1 + $0x120] ss:$8 sps:$4 sm:$0xff]   ;;  %v8767_v24 = vld [vmem:[%s13512_s1 + $0x134] ss:$8 sps:$4 sm:$0xff]  }
  0x1d   :  { %6687 = vmatprep.subr.bf16.mxu0 %v8695_v29  ;;  %v8762_v23 = vld [vmem:[%s13512_s1 + $0x1020] ss:$8 sps:$4 sm:$0xff]   ;;  %v8770_v25 = vld [vmem:[%s13512_s1 + $0x1034] ss:$8 sps:$4 sm:$0xff]   ;;  %v8765_v26 = vld [vmem:[%s13512_s1 + $0x130] ss:$8 sps:$4 sm:$0xff]  }
  0x1e   :  { %v8768_v27 = vld [vmem:[%s13512_s1 + $0x1030] ss:$8 sps:$4 sm:$0xff]   ;;  %v8773_v28 = vld [vmem:[%s13512_s1 + $0x144] ss:$8 sps:$4 sm:$0xff]   ;;  %v8795_v52 = vld [vmem:[%s13512_s1 + $0x180] ss:$8 sps:$4 sm:$0xff]  }
  0x1f   :  { %6043 = vmatpush1.bf16.msra.mxu1 %v8697_v30  ;;  %v8776_v29 = vld [vmem:[%s13512_s1 + $0x1044] ss:$8 sps:$4 sm:$0xff]   ;;  %v8771_v30 = vld [vmem:[%s13512_s1 + $0x140] ss:$8 sps:$4 sm:$0xff]   ;;  %v8789_v48 = vld [vmem:[%s13512_s1 + $0x170] ss:$8 sps:$4 sm:$0xff]  }
  0x20   :  { %6688 = vmatpush1.bf16.msra.mxu0 %v8698_v31  ;;  %6044 = vmatprep.subr.bf16.mxu1 %v8699_v32  ;;  %v8774_v31 = vld [vmem:[%s13512_s1 + $0x1040] ss:$8 sps:$4 sm:$0xff]   ;;  %v8779_v32 = vld [vmem:[%s13512_s1 + $0x154] ss:$8 sps:$4 sm:$0xff]   ;;  %v8792_v49 = vld [vmem:[%s13512_s1 + $0x1070] ss:$8 sps:$4 sm:$0xff]  }
  0x21   :  { %6689 = vmatprep.subr.bf16.mxu0 %v8701_v33  ;;  %v8782_v33 = vld [vmem:[%s13512_s1 + $0x1054] ss:$8 sps:$4 sm:$0xff]   ;;  %v8798_v53 = vld [vmem:[%s13512_s1 + $0x1080] ss:$8 sps:$4 sm:$0xff]   ;;  %v8825_v8 = vld [vmem:[%s13512_s1 + $0x1d0] ss:$8 sps:$4 sm:$0xff]  }
  0x22   :  { %v8803_v54 = vld [vmem:[%s13512_s1 + $0x194] ss:$8 sps:$4 sm:$0xff]   ;;  %v8828_v9 = vld [vmem:[%s13512_s1 + $0x10d0] ss:$8 sps:$4 sm:$0xff]   ;;  %v8833_v10 = vld [vmem:[%s13512_s1 + $0x1e4] ss:$8 sps:$4 sm:$0xff]  }
  0x23   :  { %6045 = vmatpush1.bf16.msra.mxu1 %v8703_v34  ;;  %v8777_v34 = vld [vmem:[%s13512_s1 + $0x150] ss:$8 sps:$4 sm:$0xff]   ;;  %v8806_v55 = vld [vmem:[%s13512_s1 + $0x1094] ss:$8 sps:$4 sm:$0xff]  }
  0x24   :  { %6690 = vmatpush1.bf16.msra.mxu0 %v8704_v35  ;;  %6046 = vmatprep.subr.bf16.mxu1 %v8705_v36  ;;  %v8780_v35 = vld [vmem:[%s13512_s1 + $0x1050] ss:$8 sps:$4 sm:$0xff]   ;;  %v8785_v36 = vld [vmem:[%s13512_s1 + $0x164] ss:$8 sps:$4 sm:$0xff]   ;;  %v8827_v6 = vld [vmem:[%s13512_s1 + $0x1d4] ss:$8 sps:$4 sm:$0xff]  }
  0x25   :  { %6691 = vmatprep.subr.bf16.mxu0 %v8707_v37  ;;  %v8788_v37 = vld [vmem:[%s13512_s1 + $0x1064] ss:$8 sps:$4 sm:$0xff]  }
  0x27   :  { %6047 = vmatpush1.bf16.msra.mxu1 %v8709_v38  ;;  %v8783_v38 = vld [vmem:[%s13512_s1 + $0x160] ss:$8 sps:$4 sm:$0xff]  }
  0x28   :  { %6692 = vmatpush1.bf16.msra.mxu0 %v8710_v39  ;;  %6048 = vmatprep.subr.bf16.mxu1 %v8711_v40  ;;  %v8786_v39 = vld [vmem:[%s13512_s1 + $0x1060] ss:$8 sps:$4 sm:$0xff]   ;;  %v24_v40 = vld [vmem:[%s13513_s0 + $0x18] sm:$0xff] }
  0x29   :  { %6693 = vmatprep.subr.bf16.mxu0 %v8713_v41  ;;  %v85_v41 = vld [vmem:[%s13513_s0 + $0x200] sm:$0xff] }
  0x2b   :  { %6049 = vmatpush1.bf16.msra.mxu1 %v8715_v42  ;;  %v8791_v42 = vld [vmem:[%s13512_s1 + $0x174] ss:$8 sps:$4 sm:$0xff]  }
  0x2c   :  { %6694 = vmatpush1.bf16.msra.mxu0 %v8716_v43  ;;  %6050 = vmatprep.subr.bf16.mxu1 %v8717_v44  ;;  %v8794_v43 = vld [vmem:[%s13512_s1 + $0x1074] ss:$8 sps:$4 sm:$0xff]   ;;  %v146_v44 = vpack.c.bf16 %v85_v41, %v24_v40  ;;  %v8858_v40 = vld [vmem:[%s13512_s1 + $0x1120] ss:$8 sps:$4 sm:$0xff]  }
  0x2d   :  { %6695 = vmatprep.subr.bf16.mxu0 %v8719_v45  ;;  %v54_v45 = vld [vmem:[%s13513_s0 + $0x108] sm:$0xff] }
  0x2f   :  { %6051 = vmatpush1.bf16.msra.mxu1 %v8721_v46  ;;  %v115_v46 = vld [vmem:[%s13513_s0 + $0x2f0] sm:$0xff] }
  0x30   :  { %6696 = vmatpush1.bf16.msra.mxu0 %v8722_v47  ;;  %6052 = vmatprep.subr.bf16.mxu1 %v8723_v50  ;;  %v176_v47 = vpack.c.bf16 %v115_v46, %v54_v45  ;;  %v8797_v50 = vld [vmem:[%s13512_s1 + $0x184] ss:$8 sps:$4 sm:$0xff]   ;;  %v8864_v45 = vld [vmem:[%s13512_s1 + $0x1130] ss:$8 sps:$4 sm:$0xff]  }
  0x31   :  { %6697 = vmatprep.subr.bf16.mxu0 %v8725_v51  ;;  %v8800_v51 = vld [vmem:[%s13512_s1 + $0x1084] ss:$8 sps:$4 sm:$0xff]  }
  0x32   :  { %v8869_v46 = vld [vmem:[%s13512_s1 + $0x244] ss:$8 sps:$4 sm:$0xff]  }
  0x33   :  { %6053 = vmatpush1.bf16.msra.mxu1 %v8727_v56  ;;  %v8801_v56 = vld [vmem:[%s13512_s1 + $0x190] ss:$8 sps:$4 sm:$0xff]  }
  0x34   :  { %6698 = vmatpush1.bf16.msra.mxu0 %v8728_v57  ;;  %6054 = vmatprep.subr.bf16.mxu1 %v8729_v58  ;;  %v8804_v57 = vld [vmem:[%s13512_s1 + $0x1090] ss:$8 sps:$4 sm:$0xff]   ;;  %v8809_v58 = vld [vmem:[%s13512_s1 + $0x1a4] ss:$8 sps:$4 sm:$0xff]  }
  0x35   :  { %6699 = vmatprep.subr.bf16.mxu0 %v8731_v59  ;;  %v8812_v59 = vld [vmem:[%s13512_s1 + $0x10a4] ss:$8 sps:$4 sm:$0xff]  }
  0x37   :  { %6055 = vmatpush1.bf16.msra.mxu1 %v8733_v60  ;;  %v8807_v60 = vld [vmem:[%s13512_s1 + $0x1a0] ss:$8 sps:$4 sm:$0xff]  }
  0x38   :  { %6700 = vmatpush1.bf16.msra.mxu0 %v8734_v61  ;;  %6056 = vmatprep.subr.bf16.mxu1 %v8735_v62  ;;  %v8810_v61 = vld [vmem:[%s13512_s1 + $0x10a0] ss:$8 sps:$4 sm:$0xff]   ;;  %v8815_v62 = vld [vmem:[%s13512_s1 + $0x1b4] ss:$8 sps:$4 sm:$0xff]  }
  0x39   :  { %6701 = vmatprep.subr.bf16.mxu0 %v8737_v63  ;;  %v8818_v63 = vld [vmem:[%s13512_s1 + $0x10b4] ss:$8 sps:$4 sm:$0xff]  }
  0x3b   :  { %6057 = vmatpush1.bf16.msra.mxu1 %v8739_v0  ;;  %v8813_v0 = vld [vmem:[%s13512_s1 + $0x1b0] ss:$8 sps:$4 sm:$0xff]  }
  0x3c   :  { %6702 = vmatpush1.bf16.msra.mxu0 %v8740_v1  ;;  %6058 = vmatprep.subr.bf16.mxu1 %v8741_v2  ;;  %v8816_v1 = vld [vmem:[%s13512_s1 + $0x10b0] ss:$8 sps:$4 sm:$0xff]   ;;  %v8821_v2 = vld [vmem:[%s13512_s1 + $0x1c4] ss:$8 sps:$4 sm:$0xff]  }
  0x3d   :  { %6703 = vmatprep.subr.bf16.mxu0 %v8743_v3  ;;  %v8824_v3 = vld [vmem:[%s13512_s1 + $0x10c4] ss:$8 sps:$4 sm:$0xff]  }
  0x3f   :  { %6059 = vmatpush1.bf16.msra.mxu1 %v8745_v4  ;;  %v8819_v4 = vld [vmem:[%s13512_s1 + $0x1c0] ss:$8 sps:$4 sm:$0xff]  }
  0x40   :  { %6704 = vmatpush1.bf16.msra.mxu0 %v8746_v5  ;;  %6071 = vmatprep.subr.bf16.mxu1 %v8749_v7  ;;  %v8822_v5 = vld [vmem:[%s13512_s1 + $0x10c0] ss:$8 sps:$4 sm:$0xff]   ;;  %v8830_v7 = vld [vmem:[%s13512_s1 + $0x10d4] ss:$8 sps:$4 sm:$0xff]  }
  0x41   :  { %6716 = vmatprep.subr.bf16.mxu0 %v8752_v11  ;;  %v8836_v11 = vld [vmem:[%s13512_s1 + $0x10e4] ss:$8 sps:$4 sm:$0xff]  }
  0x42   :  { %6061 = vmatmul.mubr.bf16.vlgmr.msra.gmra.mrb[0].mxu1 %v143_v14  ;;  %v8839_v14 = vld [vmem:[%s13512_s1 + $0x1f4] ss:$8 sps:$4 sm:$0xff]  }
  0x43   :  { %6706 = vmatmul.mubr.bf16.vlgmr.msra.gmra.mrb[0].mxu0 %v173_v15  ;;  %6072 = vmatpush1.bf16.msra.mxu1 %v8747_v12  ;;  %v8831_v12 = vld [vmem:[%s13512_s1 + $0x1e0] ss:$8 sps:$4 sm:$0xff]   ;;  %v8842_v15 = vld [vmem:[%s13512_s1 + $0x10f4] ss:$8 sps:$4 sm:$0xff]  }
  0x44   :  { %6717 = vmatpush1.bf16.msra.mxu0 %v8750_v13  ;;  %6073 = vmatprep.subr.bf16.mxu1 %v8755_v16  ;;  %v8834_v13 = vld [vmem:[%s13512_s1 + $0x10e0] ss:$8 sps:$4 sm:$0xff]   ;;  %v8837_v16 = vld [vmem:[%s13512_s1 + $0x1f0] ss:$8 sps:$4 sm:$0xff]  }
  0x45   :  { %6718 = vmatprep.subr.bf16.mxu0 %v8758_v17  ;;  %6103 = vmatprep.mubr.bf16.mxu1 %v146_v44  ;;  %v8840_v17 = vld [vmem:[%s13512_s1 + $0x10f0] ss:$8 sps:$4 sm:$0xff]  }
  0x46   :  { %6748 = vmatprep.mubr.bf16.mxu0 %v176_v47  ;;  %v8861_v44 = vld [vmem:[%s13512_s1 + $0x230] ss:$8 sps:$4 sm:$0xff]   ;;  %v8872_v47 = vld [vmem:[%s13512_s1 + $0x1144] ss:$8 sps:$4 sm:$0xff]  }
  0x47   :  { %6074 = vmatpush1.bf16.msra.mxu1 %v8753_v18  ;;  %v23_v18 = vld [vmem:[%s13513_s0 + $0x10] sm:$0xff] }
  0x48   :  { %6719 = vmatpush1.bf16.msra.mxu0 %v8756_v19  ;;  %6075 = vmatprep.subr.bf16.mxu1 %v8761_v20  ;;  %v8845_v19 = vld [vmem:[%s13512_s1 + $0x204] ss:$8 sps:$4 sm:$0xff]   ;;  %v84_v20 = vld [vmem:[%s13513_s0 + $0x1f8] sm:$0xff] }
  0x49   :  { %6720 = vmatprep.subr.bf16.mxu0 %v8764_v21  ;;  %v53_v21 = vld [vmem:[%s13513_s0 + $0x100] sm:$0xff] }
  0x4b   :  { %6076 = vmatpush1.bf16.msra.mxu1 %v8759_v22  ;;  %v114_v22 = vld [vmem:[%s13513_s0 + $0x2e8] sm:$0xff] }
  0x4c   :  { %6721 = vmatpush1.bf16.msra.mxu0 %v8762_v23  ;;  %6077 = vmatprep.subr.bf16.mxu1 %v8767_v24  ;;  %v8848_v23 = vld [vmem:[%s13512_s1 + $0x1104] ss:$8 sps:$4 sm:$0xff]   ;;  %v8843_v24 = vld [vmem:[%s13512_s1 + $0x200] ss:$8 sps:$4 sm:$0xff]  }
  0x4d   :  { %6722 = vmatprep.subr.bf16.mxu0 %v8770_v25  ;;  %v8846_v25 = vld [vmem:[%s13512_s1 + $0x1100] ss:$8 sps:$4 sm:$0xff]  }
  0x4f   :  { %6078 = vmatpush1.bf16.msra.mxu1 %v8765_v26  ;;  %v145_v26 = vpack.c.bf16 %v84_v20, %v23_v18  ;;  %v8923_v18 = vld [vmem:[%s13512_s1 + $0x2d4] ss:$8 sps:$4 sm:$0xff]   ;;  %v8921_v20 = vld [vmem:[%s13512_s1 + $0x2d0] ss:$8 sps:$4 sm:$0xff]  }
  0x50   :  { %6723 = vmatpush1.bf16.msra.mxu0 %v8768_v27  ;;  %6079 = vmatprep.subr.bf16.mxu1 %v8773_v28  ;;  %v175_v27 = vpack.c.bf16 %v114_v22, %v53_v21  ;;  %v8851_v28 = vld [vmem:[%s13512_s1 + $0x214] ss:$8 sps:$4 sm:$0xff]   ;;  %v8924_v21 = vld [vmem:[%s13512_s1 + $0x11d0] ss:$8 sps:$4 sm:$0xff]   ;;  %v8929_v22 = vld [vmem:[%s13512_s1 + $0x2e4] ss:$8 sps:$4 sm:$0xff]  }
  0x51   :  { %6724 = vmatprep.subr.bf16.mxu0 %v8776_v29  ;;  %v8854_v29 = vld [vmem:[%s13512_s1 + $0x1114] ss:$8 sps:$4 sm:$0xff]  }
  0x53   :  { %6080 = vmatpush1.bf16.msra.mxu1 %v8771_v30  ;;  %v8849_v30 = vld [vmem:[%s13512_s1 + $0x210] ss:$8 sps:$4 sm:$0xff]  }
  0x54   :  { %6725 = vmatpush1.bf16.msra.mxu0 %v8774_v31  ;;  %6081 = vmatprep.subr.bf16.mxu1 %v8779_v32  ;;  %v8852_v31 = vld [vmem:[%s13512_s1 + $0x1110] ss:$8 sps:$4 sm:$0xff]   ;;  %v8857_v32 = vld [vmem:[%s13512_s1 + $0x224] ss:$8 sps:$4 sm:$0xff]  }
  0x55   :  { %6726 = vmatprep.subr.bf16.mxu0 %v8782_v33  ;;  %v8860_v33 = vld [vmem:[%s13512_s1 + $0x1124] ss:$8 sps:$4 sm:$0xff]  }
  0x57   :  { %6082 = vmatpush1.bf16.msra.mxu1 %v8777_v34  ;;  %v26_v34 = vld [vmem:[%s13513_s0 + $0x28] sm:$0xff] }
  0x58   :  { %6727 = vmatpush1.bf16.msra.mxu0 %v8780_v35  ;;  %6083 = vmatprep.subr.bf16.mxu1 %v8785_v36  ;;  %v87_v35 = vld [vmem:[%s13513_s0 + $0x210] sm:$0xff] }
  0x59   :  { %6728 = vmatprep.subr.bf16.mxu0 %v8788_v37  ;;  %v148_v36 = vpack.c.bf16 %v87_v35, %v26_v34  ;;  %v8855_v37 = vld [vmem:[%s13512_s1 + $0x220] ss:$8 sps:$4 sm:$0xff]   ;;  %v116_v34 = vld [vmem:[%s13513_s0 + $0x2f8] sm:$0xff]  ;;  %v8944_v35 = vld [vmem:[%s13512_s1 + $0x1204] ss:$8 sps:$4 sm:$0xff]  }
  0x5b   :  { %6084 = vmatpush1.bf16.msra.mxu1 %v8783_v38  ;;  %v56_v38 = vld [vmem:[%s13513_s0 + $0x118] sm:$0xff] }
  0x5c   :  { %6729 = vmatpush1.bf16.msra.mxu0 %v8786_v39  ;;  %6085 = vmatprep.subr.bf16.mxu1 %v8791_v42  ;;  %v117_v39 = vld [vmem:[%s13513_s0 + $0x300] sm:$0xff]  ;;  %v8863_v42 = vld [vmem:[%s13512_s1 + $0x234] ss:$8 sps:$4 sm:$0xff]  }
  0x5d   :  { %6730 = vmatprep.subr.bf16.mxu0 %v8794_v43  ;;  %v178_v41 = vpack.c.bf16 %v117_v39, %v56_v38  ;;  %v8866_v43 = vld [vmem:[%s13512_s1 + $0x1134] ss:$8 sps:$4 sm:$0xff]   ;;  %v89_v39 = vld [vmem:[%s13513_s0 + $0x220] sm:$0xff] }
  0x5e   :  { %v28_v38 = vld [vmem:[%s13513_s0 + $0x38] sm:$0xff] }
  0x5f   :  { %6086 = vmatpush1.bf16.msra.mxu1 %v8789_v48  ;;  %v8867_v48 = vld [vmem:[%s13512_s1 + $0x240] ss:$8 sps:$4 sm:$0xff]  }
  0x60   :  { %6731 = vmatpush1.bf16.msra.mxu0 %v8792_v49  ;;  %6087 = vmatprep.subr.bf16.mxu1 %v8797_v50  ;;  %v8870_v49 = vld [vmem:[%s13512_s1 + $0x1140] ss:$8 sps:$4 sm:$0xff]   ;;  %v8875_v50 = vld [vmem:[%s13512_s1 + $0x254] ss:$8 sps:$4 sm:$0xff]  }
  0x61   :  { %6732 = vmatprep.subr.bf16.mxu0 %v8800_v51  ;;  %v8878_v51 = vld [vmem:[%s13512_s1 + $0x1154] ss:$8 sps:$4 sm:$0xff]  }
  0x63   :  { %6088 = vmatpush1.bf16.msra.mxu1 %v8795_v52  ;;  %v8873_v52 = vld [vmem:[%s13512_s1 + $0x250] ss:$8 sps:$4 sm:$0xff]  }
  0x64   :  { %6733 = vmatpush1.bf16.msra.mxu0 %v8798_v53  ;;  %6089 = vmatprep.subr.bf16.mxu1 %v8803_v54  ;;  %v8876_v53 = vld [vmem:[%s13512_s1 + $0x1150] ss:$8 sps:$4 sm:$0xff]   ;;  %v8881_v54 = vld [vmem:[%s13512_s1 + $0x264] ss:$8 sps:$4 sm:$0xff]  }
  0x65   :  { %6734 = vmatprep.subr.bf16.mxu0 %v8806_v55  ;;  %v8884_v55 = vld [vmem:[%s13512_s1 + $0x1164] ss:$8 sps:$4 sm:$0xff]  }
  0x67   :  { %6090 = vmatpush1.bf16.msra.mxu1 %v8801_v56  ;;  %v8879_v56 = vld [vmem:[%s13512_s1 + $0x260] ss:$8 sps:$4 sm:$0xff]  }
  0x68   :  { %6735 = vmatpush1.bf16.msra.mxu0 %v8804_v57  ;;  %6091 = vmatprep.subr.bf16.mxu1 %v8809_v58  ;;  %v8882_v57 = vld [vmem:[%s13512_s1 + $0x1160] ss:$8 sps:$4 sm:$0xff]   ;;  %v8887_v58 = vld [vmem:[%s13512_s1 + $0x274] ss:$8 sps:$4 sm:$0xff]  }
  0x69   :  { %6736 = vmatprep.subr.bf16.mxu0 %v8812_v59  ;;  %v8890_v59 = vld [vmem:[%s13512_s1 + $0x1174] ss:$8 sps:$4 sm:$0xff]  }
  0x6b   :  { %6092 = vmatpush1.bf16.msra.mxu1 %v8807_v60  ;;  %v8885_v60 = vld [vmem:[%s13512_s1 + $0x270] ss:$8 sps:$4 sm:$0xff]  }
  0x6c   :  { %6737 = vmatpush1.bf16.msra.mxu0 %v8810_v61  ;;  %6093 = vmatprep.subr.bf16.mxu1 %v8815_v62  ;;  %v8888_v61 = vld [vmem:[%s13512_s1 + $0x1170] ss:$8 sps:$4 sm:$0xff]   ;;  %v8893_v62 = vld [vmem:[%s13512_s1 + $0x284] ss:$8 sps:$4 sm:$0xff]  }
  0x6d   :  { %6738 = vmatprep.subr.bf16.mxu0 %v8818_v63  ;;  %v8896_v63 = vld [vmem:[%s13512_s1 + $0x1184] ss:$8 sps:$4 sm:$0xff]  }
  0x6f   :  { %6094 = vmatpush1.bf16.msra.mxu1 %v8813_v0  ;;  %v8891_v0 = vld [vmem:[%s13512_s1 + $0x280] ss:$8 sps:$4 sm:$0xff]  }
  0x70   :  { %6739 = vmatpush1.bf16.msra.mxu0 %v8816_v1  ;;  %6095 = vmatprep.subr.bf16.mxu1 %v8821_v2  ;;  %v8894_v1 = vld [vmem:[%s13512_s1 + $0x1180] ss:$8 sps:$4 sm:$0xff]   ;;  %v8899_v2 = vld [vmem:[%s13512_s1 + $0x294] ss:$8 sps:$4 sm:$0xff]  }
  0x71   :  { %6740 = vmatprep.subr.bf16.mxu0 %v8824_v3  ;;  %v8902_v3 = vld [vmem:[%s13512_s1 + $0x1194] ss:$8 sps:$4 sm:$0xff]  }
  0x73   :  { %6096 = vmatpush1.bf16.msra.mxu1 %v8819_v4  ;;  %v8897_v4 = vld [vmem:[%s13512_s1 + $0x290] ss:$8 sps:$4 sm:$0xff]  }
  0x74   :  { %6741 = vmatpush1.bf16.msra.mxu0 %v8822_v5  ;;  %6097 = vmatprep.subr.bf16.mxu1 %v8827_v6  ;;  %v8900_v5 = vld [vmem:[%s13512_s1 + $0x1190] ss:$8 sps:$4 sm:$0xff]   ;;  %v8905_v6 = vld [vmem:[%s13512_s1 + $0x2a4] ss:$8 sps:$4 sm:$0xff]  }
  0x75   :  { %6742 = vmatprep.subr.bf16.mxu0 %v8830_v7  ;;  %v8908_v7 = vld [vmem:[%s13512_s1 + $0x11a4] ss:$8 sps:$4 sm:$0xff]  }
  0x77   :  { %6098 = vmatpush1.bf16.msra.mxu1 %v8825_v8  ;;  %v8903_v8 = vld [vmem:[%s13512_s1 + $0x2a0] ss:$8 sps:$4 sm:$0xff]  }
  0x78   :  { %6743 = vmatpush1.bf16.msra.mxu0 %v8828_v9  ;;  %6099 = vmatprep.subr.bf16.mxu1 %v8833_v10  ;;  %v8906_v9 = vld [vmem:[%s13512_s1 + $0x11a0] ss:$8 sps:$4 sm:$0xff]   ;;  %v8911_v10 = vld [vmem:[%s13512_s1 + $0x2b4] ss:$8 sps:$4 sm:$0xff]  }
  0x79   :  { %6744 = vmatprep.subr.bf16.mxu0 %v8836_v11  ;;  %v8914_v11 = vld [vmem:[%s13512_s1 + $0x11b4] ss:$8 sps:$4 sm:$0xff]  }
  0x7b   :  { %6100 = vmatpush1.bf16.msra.mxu1 %v8831_v12  ;;  %v8909_v12 = vld [vmem:[%s13512_s1 + $0x2b0] ss:$8 sps:$4 sm:$0xff]  }
  0x7c   :  { %6745 = vmatpush1.bf16.msra.mxu0 %v8834_v13  ;;  %6101 = vmatprep.subr.bf16.mxu1 %v8839_v14  ;;  %v8912_v13 = vld [vmem:[%s13512_s1 + $0x11b0] ss:$8 sps:$4 sm:$0xff]   ;;  %v8917_v14 = vld [vmem:[%s13512_s1 + $0x2c4] ss:$8 sps:$4 sm:$0xff]  }
  0x7d   :  { %6746 = vmatprep.subr.bf16.mxu0 %v8842_v15  ;;  %v8920_v15 = vld [vmem:[%s13512_s1 + $0x11c4] ss:$8 sps:$4 sm:$0xff]  }
  0x7f   :  { %6102 = vmatpush1.bf16.msra.mxu1 %v8837_v16  ;;  %v8915_v16 = vld [vmem:[%s13512_s1 + $0x2c0] ss:$8 sps:$4 sm:$0xff]  }
  0x80   :  { %6747 = vmatpush1.bf16.msra.mxu0 %v8840_v17  ;;  %6114 = vmatprep.subr.bf16.mxu1 %v8845_v19  ;;  %v8918_v17 = vld [vmem:[%s13512_s1 + $0x11c0] ss:$8 sps:$4 sm:$0xff]   ;;  %v8926_v19 = vld [vmem:[%s13512_s1 + $0x11d4] ss:$8 sps:$4 sm:$0xff]  }
  0x81   :  { %6759 = vmatprep.subr.bf16.mxu0 %v8848_v23  ;;  %v8932_v23 = vld [vmem:[%s13512_s1 + $0x11e4] ss:$8 sps:$4 sm:$0xff]  }
  0x82   :  { %6104 = vmatmul.mubr.bf16.vlgmr.msra.gmra.mrb[0].mxu1 %v145_v26  ;;  %v8935_v26 = vld [vmem:[%s13512_s1 + $0x2f4] ss:$8 sps:$4 sm:$0xff]  }
  0x83   :  { %6749 = vmatmul.mubr.bf16.vlgmr.msra.gmra.mrb[0].mxu0 %v175_v27  ;;  %6115 = vmatpush1.bf16.msra.mxu1 %v8843_v24  ;;  %v8927_v24 = vld [vmem:[%s13512_s1 + $0x2e0] ss:$8 sps:$4 sm:$0xff]   ;;  %v8938_v27 = vld [vmem:[%s13512_s1 + $0x11f4] ss:$8 sps:$4 sm:$0xff]  }
  0x84   :  { %6760 = vmatpush1.bf16.msra.mxu0 %v8846_v25  ;;  %6116 = vmatprep.subr.bf16.mxu1 %v8851_v28  ;;  %v8930_v25 = vld [vmem:[%s13512_s1 + $0x11e0] ss:$8 sps:$4 sm:$0xff]   ;;  %v8933_v28 = vld [vmem:[%s13512_s1 + $0x2f0] ss:$8 sps:$4 sm:$0xff]  }
  0x85   :  { %6761 = vmatprep.subr.bf16.mxu0 %v8854_v29  ;;  %6146 = vmatprep.mubr.bf16.mxu1 %v148_v36  ;;  %v8936_v29 = vld [vmem:[%s13512_s1 + $0x11f0] ss:$8 sps:$4 sm:$0xff]   ;;  %v8939_v36 = vld [vmem:[%s13512_s1 + $0x300] ss:$8 sps:$4 sm:$0xff]  }
  0x86   :  { %6791 = vmatprep.mubr.bf16.mxu0 %v178_v41 }
  0x87   :  { %6117 = vmatpush1.bf16.msra.mxu1 %v8849_v30  ;;  %v25_v30 = vld [vmem:[%s13513_s0 + $0x20] sm:$0xff] }
  0x88   :  { %6762 = vmatpush1.bf16.msra.mxu0 %v8852_v31  ;;  %6118 = vmatprep.subr.bf16.mxu1 %v8857_v32  ;;  %v8941_v31 = vld [vmem:[%s13512_s1 + $0x304] ss:$8 sps:$4 sm:$0xff]  }
  0x89   :  { %6763 = vmatprep.subr.bf16.mxu0 %v8860_v33  ;;  %v86_v32 = vld [vmem:[%s13513_s0 + $0x208] sm:$0xff]  ;;  %v55_v33 = vld [vmem:[%s13513_s0 + $0x110] sm:$0xff] }
  0x8a   :  { %v177_v41 = vpack.c.bf16 %v116_v34, %v55_v33  ;;  %v9020_v33 = vld [vmem:[%s13512_s1 + $0x12d0] ss:$8 sps:$4 sm:$0xff]   ;;  %v9025_v34 = vld [vmem:[%s13512_s1 + $0x3e4] ss:$8 sps:$4 sm:$0xff]  }
  0x8b   :  { %6119 = vmatpush1.bf16.msra.mxu1 %v8855_v37  ;;  %v8942_v37 = vld [vmem:[%s13512_s1 + $0x1200] ss:$8 sps:$4 sm:$0xff]  }
  0x8c   :  { %6764 = vmatpush1.bf16.msra.mxu0 %v8858_v40  ;;  %6120 = vmatprep.subr.bf16.mxu1 %v8863_v42  ;;  %v147_v40 = vpack.c.bf16 %v86_v32, %v25_v30  ;;  %v58_v42 = vld [vmem:[%s13513_s0 + $0x128] sm:$0xff]  ;;  %v9019_v30 = vld [vmem:[%s13512_s1 + $0x3d4] ss:$8 sps:$4 sm:$0xff]   ;;  %v9017_v32 = vld [vmem:[%s13512_s1 + $0x3d0] ss:$8 sps:$4 sm:$0xff]  }
  0x8d   :  { %6765 = vmatprep.subr.bf16.mxu0 %v8866_v43  ;;  %v119_v43 = vld [vmem:[%s13513_s0 + $0x310] sm:$0xff] }
  0x8f   :  { %6121 = vmatpush1.bf16.msra.mxu1 %v8861_v44  ;;  %v8947_v44 = vld [vmem:[%s13512_s1 + $0x314] ss:$8 sps:$4 sm:$0xff]  }
  0x90   :  { %6766 = vmatpush1.bf16.msra.mxu0 %v8864_v45  ;;  %6122 = vmatprep.subr.bf16.mxu1 %v8869_v46  ;;  %v8950_v45 = vld [vmem:[%s13512_s1 + $0x1214] ss:$8 sps:$4 sm:$0xff]   ;;  %v150_v46 = vpack.c.bf16 %v89_v39, %v28_v38 }
  0x91   :  { %6767 = vmatprep.subr.bf16.mxu0 %v8872_v47  ;;  %v180_v47 = vpack.c.bf16 %v119_v43, %v58_v42  ;;  %v9031_v38 = vld [vmem:[%s13512_s1 + $0x3f4] ss:$8 sps:$4 sm:$0xff]   ;;  %v9037_v43 = vld [vmem:[%s13512_s1 + $0x404] ss:$8 sps:$4 sm:$0xff]  }
  0x92   :  { %v9034_v39 = vld [vmem:[%s13512_s1 + $0x12f4] ss:$8 sps:$4 sm:$0xff]  }
  0x93   :  { %6123 = vmatpush1.bf16.msra.mxu1 %v8867_v48  ;;  %v8945_v48 = vld [vmem:[%s13512_s1 + $0x310] ss:$8 sps:$4 sm:$0xff]  }
  0x94   :  { %6768 = vmatpush1.bf16.msra.mxu0 %v8870_v49  ;;  %6124 = vmatprep.subr.bf16.mxu1 %v8875_v50  ;;  %v8948_v49 = vld [vmem:[%s13512_s1 + $0x1210] ss:$8 sps:$4 sm:$0xff]   ;;  %v8953_v50 = vld [vmem:[%s13512_s1 + $0x324] ss:$8 sps:$4 sm:$0xff]  }
  0x95   :  { %6769 = vmatprep.subr.bf16.mxu0 %v8878_v51  ;;  %v8956_v51 = vld [vmem:[%s13512_s1 + $0x1224] ss:$8 sps:$4 sm:$0xff]   ;;  %v27_v42 = vld [vmem:[%s13513_s0 + $0x30] sm:$0xff] }
  0x97   :  { %6125 = vmatpush1.bf16.msra.mxu1 %v8873_v52  ;;  %v8951_v52 = vld [vmem:[%s13512_s1 + $0x320] ss:$8 sps:$4 sm:$0xff]  }
  0x98   :  { %6770 = vmatpush1.bf16.msra.mxu0 %v8876_v53  ;;  %6126 = vmatprep.subr.bf16.mxu1 %v8881_v54  ;;  %v8954_v53 = vld [vmem:[%s13512_s1 + $0x1220] ss:$8 sps:$4 sm:$0xff]   ;;  %v8959_v54 = vld [vmem:[%s13512_s1 + $0x334] ss:$8 sps:$4 sm:$0xff]  }
  0x99   :  { %6771 = vmatprep.subr.bf16.mxu0 %v8884_v55  ;;  %v8962_v55 = vld [vmem:[%s13512_s1 + $0x1234] ss:$8 sps:$4 sm:$0xff]  }
  0x9b   :  { %6127 = vmatpush1.bf16.msra.mxu1 %v8879_v56  ;;  %v8957_v56 = vld [vmem:[%s13512_s1 + $0x330] ss:$8 sps:$4 sm:$0xff]  }
  0x9c   :  { %6772 = vmatpush1.bf16.msra.mxu0 %v8882_v57  ;;  %6128 = vmatprep.subr.bf16.mxu1 %v8887_v58  ;;  %v8960_v57 = vld [vmem:[%s13512_s1 + $0x1230] ss:$8 sps:$4 sm:$0xff]   ;;  %v8965_v58 = vld [vmem:[%s13512_s1 + $0x344] ss:$8 sps:$4 sm:$0xff]  }
  0x9d   :  { %6773 = vmatprep.subr.bf16.mxu0 %v8890_v59  ;;  %v8968_v59 = vld [vmem:[%s13512_s1 + $0x1244] ss:$8 sps:$4 sm:$0xff]  }
  0x9f   :  { %6129 = vmatpush1.bf16.msra.mxu1 %v8885_v60  ;;  %v8963_v60 = vld [vmem:[%s13512_s1 + $0x340] ss:$8 sps:$4 sm:$0xff]  }
  0xa0   :  { %6774 = vmatpush1.bf16.msra.mxu0 %v8888_v61  ;;  %6130 = vmatprep.subr.bf16.mxu1 %v8893_v62  ;;  %v8966_v61 = vld [vmem:[%s13512_s1 + $0x1240] ss:$8 sps:$4 sm:$0xff]   ;;  %v8971_v62 = vld [vmem:[%s13512_s1 + $0x354] ss:$8 sps:$4 sm:$0xff]  }
  0xa1   :  { %6775 = vmatprep.subr.bf16.mxu0 %v8896_v63  ;;  %v8974_v63 = vld [vmem:[%s13512_s1 + $0x1254] ss:$8 sps:$4 sm:$0xff]  }
  0xa3   :  { %6131 = vmatpush1.bf16.msra.mxu1 %v8891_v0  ;;  %v8969_v0 = vld [vmem:[%s13512_s1 + $0x350] ss:$8 sps:$4 sm:$0xff]  }
  0xa4   :  { %6776 = vmatpush1.bf16.msra.mxu0 %v8894_v1  ;;  %6132 = vmatprep.subr.bf16.mxu1 %v8899_v2  ;;  %v8972_v1 = vld [vmem:[%s13512_s1 + $0x1250] ss:$8 sps:$4 sm:$0xff]   ;;  %v8977_v2 = vld [vmem:[%s13512_s1 + $0x364] ss:$8 sps:$4 sm:$0xff]  }
  0xa5   :  { %6777 = vmatprep.subr.bf16.mxu0 %v8902_v3  ;;  %v8980_v3 = vld [vmem:[%s13512_s1 + $0x1264] ss:$8 sps:$4 sm:$0xff]  }
  0xa7   :  { %6133 = vmatpush1.bf16.msra.mxu1 %v8897_v4  ;;  %v8975_v4 = vld [vmem:[%s13512_s1 + $0x360] ss:$8 sps:$4 sm:$0xff]  }
  0xa8   :  { %6778 = vmatpush1.bf16.msra.mxu0 %v8900_v5  ;;  %6134 = vmatprep.subr.bf16.mxu1 %v8905_v6  ;;  %v8978_v5 = vld [vmem:[%s13512_s1 + $0x1260] ss:$8 sps:$4 sm:$0xff]   ;;  %v8983_v6 = vld [vmem:[%s13512_s1 + $0x374] ss:$8 sps:$4 sm:$0xff]  }
  0xa9   :  { %6779 = vmatprep.subr.bf16.mxu0 %v8908_v7  ;;  %v8986_v7 = vld [vmem:[%s13512_s1 + $0x1274] ss:$8 sps:$4 sm:$0xff]  }
  0xab   :  { %6135 = vmatpush1.bf16.msra.mxu1 %v8903_v8  ;;  %v8981_v8 = vld [vmem:[%s13512_s1 + $0x370] ss:$8 sps:$4 sm:$0xff]  }
  0xac   :  { %6780 = vmatpush1.bf16.msra.mxu0 %v8906_v9  ;;  %6136 = vmatprep.subr.bf16.mxu1 %v8911_v10  ;;  %v8984_v9 = vld [vmem:[%s13512_s1 + $0x1270] ss:$8 sps:$4 sm:$0xff]   ;;  %v8989_v10 = vld [vmem:[%s13512_s1 + $0x384] ss:$8 sps:$4 sm:$0xff]  }
  0xad   :  { %6781 = vmatprep.subr.bf16.mxu0 %v8914_v11  ;;  %v8992_v11 = vld [vmem:[%s13512_s1 + $0x1284] ss:$8 sps:$4 sm:$0xff]  }
  0xaf   :  { %6137 = vmatpush1.bf16.msra.mxu1 %v8909_v12  ;;  %v8987_v12 = vld [vmem:[%s13512_s1 + $0x380] ss:$8 sps:$4 sm:$0xff]  }
  0xb0   :  { %6782 = vmatpush1.bf16.msra.mxu0 %v8912_v13  ;;  %6138 = vmatprep.subr.bf16.mxu1 %v8917_v14  ;;  %v8990_v13 = vld [vmem:[%s13512_s1 + $0x1280] ss:$8 sps:$4 sm:$0xff]   ;;  %v8995_v14 = vld [vmem:[%s13512_s1 + $0x394] ss:$8 sps:$4 sm:$0xff]  }
  0xb1   :  { %6783 = vmatprep.subr.bf16.mxu0 %v8920_v15  ;;  %v8998_v15 = vld [vmem:[%s13512_s1 + $0x1294] ss:$8 sps:$4 sm:$0xff]  }
  0xb3   :  { %6139 = vmatpush1.bf16.msra.mxu1 %v8915_v16  ;;  %v8993_v16 = vld [vmem:[%s13512_s1 + $0x390] ss:$8 sps:$4 sm:$0xff]  }
  0xb4   :  { %6784 = vmatpush1.bf16.msra.mxu0 %v8918_v17  ;;  %6140 = vmatprep.subr.bf16.mxu1 %v8923_v18  ;;  %v8996_v17 = vld [vmem:[%s13512_s1 + $0x1290] ss:$8 sps:$4 sm:$0xff]   ;;  %v9001_v18 = vld [vmem:[%s13512_s1 + $0x3a4] ss:$8 sps:$4 sm:$0xff]  }
  0xb5   :  { %6785 = vmatprep.subr.bf16.mxu0 %v8926_v19  ;;  %v9004_v19 = vld [vmem:[%s13512_s1 + $0x12a4] ss:$8 sps:$4 sm:$0xff]  }
  0xb7   :  { %6141 = vmatpush1.bf16.msra.mxu1 %v8921_v20  ;;  %v8999_v20 = vld [vmem:[%s13512_s1 + $0x3a0] ss:$8 sps:$4 sm:$0xff]  }
  0xb8   :  { %6786 = vmatpush1.bf16.msra.mxu0 %v8924_v21  ;;  %6142 = vmatprep.subr.bf16.mxu1 %v8929_v22  ;;  %v9002_v21 = vld [vmem:[%s13512_s1 + $0x12a0] ss:$8 sps:$4 sm:$0xff]   ;;  %v9007_v22 = vld [vmem:[%s13512_s1 + $0x3b4] ss:$8 sps:$4 sm:$0xff]  }
  0xb9   :  { %6787 = vmatprep.subr.bf16.mxu0 %v8932_v23  ;;  %v9010_v23 = vld [vmem:[%s13512_s1 + $0x12b4] ss:$8 sps:$4 sm:$0xff]  }
  0xbb   :  { %6143 = vmatpush1.bf16.msra.mxu1 %v8927_v24  ;;  %v9005_v24 = vld [vmem:[%s13512_s1 + $0x3b0] ss:$8 sps:$4 sm:$0xff]  }
  0xbc   :  { %6788 = vmatpush1.bf16.msra.mxu0 %v8930_v25  ;;  %6144 = vmatprep.subr.bf16.mxu1 %v8935_v26  ;;  %v9008_v25 = vld [vmem:[%s13512_s1 + $0x12b0] ss:$8 sps:$4 sm:$0xff]   ;;  %v9013_v26 = vld [vmem:[%s13512_s1 + $0x3c4] ss:$8 sps:$4 sm:$0xff]  }
  0xbd   :  { %6789 = vmatprep.subr.bf16.mxu0 %v8938_v27  ;;  %v9016_v27 = vld [vmem:[%s13512_s1 + $0x12c4] ss:$8 sps:$4 sm:$0xff]  }
  0xbf   :  { %6145 = vmatpush1.bf16.msra.mxu1 %v8933_v28  ;;  %v9011_v28 = vld [vmem:[%s13512_s1 + $0x3c0] ss:$8 sps:$4 sm:$0xff]  }
  0xc0   :  { %6790 = vmatpush1.bf16.msra.mxu0 %v8936_v29  ;;  %6157 = vmatprep.subr.bf16.mxu1 %v8941_v31  ;;  %v9014_v29 = vld [vmem:[%s13512_s1 + $0x12c0] ss:$8 sps:$4 sm:$0xff]   ;;  %v9022_v31 = vld [vmem:[%s13512_s1 + $0x12d4] ss:$8 sps:$4 sm:$0xff]  }
  0xc1   :  { %6802 = vmatprep.subr.bf16.mxu0 %v8944_v35  ;;  %v9028_v35 = vld [vmem:[%s13512_s1 + $0x12e4] ss:$8 sps:$4 sm:$0xff]  }
  0xc2   :  { %6147 = vmatmul.mubr.bf16.vlgmr.msra.gmra.mrb[0].mxu1 %v147_v40  ;;  %v9029_v40 = vld [vmem:[%s13512_s1 + $0x3f0] ss:$8 sps:$4 sm:$0xff]  }
  0xc3   :  { %6792 = vmatmul.mubr.bf16.vlgmr.msra.gmra.mrb[0].mxu0 %v177_v41  ;;  %6158 = vmatpush1.bf16.msra.mxu1 %v8939_v36  ;;  %v9023_v36 = vld [vmem:[%s13512_s1 + $0x3e0] ss:$8 sps:$4 sm:$0xff]   ;;  %v9032_v41 = vld [vmem:[%s13512_s1 + $0x12f0] ss:$8 sps:$4 sm:$0xff]  }
  0xc4   :  { %6803 = vmatpush1.bf16.msra.mxu0 %v8942_v37  ;;  %6159 = vmatprep.subr.bf16.mxu1 %v8947_v44  ;;  %v9026_v37 = vld [vmem:[%s13512_s1 + $0x12e0] ss:$8 sps:$4 sm:$0xff]   ;;  %v88_v44 = vld [vmem:[%s13513_s0 + $0x218] sm:$0xff] }
  0xc5   :  { %6804 = vmatprep.subr.bf16.mxu0 %v8950_v45  ;;  %6189 = vmatprep.mubr.bf16.mxu1 %v150_v46  ;;  %v57_v45 = vld [vmem:[%s13513_s0 + $0x120] sm:$0xff]  ;;  %v118_v46 = vld [vmem:[%s13513_s0 + $0x308] sm:$0xff] }
  0xc6   :  { %6834 = vmatprep.mubr.bf16.mxu0 %v180_v47  ;;  %v9040_v47 = vld [vmem:[%s13512_s1 + $0x1304] ss:$8 sps:$4 sm:$0xff]  }
  0xc7   :  { %6160 = vmatpush1.bf16.msra.mxu1 %v8945_v48  ;;  %v9035_v48 = vld [vmem:[%s13512_s1 + $0x400] ss:$8 sps:$4 sm:$0xff]  }
  0xc8   :  { %6805 = vmatpush1.bf16.msra.mxu0 %v8948_v49  ;;  %6161 = vmatprep.subr.bf16.mxu1 %v8953_v50  ;;  %v9038_v49 = vld [vmem:[%s13512_s1 + $0x1300] ss:$8 sps:$4 sm:$0xff]  }
  0xc9   :  { %6806 = vmatprep.subr.bf16.mxu0 %v8956_v51  ;;  %v30_v50 = vld [vmem:[%s13513_s0 + $0x48] sm:$0xff]  ;;  %v91_v51 = vld [vmem:[%s13513_s0 + $0x230] sm:$0xff] }
  0xcb   :  { %6162 = vmatpush1.bf16.msra.mxu1 %v8951_v52  ;;  %v149_v52 = vpack.c.bf16 %v88_v44, %v27_v42  ;;  %v9115_v42 = vld [vmem:[%s13512_s1 + $0x4d4] ss:$8 sps:$4 sm:$0xff]   ;;  %v9113_v44 = vld [vmem:[%s13512_s1 + $0x4d0] ss:$8 sps:$4 sm:$0xff]  }
  0xcc   :  { %6807 = vmatpush1.bf16.msra.mxu0 %v8954_v53  ;;  %6163 = vmatprep.subr.bf16.mxu1 %v8959_v54  ;;  %v179_v53 = vpack.c.bf16 %v118_v46, %v57_v45  ;;  %v60_v54 = vld [vmem:[%s13513_s0 + $0x138] sm:$0xff]  ;;  %v9121_v46 = vld [vmem:[%s13512_s1 + $0x4e4] ss:$8 sps:$4 sm:$0xff]  }
  0xcd   :  { %6808 = vmatprep.subr.bf16.mxu0 %v8962_v55  ;;  %v121_v55 = vld [vmem:[%s13513_s0 + $0x320] sm:$0xff]  ;;  %v9116_v45 = vld [vmem:[%s13512_s1 + $0x13d0] ss:$8 sps:$4 sm:$0xff]  }
  0xcf   :  { %6164 = vmatpush1.bf16.msra.mxu1 %v8957_v56  ;;  %v9043_v56 = vld [vmem:[%s13512_s1 + $0x414] ss:$8 sps:$4 sm:$0xff]  }
  0xd0   :  { %6809 = vmatpush1.bf16.msra.mxu0 %v8960_v57  ;;  %6165 = vmatprep.subr.bf16.mxu1 %v8965_v58  ;;  %v9046_v57 = vld [vmem:[%s13512_s1 + $0x1314] ss:$8 sps:$4 sm:$0xff]   ;;  %v152_v58 = vpack.c.bf16 %v91_v51, %v30_v50 }
  0xd1   :  { %6810 = vmatprep.subr.bf16.mxu0 %v8968_v59  ;;  %v182_v59 = vpack.c.bf16 %v121_v55, %v60_v54  ;;  %v9127_v50 = vld [vmem:[%s13512_s1 + $0x4f4] ss:$8 sps:$4 sm:$0xff]   ;;  %v29_v54 = vld [vmem:[%s13513_s0 + $0x40] sm:$0xff]  ;;  %v90_v55 = vld [vmem:[%s13513_s0 + $0x228] sm:$0xff] }
  0xd2   :  { %v9130_v51 = vld [vmem:[%s13512_s1 + $0x13f4] ss:$8 sps:$4 sm:$0xff]  }
  0xd3   :  { %6166 = vmatpush1.bf16.msra.mxu1 %v8963_v60  ;;  %v9041_v60 = vld [vmem:[%s13512_s1 + $0x410] ss:$8 sps:$4 sm:$0xff]  }
  0xd4   :  { %6811 = vmatpush1.bf16.msra.mxu0 %v8966_v61  ;;  %6167 = vmatprep.subr.bf16.mxu1 %v8971_v62  ;;  %v9044_v61 = vld [vmem:[%s13512_s1 + $0x1310] ss:$8 sps:$4 sm:$0xff]   ;;  %v9049_v62 = vld [vmem:[%s13512_s1 + $0x424] ss:$8 sps:$4 sm:$0xff]  }
  0xd5   :  { %6812 = vmatprep.subr.bf16.mxu0 %v8974_v63  ;;  %v9052_v63 = vld [vmem:[%s13512_s1 + $0x1324] ss:$8 sps:$4 sm:$0xff]  }
  0xd7   :  { %6168 = vmatpush1.bf16.msra.mxu1 %v8969_v0  ;;  %v9047_v0 = vld [vmem:[%s13512_s1 + $0x420] ss:$8 sps:$4 sm:$0xff]  }
  0xd8   :  { %6813 = vmatpush1.bf16.msra.mxu0 %v8972_v1  ;;  %6169 = vmatprep.subr.bf16.mxu1 %v8977_v2  ;;  %v9050_v1 = vld [vmem:[%s13512_s1 + $0x1320] ss:$8 sps:$4 sm:$0xff]   ;;  %v9055_v2 = vld [vmem:[%s13512_s1 + $0x434] ss:$8 sps:$4 sm:$0xff]  }
  0xd9   :  { %6814 = vmatprep.subr.bf16.mxu0 %v8980_v3  ;;  %v9058_v3 = vld [vmem:[%s13512_s1 + $0x1334] ss:$8 sps:$4 sm:$0xff]  }
  0xdb   :  { %6170 = vmatpush1.bf16.msra.mxu1 %v8975_v4  ;;  %v9053_v4 = vld [vmem:[%s13512_s1 + $0x430] ss:$8 sps:$4 sm:$0xff]  }
  0xdc   :  { %6815 = vmatpush1.bf16.msra.mxu0 %v8978_v5  ;;  %6171 = vmatprep.subr.bf16.mxu1 %v8983_v6  ;;  %v9056_v5 = vld [vmem:[%s13512_s1 + $0x1330] ss:$8 sps:$4 sm:$0xff]   ;;  %v9061_v6 = vld [vmem:[%s13512_s1 + $0x444] ss:$8 sps:$4 sm:$0xff]  }
  0xdd   :  { %6816 = vmatprep.subr.bf16.mxu0 %v8986_v7  ;;  %v9064_v7 = vld [vmem:[%s13512_s1 + $0x1344] ss:$8 sps:$4 sm:$0xff]  }
  0xdf   :  { %6172 = vmatpush1.bf16.msra.mxu1 %v8981_v8  ;;  %v9059_v8 = vld [vmem:[%s13512_s1 + $0x440] ss:$8 sps:$4 sm:$0xff]  }
  0xe0   :  { %6817 = vmatpush1.bf16.msra.mxu0 %v8984_v9  ;;  %6173 = vmatprep.subr.bf16.mxu1 %v8989_v10  ;;  %v9062_v9 = vld [vmem:[%s13512_s1 + $0x1340] ss:$8 sps:$4 sm:$0xff]   ;;  %v9067_v10 = vld [vmem:[%s13512_s1 + $0x454] ss:$8 sps:$4 sm:$0xff]  }
  0xe1   :  { %6818 = vmatprep.subr.bf16.mxu0 %v8992_v11  ;;  %v9070_v11 = vld [vmem:[%s13512_s1 + $0x1354] ss:$8 sps:$4 sm:$0xff]  }
  0xe3   :  { %6174 = vmatpush1.bf16.msra.mxu1 %v8987_v12  ;;  %v9065_v12 = vld [vmem:[%s13512_s1 + $0x450] ss:$8 sps:$4 sm:$0xff]  }
  0xe4   :  { %6819 = vmatpush1.bf16.msra.mxu0 %v8990_v13  ;;  %6175 = vmatprep.subr.bf16.mxu1 %v8995_v14  ;;  %v9068_v13 = vld [vmem:[%s13512_s1 + $0x1350] ss:$8 sps:$4 sm:$0xff]   ;;  %v9073_v14 = vld [vmem:[%s13512_s1 + $0x464] ss:$8 sps:$4 sm:$0xff]  }
  0xe5   :  { %6820 = vmatprep.subr.bf16.mxu0 %v8998_v15  ;;  %v9076_v15 = vld [vmem:[%s13512_s1 + $0x1364] ss:$8 sps:$4 sm:$0xff]  }
  0xe7   :  { %6176 = vmatpush1.bf16.msra.mxu1 %v8993_v16  ;;  %v9071_v16 = vld [vmem:[%s13512_s1 + $0x460] ss:$8 sps:$4 sm:$0xff]  }
  0xe8   :  { %6821 = vmatpush1.bf16.msra.mxu0 %v8996_v17  ;;  %6177 = vmatprep.subr.bf16.mxu1 %v9001_v18  ;;  %v9074_v17 = vld [vmem:[%s13512_s1 + $0x1360] ss:$8 sps:$4 sm:$0xff]   ;;  %v9079_v18 = vld [vmem:[%s13512_s1 + $0x474] ss:$8 sps:$4 sm:$0xff]  }
  0xe9   :  { %6822 = vmatprep.subr.bf16.mxu0 %v9004_v19  ;;  %v9082_v19 = vld [vmem:[%s13512_s1 + $0x1374] ss:$8 sps:$4 sm:$0xff]  }
  0xeb   :  { %6178 = vmatpush1.bf16.msra.mxu1 %v8999_v20  ;;  %v9077_v20 = vld [vmem:[%s13512_s1 + $0x470] ss:$8 sps:$4 sm:$0xff]  }
  0xec   :  { %6823 = vmatpush1.bf16.msra.mxu0 %v9002_v21  ;;  %6179 = vmatprep.subr.bf16.mxu1 %v9007_v22  ;;  %v9080_v21 = vld [vmem:[%s13512_s1 + $0x1370] ss:$8 sps:$4 sm:$0xff]   ;;  %v9085_v22 = vld [vmem:[%s13512_s1 + $0x484] ss:$8 sps:$4 sm:$0xff]  }
  0xed   :  { %6824 = vmatprep.subr.bf16.mxu0 %v9010_v23  ;;  %v9088_v23 = vld [vmem:[%s13512_s1 + $0x1384] ss:$8 sps:$4 sm:$0xff]  }
  0xef   :  { %6180 = vmatpush1.bf16.msra.mxu1 %v9005_v24  ;;  %v9083_v24 = vld [vmem:[%s13512_s1 + $0x480] ss:$8 sps:$4 sm:$0xff]  }
  0xf0   :  { %6825 = vmatpush1.bf16.msra.mxu0 %v9008_v25  ;;  %6181 = vmatprep.subr.bf16.mxu1 %v9013_v26  ;;  %v9086_v25 = vld [vmem:[%s13512_s1 + $0x1380] ss:$8 sps:$4 sm:$0xff]   ;;  %v9091_v26 = vld [vmem:[%s13512_s1 + $0x494] ss:$8 sps:$4 sm:$0xff]  }
  0xf1   :  { %6826 = vmatprep.subr.bf16.mxu0 %v9016_v27  ;;  %v9094_v27 = vld [vmem:[%s13512_s1 + $0x1394] ss:$8 sps:$4 sm:$0xff]  }
  0xf3   :  { %6182 = vmatpush1.bf16.msra.mxu1 %v9011_v28  ;;  %v9089_v28 = vld [vmem:[%s13512_s1 + $0x490] ss:$8 sps:$4 sm:$0xff]  }
  0xf4   :  { %6827 = vmatpush1.bf16.msra.mxu0 %v9014_v29  ;;  %6183 = vmatprep.subr.bf16.mxu1 %v9019_v30  ;;  %v9092_v29 = vld [vmem:[%s13512_s1 + $0x1390] ss:$8 sps:$4 sm:$0xff]   ;;  %v9097_v30 = vld [vmem:[%s13512_s1 + $0x4a4] ss:$8 sps:$4 sm:$0xff]  }
  0xf5   :  { %6828 = vmatprep.subr.bf16.mxu0 %v9022_v31  ;;  %v9100_v31 = vld [vmem:[%s13512_s1 + $0x13a4] ss:$8 sps:$4 sm:$0xff]  }
  0xf7   :  { %6184 = vmatpush1.bf16.msra.mxu1 %v9017_v32  ;;  %v9095_v32 = vld [vmem:[%s13512_s1 + $0x4a0] ss:$8 sps:$4 sm:$0xff]  }
  0xf8   :  { %6829 = vmatpush1.bf16.msra.mxu0 %v9020_v33  ;;  %6185 = vmatprep.subr.bf16.mxu1 %v9025_v34  ;;  %v9098_v33 = vld [vmem:[%s13512_s1 + $0x13a0] ss:$8 sps:$4 sm:$0xff]   ;;  %v9103_v34 = vld [vmem:[%s13512_s1 + $0x4b4] ss:$8 sps:$4 sm:$0xff]  }
  0xf9   :  { %6830 = vmatprep.subr.bf16.mxu0 %v9028_v35  ;;  %v9106_v35 = vld [vmem:[%s13512_s1 + $0x13b4] ss:$8 sps:$4 sm:$0xff]  }
  0xfb   :  { %6186 = vmatpush1.bf16.msra.mxu1 %v9023_v36  ;;  %v9101_v36 = vld [vmem:[%s13512_s1 + $0x4b0] ss:$8 sps:$4 sm:$0xff]  }
  0xfc   :  { %6831 = vmatpush1.bf16.msra.mxu0 %v9026_v37  ;;  %6187 = vmatprep.subr.bf16.mxu1 %v9031_v38  ;;  %v9104_v37 = vld [vmem:[%s13512_s1 + $0x13b0] ss:$8 sps:$4 sm:$0xff]   ;;  %v9109_v38 = vld [vmem:[%s13512_s1 + $0x4c4] ss:$8 sps:$4 sm:$0xff]  }
  0xfd   :  { %6832 = vmatprep.subr.bf16.mxu0 %v9034_v39  ;;  %v9112_v39 = vld [vmem:[%s13512_s1 + $0x13c4] ss:$8 sps:$4 sm:$0xff]  }
  0xff   :  { %6188 = vmatpush1.bf16.msra.mxu1 %v9029_v40  ;;  %v9107_v40 = vld [vmem:[%s13512_s1 + $0x4c0] ss:$8 sps:$4 sm:$0xff]  }
 0x100   :  { %6833 = vmatpush1.bf16.msra.mxu0 %v9032_v41  ;;  %6200 = vmatprep.subr.bf16.mxu1 %v9037_v43  ;;  %v9110_v41 = vld [vmem:[%s13512_s1 + $0x13c0] ss:$8 sps:$4 sm:$0xff]   ;;  %v9118_v43 = vld [vmem:[%s13512_s1 + $0x13d4] ss:$8 sps:$4 sm:$0xff]  }
 0x101   :  { %6845 = vmatprep.subr.bf16.mxu0 %v9040_v47  ;;  %v9124_v47 = vld [vmem:[%s13512_s1 + $0x13e4] ss:$8 sps:$4 sm:$0xff]  }
 0x102   :  { %6190 = vmatmul.mubr.bf16.vlgmr.msra.gmra.mrb[0].mxu1 %v149_v52  ;;  %v9125_v52 = vld [vmem:[%s13512_s1 + $0x4f0] ss:$8 sps:$4 sm:$0xff]  }
 0x103   :  { %6835 = vmatmul.mubr.bf16.vlgmr.msra.gmra.mrb[0].mxu0 %v179_v53  ;;  %6201 = vmatpush1.bf16.msra.mxu1 %v9035_v48  ;;  %v9119_v48 = vld [vmem:[%s13512_s1 + $0x4e0] ss:$8 sps:$4 sm:$0xff]   ;;  %v9128_v53 = vld [vmem:[%s13512_s1 + $0x13f0] ss:$8 sps:$4 sm:$0xff]  }
 0x104   :  { %6846 = vmatpush1.bf16.msra.mxu0 %v9038_v49  ;;  %6202 = vmatprep.subr.bf16.mxu1 %v9043_v56  ;;  %v9122_v49 = vld [vmem:[%s13512_s1 + $0x13e0] ss:$8 sps:$4 sm:$0xff]   ;;  %v9133_v56 = vld [vmem:[%s13512_s1 + $0x504] ss:$8 sps:$4 sm:$0xff]  }
 0x105   :  { %6847 = vmatprep.subr.bf16.mxu0 %v9046_v57  ;;  %6232 = vmatprep.mubr.bf16.mxu1 %v152_v58  ;;  %v9136_v57 = vld [vmem:[%s13512_s1 + $0x1404] ss:$8 sps:$4 sm:$0xff]   ;;  %v59_v58 = vld [vmem:[%s13513_s0 + $0x130] sm:$0xff] }
 0x106   :  { %6877 = vmatprep.mubr.bf16.mxu0 %v182_v59  ;;  %v120_v59 = vld [vmem:[%s13513_s0 + $0x318] sm:$0xff] }
 0x107   :  { %6203 = vmatpush1.bf16.msra.mxu1 %v9041_v60  ;;  %v32_v60 = vld [vmem:[%s13513_s0 + $0x58] sm:$0xff] }
 0x108   :  { %6848 = vmatpush1.bf16.msra.mxu0 %v9044_v61  ;;  %6204 = vmatprep.subr.bf16.mxu1 %v9049_v62  ;;  %v93_v61 = vld [vmem:[%s13513_s0 + $0x240] sm:$0xff]  ;;  %v62_v62 = vld [vmem:[%s13513_s0 + $0x148] sm:$0xff] }
 0x109   :  { %6849 = vmatprep.subr.bf16.mxu0 %v9052_v63  ;;  %v123_v63 = vld [vmem:[%s13513_s0 + $0x330] sm:$0xff] }
 0x10b   :  { %6205 = vmatpush1.bf16.msra.mxu1 %v9047_v0  ;;  %v151_v0 = vpack.c.bf16 %v90_v55, %v29_v54  ;;  %v9211_v54 = vld [vmem:[%s13512_s1 + $0x5d4] ss:$8 sps:$4 sm:$0xff]  }
 0x10c   :  { %6850 = vmatpush1.bf16.msra.mxu0 %v9050_v1  ;;  %6206 = vmatprep.subr.bf16.mxu1 %v9055_v2  ;;  %v181_v1 = vpack.c.bf16 %v120_v59, %v59_v58  ;;  %v9131_v2 = vld [vmem:[%s13512_s1 + $0x500] ss:$8 sps:$4 sm:$0xff]   ;;  %v9214_v55 = vld [vmem:[%s13512_s1 + $0x14d4] ss:$8 sps:$4 sm:$0xff]   ;;  %v9217_v58 = vld [vmem:[%s13512_s1 + $0x5e4] ss:$8 sps:$4 sm:$0xff]  }
 0x10d   :  { %6851 = vmatprep.subr.bf16.mxu0 %v9058_v3  ;;  %v9134_v3 = vld [vmem:[%s13512_s1 + $0x1400] ss:$8 sps:$4 sm:$0xff]   ;;  %v9220_v59 = vld [vmem:[%s13512_s1 + $0x14e4] ss:$8 sps:$4 sm:$0xff]  }
 0x10f   :  { %6207 = vmatpush1.bf16.msra.mxu1 %v9053_v4  ;;  %v9139_v4 = vld [vmem:[%s13512_s1 + $0x514] ss:$8 sps:$4 sm:$0xff]  }
 0x110   :  { %6852 = vmatpush1.bf16.msra.mxu0 %v9056_v5  ;;  %6208 = vmatprep.subr.bf16.mxu1 %v9061_v6  ;;  %v9142_v5 = vld [vmem:[%s13512_s1 + $0x1414] ss:$8 sps:$4 sm:$0xff]   ;;  %v154_v6 = vpack.c.bf16 %v93_v61, %v32_v60  ;;  %v9215_v60 = vld [vmem:[%s13512_s1 + $0x5e0] ss:$8 sps:$4 sm:$0xff]  }
 0x111   :  { %6853 = vmatprep.subr.bf16.mxu0 %v9064_v7  ;;  %v184_v7 = vpack.c.bf16 %v123_v63, %v62_v62  ;;  %v9218_v61 = vld [vmem:[%s13512_s1 + $0x14e0] ss:$8 sps:$4 sm:$0xff]   ;;  %v9223_v62 = vld [vmem:[%s13512_s1 + $0x5f4] ss:$8 sps:$4 sm:$0xff]  }
 0x112   :  { %v9226_v63 = vld [vmem:[%s13512_s1 + $0x14f4] ss:$8 sps:$4 sm:$0xff]  }
 0x113   :  { %6209 = vmatpush1.bf16.msra.mxu1 %v9059_v8  ;;  %v9137_v8 = vld [vmem:[%s13512_s1 + $0x510] ss:$8 sps:$4 sm:$0xff]  }
 0x114   :  { %6854 = vmatpush1.bf16.msra.mxu0 %v9062_v9  ;;  %6210 = vmatprep.subr.bf16.mxu1 %v9067_v10  ;;  %v9140_v9 = vld [vmem:[%s13512_s1 + $0x1410] ss:$8 sps:$4 sm:$0xff]   ;;  %v9145_v10 = vld [vmem:[%s13512_s1 + $0x524] ss:$8 sps:$4 sm:$0xff]  }
 0x115   :  { %6855 = vmatprep.subr.bf16.mxu0 %v9070_v11  ;;  %v9148_v11 = vld [vmem:[%s13512_s1 + $0x1424] ss:$8 sps:$4 sm:$0xff]  }
 0x117   :  { %6211 = vmatpush1.bf16.msra.mxu1 %v9065_v12  ;;  %v9143_v12 = vld [vmem:[%s13512_s1 + $0x520] ss:$8 sps:$4 sm:$0xff]  }
 0x118   :  { %6856 = vmatpush1.bf16.msra.mxu0 %v9068_v13  ;;  %6212 = vmatprep.subr.bf16.mxu1 %v9073_v14  ;;  %v9146_v13 = vld [vmem:[%s13512_s1 + $0x1420] ss:$8 sps:$4 sm:$0xff]   ;;  %v9151_v14 = vld [vmem:[%s13512_s1 + $0x534] ss:$8 sps:$4 sm:$0xff]  }
 0x119   :  { %6857 = vmatprep.subr.bf16.mxu0 %v9076_v15  ;;  %v9154_v15 = vld [vmem:[%s13512_s1 + $0x1434] ss:$8 sps:$4 sm:$0xff]  }
 0x11b   :  { %6213 = vmatpush1.bf16.msra.mxu1 %v9071_v16  ;;  %v9149_v16 = vld [vmem:[%s13512_s1 + $0x530] ss:$8 sps:$4 sm:$0xff]  }
 0x11c   :  { %6858 = vmatpush1.bf16.msra.mxu0 %v9074_v17  ;;  %6214 = vmatprep.subr.bf16.mxu1 %v9079_v18  ;;  %v9152_v17 = vld [vmem:[%s13512_s1 + $0x1430] ss:$8 sps:$4 sm:$0xff]   ;;  %v9157_v18 = vld [vmem:[%s13512_s1 + $0x544] ss:$8 sps:$4 sm:$0xff]  }
 0x11d   :  { %6859 = vmatprep.subr.bf16.mxu0 %v9082_v19  ;;  %v9160_v19 = vld [vmem:[%s13512_s1 + $0x1444] ss:$8 sps:$4 sm:$0xff]  }
 0x11f   :  { %6215 = vmatpush1.bf16.msra.mxu1 %v9077_v20  ;;  %v9155_v20 = vld [vmem:[%s13512_s1 + $0x540] ss:$8 sps:$4 sm:$0xff]  }
 0x120   :  { %6860 = vmatpush1.bf16.msra.mxu0 %v9080_v21  ;;  %6216 = vmatprep.subr.bf16.mxu1 %v9085_v22  ;;  %v9158_v21 = vld [vmem:[%s13512_s1 + $0x1440] ss:$8 sps:$4 sm:$0xff]   ;;  %v9163_v22 = vld [vmem:[%s13512_s1 + $0x554] ss:$8 sps:$4 sm:$0xff]  }
 0x121   :  { %6861 = vmatprep.subr.bf16.mxu0 %v9088_v23  ;;  %v9166_v23 = vld [vmem:[%s13512_s1 + $0x1454] ss:$8 sps:$4 sm:$0xff]  }
 0x123   :  { %6217 = vmatpush1.bf16.msra.mxu1 %v9083_v24  ;;  %v9161_v24 = vld [vmem:[%s13512_s1 + $0x550] ss:$8 sps:$4 sm:$0xff]  }
 0x124   :  { %6862 = vmatpush1.bf16.msra.mxu0 %v9086_v25  ;;  %6218 = vmatprep.subr.bf16.mxu1 %v9091_v26  ;;  %v9164_v25 = vld [vmem:[%s13512_s1 + $0x1450] ss:$8 sps:$4 sm:$0xff]   ;;  %v9169_v26 = vld [vmem:[%s13512_s1 + $0x564] ss:$8 sps:$4 sm:$0xff]  }
 0x125   :  { %6863 = vmatprep.subr.bf16.mxu0 %v9094_v27  ;;  %v9172_v27 = vld [vmem:[%s13512_s1 + $0x1464] ss:$8 sps:$4 sm:$0xff]  }
 0x127   :  { %6219 = vmatpush1.bf16.msra.mxu1 %v9089_v28  ;;  %v9167_v28 = vld [vmem:[%s13512_s1 + $0x560] ss:$8 sps:$4 sm:$0xff]  }
 0x128   :  { %6864 = vmatpush1.bf16.msra.mxu0 %v9092_v29  ;;  %6220 = vmatprep.subr.bf16.mxu1 %v9097_v30  ;;  %v9170_v29 = vld [vmem:[%s13512_s1 + $0x1460] ss:$8 sps:$4 sm:$0xff]   ;;  %v9175_v30 = vld [vmem:[%s13512_s1 + $0x574] ss:$8 sps:$4 sm:$0xff]  }
 0x129   :  { %6865 = vmatprep.subr.bf16.mxu0 %v9100_v31  ;;  %v9178_v31 = vld [vmem:[%s13512_s1 + $0x1474] ss:$8 sps:$4 sm:$0xff]  }
 0x12b   :  { %6221 = vmatpush1.bf16.msra.mxu1 %v9095_v32  ;;  %v9173_v32 = vld [vmem:[%s13512_s1 + $0x570] ss:$8 sps:$4 sm:$0xff]  }
 0x12c   :  { %6866 = vmatpush1.bf16.msra.mxu0 %v9098_v33  ;;  %6222 = vmatprep.subr.bf16.mxu1 %v9103_v34  ;;  %v9176_v33 = vld [vmem:[%s13512_s1 + $0x1470] ss:$8 sps:$4 sm:$0xff]   ;;  %v9181_v34 = vld [vmem:[%s13512_s1 + $0x584] ss:$8 sps:$4 sm:$0xff]  }
 0x12d   :  { %6867 = vmatprep.subr.bf16.mxu0 %v9106_v35  ;;  %v9184_v35 = vld [vmem:[%s13512_s1 + $0x1484] ss:$8 sps:$4 sm:$0xff]  }
 0x12f   :  { %6223 = vmatpush1.bf16.msra.mxu1 %v9101_v36  ;;  %v9179_v36 = vld [vmem:[%s13512_s1 + $0x580] ss:$8 sps:$4 sm:$0xff]  }
 0x130   :  { %6868 = vmatpush1.bf16.msra.mxu0 %v9104_v37  ;;  %6224 = vmatprep.subr.bf16.mxu1 %v9109_v38  ;;  %v9182_v37 = vld [vmem:[%s13512_s1 + $0x1480] ss:$8 sps:$4 sm:$0xff]   ;;  %v9187_v38 = vld [vmem:[%s13512_s1 + $0x594] ss:$8 sps:$4 sm:$0xff]  }
 0x131   :  { %6869 = vmatprep.subr.bf16.mxu0 %v9112_v39  ;;  %v9190_v39 = vld [vmem:[%s13512_s1 + $0x1494] ss:$8 sps:$4 sm:$0xff]  }
 0x133   :  { %6225 = vmatpush1.bf16.msra.mxu1 %v9107_v40  ;;  %v9185_v40 = vld [vmem:[%s13512_s1 + $0x590] ss:$8 sps:$4 sm:$0xff]  }
 0x134   :  { %6870 = vmatpush1.bf16.msra.mxu0 %v9110_v41  ;;  %6226 = vmatprep.subr.bf16.mxu1 %v9115_v42  ;;  %v9188_v41 = vld [vmem:[%s13512_s1 + $0x1490] ss:$8 sps:$4 sm:$0xff]   ;;  %v9193_v42 = vld [vmem:[%s13512_s1 + $0x5a4] ss:$8 sps:$4 sm:$0xff]  }
 0x135   :  { %6871 = vmatprep.subr.bf16.mxu0 %v9118_v43  ;;  %v9196_v43 = vld [vmem:[%s13512_s1 + $0x14a4] ss:$8 sps:$4 sm:$0xff]  }
 0x137   :  { %6227 = vmatpush1.bf16.msra.mxu1 %v9113_v44  ;;  %v9191_v44 = vld [vmem:[%s13512_s1 + $0x5a0] ss:$8 sps:$4 sm:$0xff]  }
 0x138   :  { %6872 = vmatpush1.bf16.msra.mxu0 %v9116_v45  ;;  %6228 = vmatprep.subr.bf16.mxu1 %v9121_v46  ;;  %v9194_v45 = vld [vmem:[%s13512_s1 + $0x14a0] ss:$8 sps:$4 sm:$0xff]   ;;  %v9199_v46 = vld [vmem:[%s13512_s1 + $0x5b4] ss:$8 sps:$4 sm:$0xff]  }
 0x139   :  { %6873 = vmatprep.subr.bf16.mxu0 %v9124_v47  ;;  %v9202_v47 = vld [vmem:[%s13512_s1 + $0x14b4] ss:$8 sps:$4 sm:$0xff]  }
 0x13b   :  { %6229 = vmatpush1.bf16.msra.mxu1 %v9119_v48  ;;  %v9197_v48 = vld [vmem:[%s13512_s1 + $0x5b0] ss:$8 sps:$4 sm:$0xff]  }
 0x13c   :  { %6874 = vmatpush1.bf16.msra.mxu0 %v9122_v49  ;;  %6230 = vmatprep.subr.bf16.mxu1 %v9127_v50  ;;  %v9200_v49 = vld [vmem:[%s13512_s1 + $0x14b0] ss:$8 sps:$4 sm:$0xff]   ;;  %v9205_v50 = vld [vmem:[%s13512_s1 + $0x5c4] ss:$8 sps:$4 sm:$0xff]  }
 0x13d   :  { %6875 = vmatprep.subr.bf16.mxu0 %v9130_v51  ;;  %v9208_v51 = vld [vmem:[%s13512_s1 + $0x14c4] ss:$8 sps:$4 sm:$0xff]  }
 0x13f   :  { %6231 = vmatpush1.bf16.msra.mxu1 %v9125_v52  ;;  %v9203_v52 = vld [vmem:[%s13512_s1 + $0x5c0] ss:$8 sps:$4 sm:$0xff]  }
 0x140   :  { %6876 = vmatpush1.bf16.msra.mxu0 %v9128_v53  ;;  %6243 = vmatprep.subr.bf16.mxu1 %v9133_v56  ;;  %v9206_v53 = vld [vmem:[%s13512_s1 + $0x14c0] ss:$8 sps:$4 sm:$0xff]   ;;  %v9209_v56 = vld [vmem:[%s13512_s1 + $0x5d0] ss:$8 sps:$4 sm:$0xff]  }
 0x141   :  { %6888 = vmatprep.subr.bf16.mxu0 %v9136_v57  ;;  %v9212_v57 = vld [vmem:[%s13512_s1 + $0x14d0] ss:$8 sps:$4 sm:$0xff]  }
 0x142   :  { %6233 = vmatmul.mubr.bf16.vlgmr.msra.gmra.mrb[0].mxu1 %v151_v0  ;;  %v9221_v0 = vld [vmem:[%s13512_s1 + $0x5f0] ss:$8 sps:$4 sm:$0xff]  }
 0x143   :  { %6878 = vmatmul.mubr.bf16.vlgmr.msra.gmra.mrb[0].mxu0 %v181_v1  ;;  %6244 = vmatpush1.bf16.msra.mxu1 %v9131_v2  ;;  %v9224_v1 = vld [vmem:[%s13512_s1 + $0x14f0] ss:$8 sps:$4 sm:$0xff]  }
 0x144   :  { %6889 = vmatpush1.bf16.msra.mxu0 %v9134_v3  ;;  %6245 = vmatprep.subr.bf16.mxu1 %v9139_v4  ;;  %v31_v2 = vld [vmem:[%s13513_s0 + $0x50] sm:$0xff]  ;;  %v92_v3 = vld [vmem:[%s13513_s0 + $0x238] sm:$0xff]  ;;  %v9229_v4 = vld [vmem:[%s13512_s1 + $0x604] ss:$8 sps:$4 sm:$0xff]  }
 0x145   :  { %6890 = vmatprep.subr.bf16.mxu0 %v9142_v5  ;;  %6275 = vmatprep.mubr.bf16.mxu1 %v154_v6  ;;  %v9232_v5 = vld [vmem:[%s13512_s1 + $0x1504] ss:$8 sps:$4 sm:$0xff]  }
 0x146   :  { %6920 = vmatprep.mubr.bf16.mxu0 %v184_v7  ;;  %v61_v6 = vld [vmem:[%s13513_s0 + $0x140] sm:$0xff]  ;;  %v122_v7 = vld [vmem:[%s13513_s0 + $0x328] sm:$0xff] }
 0x147   :  { %6246 = vmatpush1.bf16.msra.mxu1 %v9137_v8  ;;  %v34_v8 = vld [vmem:[%s13513_s0 + $0x68] sm:$0xff] }
 0x148   :  { %6891 = vmatpush1.bf16.msra.mxu0 %v9140_v9  ;;  %6247 = vmatprep.subr.bf16.mxu1 %v9145_v10  ;;  %v95_v9 = vld [vmem:[%s13513_s0 + $0x250] sm:$0xff]  ;;  %v64_v10 = vld [vmem:[%s13513_s0 + $0x158] sm:$0xff] }
 0x149   :  { %6892 = vmatprep.subr.bf16.mxu0 %v9148_v11  ;;  %v125_v11 = vld [vmem:[%s13513_s0 + $0x340] sm:$0xff] }
 0x14b   :  { %6248 = vmatpush1.bf16.msra.mxu1 %v9143_v12  ;;  %v153_v12 = vpack.c.bf16 %v92_v3, %v31_v2  ;;  %v9307_v2 = vld [vmem:[%s13512_s1 + $0x6d4] ss:$8 sps:$4 sm:$0xff]  }
 0x14c   :  { %6893 = vmatpush1.bf16.msra.mxu0 %v9146_v13  ;;  %6249 = vmatprep.subr.bf16.mxu1 %v9151_v14  ;;  %v183_v13 = vpack.c.bf16 %v122_v7, %v61_v6  ;;  %v9227_v14 = vld [vmem:[%s13512_s1 + $0x600] ss:$8 sps:$4 sm:$0xff]   ;;  %v9310_v3 = vld [vmem:[%s13512_s1 + $0x15d4] ss:$8 sps:$4 sm:$0xff]   ;;  %v9313_v6 = vld [vmem:[%s13512_s1 + $0x6e4] ss:$8 sps:$4 sm:$0xff]  }
 0x14d   :  { %6894 = vmatprep.subr.bf16.mxu0 %v9154_v15  ;;  %v9230_v15 = vld [vmem:[%s13512_s1 + $0x1500] ss:$8 sps:$4 sm:$0xff]   ;;  %v9316_v7 = vld [vmem:[%s13512_s1 + $0x15e4] ss:$8 sps:$4 sm:$0xff]  }
 0x14f   :  { %6250 = vmatpush1.bf16.msra.mxu1 %v9149_v16  ;;  %v9235_v16 = vld [vmem:[%s13512_s1 + $0x614] ss:$8 sps:$4 sm:$0xff]  }
 0x150   :  { %6895 = vmatpush1.bf16.msra.mxu0 %v9152_v17  ;;  %6251 = vmatprep.subr.bf16.mxu1 %v9157_v18  ;;  %v9238_v17 = vld [vmem:[%s13512_s1 + $0x1514] ss:$8 sps:$4 sm:$0xff]   ;;  %v156_v18 = vpack.c.bf16 %v95_v9, %v34_v8  ;;  %v9311_v8 = vld [vmem:[%s13512_s1 + $0x6e0] ss:$8 sps:$4 sm:$0xff]  }
 0x151   :  { %6896 = vmatprep.subr.bf16.mxu0 %v9160_v19  ;;  %v186_v19 = vpack.c.bf16 %v125_v11, %v64_v10  ;;  %v9314_v9 = vld [vmem:[%s13512_s1 + $0x15e0] ss:$8 sps:$4 sm:$0xff]   ;;  %v9319_v10 = vld [vmem:[%s13512_s1 + $0x6f4] ss:$8 sps:$4 sm:$0xff]  }
 0x152   :  { %v9322_v11 = vld [vmem:[%s13512_s1 + $0x15f4] ss:$8 sps:$4 sm:$0xff]  }
 0x153   :  { %6252 = vmatpush1.bf16.msra.mxu1 %v9155_v20  ;;  %v9233_v20 = vld [vmem:[%s13512_s1 + $0x610] ss:$8 sps:$4 sm:$0xff]  }
 0x154   :  { %6897 = vmatpush1.bf16.msra.mxu0 %v9158_v21  ;;  %6253 = vmatprep.subr.bf16.mxu1 %v9163_v22  ;;  %v9236_v21 = vld [vmem:[%s13512_s1 + $0x1510] ss:$8 sps:$4 sm:$0xff]   ;;  %v9241_v22 = vld [vmem:[%s13512_s1 + $0x624] ss:$8 sps:$4 sm:$0xff]  }
 0x155   :  { %6898 = vmatprep.subr.bf16.mxu0 %v9166_v23  ;;  %v9244_v23 = vld [vmem:[%s13512_s1 + $0x1524] ss:$8 sps:$4 sm:$0xff]  }
 0x157   :  { %6254 = vmatpush1.bf16.msra.mxu1 %v9161_v24  ;;  %v9239_v24 = vld [vmem:[%s13512_s1 + $0x620] ss:$8 sps:$4 sm:$0xff]  }
 0x158   :  { %6899 = vmatpush1.bf16.msra.mxu0 %v9164_v25  ;;  %6255 = vmatprep.subr.bf16.mxu1 %v9169_v26  ;;  %v9242_v25 = vld [vmem:[%s13512_s1 + $0x1520] ss:$8 sps:$4 sm:$0xff]   ;;  %v9247_v26 = vld [vmem:[%s13512_s1 + $0x634] ss:$8 sps:$4 sm:$0xff]  }
 0x159   :  { %6900 = vmatprep.subr.bf16.mxu0 %v9172_v27  ;;  %v9250_v27 = vld [vmem:[%s13512_s1 + $0x1534] ss:$8 sps:$4 sm:$0xff]  }
 0x15b   :  { %6256 = vmatpush1.bf16.msra.mxu1 %v9167_v28  ;;  %v9245_v28 = vld [vmem:[%s13512_s1 + $0x630] ss:$8 sps:$4 sm:$0xff]  }
 0x15c   :  { %6901 = vmatpush1.bf16.msra.mxu0 %v9170_v29  ;;  %6257 = vmatprep.subr.bf16.mxu1 %v9175_v30  ;;  %v9248_v29 = vld [vmem:[%s13512_s1 + $0x1530] ss:$8 sps:$4 sm:$0xff]   ;;  %v9253_v30 = vld [vmem:[%s13512_s1 + $0x644] ss:$8 sps:$4 sm:$0xff]  }
 0x15d   :  { %6902 = vmatprep.subr.bf16.mxu0 %v9178_v31  ;;  %v9256_v31 = vld [vmem:[%s13512_s1 + $0x1544] ss:$8 sps:$4 sm:$0xff]  }
 0x15f   :  { %6258 = vmatpush1.bf16.msra.mxu1 %v9173_v32  ;;  %v9251_v32 = vld [vmem:[%s13512_s1 + $0x640] ss:$8 sps:$4 sm:$0xff]  }
 0x160   :  { %6903 = vmatpush1.bf16.msra.mxu0 %v9176_v33  ;;  %6259 = vmatprep.subr.bf16.mxu1 %v9181_v34  ;;  %v9254_v33 = vld [vmem:[%s13512_s1 + $0x1540] ss:$8 sps:$4 sm:$0xff]   ;;  %v9259_v34 = vld [vmem:[%s13512_s1 + $0x654] ss:$8 sps:$4 sm:$0xff]  }
 0x161   :  { %6904 = vmatprep.subr.bf16.mxu0 %v9184_v35  ;;  %v9262_v35 = vld [vmem:[%s13512_s1 + $0x1554] ss:$8 sps:$4 sm:$0xff]  }
 0x163   :  { %6260 = vmatpush1.bf16.msra.mxu1 %v9179_v36  ;;  %v9257_v36 = vld [vmem:[%s13512_s1 + $0x650] ss:$8 sps:$4 sm:$0xff]  }
 0x164   :  { %6905 = vmatpush1.bf16.msra.mxu0 %v9182_v37  ;;  %6261 = vmatprep.subr.bf16.mxu1 %v9187_v38  ;;  %v9260_v37 = vld [vmem:[%s13512_s1 + $0x1550] ss:$8 sps:$4 sm:$0xff]   ;;  %v9265_v38 = vld [vmem:[%s13512_s1 + $0x664] ss:$8 sps:$4 sm:$0xff]  }
 0x165   :  { %6906 = vmatprep.subr.bf16.mxu0 %v9190_v39  ;;  %v9268_v39 = vld [vmem:[%s13512_s1 + $0x1564] ss:$8 sps:$4 sm:$0xff]  }
 0x167   :  { %6262 = vmatpush1.bf16.msra.mxu1 %v9185_v40  ;;  %v9263_v40 = vld [vmem:[%s13512_s1 + $0x660] ss:$8 sps:$4 sm:$0xff]  }
 0x168   :  { %6907 = vmatpush1.bf16.msra.mxu0 %v9188_v41  ;;  %6263 = vmatprep.subr.bf16.mxu1 %v9193_v42  ;;  %v9266_v41 = vld [vmem:[%s13512_s1 + $0x1560] ss:$8 sps:$4 sm:$0xff]   ;;  %v9271_v42 = vld [vmem:[%s13512_s1 + $0x674] ss:$8 sps:$4 sm:$0xff]  }
 0x169   :  { %6908 = vmatprep.subr.bf16.mxu0 %v9196_v43  ;;  %v9274_v43 = vld [vmem:[%s13512_s1 + $0x1574] ss:$8 sps:$4 sm:$0xff]  }
 0x16b   :  { %6264 = vmatpush1.bf16.msra.mxu1 %v9191_v44  ;;  %v9269_v44 = vld [vmem:[%s13512_s1 + $0x670] ss:$8 sps:$4 sm:$0xff]  }
 0x16c   :  { %6909 = vmatpush1.bf16.msra.mxu0 %v9194_v45  ;;  %6265 = vmatprep.subr.bf16.mxu1 %v9199_v46  ;;  %v9272_v45 = vld [vmem:[%s13512_s1 + $0x1570] ss:$8 sps:$4 sm:$0xff]   ;;  %v9277_v46 = vld [vmem:[%s13512_s1 + $0x684] ss:$8 sps:$4 sm:$0xff]  }
 0x16d   :  { %6910 = vmatprep.subr.bf16.mxu0 %v9202_v47  ;;  %v9280_v47 = vld [vmem:[%s13512_s1 + $0x1584] ss:$8 sps:$4 sm:$0xff]  }
 0x16f   :  { %6266 = vmatpush1.bf16.msra.mxu1 %v9197_v48  ;;  %v9275_v48 = vld [vmem:[%s13512_s1 + $0x680] ss:$8 sps:$4 sm:$0xff]  }
 0x170   :  { %6911 = vmatpush1.bf16.msra.mxu0 %v9200_v49  ;;  %6267 = vmatprep.subr.bf16.mxu1 %v9205_v50  ;;  %v9278_v49 = vld [vmem:[%s13512_s1 + $0x1580] ss:$8 sps:$4 sm:$0xff]   ;;  %v9283_v50 = vld [vmem:[%s13512_s1 + $0x694] ss:$8 sps:$4 sm:$0xff]  }
 0x171   :  { %6912 = vmatprep.subr.bf16.mxu0 %v9208_v51  ;;  %v9286_v51 = vld [vmem:[%s13512_s1 + $0x1594] ss:$8 sps:$4 sm:$0xff]  }
 0x173   :  { %6268 = vmatpush1.bf16.msra.mxu1 %v9203_v52  ;;  %v9281_v52 = vld [vmem:[%s13512_s1 + $0x690] ss:$8 sps:$4 sm:$0xff]  }
 0x174   :  { %6913 = vmatpush1.bf16.msra.mxu0 %v9206_v53  ;;  %6269 = vmatprep.subr.bf16.mxu1 %v9211_v54  ;;  %v9284_v53 = vld [vmem:[%s13512_s1 + $0x1590] ss:$8 sps:$4 sm:$0xff]   ;;  %v9289_v54 = vld [vmem:[%s13512_s1 + $0x6a4] ss:$8 sps:$4 sm:$0xff]  }
 0x175   :  { %6914 = vmatprep.subr.bf16.mxu0 %v9214_v55  ;;  %v9292_v55 = vld [vmem:[%s13512_s1 + $0x15a4] ss:$8 sps:$4 sm:$0xff]  }
 0x177   :  { %6270 = vmatpush1.bf16.msra.mxu1 %v9209_v56  ;;  %v9287_v56 = vld [vmem:[%s13512_s1 + $0x6a0] ss:$8 sps:$4 sm:$0xff]  }
 0x178   :  { %6915 = vmatpush1.bf16.msra.mxu0 %v9212_v57  ;;  %6271 = vmatprep.subr.bf16.mxu1 %v9217_v58  ;;  %v9290_v57 = vld [vmem:[%s13512_s1 + $0x15a0] ss:$8 sps:$4 sm:$0xff]   ;;  %v9295_v58 = vld [vmem:[%s13512_s1 + $0x6b4] ss:$8 sps:$4 sm:$0xff]  }
 0x179   :  { %6916 = vmatprep.subr.bf16.mxu0 %v9220_v59  ;;  %v9298_v59 = vld [vmem:[%s13512_s1 + $0x15b4] ss:$8 sps:$4 sm:$0xff]  }
 0x17b   :  { %6272 = vmatpush1.bf16.msra.mxu1 %v9215_v60  ;;  %v9293_v60 = vld [vmem:[%s13512_s1 + $0x6b0] ss:$8 sps:$4 sm:$0xff]  }
 0x17c   :  { %6917 = vmatpush1.bf16.msra.mxu0 %v9218_v61  ;;  %6273 = vmatprep.subr.bf16.mxu1 %v9223_v62  ;;  %v9296_v61 = vld [vmem:[%s13512_s1 + $0x15b0] ss:$8 sps:$4 sm:$0xff]   ;;  %v9301_v62 = vld [vmem:[%s13512_s1 + $0x6c4] ss:$8 sps:$4 sm:$0xff]  }
 0x17d   :  { %6918 = vmatprep.subr.bf16.mxu0 %v9226_v63  ;;  %v9304_v63 = vld [vmem:[%s13512_s1 + $0x15c4] ss:$8 sps:$4 sm:$0xff]  }
 0x17f   :  { %6274 = vmatpush1.bf16.msra.mxu1 %v9221_v0  ;;  %v9299_v0 = vld [vmem:[%s13512_s1 + $0x6c0] ss:$8 sps:$4 sm:$0xff]  }
 0x180   :  { %6919 = vmatpush1.bf16.msra.mxu0 %v9224_v1  ;;  %6286 = vmatprep.subr.bf16.mxu1 %v9229_v4  ;;  %v9302_v1 = vld [vmem:[%s13512_s1 + $0x15c0] ss:$8 sps:$4 sm:$0xff]   ;;  %v9305_v4 = vld [vmem:[%s13512_s1 + $0x6d0] ss:$8 sps:$4 sm:$0xff]  }
 0x181   :  { %6931 = vmatprep.subr.bf16.mxu0 %v9232_v5  ;;  %v9308_v5 = vld [vmem:[%s13512_s1 + $0x15d0] ss:$8 sps:$4 sm:$0xff]  }
 0x182   :  { %6276 = vmatmul.mubr.bf16.vlgmr.msra.gmra.mrb[0].mxu1 %v153_v12  ;;  %v9317_v12 = vld [vmem:[%s13512_s1 + $0x6f0] ss:$8 sps:$4 sm:$0xff]  }
 0x183   :  { %6921 = vmatmul.mubr.bf16.vlgmr.msra.gmra.mrb[0].mxu0 %v183_v13  ;;  %6287 = vmatpush1.bf16.msra.mxu1 %v9227_v14  ;;  %v9320_v13 = vld [vmem:[%s13512_s1 + $0x15f0] ss:$8 sps:$4 sm:$0xff]   ;;  %v33_v14 = vld [vmem:[%s13513_s0 + $0x60] sm:$0xff] }
 0x184   :  { %6932 = vmatpush1.bf16.msra.mxu0 %v9230_v15  ;;  %6288 = vmatprep.subr.bf16.mxu1 %v9235_v16  ;;  %v94_v15 = vld [vmem:[%s13513_s0 + $0x248] sm:$0xff] }
 0x185   :  { %6933 = vmatprep.subr.bf16.mxu0 %v9238_v17  ;;  %6318 = vmatprep.mubr.bf16.mxu1 %v156_v18  ;;  %v9325_v16 = vld [vmem:[%s13512_s1 + $0x704] ss:$8 sps:$4 sm:$0xff]   ;;  %v63_v18 = vld [vmem:[%s13513_s0 + $0x150] sm:$0xff] }
 0x186   :  { %6963 = vmatprep.mubr.bf16.mxu0 %v186_v19  ;;  %v9328_v17 = vld [vmem:[%s13512_s1 + $0x1604] ss:$8 sps:$4 sm:$0xff]   ;;  %v124_v19 = vld [vmem:[%s13513_s0 + $0x338] sm:$0xff] }
 0x187   :  { %6289 = vmatpush1.bf16.msra.mxu1 %v9233_v20  ;;  %v36_v20 = vld [vmem:[%s13513_s0 + $0x78] sm:$0xff] }
 0x188   :  { %6934 = vmatpush1.bf16.msra.mxu0 %v9236_v21  ;;  %6290 = vmatprep.subr.bf16.mxu1 %v9241_v22  ;;  %v97_v21 = vld [vmem:[%s13513_s0 + $0x260] sm:$0xff]  ;;  %v66_v22 = vld [vmem:[%s13513_s0 + $0x168] sm:$0xff] }
 0x189   :  { %6935 = vmatprep.subr.bf16.mxu0 %v9244_v23  ;;  %v127_v23 = vld [vmem:[%s13513_s0 + $0x350] sm:$0xff] }
 0x18b   :  { %6291 = vmatpush1.bf16.msra.mxu1 %v9239_v24  ;;  %v155_v24 = vpack.c.bf16 %v94_v15, %v33_v14  ;;  %v9403_v14 = vld [vmem:[%s13512_s1 + $0x7d4] ss:$8 sps:$4 sm:$0xff]  }
 0x18c   :  { %6936 = vmatpush1.bf16.msra.mxu0 %v9242_v25  ;;  %6292 = vmatprep.subr.bf16.mxu1 %v9247_v26  ;;  %v185_v25 = vpack.c.bf16 %v124_v19, %v63_v18  ;;  %v9323_v26 = vld [vmem:[%s13512_s1 + $0x700] ss:$8 sps:$4 sm:$0xff]   ;;  %v9406_v15 = vld [vmem:[%s13512_s1 + $0x16d4] ss:$8 sps:$4 sm:$0xff]   ;;  %v9409_v18 = vld [vmem:[%s13512_s1 + $0x7e4] ss:$8 sps:$4 sm:$0xff]  }
 0x18d   :  { %6937 = vmatprep.subr.bf16.mxu0 %v9250_v27  ;;  %v9326_v27 = vld [vmem:[%s13512_s1 + $0x1600] ss:$8 sps:$4 sm:$0xff]   ;;  %v9412_v19 = vld [vmem:[%s13512_s1 + $0x16e4] ss:$8 sps:$4 sm:$0xff]  }
 0x18f   :  { %6293 = vmatpush1.bf16.msra.mxu1 %v9245_v28  ;;  %v9331_v28 = vld [vmem:[%s13512_s1 + $0x714] ss:$8 sps:$4 sm:$0xff]  }
 0x190   :  { %6938 = vmatpush1.bf16.msra.mxu0 %v9248_v29  ;;  %6294 = vmatprep.subr.bf16.mxu1 %v9253_v30  ;;  %v9334_v29 = vld [vmem:[%s13512_s1 + $0x1614] ss:$8 sps:$4 sm:$0xff]   ;;  %v158_v30 = vpack.c.bf16 %v97_v21, %v36_v20  ;;  %v9407_v20 = vld [vmem:[%s13512_s1 + $0x7e0] ss:$8 sps:$4 sm:$0xff]  }
 0x191   :  { %6939 = vmatprep.subr.bf16.mxu0 %v9256_v31  ;;  %v188_v31 = vpack.c.bf16 %v127_v23, %v66_v22  ;;  %v9410_v21 = vld [vmem:[%s13512_s1 + $0x16e0] ss:$8 sps:$4 sm:$0xff]   ;;  %v9415_v22 = vld [vmem:[%s13512_s1 + $0x7f4] ss:$8 sps:$4 sm:$0xff]  }
 0x192   :  { %v9418_v23 = vld [vmem:[%s13512_s1 + $0x16f4] ss:$8 sps:$4 sm:$0xff]  }
 0x193   :  { %6295 = vmatpush1.bf16.msra.mxu1 %v9251_v32  ;;  %v9329_v32 = vld [vmem:[%s13512_s1 + $0x710] ss:$8 sps:$4 sm:$0xff]  }
 0x194   :  { %6940 = vmatpush1.bf16.msra.mxu0 %v9254_v33  ;;  %6296 = vmatprep.subr.bf16.mxu1 %v9259_v34  ;;  %v9332_v33 = vld [vmem:[%s13512_s1 + $0x1610] ss:$8 sps:$4 sm:$0xff]   ;;  %v9337_v34 = vld [vmem:[%s13512_s1 + $0x724] ss:$8 sps:$4 sm:$0xff]  }
 0x195   :  { %6941 = vmatprep.subr.bf16.mxu0 %v9262_v35  ;;  %v9340_v35 = vld [vmem:[%s13512_s1 + $0x1624] ss:$8 sps:$4 sm:$0xff]  }
 0x197   :  { %6297 = vmatpush1.bf16.msra.mxu1 %v9257_v36  ;;  %v9335_v36 = vld [vmem:[%s13512_s1 + $0x720] ss:$8 sps:$4 sm:$0xff]  }
 0x198   :  { %6942 = vmatpush1.bf16.msra.mxu0 %v9260_v37  ;;  %6298 = vmatprep.subr.bf16.mxu1 %v9265_v38  ;;  %v9338_v37 = vld [vmem:[%s13512_s1 + $0x1620] ss:$8 sps:$4 sm:$0xff]   ;;  %v9343_v38 = vld [vmem:[%s13512_s1 + $0x734] ss:$8 sps:$4 sm:$0xff]  }
 0x199   :  { %6943 = vmatprep.subr.bf16.mxu0 %v9268_v39  ;;  %v9346_v39 = vld [vmem:[%s13512_s1 + $0x1634] ss:$8 sps:$4 sm:$0xff]  }
 0x19b   :  { %6299 = vmatpush1.bf16.msra.mxu1 %v9263_v40  ;;  %v9341_v40 = vld [vmem:[%s13512_s1 + $0x730] ss:$8 sps:$4 sm:$0xff]  }
 0x19c   :  { %6944 = vmatpush1.bf16.msra.mxu0 %v9266_v41  ;;  %6300 = vmatprep.subr.bf16.mxu1 %v9271_v42  ;;  %v9344_v41 = vld [vmem:[%s13512_s1 + $0x1630] ss:$8 sps:$4 sm:$0xff]   ;;  %v9349_v42 = vld [vmem:[%s13512_s1 + $0x744] ss:$8 sps:$4 sm:$0xff]  }
 0x19d   :  { %6945 = vmatprep.subr.bf16.mxu0 %v9274_v43  ;;  %v9352_v43 = vld [vmem:[%s13512_s1 + $0x1644] ss:$8 sps:$4 sm:$0xff]  }
 0x19f   :  { %6301 = vmatpush1.bf16.msra.mxu1 %v9269_v44  ;;  %v9347_v44 = vld [vmem:[%s13512_s1 + $0x740] ss:$8 sps:$4 sm:$0xff]  }
 0x1a0   :  { %6946 = vmatpush1.bf16.msra.mxu0 %v9272_v45  ;;  %6302 = vmatprep.subr.bf16.mxu1 %v9277_v46  ;;  %v9350_v45 = vld [vmem:[%s13512_s1 + $0x1640] ss:$8 sps:$4 sm:$0xff]   ;;  %v9355_v46 = vld [vmem:[%s13512_s1 + $0x754] ss:$8 sps:$4 sm:$0xff]  }
 0x1a1   :  { %6947 = vmatprep.subr.bf16.mxu0 %v9280_v47  ;;  %v9358_v47 = vld [vmem:[%s13512_s1 + $0x1654] ss:$8 sps:$4 sm:$0xff]  }
 0x1a3   :  { %6303 = vmatpush1.bf16.msra.mxu1 %v9275_v48  ;;  %v9353_v48 = vld [vmem:[%s13512_s1 + $0x750] ss:$8 sps:$4 sm:$0xff]  }
 0x1a4   :  { %6948 = vmatpush1.bf16.msra.mxu0 %v9278_v49  ;;  %6304 = vmatprep.subr.bf16.mxu1 %v9283_v50  ;;  %v9356_v49 = vld [vmem:[%s13512_s1 + $0x1650] ss:$8 sps:$4 sm:$0xff]   ;;  %v9361_v50 = vld [vmem:[%s13512_s1 + $0x764] ss:$8 sps:$4 sm:$0xff]  }
 0x1a5   :  { %6949 = vmatprep.subr.bf16.mxu0 %v9286_v51  ;;  %v9364_v51 = vld [vmem:[%s13512_s1 + $0x1664] ss:$8 sps:$4 sm:$0xff]  }
 0x1a7   :  { %6305 = vmatpush1.bf16.msra.mxu1 %v9281_v52  ;;  %v9359_v52 = vld [vmem:[%s13512_s1 + $0x760] ss:$8 sps:$4 sm:$0xff]  }
 0x1a8   :  { %6950 = vmatpush1.bf16.msra.mxu0 %v9284_v53  ;;  %6306 = vmatprep.subr.bf16.mxu1 %v9289_v54  ;;  %v9362_v53 = vld [vmem:[%s13512_s1 + $0x1660] ss:$8 sps:$4 sm:$0xff]   ;;  %v9367_v54 = vld [vmem:[%s13512_s1 + $0x774] ss:$8 sps:$4 sm:$0xff]  }
 0x1a9   :  { %6951 = vmatprep.subr.bf16.mxu0 %v9292_v55  ;;  %v9370_v55 = vld [vmem:[%s13512_s1 + $0x1674] ss:$8 sps:$4 sm:$0xff]  }
 0x1ab   :  { %6307 = vmatpush1.bf16.msra.mxu1 %v9287_v56  ;;  %v9365_v56 = vld [vmem:[%s13512_s1 + $0x770] ss:$8 sps:$4 sm:$0xff]  }
 0x1ac   :  { %6952 = vmatpush1.bf16.msra.mxu0 %v9290_v57  ;;  %6308 = vmatprep.subr.bf16.mxu1 %v9295_v58  ;;  %v9368_v57 = vld [vmem:[%s13512_s1 + $0x1670] ss:$8 sps:$4 sm:$0xff]   ;;  %v9373_v58 = vld [vmem:[%s13512_s1 + $0x784] ss:$8 sps:$4 sm:$0xff]  }
 0x1ad   :  { %6953 = vmatprep.subr.bf16.mxu0 %v9298_v59  ;;  %v9376_v59 = vld [vmem:[%s13512_s1 + $0x1684] ss:$8 sps:$4 sm:$0xff]  }
 0x1af   :  { %6309 = vmatpush1.bf16.msra.mxu1 %v9293_v60  ;;  %v9371_v60 = vld [vmem:[%s13512_s1 + $0x780] ss:$8 sps:$4 sm:$0xff]  }
 0x1b0   :  { %6954 = vmatpush1.bf16.msra.mxu0 %v9296_v61  ;;  %6310 = vmatprep.subr.bf16.mxu1 %v9301_v62  ;;  %v9374_v61 = vld [vmem:[%s13512_s1 + $0x1680] ss:$8 sps:$4 sm:$0xff]   ;;  %v9379_v62 = vld [vmem:[%s13512_s1 + $0x794] ss:$8 sps:$4 sm:$0xff]  }
 0x1b1   :  { %6955 = vmatprep.subr.bf16.mxu0 %v9304_v63  ;;  %v9382_v63 = vld [vmem:[%s13512_s1 + $0x1694] ss:$8 sps:$4 sm:$0xff]  }
 0x1b3   :  { %6311 = vmatpush1.bf16.msra.mxu1 %v9299_v0  ;;  %v9377_v0 = vld [vmem:[%s13512_s1 + $0x790] ss:$8 sps:$4 sm:$0xff]  }
 0x1b4   :  { %6956 = vmatpush1.bf16.msra.mxu0 %v9302_v1  ;;  %6312 = vmatprep.subr.bf16.mxu1 %v9307_v2  ;;  %v9380_v1 = vld [vmem:[%s13512_s1 + $0x1690] ss:$8 sps:$4 sm:$0xff]   ;;  %v9385_v2 = vld [vmem:[%s13512_s1 + $0x7a4] ss:$8 sps:$4 sm:$0xff]  }
 0x1b5   :  { %6957 = vmatprep.subr.bf16.mxu0 %v9310_v3  ;;  %v9388_v3 = vld [vmem:[%s13512_s1 + $0x16a4] ss:$8 sps:$4 sm:$0xff]  }
 0x1b7   :  { %6313 = vmatpush1.bf16.msra.mxu1 %v9305_v4  ;;  %v9383_v4 = vld [vmem:[%s13512_s1 + $0x7a0] ss:$8 sps:$4 sm:$0xff]  }
 0x1b8   :  { %6958 = vmatpush1.bf16.msra.mxu0 %v9308_v5  ;;  %6314 = vmatprep.subr.bf16.mxu1 %v9313_v6  ;;  %v9386_v5 = vld [vmem:[%s13512_s1 + $0x16a0] ss:$8 sps:$4 sm:$0xff]   ;;  %v9391_v6 = vld [vmem:[%s13512_s1 + $0x7b4] ss:$8 sps:$4 sm:$0xff]  }
 0x1b9   :  { %6959 = vmatprep.subr.bf16.mxu0 %v9316_v7  ;;  %v9394_v7 = vld [vmem:[%s13512_s1 + $0x16b4] ss:$8 sps:$4 sm:$0xff]  }
 0x1bb   :  { %6315 = vmatpush1.bf16.msra.mxu1 %v9311_v8  ;;  %v9389_v8 = vld [vmem:[%s13512_s1 + $0x7b0] ss:$8 sps:$4 sm:$0xff]  }
 0x1bc   :  { %6960 = vmatpush1.bf16.msra.mxu0 %v9314_v9  ;;  %6316 = vmatprep.subr.bf16.mxu1 %v9319_v10  ;;  %v9392_v9 = vld [vmem:[%s13512_s1 + $0x16b0] ss:$8 sps:$4 sm:$0xff]   ;;  %v9397_v10 = vld [vmem:[%s13512_s1 + $0x7c4] ss:$8 sps:$4 sm:$0xff]  }
 0x1bd   :  { %6961 = vmatprep.subr.bf16.mxu0 %v9322_v11  ;;  %v9400_v11 = vld [vmem:[%s13512_s1 + $0x16c4] ss:$8 sps:$4 sm:$0xff]  }
 0x1bf   :  { %6317 = vmatpush1.bf16.msra.mxu1 %v9317_v12  ;;  %v9395_v12 = vld [vmem:[%s13512_s1 + $0x7c0] ss:$8 sps:$4 sm:$0xff]  }
 0x1c0   :  { %6962 = vmatpush1.bf16.msra.mxu0 %v9320_v13  ;;  %6329 = vmatprep.subr.bf16.mxu1 %v9325_v16  ;;  %v9398_v13 = vld [vmem:[%s13512_s1 + $0x16c0] ss:$8 sps:$4 sm:$0xff]   ;;  %v9401_v16 = vld [vmem:[%s13512_s1 + $0x7d0] ss:$8 sps:$4 sm:$0xff]  }
 0x1c1   :  { %6974 = vmatprep.subr.bf16.mxu0 %v9328_v17  ;;  %v9404_v17 = vld [vmem:[%s13512_s1 + $0x16d0] ss:$8 sps:$4 sm:$0xff]  }
 0x1c2   :  { %6319 = vmatmul.mubr.bf16.vlgmr.msra.gmra.mrb[0].mxu1 %v155_v24  ;;  %v9413_v24 = vld [vmem:[%s13512_s1 + $0x7f0] ss:$8 sps:$4 sm:$0xff]  }
 0x1c3   :  { %6964 = vmatmul.mubr.bf16.vlgmr.msra.gmra.mrb[0].mxu0 %v185_v25  ;;  %6330 = vmatpush1.bf16.msra.mxu1 %v9323_v26  ;;  %v9416_v25 = vld [vmem:[%s13512_s1 + $0x16f0] ss:$8 sps:$4 sm:$0xff]  }
 0x1c4   :  { %6975 = vmatpush1.bf16.msra.mxu0 %v9326_v27  ;;  %6331 = vmatprep.subr.bf16.mxu1 %v9331_v28  ;;  %v35_v26 = vld [vmem:[%s13513_s0 + $0x70] sm:$0xff]  ;;  %v96_v27 = vld [vmem:[%s13513_s0 + $0x258] sm:$0xff]  ;;  %v9421_v28 = vld [vmem:[%s13512_s1 + $0x804] ss:$8 sps:$4 sm:$0xff]  }
 0x1c5   :  { %6976 = vmatprep.subr.bf16.mxu0 %v9334_v29  ;;  %6361 = vmatprep.mubr.bf16.mxu1 %v158_v30  ;;  %v9424_v29 = vld [vmem:[%s13512_s1 + $0x1704] ss:$8 sps:$4 sm:$0xff]  }
 0x1c6   :  { %7006 = vmatprep.mubr.bf16.mxu0 %v188_v31  ;;  %v65_v30 = vld [vmem:[%s13513_s0 + $0x160] sm:$0xff]  ;;  %v126_v31 = vld [vmem:[%s13513_s0 + $0x348] sm:$0xff] }
 0x1c7   :  { %6332 = vmatpush1.bf16.msra.mxu1 %v9329_v32  ;;  %v38_v32 = vld [vmem:[%s13513_s0 + $0x88] sm:$0xff] }
 0x1c8   :  { %6977 = vmatpush1.bf16.msra.mxu0 %v9332_v33  ;;  %6333 = vmatprep.subr.bf16.mxu1 %v9337_v34  ;;  %v99_v33 = vld [vmem:[%s13513_s0 + $0x270] sm:$0xff]  ;;  %v68_v34 = vld [vmem:[%s13513_s0 + $0x178] sm:$0xff] }
 0x1c9   :  { %6978 = vmatprep.subr.bf16.mxu0 %v9340_v35  ;;  %v129_v35 = vld [vmem:[%s13513_s0 + $0x360] sm:$0xff] }
 0x1cb   :  { %6334 = vmatpush1.bf16.msra.mxu1 %v9335_v36  ;;  %v157_v36 = vpack.c.bf16 %v96_v27, %v35_v26  ;;  %v9499_v26 = vld [vmem:[%s13512_s1 + $0x8d4] ss:$8 sps:$4 sm:$0xff]  }
 0x1cc   :  { %6979 = vmatpush1.bf16.msra.mxu0 %v9338_v37  ;;  %6335 = vmatprep.subr.bf16.mxu1 %v9343_v38  ;;  %v187_v37 = vpack.c.bf16 %v126_v31, %v65_v30  ;;  %v9419_v38 = vld [vmem:[%s13512_s1 + $0x800] ss:$8 sps:$4 sm:$0xff]   ;;  %v9502_v27 = vld [vmem:[%s13512_s1 + $0x17d4] ss:$8 sps:$4 sm:$0xff]   ;;  %v9505_v30 = vld [vmem:[%s13512_s1 + $0x8e4] ss:$8 sps:$4 sm:$0xff]  }
 0x1cd   :  { %6980 = vmatprep.subr.bf16.mxu0 %v9346_v39  ;;  %v9422_v39 = vld [vmem:[%s13512_s1 + $0x1700] ss:$8 sps:$4 sm:$0xff]   ;;  %v9508_v31 = vld [vmem:[%s13512_s1 + $0x17e4] ss:$8 sps:$4 sm:$0xff]  }
 0x1cf   :  { %6336 = vmatpush1.bf16.msra.mxu1 %v9341_v40  ;;  %v9427_v40 = vld [vmem:[%s13512_s1 + $0x814] ss:$8 sps:$4 sm:$0xff]  }
 0x1d0   :  { %6981 = vmatpush1.bf16.msra.mxu0 %v9344_v41  ;;  %6337 = vmatprep.subr.bf16.mxu1 %v9349_v42  ;;  %v9430_v41 = vld [vmem:[%s13512_s1 + $0x1714] ss:$8 sps:$4 sm:$0xff]   ;;  %v160_v42 = vpack.c.bf16 %v99_v33, %v38_v32  ;;  %v9503_v32 = vld [vmem:[%s13512_s1 + $0x8e0] ss:$8 sps:$4 sm:$0xff]  }
 0x1d1   :  { %6982 = vmatprep.subr.bf16.mxu0 %v9352_v43  ;;  %v190_v43 = vpack.c.bf16 %v129_v35, %v68_v34  ;;  %v9506_v33 = vld [vmem:[%s13512_s1 + $0x17e0] ss:$8 sps:$4 sm:$0xff]   ;;  %v9511_v34 = vld [vmem:[%s13512_s1 + $0x8f4] ss:$8 sps:$4 sm:$0xff]  }
 0x1d2   :  { %v9514_v35 = vld [vmem:[%s13512_s1 + $0x17f4] ss:$8 sps:$4 sm:$0xff]  }
 0x1d3   :  { %6338 = vmatpush1.bf16.msra.mxu1 %v9347_v44  ;;  %v9425_v44 = vld [vmem:[%s13512_s1 + $0x810] ss:$8 sps:$4 sm:$0xff]  }
 0x1d4   :  { %6983 = vmatpush1.bf16.msra.mxu0 %v9350_v45  ;;  %6339 = vmatprep.subr.bf16.mxu1 %v9355_v46  ;;  %v9428_v45 = vld [vmem:[%s13512_s1 + $0x1710] ss:$8 sps:$4 sm:$0xff]   ;;  %v9433_v46 = vld [vmem:[%s13512_s1 + $0x824] ss:$8 sps:$4 sm:$0xff]  }
 0x1d5   :  { %6984 = vmatprep.subr.bf16.mxu0 %v9358_v47  ;;  %v9436_v47 = vld [vmem:[%s13512_s1 + $0x1724] ss:$8 sps:$4 sm:$0xff]  }
 0x1d7   :  { %6340 = vmatpush1.bf16.msra.mxu1 %v9353_v48  ;;  %v9431_v48 = vld [vmem:[%s13512_s1 + $0x820] ss:$8 sps:$4 sm:$0xff]  }
 0x1d8   :  { %6985 = vmatpush1.bf16.msra.mxu0 %v9356_v49  ;;  %6341 = vmatprep.subr.bf16.mxu1 %v9361_v50  ;;  %v9434_v49 = vld [vmem:[%s13512_s1 + $0x1720] ss:$8 sps:$4 sm:$0xff]   ;;  %v9439_v50 = vld [vmem:[%s13512_s1 + $0x834] ss:$8 sps:$4 sm:$0xff]  }
 0x1d9   :  { %6986 = vmatprep.subr.bf16.mxu0 %v9364_v51  ;;  %v9442_v51 = vld [vmem:[%s13512_s1 + $0x1734] ss:$8 sps:$4 sm:$0xff]  }
 0x1db   :  { %6342 = vmatpush1.bf16.msra.mxu1 %v9359_v52  ;;  %v9437_v52 = vld [vmem:[%s13512_s1 + $0x830] ss:$8 sps:$4 sm:$0xff]  }
 0x1dc   :  { %6987 = vmatpush1.bf16.msra.mxu0 %v9362_v53  ;;  %6343 = vmatprep.subr.bf16.mxu1 %v9367_v54  ;;  %v9440_v53 = vld [vmem:[%s13512_s1 + $0x1730] ss:$8 sps:$4 sm:$0xff]   ;;  %v9445_v54 = vld [vmem:[%s13512_s1 + $0x844] ss:$8 sps:$4 sm:$0xff]  }
 0x1dd   :  { %6988 = vmatprep.subr.bf16.mxu0 %v9370_v55  ;;  %v9448_v55 = vld [vmem:[%s13512_s1 + $0x1744] ss:$8 sps:$4 sm:$0xff]  }
 0x1df   :  { %6344 = vmatpush1.bf16.msra.mxu1 %v9365_v56  ;;  %v9443_v56 = vld [vmem:[%s13512_s1 + $0x840] ss:$8 sps:$4 sm:$0xff]  }
 0x1e0   :  { %6989 = vmatpush1.bf16.msra.mxu0 %v9368_v57  ;;  %6345 = vmatprep.subr.bf16.mxu1 %v9373_v58  ;;  %v9446_v57 = vld [vmem:[%s13512_s1 + $0x1740] ss:$8 sps:$4 sm:$0xff]   ;;  %v9451_v58 = vld [vmem:[%s13512_s1 + $0x854] ss:$8 sps:$4 sm:$0xff]  }
 0x1e1   :  { %6990 = vmatprep.subr.bf16.mxu0 %v9376_v59  ;;  %v9454_v59 = vld [vmem:[%s13512_s1 + $0x1754] ss:$8 sps:$4 sm:$0xff]  }
 0x1e3   :  { %6346 = vmatpush1.bf16.msra.mxu1 %v9371_v60  ;;  %v9449_v60 = vld [vmem:[%s13512_s1 + $0x850] ss:$8 sps:$4 sm:$0xff]  }
 0x1e4   :  { %6991 = vmatpush1.bf16.msra.mxu0 %v9374_v61  ;;  %6347 = vmatprep.subr.bf16.mxu1 %v9379_v62  ;;  %v9452_v61 = vld [vmem:[%s13512_s1 + $0x1750] ss:$8 sps:$4 sm:$0xff]   ;;  %v9457_v62 = vld [vmem:[%s13512_s1 + $0x864] ss:$8 sps:$4 sm:$0xff]  }
 0x1e5   :  { %6992 = vmatprep.subr.bf16.mxu0 %v9382_v63  ;;  %v9460_v63 = vld [vmem:[%s13512_s1 + $0x1764] ss:$8 sps:$4 sm:$0xff]  }
 0x1e7   :  { %6348 = vmatpush1.bf16.msra.mxu1 %v9377_v0  ;;  %v9455_v0 = vld [vmem:[%s13512_s1 + $0x860] ss:$8 sps:$4 sm:$0xff]  }
 0x1e8   :  { %6993 = vmatpush1.bf16.msra.mxu0 %v9380_v1  ;;  %6349 = vmatprep.subr.bf16.mxu1 %v9385_v2  ;;  %v9458_v1 = vld [vmem:[%s13512_s1 + $0x1760] ss:$8 sps:$4 sm:$0xff]   ;;  %v9463_v2 = vld [vmem:[%s13512_s1 + $0x874] ss:$8 sps:$4 sm:$0xff]  }
 0x1e9   :  { %6994 = vmatprep.subr.bf16.mxu0 %v9388_v3  ;;  %v9466_v3 = vld [vmem:[%s13512_s1 + $0x1774] ss:$8 sps:$4 sm:$0xff]  }
 0x1eb   :  { %6350 = vmatpush1.bf16.msra.mxu1 %v9383_v4  ;;  %v9461_v4 = vld [vmem:[%s13512_s1 + $0x870] ss:$8 sps:$4 sm:$0xff]  }
 0x1ec   :  { %6995 = vmatpush1.bf16.msra.mxu0 %v9386_v5  ;;  %6351 = vmatprep.subr.bf16.mxu1 %v9391_v6  ;;  %v9464_v5 = vld [vmem:[%s13512_s1 + $0x1770] ss:$8 sps:$4 sm:$0xff]   ;;  %v9469_v6 = vld [vmem:[%s13512_s1 + $0x884] ss:$8 sps:$4 sm:$0xff]  }
 0x1ed   :  { %6996 = vmatprep.subr.bf16.mxu0 %v9394_v7  ;;  %v9472_v7 = vld [vmem:[%s13512_s1 + $0x1784] ss:$8 sps:$4 sm:$0xff]  }
 0x1ef   :  { %6352 = vmatpush1.bf16.msra.mxu1 %v9389_v8  ;;  %v9467_v8 = vld [vmem:[%s13512_s1 + $0x880] ss:$8 sps:$4 sm:$0xff]  }
 0x1f0   :  { %6997 = vmatpush1.bf16.msra.mxu0 %v9392_v9  ;;  %6353 = vmatprep.subr.bf16.mxu1 %v9397_v10  ;;  %v9470_v9 = vld [vmem:[%s13512_s1 + $0x1780] ss:$8 sps:$4 sm:$0xff]   ;;  %v9475_v10 = vld [vmem:[%s13512_s1 + $0x894] ss:$8 sps:$4 sm:$0xff]  }
 0x1f1   :  { %6998 = vmatprep.subr.bf16.mxu0 %v9400_v11  ;;  %v9478_v11 = vld [vmem:[%s13512_s1 + $0x1794] ss:$8 sps:$4 sm:$0xff]  }
 0x1f3   :  { %6354 = vmatpush1.bf16.msra.mxu1 %v9395_v12  ;;  %v9473_v12 = vld [vmem:[%s13512_s1 + $0x890] ss:$8 sps:$4 sm:$0xff]  }
 0x1f4   :  { %6999 = vmatpush1.bf16.msra.mxu0 %v9398_v13  ;;  %6355 = vmatprep.subr.bf16.mxu1 %v9403_v14  ;;  %v9476_v13 = vld [vmem:[%s13512_s1 + $0x1790] ss:$8 sps:$4 sm:$0xff]   ;;  %v9481_v14 = vld [vmem:[%s13512_s1 + $0x8a4] ss:$8 sps:$4 sm:$0xff]  }
 0x1f5   :  { %7000 = vmatprep.subr.bf16.mxu0 %v9406_v15  ;;  %v9484_v15 = vld [vmem:[%s13512_s1 + $0x17a4] ss:$8 sps:$4 sm:$0xff]  }
 0x1f7   :  { %6356 = vmatpush1.bf16.msra.mxu1 %v9401_v16  ;;  %v9479_v16 = vld [vmem:[%s13512_s1 + $0x8a0] ss:$8 sps:$4 sm:$0xff]  }
 0x1f8   :  { %7001 = vmatpush1.bf16.msra.mxu0 %v9404_v17  ;;  %6357 = vmatprep.subr.bf16.mxu1 %v9409_v18  ;;  %v9482_v17 = vld [vmem:[%s13512_s1 + $0x17a0] ss:$8 sps:$4 sm:$0xff]   ;;  %v9487_v18 = vld [vmem:[%s13512_s1 + $0x8b4] ss:$8 sps:$4 sm:$0xff]  }
 0x1f9   :  { %7002 = vmatprep.subr.bf16.mxu0 %v9412_v19  ;;  %v9490_v19 = vld [vmem:[%s13512_s1 + $0x17b4] ss:$8 sps:$4 sm:$0xff]  }
 0x1fb   :  { %6358 = vmatpush1.bf16.msra.mxu1 %v9407_v20  ;;  %v9485_v20 = vld [vmem:[%s13512_s1 + $0x8b0] ss:$8 sps:$4 sm:$0xff]  }
 0x1fc   :  { %7003 = vmatpush1.bf16.msra.mxu0 %v9410_v21  ;;  %6359 = vmatprep.subr.bf16.mxu1 %v9415_v22  ;;  %v9488_v21 = vld [vmem:[%s13512_s1 + $0x17b0] ss:$8 sps:$4 sm:$0xff]   ;;  %v9493_v22 = vld [vmem:[%s13512_s1 + $0x8c4] ss:$8 sps:$4 sm:$0xff]  }
 0x1fd   :  { %7004 = vmatprep.subr.bf16.mxu0 %v9418_v23  ;;  %v9496_v23 = vld [vmem:[%s13512_s1 + $0x17c4] ss:$8 sps:$4 sm:$0xff]  }
 0x1ff   :  { %6360 = vmatpush1.bf16.msra.mxu1 %v9413_v24  ;;  %v9491_v24 = vld [vmem:[%s13512_s1 + $0x8c0] ss:$8 sps:$4 sm:$0xff]  }
 0x200   :  { %7005 = vmatpush1.bf16.msra.mxu0 %v9416_v25  ;;  %6372 = vmatprep.subr.bf16.mxu1 %v9421_v28  ;;  %v9494_v25 = vld [vmem:[%s13512_s1 + $0x17c0] ss:$8 sps:$4 sm:$0xff]   ;;  %v9497_v28 = vld [vmem:[%s13512_s1 + $0x8d0] ss:$8 sps:$4 sm:$0xff]  }
 0x201   :  { %7017 = vmatprep.subr.bf16.mxu0 %v9424_v29  ;;  %v9500_v29 = vld [vmem:[%s13512_s1 + $0x17d0] ss:$8 sps:$4 sm:$0xff]  }
 0x202   :  { %6362 = vmatmul.mubr.bf16.vlgmr.msra.gmra.mrb[0].mxu1 %v157_v36  ;;  %v9509_v36 = vld [vmem:[%s13512_s1 + $0x8f0] ss:$8 sps:$4 sm:$0xff]  }
 0x203   :  { %7007 = vmatmul.mubr.bf16.vlgmr.msra.gmra.mrb[0].mxu0 %v187_v37  ;;  %6373 = vmatpush1.bf16.msra.mxu1 %v9419_v38  ;;  %v9512_v37 = vld [vmem:[%s13512_s1 + $0x17f0] ss:$8 sps:$4 sm:$0xff]   ;;  %v37_v38 = vld [vmem:[%s13513_s0 + $0x80] sm:$0xff] }
 0x204   :  { %7018 = vmatpush1.bf16.msra.mxu0 %v9422_v39  ;;  %6374 = vmatprep.subr.bf16.mxu1 %v9427_v40  ;;  %v98_v39 = vld [vmem:[%s13513_s0 + $0x268] sm:$0xff] }
 0x205   :  { %7019 = vmatprep.subr.bf16.mxu0 %v9430_v41  ;;  %6404 = vmatprep.mubr.bf16.mxu1 %v160_v42  ;;  %v9517_v40 = vld [vmem:[%s13512_s1 + $0x904] ss:$8 sps:$4 sm:$0xff]   ;;  %v67_v42 = vld [vmem:[%s13513_s0 + $0x170] sm:$0xff] }
 0x206   :  { %7049 = vmatprep.mubr.bf16.mxu0 %v190_v43  ;;  %v9520_v41 = vld [vmem:[%s13512_s1 + $0x1804] ss:$8 sps:$4 sm:$0xff]   ;;  %v128_v43 = vld [vmem:[%s13513_s0 + $0x358] sm:$0xff] }
 0x207   :  { %6375 = vmatpush1.bf16.msra.mxu1 %v9425_v44  ;;  %v40_v44 = vld [vmem:[%s13513_s0 + $0x98] sm:$0xff] }
 0x208   :  { %7020 = vmatpush1.bf16.msra.mxu0 %v9428_v45  ;;  %6376 = vmatprep.subr.bf16.mxu1 %v9433_v46  ;;  %v101_v45 = vld [vmem:[%s13513_s0 + $0x280] sm:$0xff]  ;;  %v70_v46 = vld [vmem:[%s13513_s0 + $0x188] sm:$0xff] }
 0x209   :  { %7021 = vmatprep.subr.bf16.mxu0 %v9436_v47  ;;  %v131_v47 = vld [vmem:[%s13513_s0 + $0x370] sm:$0xff] }
 0x20b   :  { %6377 = vmatpush1.bf16.msra.mxu1 %v9431_v48  ;;  %v159_v48 = vpack.c.bf16 %v98_v39, %v37_v38  ;;  %v9595_v38 = vld [vmem:[%s13512_s1 + $0x9d4] ss:$8 sps:$4 sm:$0xff]  }
 0x20c   :  { %7022 = vmatpush1.bf16.msra.mxu0 %v9434_v49  ;;  %6378 = vmatprep.subr.bf16.mxu1 %v9439_v50  ;;  %v189_v49 = vpack.c.bf16 %v128_v43, %v67_v42  ;;  %v9515_v50 = vld [vmem:[%s13512_s1 + $0x900] ss:$8 sps:$4 sm:$0xff]   ;;  %v9598_v39 = vld [vmem:[%s13512_s1 + $0x18d4] ss:$8 sps:$4 sm:$0xff]   ;;  %v9601_v42 = vld [vmem:[%s13512_s1 + $0x9e4] ss:$8 sps:$4 sm:$0xff]  }
 0x20d   :  { %7023 = vmatprep.subr.bf16.mxu0 %v9442_v51  ;;  %v9518_v51 = vld [vmem:[%s13512_s1 + $0x1800] ss:$8 sps:$4 sm:$0xff]   ;;  %v9604_v43 = vld [vmem:[%s13512_s1 + $0x18e4] ss:$8 sps:$4 sm:$0xff]  }
 0x20f   :  { %6379 = vmatpush1.bf16.msra.mxu1 %v9437_v52  ;;  %v9523_v52 = vld [vmem:[%s13512_s1 + $0x914] ss:$8 sps:$4 sm:$0xff]  }
 0x210   :  { %7024 = vmatpush1.bf16.msra.mxu0 %v9440_v53  ;;  %6380 = vmatprep.subr.bf16.mxu1 %v9445_v54  ;;  %v9526_v53 = vld [vmem:[%s13512_s1 + $0x1814] ss:$8 sps:$4 sm:$0xff]   ;;  %v162_v54 = vpack.c.bf16 %v101_v45, %v40_v44  ;;  %v9599_v44 = vld [vmem:[%s13512_s1 + $0x9e0] ss:$8 sps:$4 sm:$0xff]  }
 0x211   :  { %7025 = vmatprep.subr.bf16.mxu0 %v9448_v55  ;;  %v192_v55 = vpack.c.bf16 %v131_v47, %v70_v46  ;;  %v9602_v45 = vld [vmem:[%s13512_s1 + $0x18e0] ss:$8 sps:$4 sm:$0xff]   ;;  %v9607_v46 = vld [vmem:[%s13512_s1 + $0x9f4] ss:$8 sps:$4 sm:$0xff]  }
 0x212   :  { %v9610_v47 = vld [vmem:[%s13512_s1 + $0x18f4] ss:$8 sps:$4 sm:$0xff]  }
 0x213   :  { %6381 = vmatpush1.bf16.msra.mxu1 %v9443_v56  ;;  %v9521_v56 = vld [vmem:[%s13512_s1 + $0x910] ss:$8 sps:$4 sm:$0xff]  }
 0x214   :  { %7026 = vmatpush1.bf16.msra.mxu0 %v9446_v57  ;;  %6382 = vmatprep.subr.bf16.mxu1 %v9451_v58  ;;  %v9524_v57 = vld [vmem:[%s13512_s1 + $0x1810] ss:$8 sps:$4 sm:$0xff]   ;;  %v9529_v58 = vld [vmem:[%s13512_s1 + $0x924] ss:$8 sps:$4 sm:$0xff]  }
 0x215   :  { %7027 = vmatprep.subr.bf16.mxu0 %v9454_v59  ;;  %v9532_v59 = vld [vmem:[%s13512_s1 + $0x1824] ss:$8 sps:$4 sm:$0xff]  }
 0x217   :  { %6383 = vmatpush1.bf16.msra.mxu1 %v9449_v60  ;;  %v9527_v60 = vld [vmem:[%s13512_s1 + $0x920] ss:$8 sps:$4 sm:$0xff]  }
 0x218   :  { %7028 = vmatpush1.bf16.msra.mxu0 %v9452_v61  ;;  %6384 = vmatprep.subr.bf16.mxu1 %v9457_v62  ;;  %v9530_v61 = vld [vmem:[%s13512_s1 + $0x1820] ss:$8 sps:$4 sm:$0xff]   ;;  %v9535_v62 = vld [vmem:[%s13512_s1 + $0x934] ss:$8 sps:$4 sm:$0xff]  }
 0x219   :  { %7029 = vmatprep.subr.bf16.mxu0 %v9460_v63  ;;  %v9538_v63 = vld [vmem:[%s13512_s1 + $0x1834] ss:$8 sps:$4 sm:$0xff]  }
 0x21b   :  { %6385 = vmatpush1.bf16.msra.mxu1 %v9455_v0  ;;  %v9533_v0 = vld [vmem:[%s13512_s1 + $0x930] ss:$8 sps:$4 sm:$0xff]  }
 0x21c   :  { %7030 = vmatpush1.bf16.msra.mxu0 %v9458_v1  ;;  %6386 = vmatprep.subr.bf16.mxu1 %v9463_v2  ;;  %v9536_v1 = vld [vmem:[%s13512_s1 + $0x1830] ss:$8 sps:$4 sm:$0xff]   ;;  %v9541_v2 = vld [vmem:[%s13512_s1 + $0x944] ss:$8 sps:$4 sm:$0xff]  }
 0x21d   :  { %7031 = vmatprep.subr.bf16.mxu0 %v9466_v3  ;;  %v9544_v3 = vld [vmem:[%s13512_s1 + $0x1844] ss:$8 sps:$4 sm:$0xff]  }
 0x21f   :  { %6387 = vmatpush1.bf16.msra.mxu1 %v9461_v4  ;;  %v9539_v4 = vld [vmem:[%s13512_s1 + $0x940] ss:$8 sps:$4 sm:$0xff]  }
 0x220   :  { %7032 = vmatpush1.bf16.msra.mxu0 %v9464_v5  ;;  %6388 = vmatprep.subr.bf16.mxu1 %v9469_v6  ;;  %v9542_v5 = vld [vmem:[%s13512_s1 + $0x1840] ss:$8 sps:$4 sm:$0xff]   ;;  %v9547_v6 = vld [vmem:[%s13512_s1 + $0x954] ss:$8 sps:$4 sm:$0xff]  }
 0x221   :  { %7033 = vmatprep.subr.bf16.mxu0 %v9472_v7  ;;  %v9550_v7 = vld [vmem:[%s13512_s1 + $0x1854] ss:$8 sps:$4 sm:$0xff]  }
 0x223   :  { %6389 = vmatpush1.bf16.msra.mxu1 %v9467_v8  ;;  %v9545_v8 = vld [vmem:[%s13512_s1 + $0x950] ss:$8 sps:$4 sm:$0xff]  }
 0x224   :  { %7034 = vmatpush1.bf16.msra.mxu0 %v9470_v9  ;;  %6390 = vmatprep.subr.bf16.mxu1 %v9475_v10  ;;  %v9548_v9 = vld [vmem:[%s13512_s1 + $0x1850] ss:$8 sps:$4 sm:$0xff]   ;;  %v9553_v10 = vld [vmem:[%s13512_s1 + $0x964] ss:$8 sps:$4 sm:$0xff]  }
 0x225   :  { %7035 = vmatprep.subr.bf16.mxu0 %v9478_v11  ;;  %v9556_v11 = vld [vmem:[%s13512_s1 + $0x1864] ss:$8 sps:$4 sm:$0xff]  }
 0x227   :  { %6391 = vmatpush1.bf16.msra.mxu1 %v9473_v12  ;;  %v9551_v12 = vld [vmem:[%s13512_s1 + $0x960] ss:$8 sps:$4 sm:$0xff]  }
 0x228   :  { %7036 = vmatpush1.bf16.msra.mxu0 %v9476_v13  ;;  %6392 = vmatprep.subr.bf16.mxu1 %v9481_v14  ;;  %v9554_v13 = vld [vmem:[%s13512_s1 + $0x1860] ss:$8 sps:$4 sm:$0xff]   ;;  %v9559_v14 = vld [vmem:[%s13512_s1 + $0x974] ss:$8 sps:$4 sm:$0xff]  }
 0x229   :  { %7037 = vmatprep.subr.bf16.mxu0 %v9484_v15  ;;  %v9562_v15 = vld [vmem:[%s13512_s1 + $0x1874] ss:$8 sps:$4 sm:$0xff]  }
 0x22b   :  { %6393 = vmatpush1.bf16.msra.mxu1 %v9479_v16  ;;  %v9557_v16 = vld [vmem:[%s13512_s1 + $0x970] ss:$8 sps:$4 sm:$0xff]  }
 0x22c   :  { %7038 = vmatpush1.bf16.msra.mxu0 %v9482_v17  ;;  %6394 = vmatprep.subr.bf16.mxu1 %v9487_v18  ;;  %v9560_v17 = vld [vmem:[%s13512_s1 + $0x1870] ss:$8 sps:$4 sm:$0xff]   ;;  %v9565_v18 = vld [vmem:[%s13512_s1 + $0x984] ss:$8 sps:$4 sm:$0xff]  }
 0x22d   :  { %7039 = vmatprep.subr.bf16.mxu0 %v9490_v19  ;;  %v9568_v19 = vld [vmem:[%s13512_s1 + $0x1884] ss:$8 sps:$4 sm:$0xff]  }
 0x22f   :  { %6395 = vmatpush1.bf16.msra.mxu1 %v9485_v20  ;;  %v9563_v20 = vld [vmem:[%s13512_s1 + $0x980] ss:$8 sps:$4 sm:$0xff]  }
 0x230   :  { %7040 = vmatpush1.bf16.msra.mxu0 %v9488_v21  ;;  %6396 = vmatprep.subr.bf16.mxu1 %v9493_v22  ;;  %v9566_v21 = vld [vmem:[%s13512_s1 + $0x1880] ss:$8 sps:$4 sm:$0xff]   ;;  %v9571_v22 = vld [vmem:[%s13512_s1 + $0x994] ss:$8 sps:$4 sm:$0xff]  }
 0x231   :  { %7041 = vmatprep.subr.bf16.mxu0 %v9496_v23  ;;  %v9574_v23 = vld [vmem:[%s13512_s1 + $0x1894] ss:$8 sps:$4 sm:$0xff]  }
 0x233   :  { %6397 = vmatpush1.bf16.msra.mxu1 %v9491_v24  ;;  %v9569_v24 = vld [vmem:[%s13512_s1 + $0x990] ss:$8 sps:$4 sm:$0xff]  }
 0x234   :  { %7042 = vmatpush1.bf16.msra.mxu0 %v9494_v25  ;;  %6398 = vmatprep.subr.bf16.mxu1 %v9499_v26  ;;  %v9572_v25 = vld [vmem:[%s13512_s1 + $0x1890] ss:$8 sps:$4 sm:$0xff]   ;;  %v9577_v26 = vld [vmem:[%s13512_s1 + $0x9a4] ss:$8 sps:$4 sm:$0xff]  }
 0x235   :  { %7043 = vmatprep.subr.bf16.mxu0 %v9502_v27  ;;  %v9580_v27 = vld [vmem:[%s13512_s1 + $0x18a4] ss:$8 sps:$4 sm:$0xff]  }
 0x237   :  { %6399 = vmatpush1.bf16.msra.mxu1 %v9497_v28  ;;  %v9575_v28 = vld [vmem:[%s13512_s1 + $0x9a0] ss:$8 sps:$4 sm:$0xff]  }
 0x238   :  { %7044 = vmatpush1.bf16.msra.mxu0 %v9500_v29  ;;  %6400 = vmatprep.subr.bf16.mxu1 %v9505_v30  ;;  %v9578_v29 = vld [vmem:[%s13512_s1 + $0x18a0] ss:$8 sps:$4 sm:$0xff]   ;;  %v9583_v30 = vld [vmem:[%s13512_s1 + $0x9b4] ss:$8 sps:$4 sm:$0xff]  }
 0x239   :  { %7045 = vmatprep.subr.bf16.mxu0 %v9508_v31  ;;  %v9586_v31 = vld [vmem:[%s13512_s1 + $0x18b4] ss:$8 sps:$4 sm:$0xff]  }
 0x23b   :  { %6401 = vmatpush1.bf16.msra.mxu1 %v9503_v32  ;;  %v9581_v32 = vld [vmem:[%s13512_s1 + $0x9b0] ss:$8 sps:$4 sm:$0xff]  }
 0x23c   :  { %7046 = vmatpush1.bf16.msra.mxu0 %v9506_v33  ;;  %6402 = vmatprep.subr.bf16.mxu1 %v9511_v34  ;;  %v9584_v33 = vld [vmem:[%s13512_s1 + $0x18b0] ss:$8 sps:$4 sm:$0xff]   ;;  %v9589_v34 = vld [vmem:[%s13512_s1 + $0x9c4] ss:$8 sps:$4 sm:$0xff]  }
 0x23d   :  { %7047 = vmatprep.subr.bf16.mxu0 %v9514_v35  ;;  %v9592_v35 = vld [vmem:[%s13512_s1 + $0x18c4] ss:$8 sps:$4 sm:$0xff]  }
 0x23f   :  { %6403 = vmatpush1.bf16.msra.mxu1 %v9509_v36  ;;  %v9587_v36 = vld [vmem:[%s13512_s1 + $0x9c0] ss:$8 sps:$4 sm:$0xff]  }
 0x240   :  { %7048 = vmatpush1.bf16.msra.mxu0 %v9512_v37  ;;  %6415 = vmatprep.subr.bf16.mxu1 %v9517_v40  ;;  %v9590_v37 = vld [vmem:[%s13512_s1 + $0x18c0] ss:$8 sps:$4 sm:$0xff]   ;;  %v9593_v40 = vld [vmem:[%s13512_s1 + $0x9d0] ss:$8 sps:$4 sm:$0xff]  }
 0x241   :  { %7060 = vmatprep.subr.bf16.mxu0 %v9520_v41  ;;  %v9596_v41 = vld [vmem:[%s13512_s1 + $0x18d0] ss:$8 sps:$4 sm:$0xff]  }
 0x242   :  { %6405 = vmatmul.mubr.bf16.vlgmr.msra.gmra.mrb[0].mxu1 %v159_v48  ;;  %v9605_v48 = vld [vmem:[%s13512_s1 + $0x9f0] ss:$8 sps:$4 sm:$0xff]  }
 0x243   :  { %7050 = vmatmul.mubr.bf16.vlgmr.msra.gmra.mrb[0].mxu0 %v189_v49  ;;  %6416 = vmatpush1.bf16.msra.mxu1 %v9515_v50  ;;  %v9608_v49 = vld [vmem:[%s13512_s1 + $0x18f0] ss:$8 sps:$4 sm:$0xff]  }
 0x244   :  { %7061 = vmatpush1.bf16.msra.mxu0 %v9518_v51  ;;  %6417 = vmatprep.subr.bf16.mxu1 %v9523_v52  ;;  %v39_v50 = vld [vmem:[%s13513_s0 + $0x90] sm:$0xff]  ;;  %v100_v51 = vld [vmem:[%s13513_s0 + $0x278] sm:$0xff]  ;;  %v69_v52 = vld [vmem:[%s13513_s0 + $0x180] sm:$0xff] }
 0x245   :  { %7062 = vmatprep.subr.bf16.mxu0 %v9526_v53  ;;  %6447 = vmatprep.mubr.bf16.mxu1 %v162_v54  ;;  %v130_v53 = vld [vmem:[%s13513_s0 + $0x368] sm:$0xff] }
 0x246   :  { %7092 = vmatprep.mubr.bf16.mxu0 %v192_v55  ;;  %v9613_v54 = vld [vmem:[%s13512_s1 + $0xa04] ss:$8 sps:$4 sm:$0xff]  }
 0x247   :  { %6418 = vmatpush1.bf16.msra.mxu1 %v9521_v56  ;;  %v9616_v55 = vld [vmem:[%s13512_s1 + $0x1904] ss:$8 sps:$4 sm:$0xff]  }
 0x248   :  { %7063 = vmatpush1.bf16.msra.mxu0 %v9524_v57  ;;  %6419 = vmatprep.subr.bf16.mxu1 %v9529_v58  ;;  %v42_v56 = vld [vmem:[%s13513_s0 + $0xa8] sm:$0xff]  ;;  %v161_v57 = vpack.c.bf16 %v100_v51, %v39_v50  ;;  %v191_v58 = vpack.c.bf16 %v130_v53, %v69_v52  ;;  %v9691_v50 = vld [vmem:[%s13512_s1 + $0xad4] ss:$8 sps:$4 sm:$0xff]   ;;  %v9689_v52 = vld [vmem:[%s13512_s1 + $0xad0] ss:$8 sps:$4 sm:$0xff]  }
 0x249   :  { %7064 = vmatprep.subr.bf16.mxu0 %v9532_v59  ;;  %v103_v59 = vld [vmem:[%s13513_s0 + $0x290] sm:$0xff] }
 0x24a   :  { %v9694_v51 = vld [vmem:[%s13512_s1 + $0x19d4] ss:$8 sps:$4 sm:$0xff]   ;;  %v9692_v53 = vld [vmem:[%s13512_s1 + $0x19d0] ss:$8 sps:$4 sm:$0xff]  }
 0x24b   :  { %6420 = vmatpush1.bf16.msra.mxu1 %v9527_v60  ;;  %v72_v60 = vld [vmem:[%s13513_s0 + $0x198] sm:$0xff] }
 0x24c   :  { %7065 = vmatpush1.bf16.msra.mxu0 %v9530_v61  ;;  %6421 = vmatprep.subr.bf16.mxu1 %v9535_v62  ;;  %v133_v61 = vld [vmem:[%s13513_s0 + $0x380] sm:$0xff] }
 0x24d   :  { %7066 = vmatprep.subr.bf16.mxu0 %v9538_v63  ;;  %v9611_v62 = vld [vmem:[%s13512_s1 + $0xa00] ss:$8 sps:$4 sm:$0xff]  }
 0x24e   :  { %v9614_v63 = vld [vmem:[%s13512_s1 + $0x1900] ss:$8 sps:$4 sm:$0xff]  }
 0x24f   :  { %6422 = vmatpush1.bf16.msra.mxu1 %v9533_v0  ;;  %v9619_v0 = vld [vmem:[%s13512_s1 + $0xa14] ss:$8 sps:$4 sm:$0xff]  }
 0x250   :  { %7067 = vmatpush1.bf16.msra.mxu0 %v9536_v1  ;;  %6423 = vmatprep.subr.bf16.mxu1 %v9541_v2  ;;  %v9622_v1 = vld [vmem:[%s13512_s1 + $0x1914] ss:$8 sps:$4 sm:$0xff]   ;;  %v164_v2 = vpack.c.bf16 %v103_v59, %v42_v56  ;;  %v9695_v56 = vld [vmem:[%s13512_s1 + $0xae0] ss:$8 sps:$4 sm:$0xff]  }
 0x251   :  { %7068 = vmatprep.subr.bf16.mxu0 %v9544_v3  ;;  %v194_v3 = vpack.c.bf16 %v133_v61, %v72_v60  ;;  %v9706_v59 = vld [vmem:[%s13512_s1 + $0x19f4] ss:$8 sps:$4 sm:$0xff]   ;;  %v9701_v60 = vld [vmem:[%s13512_s1 + $0xaf0] ss:$8 sps:$4 sm:$0xff]  }
 0x252   :  { %v9704_v61 = vld [vmem:[%s13512_s1 + $0x19f0] ss:$8 sps:$4 sm:$0xff]  }
 0x253   :  { %6424 = vmatpush1.bf16.msra.mxu1 %v9539_v4  ;;  %v9617_v4 = vld [vmem:[%s13512_s1 + $0xa10] ss:$8 sps:$4 sm:$0xff]  }
 0x254   :  { %7069 = vmatpush1.bf16.msra.mxu0 %v9542_v5  ;;  %6425 = vmatprep.subr.bf16.mxu1 %v9547_v6  ;;  %v9620_v5 = vld [vmem:[%s13512_s1 + $0x1910] ss:$8 sps:$4 sm:$0xff]   ;;  %v9625_v6 = vld [vmem:[%s13512_s1 + $0xa24] ss:$8 sps:$4 sm:$0xff]  }
 0x255   :  { %7070 = vmatprep.subr.bf16.mxu0 %v9550_v7  ;;  %v9628_v7 = vld [vmem:[%s13512_s1 + $0x1924] ss:$8 sps:$4 sm:$0xff]  }
 0x257   :  { %6426 = vmatpush1.bf16.msra.mxu1 %v9545_v8  ;;  %v9623_v8 = vld [vmem:[%s13512_s1 + $0xa20] ss:$8 sps:$4 sm:$0xff]  }
 0x258   :  { %7071 = vmatpush1.bf16.msra.mxu0 %v9548_v9  ;;  %6427 = vmatprep.subr.bf16.mxu1 %v9553_v10  ;;  %v9626_v9 = vld [vmem:[%s13512_s1 + $0x1920] ss:$8 sps:$4 sm:$0xff]   ;;  %v9631_v10 = vld [vmem:[%s13512_s1 + $0xa34] ss:$8 sps:$4 sm:$0xff]  }
 0x259   :  { %7072 = vmatprep.subr.bf16.mxu0 %v9556_v11  ;;  %v9634_v11 = vld [vmem:[%s13512_s1 + $0x1934] ss:$8 sps:$4 sm:$0xff]  }
 0x25b   :  { %6428 = vmatpush1.bf16.msra.mxu1 %v9551_v12  ;;  %v9629_v12 = vld [vmem:[%s13512_s1 + $0xa30] ss:$8 sps:$4 sm:$0xff]  }
 0x25c   :  { %7073 = vmatpush1.bf16.msra.mxu0 %v9554_v13  ;;  %6429 = vmatprep.subr.bf16.mxu1 %v9559_v14  ;;  %v9632_v13 = vld [vmem:[%s13512_s1 + $0x1930] ss:$8 sps:$4 sm:$0xff]   ;;  %v9637_v14 = vld [vmem:[%s13512_s1 + $0xa44] ss:$8 sps:$4 sm:$0xff]  }
 0x25d   :  { %7074 = vmatprep.subr.bf16.mxu0 %v9562_v15  ;;  %v9640_v15 = vld [vmem:[%s13512_s1 + $0x1944] ss:$8 sps:$4 sm:$0xff]  }
 0x25f   :  { %6430 = vmatpush1.bf16.msra.mxu1 %v9557_v16  ;;  %v9635_v16 = vld [vmem:[%s13512_s1 + $0xa40] ss:$8 sps:$4 sm:$0xff]  }
 0x260   :  { %7075 = vmatpush1.bf16.msra.mxu0 %v9560_v17  ;;  %6431 = vmatprep.subr.bf16.mxu1 %v9565_v18  ;;  %v9638_v17 = vld [vmem:[%s13512_s1 + $0x1940] ss:$8 sps:$4 sm:$0xff]   ;;  %v9643_v18 = vld [vmem:[%s13512_s1 + $0xa54] ss:$8 sps:$4 sm:$0xff]  }
 0x261   :  { %7076 = vmatprep.subr.bf16.mxu0 %v9568_v19  ;;  %v9646_v19 = vld [vmem:[%s13512_s1 + $0x1954] ss:$8 sps:$4 sm:$0xff]  }
 0x263   :  { %6432 = vmatpush1.bf16.msra.mxu1 %v9563_v20  ;;  %v9641_v20 = vld [vmem:[%s13512_s1 + $0xa50] ss:$8 sps:$4 sm:$0xff]  }
 0x264   :  { %7077 = vmatpush1.bf16.msra.mxu0 %v9566_v21  ;;  %6433 = vmatprep.subr.bf16.mxu1 %v9571_v22  ;;  %v9644_v21 = vld [vmem:[%s13512_s1 + $0x1950] ss:$8 sps:$4 sm:$0xff]   ;;  %v9649_v22 = vld [vmem:[%s13512_s1 + $0xa64] ss:$8 sps:$4 sm:$0xff]  }
 0x265   :  { %7078 = vmatprep.subr.bf16.mxu0 %v9574_v23  ;;  %v9652_v23 = vld [vmem:[%s13512_s1 + $0x1964] ss:$8 sps:$4 sm:$0xff]  }
 0x267   :  { %6434 = vmatpush1.bf16.msra.mxu1 %v9569_v24  ;;  %v9647_v24 = vld [vmem:[%s13512_s1 + $0xa60] ss:$8 sps:$4 sm:$0xff]  }
 0x268   :  { %7079 = vmatpush1.bf16.msra.mxu0 %v9572_v25  ;;  %6435 = vmatprep.subr.bf16.mxu1 %v9577_v26  ;;  %v9650_v25 = vld [vmem:[%s13512_s1 + $0x1960] ss:$8 sps:$4 sm:$0xff]   ;;  %v9655_v26 = vld [vmem:[%s13512_s1 + $0xa74] ss:$8 sps:$4 sm:$0xff]  }
 0x269   :  { %7080 = vmatprep.subr.bf16.mxu0 %v9580_v27  ;;  %v9658_v27 = vld [vmem:[%s13512_s1 + $0x1974] ss:$8 sps:$4 sm:$0xff]  }
 0x26b   :  { %6436 = vmatpush1.bf16.msra.mxu1 %v9575_v28  ;;  %v9653_v28 = vld [vmem:[%s13512_s1 + $0xa70] ss:$8 sps:$4 sm:$0xff]  }
 0x26c   :  { %7081 = vmatpush1.bf16.msra.mxu0 %v9578_v29  ;;  %6437 = vmatprep.subr.bf16.mxu1 %v9583_v30  ;;  %v9656_v29 = vld [vmem:[%s13512_s1 + $0x1970] ss:$8 sps:$4 sm:$0xff]   ;;  %v9661_v30 = vld [vmem:[%s13512_s1 + $0xa84] ss:$8 sps:$4 sm:$0xff]  }
 0x26d   :  { %7082 = vmatprep.subr.bf16.mxu0 %v9586_v31  ;;  %v9664_v31 = vld [vmem:[%s13512_s1 + $0x1984] ss:$8 sps:$4 sm:$0xff]  }
 0x26f   :  { %6438 = vmatpush1.bf16.msra.mxu1 %v9581_v32  ;;  %v9659_v32 = vld [vmem:[%s13512_s1 + $0xa80] ss:$8 sps:$4 sm:$0xff]  }
 0x270   :  { %7083 = vmatpush1.bf16.msra.mxu0 %v9584_v33  ;;  %6439 = vmatprep.subr.bf16.mxu1 %v9589_v34  ;;  %v9662_v33 = vld [vmem:[%s13512_s1 + $0x1980] ss:$8 sps:$4 sm:$0xff]   ;;  %v9667_v34 = vld [vmem:[%s13512_s1 + $0xa94] ss:$8 sps:$4 sm:$0xff]  }
 0x271   :  { %7084 = vmatprep.subr.bf16.mxu0 %v9592_v35  ;;  %v9670_v35 = vld [vmem:[%s13512_s1 + $0x1994] ss:$8 sps:$4 sm:$0xff]  }
 0x273   :  { %6440 = vmatpush1.bf16.msra.mxu1 %v9587_v36  ;;  %v9665_v36 = vld [vmem:[%s13512_s1 + $0xa90] ss:$8 sps:$4 sm:$0xff]  }
 0x274   :  { %7085 = vmatpush1.bf16.msra.mxu0 %v9590_v37  ;;  %6441 = vmatprep.subr.bf16.mxu1 %v9595_v38  ;;  %v9668_v37 = vld [vmem:[%s13512_s1 + $0x1990] ss:$8 sps:$4 sm:$0xff]   ;;  %v9673_v38 = vld [vmem:[%s13512_s1 + $0xaa4] ss:$8 sps:$4 sm:$0xff]  }
 0x275   :  { %7086 = vmatprep.subr.bf16.mxu0 %v9598_v39  ;;  %v9676_v39 = vld [vmem:[%s13512_s1 + $0x19a4] ss:$8 sps:$4 sm:$0xff]  }
 0x277   :  { %6442 = vmatpush1.bf16.msra.mxu1 %v9593_v40  ;;  %v9671_v40 = vld [vmem:[%s13512_s1 + $0xaa0] ss:$8 sps:$4 sm:$0xff]  }
 0x278   :  { %7087 = vmatpush1.bf16.msra.mxu0 %v9596_v41  ;;  %6443 = vmatprep.subr.bf16.mxu1 %v9601_v42  ;;  %v9674_v41 = vld [vmem:[%s13512_s1 + $0x19a0] ss:$8 sps:$4 sm:$0xff]   ;;  %v9679_v42 = vld [vmem:[%s13512_s1 + $0xab4] ss:$8 sps:$4 sm:$0xff]  }
 0x279   :  { %7088 = vmatprep.subr.bf16.mxu0 %v9604_v43  ;;  %v9682_v43 = vld [vmem:[%s13512_s1 + $0x19b4] ss:$8 sps:$4 sm:$0xff]  }
 0x27b   :  { %6444 = vmatpush1.bf16.msra.mxu1 %v9599_v44  ;;  %v9677_v44 = vld [vmem:[%s13512_s1 + $0xab0] ss:$8 sps:$4 sm:$0xff]  }
 0x27c   :  { %7089 = vmatpush1.bf16.msra.mxu0 %v9602_v45  ;;  %6445 = vmatprep.subr.bf16.mxu1 %v9607_v46  ;;  %v9680_v45 = vld [vmem:[%s13512_s1 + $0x19b0] ss:$8 sps:$4 sm:$0xff]   ;;  %v9685_v46 = vld [vmem:[%s13512_s1 + $0xac4] ss:$8 sps:$4 sm:$0xff]  }
 0x27d   :  { %7090 = vmatprep.subr.bf16.mxu0 %v9610_v47  ;;  %v9688_v47 = vld [vmem:[%s13512_s1 + $0x19c4] ss:$8 sps:$4 sm:$0xff]  }
 0x27f   :  { %6446 = vmatpush1.bf16.msra.mxu1 %v9605_v48  ;;  %v9683_v48 = vld [vmem:[%s13512_s1 + $0xac0] ss:$8 sps:$4 sm:$0xff]  }
 0x280   :  { %7091 = vmatpush1.bf16.msra.mxu0 %v9608_v49  ;;  %6458 = vmatprep.subr.bf16.mxu1 %v9613_v54  ;;  %v9686_v49 = vld [vmem:[%s13512_s1 + $0x19c0] ss:$8 sps:$4 sm:$0xff]   ;;  %v9697_v54 = vld [vmem:[%s13512_s1 + $0xae4] ss:$8 sps:$4 sm:$0xff]  }
 0x281   :  { %7103 = vmatprep.subr.bf16.mxu0 %v9616_v55  ;;  %v9700_v55 = vld [vmem:[%s13512_s1 + $0x19e4] ss:$8 sps:$4 sm:$0xff]  }
 0x282   :  { %6448 = vmatmul.mubr.bf16.vlgmr.msra.gmra.mrb[0].mxu1 %v161_v57  ;;  %v9698_v57 = vld [vmem:[%s13512_s1 + $0x19e0] ss:$8 sps:$4 sm:$0xff]  }
 0x283   :  { %7093 = vmatmul.mubr.bf16.vlgmr.msra.gmra.mrb[0].mxu0 %v191_v58  ;;  %6459 = vmatpush1.bf16.msra.mxu1 %v9611_v62  ;;  %v9703_v58 = vld [vmem:[%s13512_s1 + $0xaf4] ss:$8 sps:$4 sm:$0xff]   ;;  %v41_v62 = vld [vmem:[%s13513_s0 + $0xa0] sm:$0xff] }
 0x284   :  { %7104 = vmatpush1.bf16.msra.mxu0 %v9614_v63  ;;  %6460 = vmatprep.subr.bf16.mxu1 %v9619_v0  ;;  %v102_v63 = vld [vmem:[%s13513_s0 + $0x288] sm:$0xff]  ;;  %v71_v0 = vld [vmem:[%s13513_s0 + $0x190] sm:$0xff] }
 0x285   :  { %7105 = vmatprep.subr.bf16.mxu0 %v9622_v1  ;;  %6490 = vmatprep.mubr.bf16.mxu1 %v164_v2  ;;  %v132_v1 = vld [vmem:[%s13513_s0 + $0x378] sm:$0xff]  ;;  %v9709_v2 = vld [vmem:[%s13512_s1 + $0xb04] ss:$8 sps:$4 sm:$0xff]  }
 0x286   :  { %7135 = vmatprep.mubr.bf16.mxu0 %v194_v3  ;;  %v9712_v3 = vld [vmem:[%s13512_s1 + $0x1a04] ss:$8 sps:$4 sm:$0xff]  }
 0x287   :  { %6461 = vmatpush1.bf16.msra.mxu1 %v9617_v4  ;;  %v44_v4 = vld [vmem:[%s13513_s0 + $0xb8] sm:$0xff] }
 0x288   :  { %7106 = vmatpush1.bf16.msra.mxu0 %v9620_v5  ;;  %6462 = vmatprep.subr.bf16.mxu1 %v9625_v6  ;;  %v163_v5 = vpack.c.bf16 %v102_v63, %v41_v62  ;;  %v193_v6 = vpack.c.bf16 %v132_v1, %v71_v0  ;;  %v9787_v62 = vld [vmem:[%s13512_s1 + $0xbd4] ss:$8 sps:$4 sm:$0xff]   ;;  %v9785_v0 = vld [vmem:[%s13512_s1 + $0xbd0] ss:$8 sps:$4 sm:$0xff]  }
 0x289   :  { %7107 = vmatprep.subr.bf16.mxu0 %v9628_v7  ;;  %v105_v7 = vld [vmem:[%s13513_s0 + $0x2a0] sm:$0xff]  ;;  %v9790_v63 = vld [vmem:[%s13512_s1 + $0x1ad4] ss:$8 sps:$4 sm:$0xff]   ;;  %v9788_v1 = vld [vmem:[%s13512_s1 + $0x1ad0] ss:$8 sps:$4 sm:$0xff]  }
 0x28b   :  { %6463 = vmatpush1.bf16.msra.mxu1 %v9623_v8  ;;  %v74_v8 = vld [vmem:[%s13513_s0 + $0x1a8] sm:$0xff] }
 0x28c   :  { %7108 = vmatpush1.bf16.msra.mxu0 %v9626_v9  ;;  %6464 = vmatprep.subr.bf16.mxu1 %v9631_v10  ;;  %v135_v9 = vld [vmem:[%s13513_s0 + $0x390] sm:$0xff]  ;;  %v9707_v10 = vld [vmem:[%s13512_s1 + $0xb00] ss:$8 sps:$4 sm:$0xff]  }
 0x28d   :  { %7109 = vmatprep.subr.bf16.mxu0 %v9634_v11  ;;  %v9710_v11 = vld [vmem:[%s13512_s1 + $0x1a00] ss:$8 sps:$4 sm:$0xff]  }
 0x28f   :  { %6465 = vmatpush1.bf16.msra.mxu1 %v9629_v12  ;;  %v9715_v12 = vld [vmem:[%s13512_s1 + $0xb14] ss:$8 sps:$4 sm:$0xff]  }
 0x290   :  { %7110 = vmatpush1.bf16.msra.mxu0 %v9632_v13  ;;  %6466 = vmatprep.subr.bf16.mxu1 %v9637_v14  ;;  %v9718_v13 = vld [vmem:[%s13512_s1 + $0x1a14] ss:$8 sps:$4 sm:$0xff]   ;;  %v166_v14 = vpack.c.bf16 %v105_v7, %v44_v4  ;;  %v9791_v4 = vld [vmem:[%s13512_s1 + $0xbe0] ss:$8 sps:$4 sm:$0xff]  }
 0x291   :  { %7111 = vmatprep.subr.bf16.mxu0 %v9640_v15  ;;  %v196_v15 = vpack.c.bf16 %v135_v9, %v74_v8  ;;  %v9802_v7 = vld [vmem:[%s13512_s1 + $0x1af4] ss:$8 sps:$4 sm:$0xff]   ;;  %v9797_v8 = vld [vmem:[%s13512_s1 + $0xbf0] ss:$8 sps:$4 sm:$0xff]  }
 0x292   :  { %v9800_v9 = vld [vmem:[%s13512_s1 + $0x1af0] ss:$8 sps:$4 sm:$0xff]  }
 0x293   :  { %6467 = vmatpush1.bf16.msra.mxu1 %v9635_v16  ;;  %v9713_v16 = vld [vmem:[%s13512_s1 + $0xb10] ss:$8 sps:$4 sm:$0xff]  }
 0x294   :  { %7112 = vmatpush1.bf16.msra.mxu0 %v9638_v17  ;;  %6468 = vmatprep.subr.bf16.mxu1 %v9643_v18  ;;  %v9716_v17 = vld [vmem:[%s13512_s1 + $0x1a10] ss:$8 sps:$4 sm:$0xff]   ;;  %v9721_v18 = vld [vmem:[%s13512_s1 + $0xb24] ss:$8 sps:$4 sm:$0xff]  }
 0x295   :  { %7113 = vmatprep.subr.bf16.mxu0 %v9646_v19  ;;  %v9724_v19 = vld [vmem:[%s13512_s1 + $0x1a24] ss:$8 sps:$4 sm:$0xff]  }
 0x297   :  { %6469 = vmatpush1.bf16.msra.mxu1 %v9641_v20  ;;  %v9719_v20 = vld [vmem:[%s13512_s1 + $0xb20] ss:$8 sps:$4 sm:$0xff]  }
 0x298   :  { %7114 = vmatpush1.bf16.msra.mxu0 %v9644_v21  ;;  %6470 = vmatprep.subr.bf16.mxu1 %v9649_v22  ;;  %v9722_v21 = vld [vmem:[%s13512_s1 + $0x1a20] ss:$8 sps:$4 sm:$0xff]   ;;  %v9727_v22 = vld [vmem:[%s13512_s1 + $0xb34] ss:$8 sps:$4 sm:$0xff]  }
 0x299   :  { %7115 = vmatprep.subr.bf16.mxu0 %v9652_v23  ;;  %v9730_v23 = vld [vmem:[%s13512_s1 + $0x1a34] ss:$8 sps:$4 sm:$0xff]  }
 0x29b   :  { %6471 = vmatpush1.bf16.msra.mxu1 %v9647_v24  ;;  %v9725_v24 = vld [vmem:[%s13512_s1 + $0xb30] ss:$8 sps:$4 sm:$0xff]  }
 0x29c   :  { %7116 = vmatpush1.bf16.msra.mxu0 %v9650_v25  ;;  %6472 = vmatprep.subr.bf16.mxu1 %v9655_v26  ;;  %v9728_v25 = vld [vmem:[%s13512_s1 + $0x1a30] ss:$8 sps:$4 sm:$0xff]   ;;  %v9733_v26 = vld [vmem:[%s13512_s1 + $0xb44] ss:$8 sps:$4 sm:$0xff]  }
 0x29d   :  { %7117 = vmatprep.subr.bf16.mxu0 %v9658_v27  ;;  %v9736_v27 = vld [vmem:[%s13512_s1 + $0x1a44] ss:$8 sps:$4 sm:$0xff]  }
 0x29f   :  { %6473 = vmatpush1.bf16.msra.mxu1 %v9653_v28  ;;  %v9731_v28 = vld [vmem:[%s13512_s1 + $0xb40] ss:$8 sps:$4 sm:$0xff]  }
 0x2a0   :  { %7118 = vmatpush1.bf16.msra.mxu0 %v9656_v29  ;;  %6474 = vmatprep.subr.bf16.mxu1 %v9661_v30  ;;  %v9734_v29 = vld [vmem:[%s13512_s1 + $0x1a40] ss:$8 sps:$4 sm:$0xff]   ;;  %v9739_v30 = vld [vmem:[%s13512_s1 + $0xb54] ss:$8 sps:$4 sm:$0xff]  }
 0x2a1   :  { %7119 = vmatprep.subr.bf16.mxu0 %v9664_v31  ;;  %v9742_v31 = vld [vmem:[%s13512_s1 + $0x1a54] ss:$8 sps:$4 sm:$0xff]  }
 0x2a3   :  { %6475 = vmatpush1.bf16.msra.mxu1 %v9659_v32  ;;  %v9737_v32 = vld [vmem:[%s13512_s1 + $0xb50] ss:$8 sps:$4 sm:$0xff]  }
 0x2a4   :  { %7120 = vmatpush1.bf16.msra.mxu0 %v9662_v33  ;;  %6476 = vmatprep.subr.bf16.mxu1 %v9667_v34  ;;  %v9740_v33 = vld [vmem:[%s13512_s1 + $0x1a50] ss:$8 sps:$4 sm:$0xff]   ;;  %v9745_v34 = vld [vmem:[%s13512_s1 + $0xb64] ss:$8 sps:$4 sm:$0xff]  }
 0x2a5   :  { %7121 = vmatprep.subr.bf16.mxu0 %v9670_v35  ;;  %v9748_v35 = vld [vmem:[%s13512_s1 + $0x1a64] ss:$8 sps:$4 sm:$0xff]  }
 0x2a7   :  { %6477 = vmatpush1.bf16.msra.mxu1 %v9665_v36  ;;  %v9743_v36 = vld [vmem:[%s13512_s1 + $0xb60] ss:$8 sps:$4 sm:$0xff]  }
 0x2a8   :  { %7122 = vmatpush1.bf16.msra.mxu0 %v9668_v37  ;;  %6478 = vmatprep.subr.bf16.mxu1 %v9673_v38  ;;  %v9746_v37 = vld [vmem:[%s13512_s1 + $0x1a60] ss:$8 sps:$4 sm:$0xff]   ;;  %v9751_v38 = vld [vmem:[%s13512_s1 + $0xb74] ss:$8 sps:$4 sm:$0xff]  }
 0x2a9   :  { %7123 = vmatprep.subr.bf16.mxu0 %v9676_v39  ;;  %v9754_v39 = vld [vmem:[%s13512_s1 + $0x1a74] ss:$8 sps:$4 sm:$0xff]  }
 0x2ab   :  { %6479 = vmatpush1.bf16.msra.mxu1 %v9671_v40  ;;  %v9749_v40 = vld [vmem:[%s13512_s1 + $0xb70] ss:$8 sps:$4 sm:$0xff]  }
 0x2ac   :  { %7124 = vmatpush1.bf16.msra.mxu0 %v9674_v41  ;;  %6480 = vmatprep.subr.bf16.mxu1 %v9679_v42  ;;  %v9752_v41 = vld [vmem:[%s13512_s1 + $0x1a70] ss:$8 sps:$4 sm:$0xff]   ;;  %v9757_v42 = vld [vmem:[%s13512_s1 + $0xb84] ss:$8 sps:$4 sm:$0xff]  }
 0x2ad   :  { %7125 = vmatprep.subr.bf16.mxu0 %v9682_v43  ;;  %v9760_v43 = vld [vmem:[%s13512_s1 + $0x1a84] ss:$8 sps:$4 sm:$0xff]  }
 0x2af   :  { %6481 = vmatpush1.bf16.msra.mxu1 %v9677_v44  ;;  %v9755_v44 = vld [vmem:[%s13512_s1 + $0xb80] ss:$8 sps:$4 sm:$0xff]  }
 0x2b0   :  { %7126 = vmatpush1.bf16.msra.mxu0 %v9680_v45  ;;  %6482 = vmatprep.subr.bf16.mxu1 %v9685_v46  ;;  %v9758_v45 = vld [vmem:[%s13512_s1 + $0x1a80] ss:$8 sps:$4 sm:$0xff]   ;;  %v9763_v46 = vld [vmem:[%s13512_s1 + $0xb94] ss:$8 sps:$4 sm:$0xff]  }
 0x2b1   :  { %7127 = vmatprep.subr.bf16.mxu0 %v9688_v47  ;;  %v9766_v47 = vld [vmem:[%s13512_s1 + $0x1a94] ss:$8 sps:$4 sm:$0xff]  }
 0x2b3   :  { %6483 = vmatpush1.bf16.msra.mxu1 %v9683_v48  ;;  %v9761_v48 = vld [vmem:[%s13512_s1 + $0xb90] ss:$8 sps:$4 sm:$0xff]  }
 0x2b4   :  { %7128 = vmatpush1.bf16.msra.mxu0 %v9686_v49  ;;  %6484 = vmatprep.subr.bf16.mxu1 %v9691_v50  ;;  %v9764_v49 = vld [vmem:[%s13512_s1 + $0x1a90] ss:$8 sps:$4 sm:$0xff]   ;;  %v9769_v50 = vld [vmem:[%s13512_s1 + $0xba4] ss:$8 sps:$4 sm:$0xff]  }
 0x2b5   :  { %7129 = vmatprep.subr.bf16.mxu0 %v9694_v51  ;;  %v9772_v51 = vld [vmem:[%s13512_s1 + $0x1aa4] ss:$8 sps:$4 sm:$0xff]  }
 0x2b7   :  { %6485 = vmatpush1.bf16.msra.mxu1 %v9689_v52  ;;  %v9767_v52 = vld [vmem:[%s13512_s1 + $0xba0] ss:$8 sps:$4 sm:$0xff]  }
 0x2b8   :  { %7130 = vmatpush1.bf16.msra.mxu0 %v9692_v53  ;;  %6486 = vmatprep.subr.bf16.mxu1 %v9697_v54  ;;  %v9770_v53 = vld [vmem:[%s13512_s1 + $0x1aa0] ss:$8 sps:$4 sm:$0xff]   ;;  %v9775_v54 = vld [vmem:[%s13512_s1 + $0xbb4] ss:$8 sps:$4 sm:$0xff]  }
 0x2b9   :  { %7131 = vmatprep.subr.bf16.mxu0 %v9700_v55  ;;  %v9778_v55 = vld [vmem:[%s13512_s1 + $0x1ab4] ss:$8 sps:$4 sm:$0xff]  }
 0x2bb   :  { %6487 = vmatpush1.bf16.msra.mxu1 %v9695_v56  ;;  %v9773_v56 = vld [vmem:[%s13512_s1 + $0xbb0] ss:$8 sps:$4 sm:$0xff]  }
 0x2bc   :  { %7132 = vmatpush1.bf16.msra.mxu0 %v9698_v57  ;;  %6488 = vmatprep.subr.bf16.mxu1 %v9703_v58  ;;  %v9776_v57 = vld [vmem:[%s13512_s1 + $0x1ab0] ss:$8 sps:$4 sm:$0xff]   ;;  %v9781_v58 = vld [vmem:[%s13512_s1 + $0xbc4] ss:$8 sps:$4 sm:$0xff]  }
 0x2bd   :  { %7133 = vmatprep.subr.bf16.mxu0 %v9706_v59  ;;  %v9784_v59 = vld [vmem:[%s13512_s1 + $0x1ac4] ss:$8 sps:$4 sm:$0xff]  }
 0x2bf   :  { %6489 = vmatpush1.bf16.msra.mxu1 %v9701_v60  ;;  %v9779_v60 = vld [vmem:[%s13512_s1 + $0xbc0] ss:$8 sps:$4 sm:$0xff]  }
 0x2c0   :  { %7134 = vmatpush1.bf16.msra.mxu0 %v9704_v61  ;;  %6501 = vmatprep.subr.bf16.mxu1 %v9709_v2  ;;  %v9782_v61 = vld [vmem:[%s13512_s1 + $0x1ac0] ss:$8 sps:$4 sm:$0xff]   ;;  %v9793_v2 = vld [vmem:[%s13512_s1 + $0xbe4] ss:$8 sps:$4 sm:$0xff]  }
 0x2c1   :  { %7146 = vmatprep.subr.bf16.mxu0 %v9712_v3  ;;  %v9796_v3 = vld [vmem:[%s13512_s1 + $0x1ae4] ss:$8 sps:$4 sm:$0xff]  }
 0x2c2   :  { %6491 = vmatmul.mubr.bf16.vlgmr.msra.gmra.mrb[0].mxu1 %v163_v5  ;;  %v9794_v5 = vld [vmem:[%s13512_s1 + $0x1ae0] ss:$8 sps:$4 sm:$0xff]  }
 0x2c3   :  { %7136 = vmatmul.mubr.bf16.vlgmr.msra.gmra.mrb[0].mxu0 %v193_v6  ;;  %6502 = vmatpush1.bf16.msra.mxu1 %v9707_v10  ;;  %v9799_v6 = vld [vmem:[%s13512_s1 + $0xbf4] ss:$8 sps:$4 sm:$0xff]  }
 0x2c4   :  { %7147 = vmatpush1.bf16.msra.mxu0 %v9710_v11  ;;  %6503 = vmatprep.subr.bf16.mxu1 %v9715_v12  ;;  %v43_v10 = vld [vmem:[%s13513_s0 + $0xb0] sm:$0xff]  ;;  %v104_v11 = vld [vmem:[%s13513_s0 + $0x298] sm:$0xff]  ;;  %v73_v12 = vld [vmem:[%s13513_s0 + $0x1a0] sm:$0xff] }
 0x2c5   :  { %7148 = vmatprep.subr.bf16.mxu0 %v9718_v13  ;;  %6533 = vmatprep.mubr.bf16.mxu1 %v166_v14  ;;  %v134_v13 = vld [vmem:[%s13513_s0 + $0x388] sm:$0xff] }
 0x2c6   :  { %7178 = vmatprep.mubr.bf16.mxu0 %v196_v15  ;;  %v9805_v14 = vld [vmem:[%s13512_s1 + $0xc04] ss:$8 sps:$4 sm:$0xff]  }
 0x2c7   :  { %6504 = vmatpush1.bf16.msra.mxu1 %v9713_v16  ;;  %v9808_v15 = vld [vmem:[%s13512_s1 + $0x1b04] ss:$8 sps:$4 sm:$0xff]  }
 0x2c8   :  { %7149 = vmatpush1.bf16.msra.mxu0 %v9716_v17  ;;  %6505 = vmatprep.subr.bf16.mxu1 %v9721_v18  ;;  %v46_v16 = vld [vmem:[%s13513_s0 + $0xc8] sm:$0xff]  ;;  %v165_v17 = vpack.c.bf16 %v104_v11, %v43_v10  ;;  %v195_v18 = vpack.c.bf16 %v134_v13, %v73_v12  ;;  %v9883_v10 = vld [vmem:[%s13512_s1 + $0xcd4] ss:$8 sps:$4 sm:$0xff]   ;;  %v9881_v12 = vld [vmem:[%s13512_s1 + $0xcd0] ss:$8 sps:$4 sm:$0xff]  }
 0x2c9   :  { %7150 = vmatprep.subr.bf16.mxu0 %v9724_v19  ;;  %v107_v19 = vld [vmem:[%s13513_s0 + $0x2b0] sm:$0xff] }
 0x2ca   :  { %v9886_v11 = vld [vmem:[%s13512_s1 + $0x1bd4] ss:$8 sps:$4 sm:$0xff]   ;;  %v9884_v13 = vld [vmem:[%s13512_s1 + $0x1bd0] ss:$8 sps:$4 sm:$0xff]  }
 0x2cb   :  { %6506 = vmatpush1.bf16.msra.mxu1 %v9719_v20  ;;  %v76_v20 = vld [vmem:[%s13513_s0 + $0x1b8] sm:$0xff] }
 0x2cc   :  { %7151 = vmatpush1.bf16.msra.mxu0 %v9722_v21  ;;  %6507 = vmatprep.subr.bf16.mxu1 %v9727_v22  ;;  %v137_v21 = vld [vmem:[%s13513_s0 + $0x3a0] sm:$0xff] }
 0x2cd   :  { %7152 = vmatprep.subr.bf16.mxu0 %v9730_v23  ;;  %v9803_v22 = vld [vmem:[%s13512_s1 + $0xc00] ss:$8 sps:$4 sm:$0xff]  }
 0x2ce   :  { %v9806_v23 = vld [vmem:[%s13512_s1 + $0x1b00] ss:$8 sps:$4 sm:$0xff]  }
 0x2cf   :  { %6508 = vmatpush1.bf16.msra.mxu1 %v9725_v24  ;;  %v9811_v24 = vld [vmem:[%s13512_s1 + $0xc14] ss:$8 sps:$4 sm:$0xff]  }
 0x2d0   :  { %7153 = vmatpush1.bf16.msra.mxu0 %v9728_v25  ;;  %6509 = vmatprep.subr.bf16.mxu1 %v9733_v26  ;;  %v9814_v25 = vld [vmem:[%s13512_s1 + $0x1b14] ss:$8 sps:$4 sm:$0xff]   ;;  %v168_v26 = vpack.c.bf16 %v107_v19, %v46_v16  ;;  %v9887_v16 = vld [vmem:[%s13512_s1 + $0xce0] ss:$8 sps:$4 sm:$0xff]  }
 0x2d1   :  { %7154 = vmatprep.subr.bf16.mxu0 %v9736_v27  ;;  %v198_v27 = vpack.c.bf16 %v137_v21, %v76_v20  ;;  %v9898_v19 = vld [vmem:[%s13512_s1 + $0x1bf4] ss:$8 sps:$4 sm:$0xff]   ;;  %v9893_v20 = vld [vmem:[%s13512_s1 + $0xcf0] ss:$8 sps:$4 sm:$0xff]  }
 0x2d2   :  { %v9896_v21 = vld [vmem:[%s13512_s1 + $0x1bf0] ss:$8 sps:$4 sm:$0xff]  }
 0x2d3   :  { %6510 = vmatpush1.bf16.msra.mxu1 %v9731_v28  ;;  %v9809_v28 = vld [vmem:[%s13512_s1 + $0xc10] ss:$8 sps:$4 sm:$0xff]  }
 0x2d4   :  { %7155 = vmatpush1.bf16.msra.mxu0 %v9734_v29  ;;  %6511 = vmatprep.subr.bf16.mxu1 %v9739_v30  ;;  %v9812_v29 = vld [vmem:[%s13512_s1 + $0x1b10] ss:$8 sps:$4 sm:$0xff]   ;;  %v9817_v30 = vld [vmem:[%s13512_s1 + $0xc24] ss:$8 sps:$4 sm:$0xff]  }
 0x2d5   :  { %7156 = vmatprep.subr.bf16.mxu0 %v9742_v31  ;;  %v9820_v31 = vld [vmem:[%s13512_s1 + $0x1b24] ss:$8 sps:$4 sm:$0xff]  }
 0x2d7   :  { %6512 = vmatpush1.bf16.msra.mxu1 %v9737_v32  ;;  %v9815_v32 = vld [vmem:[%s13512_s1 + $0xc20] ss:$8 sps:$4 sm:$0xff]  }
 0x2d8   :  { %7157 = vmatpush1.bf16.msra.mxu0 %v9740_v33  ;;  %6513 = vmatprep.subr.bf16.mxu1 %v9745_v34  ;;  %v9818_v33 = vld [vmem:[%s13512_s1 + $0x1b20] ss:$8 sps:$4 sm:$0xff]   ;;  %v9823_v34 = vld [vmem:[%s13512_s1 + $0xc34] ss:$8 sps:$4 sm:$0xff]  }
 0x2d9   :  { %7158 = vmatprep.subr.bf16.mxu0 %v9748_v35  ;;  %v9826_v35 = vld [vmem:[%s13512_s1 + $0x1b34] ss:$8 sps:$4 sm:$0xff]  }
 0x2db   :  { %6514 = vmatpush1.bf16.msra.mxu1 %v9743_v36  ;;  %v9821_v36 = vld [vmem:[%s13512_s1 + $0xc30] ss:$8 sps:$4 sm:$0xff]  }
 0x2dc   :  { %7159 = vmatpush1.bf16.msra.mxu0 %v9746_v37  ;;  %6515 = vmatprep.subr.bf16.mxu1 %v9751_v38  ;;  %v9824_v37 = vld [vmem:[%s13512_s1 + $0x1b30] ss:$8 sps:$4 sm:$0xff]   ;;  %v9829_v38 = vld [vmem:[%s13512_s1 + $0xc44] ss:$8 sps:$4 sm:$0xff]  }
 0x2dd   :  { %7160 = vmatprep.subr.bf16.mxu0 %v9754_v39  ;;  %v9832_v39 = vld [vmem:[%s13512_s1 + $0x1b44] ss:$8 sps:$4 sm:$0xff]  }
 0x2df   :  { %6516 = vmatpush1.bf16.msra.mxu1 %v9749_v40  ;;  %v9827_v40 = vld [vmem:[%s13512_s1 + $0xc40] ss:$8 sps:$4 sm:$0xff]  }
 0x2e0   :  { %7161 = vmatpush1.bf16.msra.mxu0 %v9752_v41  ;;  %6517 = vmatprep.subr.bf16.mxu1 %v9757_v42  ;;  %v9830_v41 = vld [vmem:[%s13512_s1 + $0x1b40] ss:$8 sps:$4 sm:$0xff]   ;;  %v9835_v42 = vld [vmem:[%s13512_s1 + $0xc54] ss:$8 sps:$4 sm:$0xff]  }
 0x2e1   :  { %7162 = vmatprep.subr.bf16.mxu0 %v9760_v43  ;;  %v9838_v43 = vld [vmem:[%s13512_s1 + $0x1b54] ss:$8 sps:$4 sm:$0xff]  }
 0x2e3   :  { %6518 = vmatpush1.bf16.msra.mxu1 %v9755_v44  ;;  %v9833_v44 = vld [vmem:[%s13512_s1 + $0xc50] ss:$8 sps:$4 sm:$0xff]  }
 0x2e4   :  { %7163 = vmatpush1.bf16.msra.mxu0 %v9758_v45  ;;  %6519 = vmatprep.subr.bf16.mxu1 %v9763_v46  ;;  %v9836_v45 = vld [vmem:[%s13512_s1 + $0x1b50] ss:$8 sps:$4 sm:$0xff]   ;;  %v9841_v46 = vld [vmem:[%s13512_s1 + $0xc64] ss:$8 sps:$4 sm:$0xff]  }
 0x2e5   :  { %7164 = vmatprep.subr.bf16.mxu0 %v9766_v47  ;;  %v9844_v47 = vld [vmem:[%s13512_s1 + $0x1b64] ss:$8 sps:$4 sm:$0xff]  }
 0x2e7   :  { %6520 = vmatpush1.bf16.msra.mxu1 %v9761_v48  ;;  %v9839_v48 = vld [vmem:[%s13512_s1 + $0xc60] ss:$8 sps:$4 sm:$0xff]  }
 0x2e8   :  { %7165 = vmatpush1.bf16.msra.mxu0 %v9764_v49  ;;  %6521 = vmatprep.subr.bf16.mxu1 %v9769_v50  ;;  %v9842_v49 = vld [vmem:[%s13512_s1 + $0x1b60] ss:$8 sps:$4 sm:$0xff]   ;;  %v9847_v50 = vld [vmem:[%s13512_s1 + $0xc74] ss:$8 sps:$4 sm:$0xff]  }
 0x2e9   :  { %7166 = vmatprep.subr.bf16.mxu0 %v9772_v51  ;;  %v9850_v51 = vld [vmem:[%s13512_s1 + $0x1b74] ss:$8 sps:$4 sm:$0xff]  }
 0x2eb   :  { %6522 = vmatpush1.bf16.msra.mxu1 %v9767_v52  ;;  %v9845_v52 = vld [vmem:[%s13512_s1 + $0xc70] ss:$8 sps:$4 sm:$0xff]  }
 0x2ec   :  { %7167 = vmatpush1.bf16.msra.mxu0 %v9770_v53  ;;  %6523 = vmatprep.subr.bf16.mxu1 %v9775_v54  ;;  %v9848_v53 = vld [vmem:[%s13512_s1 + $0x1b70] ss:$8 sps:$4 sm:$0xff]   ;;  %v9853_v54 = vld [vmem:[%s13512_s1 + $0xc84] ss:$8 sps:$4 sm:$0xff]  }
 0x2ed   :  { %7168 = vmatprep.subr.bf16.mxu0 %v9778_v55  ;;  %v9856_v55 = vld [vmem:[%s13512_s1 + $0x1b84] ss:$8 sps:$4 sm:$0xff]  }
 0x2ef   :  { %6524 = vmatpush1.bf16.msra.mxu1 %v9773_v56  ;;  %v9851_v56 = vld [vmem:[%s13512_s1 + $0xc80] ss:$8 sps:$4 sm:$0xff]  }
 0x2f0   :  { %7169 = vmatpush1.bf16.msra.mxu0 %v9776_v57  ;;  %6525 = vmatprep.subr.bf16.mxu1 %v9781_v58  ;;  %v9854_v57 = vld [vmem:[%s13512_s1 + $0x1b80] ss:$8 sps:$4 sm:$0xff]   ;;  %v9859_v58 = vld [vmem:[%s13512_s1 + $0xc94] ss:$8 sps:$4 sm:$0xff]  }
 0x2f1   :  { %7170 = vmatprep.subr.bf16.mxu0 %v9784_v59  ;;  %v9862_v59 = vld [vmem:[%s13512_s1 + $0x1b94] ss:$8 sps:$4 sm:$0xff]  }
 0x2f3   :  { %6526 = vmatpush1.bf16.msra.mxu1 %v9779_v60  ;;  %v9857_v60 = vld [vmem:[%s13512_s1 + $0xc90] ss:$8 sps:$4 sm:$0xff]  }
 0x2f4   :  { %7171 = vmatpush1.bf16.msra.mxu0 %v9782_v61  ;;  %6527 = vmatprep.subr.bf16.mxu1 %v9787_v62  ;;  %v9860_v61 = vld [vmem:[%s13512_s1 + $0x1b90] ss:$8 sps:$4 sm:$0xff]   ;;  %v9865_v62 = vld [vmem:[%s13512_s1 + $0xca4] ss:$8 sps:$4 sm:$0xff]  }
 0x2f5   :  { %7172 = vmatprep.subr.bf16.mxu0 %v9790_v63  ;;  %v9868_v63 = vld [vmem:[%s13512_s1 + $0x1ba4] ss:$8 sps:$4 sm:$0xff]  }
 0x2f7   :  { %6528 = vmatpush1.bf16.msra.mxu1 %v9785_v0  ;;  %v9863_v0 = vld [vmem:[%s13512_s1 + $0xca0] ss:$8 sps:$4 sm:$0xff]  }
 0x2f8   :  { %7173 = vmatpush1.bf16.msra.mxu0 %v9788_v1  ;;  %6529 = vmatprep.subr.bf16.mxu1 %v9793_v2  ;;  %v9866_v1 = vld [vmem:[%s13512_s1 + $0x1ba0] ss:$8 sps:$4 sm:$0xff]   ;;  %v9871_v2 = vld [vmem:[%s13512_s1 + $0xcb4] ss:$8 sps:$4 sm:$0xff]  }
 0x2f9   :  { %7174 = vmatprep.subr.bf16.mxu0 %v9796_v3  ;;  %v9874_v3 = vld [vmem:[%s13512_s1 + $0x1bb4] ss:$8 sps:$4 sm:$0xff]  }
 0x2fb   :  { %6530 = vmatpush1.bf16.msra.mxu1 %v9791_v4  ;;  %v9869_v4 = vld [vmem:[%s13512_s1 + $0xcb0] ss:$8 sps:$4 sm:$0xff]  }
 0x2fc   :  { %7175 = vmatpush1.bf16.msra.mxu0 %v9794_v5  ;;  %6531 = vmatprep.subr.bf16.mxu1 %v9799_v6  ;;  %v9872_v5 = vld [vmem:[%s13512_s1 + $0x1bb0] ss:$8 sps:$4 sm:$0xff]   ;;  %v9877_v6 = vld [vmem:[%s13512_s1 + $0xcc4] ss:$8 sps:$4 sm:$0xff]  }
 0x2fd   :  { %7176 = vmatprep.subr.bf16.mxu0 %v9802_v7  ;;  %v9880_v7 = vld [vmem:[%s13512_s1 + $0x1bc4] ss:$8 sps:$4 sm:$0xff]  }
 0x2ff   :  { %6532 = vmatpush1.bf16.msra.mxu1 %v9797_v8  ;;  %v9875_v8 = vld [vmem:[%s13512_s1 + $0xcc0] ss:$8 sps:$4 sm:$0xff]  }
 0x300   :  { %7177 = vmatpush1.bf16.msra.mxu0 %v9800_v9  ;;  %6544 = vmatprep.subr.bf16.mxu1 %v9805_v14  ;;  %v9878_v9 = vld [vmem:[%s13512_s1 + $0x1bc0] ss:$8 sps:$4 sm:$0xff]   ;;  %v9889_v14 = vld [vmem:[%s13512_s1 + $0xce4] ss:$8 sps:$4 sm:$0xff]  }
 0x301   :  { %7189 = vmatprep.subr.bf16.mxu0 %v9808_v15  ;;  %v9892_v15 = vld [vmem:[%s13512_s1 + $0x1be4] ss:$8 sps:$4 sm:$0xff]  }
 0x302   :  { %6534 = vmatmul.mubr.bf16.vlgmr.msra.gmra.mrb[0].mxu1 %v165_v17  ;;  %v9890_v17 = vld [vmem:[%s13512_s1 + $0x1be0] ss:$8 sps:$4 sm:$0xff]  }
 0x303   :  { %7179 = vmatmul.mubr.bf16.vlgmr.msra.gmra.mrb[0].mxu0 %v195_v18  ;;  %6545 = vmatpush1.bf16.msra.mxu1 %v9803_v22  ;;  %v9895_v18 = vld [vmem:[%s13512_s1 + $0xcf4] ss:$8 sps:$4 sm:$0xff]   ;;  %v45_v22 = vld [vmem:[%s13513_s0 + $0xc0] sm:$0xff] }
 0x304   :  { %7190 = vmatpush1.bf16.msra.mxu0 %v9806_v23  ;;  %6546 = vmatprep.subr.bf16.mxu1 %v9811_v24  ;;  %v106_v23 = vld [vmem:[%s13513_s0 + $0x2a8] sm:$0xff]  ;;  %v75_v24 = vld [vmem:[%s13513_s0 + $0x1b0] sm:$0xff] }
 0x305   :  { %7191 = vmatprep.subr.bf16.mxu0 %v9814_v25  ;;  %6576 = vmatprep.mubr.bf16.mxu1 %v168_v26  ;;  %v136_v25 = vld [vmem:[%s13513_s0 + $0x398] sm:$0xff]  ;;  %v9901_v26 = vld [vmem:[%s13512_s1 + $0xd04] ss:$8 sps:$4 sm:$0xff]  }
 0x306   :  { %7221 = vmatprep.mubr.bf16.mxu0 %v198_v27  ;;  %v9904_v27 = vld [vmem:[%s13512_s1 + $0x1c04] ss:$8 sps:$4 sm:$0xff]  }
 0x307   :  { %6547 = vmatpush1.bf16.msra.mxu1 %v9809_v28  ;;  %v48_v28 = vld [vmem:[%s13513_s0 + $0xd8] sm:$0xff] }
 0x308   :  { %7192 = vmatpush1.bf16.msra.mxu0 %v9812_v29  ;;  %6548 = vmatprep.subr.bf16.mxu1 %v9817_v30  ;;  %v167_v29 = vpack.c.bf16 %v106_v23, %v45_v22  ;;  %v197_v30 = vpack.c.bf16 %v136_v25, %v75_v24  ;;  %v9979_v22 = vld [vmem:[%s13512_s1 + $0xdd4] ss:$8 sps:$4 sm:$0xff]   ;;  %v9977_v24 = vld [vmem:[%s13512_s1 + $0xdd0] ss:$8 sps:$4 sm:$0xff]  }
 0x309   :  { %7193 = vmatprep.subr.bf16.mxu0 %v9820_v31  ;;  %v109_v31 = vld [vmem:[%s13513_s0 + $0x2c0] sm:$0xff]  ;;  %v9982_v23 = vld [vmem:[%s13512_s1 + $0x1cd4] ss:$8 sps:$4 sm:$0xff]   ;;  %v9980_v25 = vld [vmem:[%s13512_s1 + $0x1cd0] ss:$8 sps:$4 sm:$0xff]  }
 0x30b   :  { %6549 = vmatpush1.bf16.msra.mxu1 %v9815_v32  ;;  %v78_v32 = vld [vmem:[%s13513_s0 + $0x1c8] sm:$0xff] }
 0x30c   :  { %7194 = vmatpush1.bf16.msra.mxu0 %v9818_v33  ;;  %6550 = vmatprep.subr.bf16.mxu1 %v9823_v34  ;;  %v139_v33 = vld [vmem:[%s13513_s0 + $0x3b0] sm:$0xff]  ;;  %v9899_v34 = vld [vmem:[%s13512_s1 + $0xd00] ss:$8 sps:$4 sm:$0xff]  }
 0x30d   :  { %7195 = vmatprep.subr.bf16.mxu0 %v9826_v35  ;;  %v9902_v35 = vld [vmem:[%s13512_s1 + $0x1c00] ss:$8 sps:$4 sm:$0xff]  }
 0x30f   :  { %6551 = vmatpush1.bf16.msra.mxu1 %v9821_v36  ;;  %v9907_v36 = vld [vmem:[%s13512_s1 + $0xd14] ss:$8 sps:$4 sm:$0xff]  }
 0x310   :  { %7196 = vmatpush1.bf16.msra.mxu0 %v9824_v37  ;;  %6552 = vmatprep.subr.bf16.mxu1 %v9829_v38  ;;  %v9910_v37 = vld [vmem:[%s13512_s1 + $0x1c14] ss:$8 sps:$4 sm:$0xff]   ;;  %v170_v38 = vpack.c.bf16 %v109_v31, %v48_v28  ;;  %v9983_v28 = vld [vmem:[%s13512_s1 + $0xde0] ss:$8 sps:$4 sm:$0xff]  }
 0x311   :  { %7197 = vmatprep.subr.bf16.mxu0 %v9832_v39  ;;  %v200_v39 = vpack.c.bf16 %v139_v33, %v78_v32  ;;  %v9994_v31 = vld [vmem:[%s13512_s1 + $0x1cf4] ss:$8 sps:$4 sm:$0xff]   ;;  %v9989_v32 = vld [vmem:[%s13512_s1 + $0xdf0] ss:$8 sps:$4 sm:$0xff]  }
 0x312   :  { %v9992_v33 = vld [vmem:[%s13512_s1 + $0x1cf0] ss:$8 sps:$4 sm:$0xff]  }
 0x313   :  { %6553 = vmatpush1.bf16.msra.mxu1 %v9827_v40  ;;  %v9905_v40 = vld [vmem:[%s13512_s1 + $0xd10] ss:$8 sps:$4 sm:$0xff]  }
 0x314   :  { %7198 = vmatpush1.bf16.msra.mxu0 %v9830_v41  ;;  %6554 = vmatprep.subr.bf16.mxu1 %v9835_v42  ;;  %v9908_v41 = vld [vmem:[%s13512_s1 + $0x1c10] ss:$8 sps:$4 sm:$0xff]   ;;  %v9913_v42 = vld [vmem:[%s13512_s1 + $0xd24] ss:$8 sps:$4 sm:$0xff]  }
 0x315   :  { %7199 = vmatprep.subr.bf16.mxu0 %v9838_v43  ;;  %v9916_v43 = vld [vmem:[%s13512_s1 + $0x1c24] ss:$8 sps:$4 sm:$0xff]  }
 0x317   :  { %6555 = vmatpush1.bf16.msra.mxu1 %v9833_v44  ;;  %v9911_v44 = vld [vmem:[%s13512_s1 + $0xd20] ss:$8 sps:$4 sm:$0xff]  }
 0x318   :  { %7200 = vmatpush1.bf16.msra.mxu0 %v9836_v45  ;;  %6556 = vmatprep.subr.bf16.mxu1 %v9841_v46  ;;  %v9914_v45 = vld [vmem:[%s13512_s1 + $0x1c20] ss:$8 sps:$4 sm:$0xff]   ;;  %v9919_v46 = vld [vmem:[%s13512_s1 + $0xd34] ss:$8 sps:$4 sm:$0xff]  }
 0x319   :  { %7201 = vmatprep.subr.bf16.mxu0 %v9844_v47  ;;  %v9922_v47 = vld [vmem:[%s13512_s1 + $0x1c34] ss:$8 sps:$4 sm:$0xff]  }
 0x31b   :  { %6557 = vmatpush1.bf16.msra.mxu1 %v9839_v48  ;;  %v9917_v48 = vld [vmem:[%s13512_s1 + $0xd30] ss:$8 sps:$4 sm:$0xff]  }
 0x31c   :  { %7202 = vmatpush1.bf16.msra.mxu0 %v9842_v49  ;;  %6558 = vmatprep.subr.bf16.mxu1 %v9847_v50  ;;  %v9920_v49 = vld [vmem:[%s13512_s1 + $0x1c30] ss:$8 sps:$4 sm:$0xff]   ;;  %v9925_v50 = vld [vmem:[%s13512_s1 + $0xd44] ss:$8 sps:$4 sm:$0xff]  }
 0x31d   :  { %7203 = vmatprep.subr.bf16.mxu0 %v9850_v51  ;;  %v9928_v51 = vld [vmem:[%s13512_s1 + $0x1c44] ss:$8 sps:$4 sm:$0xff]  }
 0x31f   :  { %6559 = vmatpush1.bf16.msra.mxu1 %v9845_v52  ;;  %v9923_v52 = vld [vmem:[%s13512_s1 + $0xd40] ss:$8 sps:$4 sm:$0xff]  }
 0x320   :  { %7204 = vmatpush1.bf16.msra.mxu0 %v9848_v53  ;;  %6560 = vmatprep.subr.bf16.mxu1 %v9853_v54  ;;  %v9926_v53 = vld [vmem:[%s13512_s1 + $0x1c40] ss:$8 sps:$4 sm:$0xff]   ;;  %v9931_v54 = vld [vmem:[%s13512_s1 + $0xd54] ss:$8 sps:$4 sm:$0xff]  }
 0x321   :  { %7205 = vmatprep.subr.bf16.mxu0 %v9856_v55  ;;  %v9934_v55 = vld [vmem:[%s13512_s1 + $0x1c54] ss:$8 sps:$4 sm:$0xff]  }
 0x323   :  { %6561 = vmatpush1.bf16.msra.mxu1 %v9851_v56  ;;  %v9929_v56 = vld [vmem:[%s13512_s1 + $0xd50] ss:$8 sps:$4 sm:$0xff]  }
 0x324   :  { %7206 = vmatpush1.bf16.msra.mxu0 %v9854_v57  ;;  %6562 = vmatprep.subr.bf16.mxu1 %v9859_v58  ;;  %v9932_v57 = vld [vmem:[%s13512_s1 + $0x1c50] ss:$8 sps:$4 sm:$0xff]   ;;  %v9937_v58 = vld [vmem:[%s13512_s1 + $0xd64] ss:$8 sps:$4 sm:$0xff]  }
 0x325   :  { %7207 = vmatprep.subr.bf16.mxu0 %v9862_v59  ;;  %v9940_v59 = vld [vmem:[%s13512_s1 + $0x1c64] ss:$8 sps:$4 sm:$0xff]  }
 0x327   :  { %6563 = vmatpush1.bf16.msra.mxu1 %v9857_v60  ;;  %v9935_v60 = vld [vmem:[%s13512_s1 + $0xd60] ss:$8 sps:$4 sm:$0xff]  }
 0x328   :  { %7208 = vmatpush1.bf16.msra.mxu0 %v9860_v61  ;;  %6564 = vmatprep.subr.bf16.mxu1 %v9865_v62  ;;  %v9938_v61 = vld [vmem:[%s13512_s1 + $0x1c60] ss:$8 sps:$4 sm:$0xff]   ;;  %v9943_v62 = vld [vmem:[%s13512_s1 + $0xd74] ss:$8 sps:$4 sm:$0xff]  }
 0x329   :  { %7209 = vmatprep.subr.bf16.mxu0 %v9868_v63  ;;  %v9946_v63 = vld [vmem:[%s13512_s1 + $0x1c74] ss:$8 sps:$4 sm:$0xff]  }
 0x32b   :  { %6565 = vmatpush1.bf16.msra.mxu1 %v9863_v0  ;;  %v9941_v0 = vld [vmem:[%s13512_s1 + $0xd70] ss:$8 sps:$4 sm:$0xff]  }
 0x32c   :  { %7210 = vmatpush1.bf16.msra.mxu0 %v9866_v1  ;;  %6566 = vmatprep.subr.bf16.mxu1 %v9871_v2  ;;  %v9944_v1 = vld [vmem:[%s13512_s1 + $0x1c70] ss:$8 sps:$4 sm:$0xff]   ;;  %v9949_v2 = vld [vmem:[%s13512_s1 + $0xd84] ss:$8 sps:$4 sm:$0xff]  }
 0x32d   :  { %7211 = vmatprep.subr.bf16.mxu0 %v9874_v3  ;;  %v9952_v3 = vld [vmem:[%s13512_s1 + $0x1c84] ss:$8 sps:$4 sm:$0xff]  }
 0x32f   :  { %6567 = vmatpush1.bf16.msra.mxu1 %v9869_v4  ;;  %v9947_v4 = vld [vmem:[%s13512_s1 + $0xd80] ss:$8 sps:$4 sm:$0xff]  }
 0x330   :  { %7212 = vmatpush1.bf16.msra.mxu0 %v9872_v5  ;;  %6568 = vmatprep.subr.bf16.mxu1 %v9877_v6  ;;  %v9950_v5 = vld [vmem:[%s13512_s1 + $0x1c80] ss:$8 sps:$4 sm:$0xff]   ;;  %v9955_v6 = vld [vmem:[%s13512_s1 + $0xd94] ss:$8 sps:$4 sm:$0xff]  }
 0x331   :  { %7213 = vmatprep.subr.bf16.mxu0 %v9880_v7  ;;  %v9958_v7 = vld [vmem:[%s13512_s1 + $0x1c94] ss:$8 sps:$4 sm:$0xff]  }
 0x333   :  { %6569 = vmatpush1.bf16.msra.mxu1 %v9875_v8  ;;  %v9953_v8 = vld [vmem:[%s13512_s1 + $0xd90] ss:$8 sps:$4 sm:$0xff]  }
 0x334   :  { %7214 = vmatpush1.bf16.msra.mxu0 %v9878_v9  ;;  %6570 = vmatprep.subr.bf16.mxu1 %v9883_v10  ;;  %v9956_v9 = vld [vmem:[%s13512_s1 + $0x1c90] ss:$8 sps:$4 sm:$0xff]   ;;  %v9961_v10 = vld [vmem:[%s13512_s1 + $0xda4] ss:$8 sps:$4 sm:$0xff]  }
 0x335   :  { %7215 = vmatprep.subr.bf16.mxu0 %v9886_v11  ;;  %v9964_v11 = vld [vmem:[%s13512_s1 + $0x1ca4] ss:$8 sps:$4 sm:$0xff]  }
 0x337   :  { %6571 = vmatpush1.bf16.msra.mxu1 %v9881_v12  ;;  %v9959_v12 = vld [vmem:[%s13512_s1 + $0xda0] ss:$8 sps:$4 sm:$0xff]  }
 0x338   :  { %7216 = vmatpush1.bf16.msra.mxu0 %v9884_v13  ;;  %6572 = vmatprep.subr.bf16.mxu1 %v9889_v14  ;;  %v9962_v13 = vld [vmem:[%s13512_s1 + $0x1ca0] ss:$8 sps:$4 sm:$0xff]   ;;  %v9967_v14 = vld [vmem:[%s13512_s1 + $0xdb4] ss:$8 sps:$4 sm:$0xff]  }
 0x339   :  { %7217 = vmatprep.subr.bf16.mxu0 %v9892_v15  ;;  %v9970_v15 = vld [vmem:[%s13512_s1 + $0x1cb4] ss:$8 sps:$4 sm:$0xff]  }
 0x33b   :  { %6573 = vmatpush1.bf16.msra.mxu1 %v9887_v16  ;;  %v9965_v16 = vld [vmem:[%s13512_s1 + $0xdb0] ss:$8 sps:$4 sm:$0xff]  }
 0x33c   :  { %7218 = vmatpush1.bf16.msra.mxu0 %v9890_v17  ;;  %6574 = vmatprep.subr.bf16.mxu1 %v9895_v18  ;;  %v9968_v17 = vld [vmem:[%s13512_s1 + $0x1cb0] ss:$8 sps:$4 sm:$0xff]   ;;  %v9973_v18 = vld [vmem:[%s13512_s1 + $0xdc4] ss:$8 sps:$4 sm:$0xff]  }
 0x33d   :  { %7219 = vmatprep.subr.bf16.mxu0 %v9898_v19  ;;  %v9976_v19 = vld [vmem:[%s13512_s1 + $0x1cc4] ss:$8 sps:$4 sm:$0xff]  }
 0x33f   :  { %6575 = vmatpush1.bf16.msra.mxu1 %v9893_v20  ;;  %v9971_v20 = vld [vmem:[%s13512_s1 + $0xdc0] ss:$8 sps:$4 sm:$0xff]  }
 0x340   :  { %7220 = vmatpush1.bf16.msra.mxu0 %v9896_v21  ;;  %6587 = vmatprep.subr.bf16.mxu1 %v9901_v26  ;;  %v9974_v21 = vld [vmem:[%s13512_s1 + $0x1cc0] ss:$8 sps:$4 sm:$0xff]   ;;  %v9985_v26 = vld [vmem:[%s13512_s1 + $0xde4] ss:$8 sps:$4 sm:$0xff]  }
 0x341   :  { %7232 = vmatprep.subr.bf16.mxu0 %v9904_v27  ;;  %v9988_v27 = vld [vmem:[%s13512_s1 + $0x1ce4] ss:$8 sps:$4 sm:$0xff]  }
 0x342   :  { %6577 = vmatmul.mubr.bf16.vlgmr.msra.gmra.mrb[0].mxu1 %v167_v29  ;;  %v9986_v29 = vld [vmem:[%s13512_s1 + $0x1ce0] ss:$8 sps:$4 sm:$0xff]  }
 0x343   :  { %7222 = vmatmul.mubr.bf16.vlgmr.msra.gmra.mrb[0].mxu0 %v197_v30  ;;  %6588 = vmatpush1.bf16.msra.mxu1 %v9899_v34  ;;  %v9991_v30 = vld [vmem:[%s13512_s1 + $0xdf4] ss:$8 sps:$4 sm:$0xff]  }
 0x344   :  { %7233 = vmatpush1.bf16.msra.mxu0 %v9902_v35  ;;  %6589 = vmatprep.subr.bf16.mxu1 %v9907_v36  ;;  %v47_v34 = vld [vmem:[%s13513_s0 + $0xd0] sm:$0xff]  ;;  %v108_v35 = vld [vmem:[%s13513_s0 + $0x2b8] sm:$0xff]  ;;  %v77_v36 = vld [vmem:[%s13513_s0 + $0x1c0] sm:$0xff] }
 0x345   :  { %7234 = vmatprep.subr.bf16.mxu0 %v9910_v37  ;;  %6619 = vmatprep.mubr.bf16.mxu1 %v170_v38  ;;  %v138_v37 = vld [vmem:[%s13513_s0 + $0x3a8] sm:$0xff] }
 0x346   :  { %7264 = vmatprep.mubr.bf16.mxu0 %v200_v39  ;;  %v9997_v38 = vld [vmem:[%s13512_s1 + $0xe04] ss:$8 sps:$4 sm:$0xff]  }
 0x347   :  { %6590 = vmatpush1.bf16.msra.mxu1 %v9905_v40  ;;  %v10000_v39 = vld [vmem:[%s13512_s1 + $0x1d04] ss:$8 sps:$4 sm:$0xff]  }
 0x348   :  { %7235 = vmatpush1.bf16.msra.mxu0 %v9908_v41  ;;  %6591 = vmatprep.subr.bf16.mxu1 %v9913_v42  ;;  %v50_v40 = vld [vmem:[%s13513_s0 + $0xe8] sm:$0xff]  ;;  %v169_v41 = vpack.c.bf16 %v108_v35, %v47_v34  ;;  %v199_v42 = vpack.c.bf16 %v138_v37, %v77_v36  ;;  %v10075_v34 = vld [vmem:[%s13512_s1 + $0xed4] ss:$8 sps:$4 sm:$0xff]   ;;  %v10073_v36 = vld [vmem:[%s13512_s1 + $0xed0] ss:$8 sps:$4 sm:$0xff]  }
 0x349   :  { %7236 = vmatprep.subr.bf16.mxu0 %v9916_v43  ;;  %v111_v43 = vld [vmem:[%s13513_s0 + $0x2d0] sm:$0xff] }
 0x34a   :  { %v10078_v35 = vld [vmem:[%s13512_s1 + $0x1dd4] ss:$8 sps:$4 sm:$0xff]   ;;  %v10076_v37 = vld [vmem:[%s13512_s1 + $0x1dd0] ss:$8 sps:$4 sm:$0xff]  }
 0x34b   :  { %6592 = vmatpush1.bf16.msra.mxu1 %v9911_v44  ;;  %v80_v44 = vld [vmem:[%s13513_s0 + $0x1d8] sm:$0xff] }
 0x34c   :  { %7237 = vmatpush1.bf16.msra.mxu0 %v9914_v45  ;;  %6593 = vmatprep.subr.bf16.mxu1 %v9919_v46  ;;  %v141_v45 = vld [vmem:[%s13513_s0 + $0x3c0] sm:$0xff] }
 0x34d   :  { %7238 = vmatprep.subr.bf16.mxu0 %v9922_v47  ;;  %v9995_v46 = vld [vmem:[%s13512_s1 + $0xe00] ss:$8 sps:$4 sm:$0xff]  }
 0x34e   :  { %v9998_v47 = vld [vmem:[%s13512_s1 + $0x1d00] ss:$8 sps:$4 sm:$0xff]  }
 0x34f   :  { %6594 = vmatpush1.bf16.msra.mxu1 %v9917_v48  ;;  %v10003_v48 = vld [vmem:[%s13512_s1 + $0xe14] ss:$8 sps:$4 sm:$0xff]  }
 0x350   :  { %7239 = vmatpush1.bf16.msra.mxu0 %v9920_v49  ;;  %6595 = vmatprep.subr.bf16.mxu1 %v9925_v50  ;;  %v10006_v49 = vld [vmem:[%s13512_s1 + $0x1d14] ss:$8 sps:$4 sm:$0xff]   ;;  %v172_v50 = vpack.c.bf16 %v111_v43, %v50_v40  ;;  %v10079_v40 = vld [vmem:[%s13512_s1 + $0xee0] ss:$8 sps:$4 sm:$0xff]  }
 0x351   :  { %7240 = vmatprep.subr.bf16.mxu0 %v9928_v51  ;;  %v202_v51 = vpack.c.bf16 %v141_v45, %v80_v44  ;;  %v10090_v43 = vld [vmem:[%s13512_s1 + $0x1df4] ss:$8 sps:$4 sm:$0xff]   ;;  %v7381_v44 = vld [vmem:[%s13514_s3 + $0x80] sm:$0xff]  ;;  %v7382_v45 = vld [vmem:[%s13514_s3 + $0x88] sm:$0xff] }
 0x353   :  { %6596 = vmatpush1.bf16.msra.mxu1 %v9923_v52  ;;  %v10001_v52 = vld [vmem:[%s13512_s1 + $0xe10] ss:$8 sps:$4 sm:$0xff]  }
 0x354   :  { %7241 = vmatpush1.bf16.msra.mxu0 %v9926_v53  ;;  %6597 = vmatprep.subr.bf16.mxu1 %v9931_v54  ;;  %v10004_v53 = vld [vmem:[%s13512_s1 + $0x1d10] ss:$8 sps:$4 sm:$0xff]   ;;  %v10009_v54 = vld [vmem:[%s13512_s1 + $0xe24] ss:$8 sps:$4 sm:$0xff]  }
 0x355   :  { %7242 = vmatprep.subr.bf16.mxu0 %v9934_v55  ;;  %v10012_v55 = vld [vmem:[%s13512_s1 + $0x1d24] ss:$8 sps:$4 sm:$0xff]  }
 0x357   :  { %6598 = vmatpush1.bf16.msra.mxu1 %v9929_v56  ;;  %v10007_v56 = vld [vmem:[%s13512_s1 + $0xe20] ss:$8 sps:$4 sm:$0xff]  }
 0x358   :  { %7243 = vmatpush1.bf16.msra.mxu0 %v9932_v57  ;;  %6599 = vmatprep.subr.bf16.mxu1 %v9937_v58  ;;  %v10010_v57 = vld [vmem:[%s13512_s1 + $0x1d20] ss:$8 sps:$4 sm:$0xff]   ;;  %v10015_v58 = vld [vmem:[%s13512_s1 + $0xe34] ss:$8 sps:$4 sm:$0xff]  }
 0x359   :  { %7244 = vmatprep.subr.bf16.mxu0 %v9940_v59  ;;  %v10018_v59 = vld [vmem:[%s13512_s1 + $0x1d34] ss:$8 sps:$4 sm:$0xff]  }
 0x35b   :  { %6600 = vmatpush1.bf16.msra.mxu1 %v9935_v60  ;;  %v10013_v60 = vld [vmem:[%s13512_s1 + $0xe30] ss:$8 sps:$4 sm:$0xff]  }
 0x35c   :  { %7245 = vmatpush1.bf16.msra.mxu0 %v9938_v61  ;;  %6601 = vmatprep.subr.bf16.mxu1 %v9943_v62  ;;  %v10016_v61 = vld [vmem:[%s13512_s1 + $0x1d30] ss:$8 sps:$4 sm:$0xff]   ;;  %v10021_v62 = vld [vmem:[%s13512_s1 + $0xe44] ss:$8 sps:$4 sm:$0xff]  }
 0x35d   :  { %7246 = vmatprep.subr.bf16.mxu0 %v9946_v63  ;;  %v10024_v63 = vld [vmem:[%s13512_s1 + $0x1d44] ss:$8 sps:$4 sm:$0xff]  }
 0x35f   :  { %6602 = vmatpush1.bf16.msra.mxu1 %v9941_v0  ;;  %v10019_v0 = vld [vmem:[%s13512_s1 + $0xe40] ss:$8 sps:$4 sm:$0xff]  }
 0x360   :  { %7247 = vmatpush1.bf16.msra.mxu0 %v9944_v1  ;;  %6603 = vmatprep.subr.bf16.mxu1 %v9949_v2  ;;  %v10022_v1 = vld [vmem:[%s13512_s1 + $0x1d40] ss:$8 sps:$4 sm:$0xff]   ;;  %v10027_v2 = vld [vmem:[%s13512_s1 + $0xe54] ss:$8 sps:$4 sm:$0xff]  }
 0x361   :  { %7248 = vmatprep.subr.bf16.mxu0 %v9952_v3  ;;  %v10030_v3 = vld [vmem:[%s13512_s1 + $0x1d54] ss:$8 sps:$4 sm:$0xff]  }
 0x363   :  { %6604 = vmatpush1.bf16.msra.mxu1 %v9947_v4  ;;  %v10025_v4 = vld [vmem:[%s13512_s1 + $0xe50] ss:$8 sps:$4 sm:$0xff]  }
 0x364   :  { %7249 = vmatpush1.bf16.msra.mxu0 %v9950_v5  ;;  %6605 = vmatprep.subr.bf16.mxu1 %v9955_v6  ;;  %v10028_v5 = vld [vmem:[%s13512_s1 + $0x1d50] ss:$8 sps:$4 sm:$0xff]   ;;  %v10033_v6 = vld [vmem:[%s13512_s1 + $0xe64] ss:$8 sps:$4 sm:$0xff]  }
 0x365   :  { %7250 = vmatprep.subr.bf16.mxu0 %v9958_v7  ;;  %v10036_v7 = vld [vmem:[%s13512_s1 + $0x1d64] ss:$8 sps:$4 sm:$0xff]  }
 0x367   :  { %6606 = vmatpush1.bf16.msra.mxu1 %v9953_v8  ;;  %v10031_v8 = vld [vmem:[%s13512_s1 + $0xe60] ss:$8 sps:$4 sm:$0xff]  }
 0x368   :  { %7251 = vmatpush1.bf16.msra.mxu0 %v9956_v9  ;;  %6607 = vmatprep.subr.bf16.mxu1 %v9961_v10  ;;  %v10034_v9 = vld [vmem:[%s13512_s1 + $0x1d60] ss:$8 sps:$4 sm:$0xff]   ;;  %v10039_v10 = vld [vmem:[%s13512_s1 + $0xe74] ss:$8 sps:$4 sm:$0xff]  }
 0x369   :  { %7252 = vmatprep.subr.bf16.mxu0 %v9964_v11  ;;  %v10042_v11 = vld [vmem:[%s13512_s1 + $0x1d74] ss:$8 sps:$4 sm:$0xff]  }
 0x36b   :  { %6608 = vmatpush1.bf16.msra.mxu1 %v9959_v12  ;;  %v10037_v12 = vld [vmem:[%s13512_s1 + $0xe70] ss:$8 sps:$4 sm:$0xff]  }
 0x36c   :  { %7253 = vmatpush1.bf16.msra.mxu0 %v9962_v13  ;;  %6609 = vmatprep.subr.bf16.mxu1 %v9967_v14  ;;  %v10040_v13 = vld [vmem:[%s13512_s1 + $0x1d70] ss:$8 sps:$4 sm:$0xff]   ;;  %v10045_v14 = vld [vmem:[%s13512_s1 + $0xe84] ss:$8 sps:$4 sm:$0xff]  }
 0x36d   :  { %7254 = vmatprep.subr.bf16.mxu0 %v9970_v15  ;;  %v10048_v15 = vld [vmem:[%s13512_s1 + $0x1d84] ss:$8 sps:$4 sm:$0xff]  }
 0x36f   :  { %6610 = vmatpush1.bf16.msra.mxu1 %v9965_v16  ;;  %v10043_v16 = vld [vmem:[%s13512_s1 + $0xe80] ss:$8 sps:$4 sm:$0xff]  }
 0x370   :  { %7255 = vmatpush1.bf16.msra.mxu0 %v9968_v17  ;;  %6611 = vmatprep.subr.bf16.mxu1 %v9973_v18  ;;  %v10046_v17 = vld [vmem:[%s13512_s1 + $0x1d80] ss:$8 sps:$4 sm:$0xff]   ;;  %v10051_v18 = vld [vmem:[%s13512_s1 + $0xe94] ss:$8 sps:$4 sm:$0xff]  }
 0x371   :  { %7256 = vmatprep.subr.bf16.mxu0 %v9976_v19  ;;  %v10054_v19 = vld [vmem:[%s13512_s1 + $0x1d94] ss:$8 sps:$4 sm:$0xff]  }
 0x373   :  { %6612 = vmatpush1.bf16.msra.mxu1 %v9971_v20  ;;  %v10049_v20 = vld [vmem:[%s13512_s1 + $0xe90] ss:$8 sps:$4 sm:$0xff]  }
 0x374   :  { %7257 = vmatpush1.bf16.msra.mxu0 %v9974_v21  ;;  %6613 = vmatprep.subr.bf16.mxu1 %v9979_v22  ;;  %v10052_v21 = vld [vmem:[%s13512_s1 + $0x1d90] ss:$8 sps:$4 sm:$0xff]   ;;  %v10057_v22 = vld [vmem:[%s13512_s1 + $0xea4] ss:$8 sps:$4 sm:$0xff]  }
 0x375   :  { %7258 = vmatprep.subr.bf16.mxu0 %v9982_v23  ;;  %v10060_v23 = vld [vmem:[%s13512_s1 + $0x1da4] ss:$8 sps:$4 sm:$0xff]  }
 0x377   :  { %6614 = vmatpush1.bf16.msra.mxu1 %v9977_v24  ;;  %v10055_v24 = vld [vmem:[%s13512_s1 + $0xea0] ss:$8 sps:$4 sm:$0xff]  }
 0x378   :  { %7259 = vmatpush1.bf16.msra.mxu0 %v9980_v25  ;;  %6615 = vmatprep.subr.bf16.mxu1 %v9985_v26  ;;  %v10058_v25 = vld [vmem:[%s13512_s1 + $0x1da0] ss:$8 sps:$4 sm:$0xff]   ;;  %v10063_v26 = vld [vmem:[%s13512_s1 + $0xeb4] ss:$8 sps:$4 sm:$0xff]  }
 0x379   :  { %7260 = vmatprep.subr.bf16.mxu0 %v9988_v27  ;;  %v10066_v27 = vld [vmem:[%s13512_s1 + $0x1db4] ss:$8 sps:$4 sm:$0xff]  }
 0x37b   :  { %6616 = vmatpush1.bf16.msra.mxu1 %v9983_v28  ;;  %v10061_v28 = vld [vmem:[%s13512_s1 + $0xeb0] ss:$8 sps:$4 sm:$0xff]  }
 0x37c   :  { %7261 = vmatpush1.bf16.msra.mxu0 %v9986_v29  ;;  %6617 = vmatprep.subr.bf16.mxu1 %v9991_v30  ;;  %v10064_v29 = vld [vmem:[%s13512_s1 + $0x1db0] ss:$8 sps:$4 sm:$0xff]   ;;  %v10069_v30 = vld [vmem:[%s13512_s1 + $0xec4] ss:$8 sps:$4 sm:$0xff]  }
 0x37d   :  { %7262 = vmatprep.subr.bf16.mxu0 %v9994_v31  ;;  %v10072_v31 = vld [vmem:[%s13512_s1 + $0x1dc4] ss:$8 sps:$4 sm:$0xff]  }
 0x37f   :  { %6618 = vmatpush1.bf16.msra.mxu1 %v9989_v32  ;;  %v10067_v32 = vld [vmem:[%s13512_s1 + $0xec0] ss:$8 sps:$4 sm:$0xff]  }
 0x380   :  { %7263 = vmatpush1.bf16.msra.mxu0 %v9992_v33  ;;  %6630 = vmatprep.subr.bf16.mxu1 %v9997_v38  ;;  %v10070_v33 = vld [vmem:[%s13512_s1 + $0x1dc0] ss:$8 sps:$4 sm:$0xff]   ;;  %v10081_v38 = vld [vmem:[%s13512_s1 + $0xee4] ss:$8 sps:$4 sm:$0xff]  }
 0x381   :  { %7275 = vmatprep.subr.bf16.mxu0 %v10000_v39  ;;  %v10084_v39 = vld [vmem:[%s13512_s1 + $0x1de4] ss:$8 sps:$4 sm:$0xff]  }
 0x382   :  { %6620 = vmatmul.mubr.bf16.vlgmr.msra.gmra.mrb[0].mxu1 %v169_v41  ;;  %v10082_v41 = vld [vmem:[%s13512_s1 + $0x1de0] ss:$8 sps:$4 sm:$0xff]  }
 0x383   :  { %7265 = vmatmul.mubr.bf16.vlgmr.msra.gmra.mrb[0].mxu0 %v199_v42  ;;  %6631 = vmatpush1.bf16.msra.mxu1 %v9995_v46  ;;  %v10087_v42 = vld [vmem:[%s13512_s1 + $0xef4] ss:$8 sps:$4 sm:$0xff]   ;;  %v10085_v46 = vld [vmem:[%s13512_s1 + $0xef0] ss:$8 sps:$4 sm:$0xff]  }
 0x384   :  { %7276 = vmatpush1.bf16.msra.mxu0 %v9998_v47  ;;  %6632 = vmatprep.subr.bf16.mxu1 %v10003_v48  ;;  %v10088_v47 = vld [vmem:[%s13512_s1 + $0x1df0] ss:$8 sps:$4 sm:$0xff]   ;;  %v49_v48 = vld [vmem:[%s13513_s0 + $0xe0] sm:$0xff] }
 0x385   :  { %7277 = vmatprep.subr.bf16.mxu0 %v10006_v49  ;;  %6662 = vmatprep.mubr.bf16.mxu1 %v172_v50  ;;  %v110_v49 = vld [vmem:[%s13513_s0 + $0x2c8] sm:$0xff]  ;;  %v79_v50 = vld [vmem:[%s13513_s0 + $0x1d0] sm:$0xff] }
 0x386   :  { %7307 = vmatprep.mubr.bf16.mxu0 %v202_v51  ;;  %v140_v51 = vld [vmem:[%s13513_s0 + $0x3b8] sm:$0xff] }
 0x387   :  { %6633 = vmatpush1.bf16.msra.mxu1 %v10001_v52  ;;  %v10093_v52 = vld [vmem:[%s13512_s1 + $0x1e04] ss:$8 sps:$4 sm:$0xff]  }
 0x388   :  { %7278 = vmatpush1.bf16.msra.mxu0 %v10004_v53  ;;  %6634 = vmatprep.subr.bf16.mxu1 %v10009_v54  ;;  %v8494_v53 = vpack.c.bf16 %v7382_v45, %v7381_v44  ;;  %v7365_v54 = vld [vmem:[%s13514_s3] sm:$0xff]  ;;  %v7379_v45 = vld [vmem:[%s13514_s3 + $0x70] sm:$0xff] }
 0x389   :  { %7279 = vmatprep.subr.bf16.mxu0 %v10012_v55  ;;  %v7366_v55 = vld [vmem:[%s13514_s3 + $0x8] sm:$0xff] }
 0x38b   :  { %6635 = vmatpush1.bf16.msra.mxu1 %v10007_v56  ;;  %v171_v56 = vpack.c.bf16 %v110_v49, %v49_v48  ;;  %v1174_v48 = vlaneseq }
 0x38c   :  { %7280 = vmatpush1.bf16.msra.mxu0 %v10010_v57  ;;  %6636 = vmatprep.subr.bf16.mxu1 %v10015_v58  ;;  %v201_v57 = vpack.c.bf16 %v140_v51, %v79_v50  ;;  %v7383_v58 = vld [vmem:[%s13514_s3 + $0x90] sm:$0xff] }
 0x38d   :  { %7281 = vmatprep.subr.bf16.mxu0 %v10018_v59  ;;  %v7384_v59 = vld [vmem:[%s13514_s3 + $0x98] sm:$0xff] }
 0x38f   :  { %6637 = vmatpush1.bf16.msra.mxu1 %v10013_v60  ;;  %v10091_v60 = vld [vmem:[%s13512_s1 + $0x1e00] ss:$8 sps:$4 sm:$0xff]  }
 0x390   :  { %7282 = vmatpush1.bf16.msra.mxu0 %v10016_v61  ;;  %6638 = vmatprep.subr.bf16.mxu1 %v10021_v62  ;;  %v10096_v61 = vld [vmem:[%s13512_s1 + $0x1e14] ss:$8 sps:$4 sm:$0xff]   ;;  %v8496_v62 = vpack.c.bf16 %v7366_v55, %v7365_v54  ;;  %v1172_v55 = vld [vmem:[%s13515_s2] sm:$0x3] }
 0x391   :  { %7283 = vmatprep.subr.bf16.mxu0 %v10024_v63  ;;  %v8498_v63 = vpack.c.bf16 %v7384_v59, %v7383_v58 }
 0x393   :  { %6639 = vmatpush1.bf16.msra.mxu1 %v10019_v0  ;;  %v7367_v0 = vld [vmem:[%s13514_s3 + $0x10] sm:$0xff] }
 0x394   :  { %7284 = vmatpush1.bf16.msra.mxu0 %v10022_v1  ;;  %6640 = vmatprep.subr.bf16.mxu1 %v10027_v2  ;;  %v7368_v1 = vld [vmem:[%s13514_s3 + $0x18] sm:$0xff]  ;;  %v7385_v2 = vld [vmem:[%s13514_s3 + $0xa0] sm:$0xff] }
 0x395   :  { %7285 = vmatprep.subr.bf16.mxu0 %v10030_v3  ;;  %v7386_v3 = vld [vmem:[%s13514_s3 + $0xa8] sm:$0xff] }
 0x397   :  { %6641 = vmatpush1.bf16.msra.mxu1 %v10025_v4  ;;  %v10094_v4 = vld [vmem:[%s13512_s1 + $0x1e10] ss:$8 sps:$4 sm:$0xff]  }
 0x398   :  { %7286 = vmatpush1.bf16.msra.mxu0 %v10028_v5  ;;  %6642 = vmatprep.subr.bf16.mxu1 %v10033_v6  ;;  %v10103_v5 = vmov 0   ;;  %v10099_v6 = vld [vmem:[%s13512_s1 + $0x1e24] ss:$8 sps:$4 sm:$0xff]  }
 0x399   :  { %7287 = vmatprep.subr.bf16.mxu0 %v10036_v7  ;;  %v8500_v7 = vpack.c.bf16 %v7368_v1, %v7367_v0 }
 0x39b   :  { %6643 = vmatpush1.bf16.msra.mxu1 %v10031_v8  ;;  %v8502_v8 = vpack.c.bf16 %v7386_v3, %v7385_v2 }
 0x39c   :  { %7288 = vmatpush1.bf16.msra.mxu0 %v10034_v9  ;;  %6644 = vmatprep.subr.bf16.mxu1 %v10039_v10  ;;  %v10097_v9 = vld [vmem:[%s13512_s1 + $0x1e20] ss:$8 sps:$4 sm:$0xff]   ;;  %v10102_v10 = vld [vmem:[%s13512_s1 + $0x1e34] ss:$8 sps:$4 sm:$0xff]  }
 0x39d   :  { %7289 = vmatprep.subr.bf16.mxu0 %v10042_v11  ;;  %v10100_v11 = vld [vmem:[%s13512_s1 + $0x1e30] ss:$8 sps:$4 sm:$0xff]  }
 0x39f   :  { %6645 = vmatpush1.bf16.msra.mxu1 %v10037_v12  ;;  %v81_v12 = vld [vmem:[%s13513_s0 + $0x1e0] sm:$0xff] }
 0x3a0   :  { %7290 = vmatpush1.bf16.msra.mxu0 %v10040_v13  ;;  %6646 = vmatprep.subr.bf16.mxu1 %v10045_v14  ;;  %v142_v13 = vld [vmem:[%s13513_s0 + $0x3c8] sm:$0xff] }
 0x3a1   :  { %7291 = vmatprep.subr.bf16.mxu0 %v10048_v15  ;;  %v203_v14 = vpack.c.bf16 %v142_v13, %v81_v12  ;;  %v7369_v15 = vld [vmem:[%s13514_s3 + $0x20] sm:$0xff] }
 0x3a2   :  { %v8455_v12 = vld [vmem:[%s13516_s4] ss:$0 sm:$0xff] }
 0x3a3   :  { %6647 = vmatpush1.bf16.msra.mxu1 %v10043_v16  ;;  %v7370_v16 = vld [vmem:[%s13514_s3 + $0x28] sm:$0xff] }
 0x3a4   :  { %7292 = vmatpush1.bf16.msra.mxu0 %v10046_v17  ;;  %6648 = vmatprep.subr.bf16.mxu1 %v10051_v18  ;;  %v8504_v17 = vpack.c.bf16 %v7370_v16, %v7369_v15  ;;  %v7387_v18 = vld [vmem:[%s13514_s3 + $0xb0] sm:$0xff] }
 0x3a5   :  { %7293 = vmatprep.subr.bf16.mxu0 %v10054_v19  ;;  %v7388_v19 = vld [vmem:[%s13514_s3 + $0xb8] sm:$0xff] }
 0x3a7   :  { %6649 = vmatpush1.bf16.msra.mxu1 %v10049_v20  ;;  %v8506_v20 = vpack.c.bf16 %v7388_v19, %v7387_v18 }
 0x3a8   :  { %7294 = vmatpush1.bf16.msra.mxu0 %v10052_v21  ;;  %6650 = vmatprep.subr.bf16.mxu1 %v10057_v22  ;;  %v7371_v21 = vld [vmem:[%s13514_s3 + $0x30] sm:$0xff]  ;;  %v7372_v22 = vld [vmem:[%s13514_s3 + $0x38] sm:$0xff] }
 0x3a9   :  { %7295 = vmatprep.subr.bf16.mxu0 %v10060_v23  ;;  %v8508_v23 = vpack.c.bf16 %v7372_v22, %v7371_v21 }
 0x3ab   :  { %6651 = vmatpush1.bf16.msra.mxu1 %v10055_v24  ;;  %v7389_v24 = vld [vmem:[%s13514_s3 + $0xc0] sm:$0xff] }
 0x3ac   :  { %7296 = vmatpush1.bf16.msra.mxu0 %v10058_v25  ;;  %6652 = vmatprep.subr.bf16.mxu1 %v10063_v26  ;;  %v7390_v25 = vld [vmem:[%s13514_s3 + $0xc8] sm:$0xff]  ;;  %v7373_v26 = vld [vmem:[%s13514_s3 + $0x40] sm:$0xff] }
 0x3ad   :  { %7297 = vmatprep.subr.bf16.mxu0 %v10066_v27  ;;  %v8510_v27 = vpack.c.bf16 %v7390_v25, %v7389_v24 }
 0x3af   :  { %6653 = vmatpush1.bf16.msra.mxu1 %v10061_v28  ;;  %v7374_v28 = vld [vmem:[%s13514_s3 + $0x48] sm:$0xff] }
 0x3b0   :  { %7298 = vmatpush1.bf16.msra.mxu0 %v10064_v29  ;;  %6654 = vmatprep.subr.bf16.mxu1 %v10069_v30  ;;  %v7391_v29 = vld [vmem:[%s13514_s3 + $0xd0] sm:$0xff]  ;;  %v7392_v30 = vld [vmem:[%s13514_s3 + $0xd8] sm:$0xff] }
 0x3b1   :  { %7299 = vmatprep.subr.bf16.mxu0 %v10072_v31  ;;  %v8512_v31 = vpack.c.bf16 %v7374_v28, %v7373_v26 }
 0x3b3   :  { %6655 = vmatpush1.bf16.msra.mxu1 %v10067_v32  ;;  %v8514_v32 = vpack.c.bf16 %v7392_v30, %v7391_v29 }
 0x3b4   :  { %7300 = vmatpush1.bf16.msra.mxu0 %v10070_v33  ;;  %6656 = vmatprep.subr.bf16.mxu1 %v10075_v34  ;;  %v7375_v33 = vld [vmem:[%s13514_s3 + $0x50] sm:$0xff]  ;;  %v7376_v34 = vld [vmem:[%s13514_s3 + $0x58] sm:$0xff] }
 0x3b5   :  { %7301 = vmatprep.subr.bf16.mxu0 %v10078_v35  ;;  %v7393_v35 = vld [vmem:[%s13514_s3 + $0xe0] sm:$0xff] }
 0x3b7   :  { %6657 = vmatpush1.bf16.msra.mxu1 %v10073_v36  ;;  %v7394_v36 = vld [vmem:[%s13514_s3 + $0xe8] sm:$0xff] }
 0x3b8   :  { %7302 = vmatpush1.bf16.msra.mxu0 %v10076_v37  ;;  %6658 = vmatprep.subr.bf16.mxu1 %v10081_v38  ;;  %v8516_v37 = vpack.c.bf16 %v7376_v34, %v7375_v33  ;;  %v8518_v38 = vpack.c.bf16 %v7394_v36, %v7393_v35 }
 0x3b9   :  { %7303 = vmatprep.subr.bf16.mxu0 %v10084_v39  ;;  %v7377_v39 = vld [vmem:[%s13514_s3 + $0x60] sm:$0xff] }
 0x3bb   :  { %6659 = vmatpush1.bf16.msra.mxu1 %v10079_v40  ;;  %v7378_v40 = vld [vmem:[%s13514_s3 + $0x68] sm:$0xff] }
 0x3bc   :  { %7304 = vmatpush1.bf16.msra.mxu0 %v10082_v41  ;;  %6660 = vmatprep.subr.bf16.mxu1 %v10087_v42  ;;  %v8520_v41 = vpack.c.bf16 %v7378_v40, %v7377_v39  ;;  %v7395_v42 = vld [vmem:[%s13514_s3 + $0xf0] sm:$0xff] }
 0x3bd   :  { %7305 = vmatprep.subr.bf16.mxu0 %v10090_v43  ;;  %v7396_v43 = vld [vmem:[%s13514_s3 + $0xf8] sm:$0xff] }
 0x3be   :  { %v8522_v44 = vpack.c.bf16 %v7396_v43, %v7395_v42 }
 0x3bf   :  { %6661 = vmatpush1.bf16.msra.mxu1 %v10085_v46  ;;  %v7380_v46 = vld [vmem:[%s13514_s3 + $0x78] sm:$0xff] }
 0x3c0   :  { %7306 = vmatpush1.bf16.msra.mxu0 %v10088_v47  ;;  %8495 = vmatprep.subr.bf16.mxu1 %v8494_v53  ;;  %v8524_v47 = vpack.c.bf16 %v7380_v46, %v7379_v45 }
 0x3c1   :  { %7318 = vmatprep.subr.bf16.mxu0 %v10093_v52  ;;  %v1175_v52 = vshrl.u32 %v1174_v48, 7 }
 0x3c2   :  { %6663 = vmatmul.mubr.bf16.vlgmr.msra.gmra.mrb[0].mxu1 %v171_v56 }
 0x3c3   :  { %7308 = vmatmul.mubr.bf16.vlgmr.msra.gmra.mrb[0].mxu0 %v201_v57  ;;  %8497 = vmatpush3.bf16.msra.mxu1 %v8496_v62  ;;  %v1176_v54 = vsub.s32 0, %v1175_v52  ;;  %v1180_v56 = vsub.s32 1, %v1175_v52 }
 0x3c4   :  { %7319 = vmatpush1.bf16.msra.mxu0 %v10091_v60  ;;  %7350 = vmatprep.mubr.bf16.mxu0 %v10103_v5 }
 0x3c5   :  { %7320 = vmatprep.subr.bf16.mxu0 %v10096_v61  ;;  %8499 = vmatprep.subr.bf16.mxu1 %v8498_v63  ;;  %v1177_v57 = vrot.slane %v1172_v55, %v1176_v54  ;;  %v1181_v58 = vrot.slane %v1172_v55, %v1180_v56 }
 0x3c7   :  { %8501 = vmatpush3.bf16.msra.mxu1 %v8500_v7 }
 0x3c8   :  { %7321 = vmatpush1.bf16.msra.mxu0 %v10094_v4  ;;  %8503 = vmatprep.subr.bf16.mxu1 %v8502_v8 }
 0x3c9   :  { %7322 = vmatprep.subr.bf16.mxu0 %v10099_v6 }
 0x3cb   :  { %8505 = vmatpush3.bf16.msra.mxu1 %v8504_v17 }
 0x3cc   :  { %7323 = vmatpush1.bf16.msra.mxu0 %v10097_v9  ;;  %8507 = vmatprep.subr.bf16.mxu1 %v8506_v20 }
 0x3cd   :  { %7324 = vmatprep.subr.bf16.mxu0 %v10102_v10 }
 0x3cf   :  { %8509 = vmatpush3.bf16.msra.mxu1 %v8508_v23 }
 0x3d0   :  { %7325 = vmatpush1.bf16.msra.mxu0 %v10100_v11  ;;  %8511 = vmatprep.subr.bf16.mxu1 %v8510_v27 }
 0x3d3   :  { %8454 = vmatmul.mubr.msk.bf16.vlgmr.msra.gmra.mrb[0].mxu0 %vm6024_vm0, %v203_v14  ;;  %8513 = vmatpush3.bf16.msra.mxu1 %v8512_v31 }
 0x3d4   :  { %8515 = vmatprep.subr.bf16.mxu1 %v8514_v32 }
 0x3d7   :  { %8517 = vmatpush3.bf16.msra.mxu1 %v8516_v37 }
 0x3d8   :  { %8519 = vmatprep.subr.bf16.mxu1 %v8518_v38 }
 0x3db   :  { %8521 = vmatpush3.bf16.msra.mxu1 %v8520_v41 }
 0x3dc   :  { %8523 = vmatprep.subr.bf16.mxu1 %v8522_v44 }
 0x3df   :  { %8525 = vmatpush3.bf16.msra.mxu1 %v8524_v47 }
 0x495   :  { %v6664_v49 = vpop.f32.mrb[0].mxu1 }
 0x496   :  { %v6666_v50 = vpop.f32.mrb[1].mxu1  ;;  %v8526_v59 = vadd.f32 %v6664_v49, %v1177_v57 }
 0x497   :  { %v6668_v51 = vpop.f32.mrb[2].mxu1  ;;  %v8528_v60 = vadd.f32 %v6666_v50, %v1181_v58 }
 0x498   :  { %v6670_v53 = vpop.f32.mrb[3].mxu1  ;;  %v8530_v62 = vadd.f32 %v6668_v51, %v1177_v57 }
 0x499   :  { %v8532_v1 = vadd.f32 %v6670_v53, %v1181_v58 }
 0x4a6   :  { %v7352_v61 = vpop.f32.mrb[0].mxu0 }
 0x4a7   :  { %v8527_v63 = vadd.f32 %v8526_v59, %v7352_v61  ;;  %v7354_v0 = vpop.f32.mrb[1].mxu0 }
 0x4a8   :  { %v8529_v2 = vadd.f32 %v8528_v60, %v7354_v0  ;;  %v7356_v3 = vpop.f32.mrb[2].mxu0 }
 0x4a9   :  { %v8531_v4 = vadd.f32 %v8530_v62, %v7356_v3  ;;  %v7358_v5 = vpop.f32.mrb[3].mxu0  ;;  %v7361_v8 = vmax.f32 %v8527_v63, 0.0 }
 0x4aa   :  { %v7362_v6 = vmax.f32 %v8529_v2, 0.0  ;;  %v8533_v7 = vadd.f32 %v8532_v1, %v7358_v5 }
 0x4ab   :  { %v7363_v10 = vmax.f32 %v8531_v4, 0.0 }
 0x4ac   :  { %v7364_v9 = vmax.f32 %v8533_v7, 0.0  ;;  %7468 = vmatprep.mubr.f32.mxu1 %v7362_v6 }
 0x4ad   :  { %7469 = vmatmul.mubr.f32.vlgmr.msra.gmra.mrb[4].mxu1 %v7361_v8 }
 0x4ae   :  { %7473 = vmatprep.mubr.f32.mxu1 %v7364_v9 }
 0x4b1   :  { %7474 = vmatmul.mubr.f32.gmra.mrb[6].mxu1 %v7363_v10 }
 0x580   :  { %v8488_v11 = vpop.f32.mrb[4].mxu1 }
 0x581   :  { %v8489_v13 = vpop.f32.mrb[5].mxu1 }
 0x582   :  { %v8490_v14 = vadd.f32 %v8489_v13, %v8488_v11 }
 0x584   :  { %v7471_v15 = vadd.f32 %v8490_v14, %v8455_v12  ;;  %v8491_v16 = vpop.f32.mrb[6].mxu1 }
 0x585   :  { %v8492_v17 = vpop.f32.mrb[7].mxu1 }
 0x586   :  { %7480 = vst.msk [vmem:[%s13517_s5] sm:$0xff] %vm7479_vm1, %v7471_v15  ;;  %v8493_v18 = vadd.f32 %v8492_v17, %v8491_v16 }
 0x588   :  { %v7476_v19 = vadd.f32 %v8493_v18, %v8455_v12 }
 0x58a   :  { %7481 = vst.msk [vmem:[%s13517_s5 + $0x8] sm:$0xff] %vm7479_vm1, %v7476_v19 }

</bundles_post_ra>
